<compile_context>
chip_gen: v7x
topology: tpu7x:2x2x1
jax: 0.10.0
libtpu: 0.0.40
codegen_flags: <defaults>
</compile_context>

<pallas_src>
import jax
import jax.numpy as jnp
from jax.experimental import pallas as pl
from jax.experimental.pallas import tpu as pltpu

MLP_HIDDEN = 2048          # fixed hidden size of the PyTorch module
NEG_PAD = -1e30            # bias for padded vocab columns (drops out of softmax)


def _round_up(x, m):
    return (x + m - 1) // m * m


def _device_defaults():
    """Generation-aware tile sizes and VMEM limit.

    v7x-class cores have 64 MiB VMEM and 2 TensorCores per chip; v5e/v6e have
    128 MiB and a single core, so they can run with larger tiles and a higher
    scoped-VMEM limit.
    """
    vmem_cap = 128 * 1024 * 1024
    try:
        vmem_cap = int(pltpu.get_tpu_info().vmem_capacity_bytes)
    except Exception:
        pass
    if vmem_cap <= 64 * 1024 * 1024:      # v7x-class TensorCore
        return dict(tm=512, tn=512, vmem_limit=40 * 1024 * 1024, multi_core=True)
    # v5e / v6e
    return dict(tm=1024, tn=1024, vmem_limit=96 * 1024 * 1024, multi_core=False)


# ----------------------------- fused kernel ----------------------------------

def _make_fused_kernel(emit_logits):
    def kernel(x_ref, mask_ref, labels_ref, active_ref,
               w1_ref, b1_ref, w2_ref, b2_ref, *outs_and_scratch):
        # x_ref:  (TM, H) bf16      mask: (TM,1) bf16   labels: (TM,1) i32
        # active: (TM,1) f32        w1: (H,2048) bf16   b1: (1,2048) f32
        # w2:     (2048, TN) bf16   b2: (1, TN) f32
        if emit_logits:
            (logits_ref, tokloss_ref, h_scr, m_scr, l_scr, p_scr) = outs_and_scratch
        else:
            (tokloss_ref, h_scr, m_scr, l_scr, p_scr) = outs_and_scratch
            logits_ref = None

        j = pl.program_id(1)
        nj = pl.num_programs(1)
        tn = w2_ref.shape[1]

        @pl.when(j == 0)
        def _init():
            # First matmul + ReLU, once per token tile.  Mask is 0/1 so the
            # bf16 multiply is exact; accumulate in f32.
            xm = x_ref[...] * mask_ref[...]
            h = jnp.dot(xm, w1_ref[...],
                        preferred_element_type=jnp.float32) + b1_ref[...]
            h_scr[...] = jnp.maximum(h, 0.0).astype(jnp.bfloat16)
            # online-softmax state for the fused CE
            m_scr[...] = jnp.full_like(m_scr, -jnp.inf)
            l_scr[...] = jnp.zeros_like(l_scr)
            p_scr[...] = jnp.zeros_like(p_scr)

        # Second matmul: one vocab tile of logits (f32 accumulation).
        logits = jnp.dot(h_scr[...], w2_ref[...],
                         preferred_element_type=jnp.float32) + b2_ref[...]
        if emit_logits:
            logits_ref[...] = logits.astype(logits_ref.dtype)

        # Online log-sum-exp over vocab tiles (f32).
        m_prev = m_scr[...]
        m_new = jnp.maximum(m_prev, jnp.max(logits, axis=-1, keepdims=True))
        alpha = jnp.exp(m_prev - m_new)
        l_scr[...] = alpha * l_scr[...] + jnp.sum(jnp.exp(logits - m_new),
                                                  axis=-1, keepdims=True)
        m_scr[...] = m_new

        # Label gather for this vocab tile: static iota, per-row shifted label.
        col = jax.lax.broadcasted_iota(jnp.int32, logits.shape, 1)
        local_label = labels_ref[...] - j * tn
        p_scr[...] += jnp.sum(jnp.where(col == local_label, logits, 0.0),
                              axis=-1, keepdims=True)

        @pl.when(j == nj - 1)
        def _finalize():
            lse = m_scr[...] + jnp.log(l_scr[...])
            tokloss_ref[...] = (lse - p_scr[...]) * active_ref[...]

    return kernel


# ----------------------------- wrapper ----------------------------------------

def inversion_mlp_forward(x, w1, b1, w2, b2, labels=None, attention_mask=None,
                          tm=None, tn=None, return_logits=True):
    """Mirror of InversionMLP.forward: returns (logits, loss).

    return_logits=False (only valid when labels is given) skips the (N, V)
    logits writeback entirely and returns (None, loss).
    """
    bsz, seq_len, hid = x.shape
    mlp_h = w1.shape[1]
    vocab = w2.shape[1]
    n_tok = bsz * seq_len

    defaults = _device_defaults()
    tm = defaults["tm"] if tm is None else tm
    tn = defaults["tn"] if tn is None else tn
    vmem_limit = defaults["vmem_limit"]
    multi_core = defaults["multi_core"]

    # Tile sizes: lane-dense (multiples of 128), clamped to the padded problem.
    tn = min(tn, _round_up(vocab, 128))
    n_min = _round_up(n_tok, 128)
    tm = min(tm, n_min)
    # v7x shards the "parallel" grid axis over 2 TensorCores: keep >= 2 tiles.
    if multi_core and n_min >= 256 and n_min // tm < 2:
        tm = max(128, (n_min // 2) // 128 * 128)
    n_pad = _round_up(n_tok, tm)
    v_pad = _round_up(vocab, tn)

    emit_logits = return_logits or labels is None

    # ---- token-level inputs (pad token axis); x / mask in bf16 ----
    x_flat = jnp.pad(x.reshape(n_tok, hid).astype(jnp.bfloat16),
                     ((0, n_pad - n_tok), (0, 0)))

    if attention_mask is None:
        mask_tok = jnp.ones((n_tok, 1), jnp.float32)
    else:
        mask_tok = attention_mask.reshape(n_tok, 1).astype(jnp.float32)
    mask_flat = jnp.pad(mask_tok, ((0, n_pad - n_tok), (0, 0))).astype(jnp.bfloat16)

    if labels is None:
        labels_flat = jnp.zeros((n_pad, 1), jnp.int32)
        active_flat = jnp.zeros((n_pad, 1), jnp.float32)
    else:
        labels_tok = labels.reshape(n_tok, 1).astype(jnp.int32)
        # CrossEntropyLoss(ignore_index=-100): active = in-mask AND label != -100
        active_tok = (labels_tok != -100).astype(jnp.float32) * mask_tok
        labels_flat = jnp.pad(labels_tok, ((0, n_pad - n_tok), (0, 0)))
        active_flat = jnp.pad(active_tok, ((0, n_pad - n_tok), (0, 0)))

    # ---- weights: bf16 into the MXU, f32 biases, vocab padded lane-dense ----
    w1_b = w1.astype(jnp.bfloat16)
    b1_r = b1.reshape(1, -1).astype(jnp.float32)
    w2_b = jnp.pad(w2.astype(jnp.bfloat16), ((0, 0), (0, v_pad - vocab)))
    b2_r = jnp.pad(b2.reshape(1, -1).astype(jnp.float32),
                   ((0, 0), (0, v_pad - vocab)), constant_values=NEG_PAD)

    grid = (n_pad // tm, v_pad // tn)

    logits_bytes = n_pad * v_pad * 2 if emit_logits else 0
    cost = pl.CostEstimate(
        flops=2 * n_pad * (hid * mlp_h + mlp_h * v_pad),
        transcendentals=n_pad * v_pad,          # exp in fused CE
        bytes_accessed=(x_flat.size * 2 + w1_b.size * 2 + b1_r.size * 4
                        + grid[0] * (w2_b.size * 2 + b2_r.size * 4)
                        + logits_bytes + n_pad * 4),
    )

    def run(single_buffer_consts):
        # Inputs whose block does not change across the vocab axis: a single
        # VMEM buffer is enough (they are only re-fetched when i changes).
        def const_spec(shape, index_map):
            if single_buffer_consts:
                return pl.BlockSpec(shape, index_map,
                                    pipeline_mode=pl.Buffered(1))
            return pl.BlockSpec(shape, index_map)

        in_specs = [
            const_spec((tm, hid), lambda i, j: (i, 0)),       # x
            const_spec((tm, 1), lambda i, j: (i, 0)),         # mask
            const_spec((tm, 1), lambda i, j: (i, 0)),         # labels
            const_spec((tm, 1), lambda i, j: (i, 0)),         # active
            const_spec((hid, mlp_h), lambda i, j: (0, 0)),    # w1 (grid-constant)
            const_spec((1, mlp_h), lambda i, j: (0, 0)),      # b1
            pl.BlockSpec((mlp_h, tn), lambda i, j: (0, j)),   # w2 (streamed)
            pl.BlockSpec((1, tn), lambda i, j: (0, j)),       # b2
        ]
        if emit_logits:
            out_shape = (jax.ShapeDtypeStruct((n_pad, v_pad), jnp.bfloat16),
                         jax.ShapeDtypeStruct((n_pad, 1), jnp.float32))
            out_specs = [pl.BlockSpec((tm, tn), lambda i, j: (i, j)),   # logits
                         pl.BlockSpec((tm, 1), lambda i, j: (i, 0))]    # tok loss
        else:
            out_shape = jax.ShapeDtypeStruct((n_pad, 1), jnp.float32)
            out_specs = pl.BlockSpec((tm, 1), lambda i, j: (i, 0))

        return pl.pallas_call(
            _make_fused_kernel(emit_logits),
            out_shape=out_shape,
            grid_spec=pltpu.PrefetchScalarGridSpec(
                num_scalar_prefetch=0,
                grid=grid,
                in_specs=in_specs,
                out_specs=out_specs,
                scratch_shapes=[
                    pltpu.VMEM((tm, mlp_h), jnp.bfloat16),    # h (ReLU out)
                    pltpu.VMEM((tm, 1), jnp.float32),         # m (running max)
                    pltpu.VMEM((tm, 1), jnp.float32),         # l (running sum)
                    pltpu.VMEM((tm, 1), jnp.float32),         # picked logit
                ]),
            compiler_params=pltpu.CompilerParams(
                dimension_semantics=("parallel", "arbitrary"),
                vmem_limit_bytes=vmem_limit),
            cost_estimate=cost,
        )(x_flat, mask_flat, labels_flat, active_flat, w1_b, b1_r, w2_b, b2_r)

    try:
        outs = run(single_buffer_consts=True)
    except Exception:
        # Fallback for jax versions without BlockSpec(pipeline_mode=Buffered(1)).
        outs = run(single_buffer_consts=False)

    if emit_logits:
        logits_pad, tokloss = outs
        logits = logits_pad[:n_tok, :vocab].astype(jnp.float32).reshape(
            bsz, seq_len, vocab)
    else:
        tokloss = outs
        logits = None

    loss = None
    if labels is not None:
        count = jnp.sum(active_flat)
        # mean over active tokens; guard the all-masked case (PyTorch would NaN)
        loss = jnp.sum(tokloss) / jnp.maximum(count, 1.0)
    return logits, loss


# ----------------------------- reference (pure JAX, f32) ----------------------

def reference_forward(x, w1, b1, w2, b2, labels, attention_mask):
    xm = x * attention_mask[:, :, None].astype(x.dtype)
    h = jnp.maximum(xm @ w1 + b1, 0.0)
    logits = h @ w2 + b2
    lf = logits.reshape(-1, logits.shape[-1])
    lab = labels.reshape(-1)
    act = ((attention_mask.reshape(-1) == 1) & (lab != -100)).astype(jnp.float32)
    lse = jax.nn.logsumexp(lf, axis=-1)
    picked = jnp.take_along_axis(lf, jnp.maximum(lab, 0)[:, None], axis=-1)[:, 0]
    per_tok = lse - picked
    loss = jnp.sum(per_tok * act) / jnp.maximum(jnp.sum(act), 1.0)
    return logits, loss


# ----------------------------- main -------------------------------------------

if __name__ == "__main__":
    # small config consistent with the module:
    #   config.hidden_size -> input_size, fixed MLP hidden = 2048, config.vocab_size
    bsz, seq_len, input_size = 2, 8, 32
    hidden_size = MLP_HIDDEN
    vocab_size = 64

    key = jax.random.PRNGKey(0)
    k_x, k_w1, k_b1, k_w2, k_b2, k_lab = jax.random.split(key, 6)

    x = jax.random.normal(k_x, (bsz, seq_len, input_size), jnp.float32)
    w1 = jax.random.normal(k_w1, (input_size, hidden_size), jnp.float32) * 0.02
    b1 = jax.random.normal(k_b1, (hidden_size,), jnp.float32) * 0.02
    w2 = jax.random.normal(k_w2, (hidden_size, vocab_size), jnp.float32) * 0.02
    b2 = jax.random.normal(k_b2, (vocab_size,), jnp.float32) * 0.02
    labels = jax.random.randint(k_lab, (bsz, seq_len), 0, vocab_size, jnp.int32)
    # deterministic attention mask with padding at the end of each row
    attention_mask = jnp.concatenate(
        [jnp.ones((bsz, seq_len - 2), jnp.int32), jnp.zeros((bsz, 2), jnp.int32)],
        axis=1,
    )

    logits, loss = inversion_mlp_forward(
        x, w1, b1, w2, b2, labels=labels, attention_mask=attention_mask
    )
    jax.block_until_ready((logits, loss))

    ref_logits, ref_loss = reference_forward(
        x, w1, b1, w2, b2, labels, attention_mask
    )
    assert logits.shape == (bsz, seq_len, vocab_size)
    assert bool(jnp.isfinite(loss))
    assert jnp.allclose(logits, ref_logits, rtol=2e-2, atol=2e-2)
    assert jnp.allclose(loss, ref_loss, rtol=2e-2, atol=2e-2)

    # loss-only variant: skips the (N, V) logits writeback entirely
    logits_none, loss_only = inversion_mlp_forward(
        x, w1, b1, w2, b2, labels=labels, attention_mask=attention_mask,
        return_logits=False
    )
    jax.block_until_ready(loss_only)
    assert logits_none is None
    assert jnp.allclose(loss_only, ref_loss, rtol=2e-2, atol=2e-2)

    print("KERNEL_OK")
</pallas_src>

<mosaic_0001>
module attributes {stable_mosaic.version = 11 : i64} {
  func.func @kernel(%arg0: i32, %arg1: i32, %arg2: memref<128x32xbf16, #tpu.memory_space<vmem>>, %arg3: memref<128x1xbf16, #tpu.memory_space<vmem>>, %arg4: memref<128x1xi32, #tpu.memory_space<vmem>>, %arg5: memref<128x1xf32, #tpu.memory_space<vmem>>, %arg6: memref<32x2048xbf16, #tpu.memory_space<vmem>>, %arg7: memref<1x2048xf32, #tpu.memory_space<vmem>>, %arg8: memref<2048x128xbf16, #tpu.memory_space<vmem>>, %arg9: memref<1x128xf32, #tpu.memory_space<vmem>>, %arg10: memref<128x128xbf16, #tpu.memory_space<vmem>>, %arg11: memref<128x1xf32, #tpu.memory_space<vmem>>, %arg12: memref<128x2048xbf16, #tpu.memory_space<vmem>>, %arg13: memref<128x1xf32, #tpu.memory_space<vmem>>, %arg14: memref<128x1xf32, #tpu.memory_space<vmem>>, %arg15: memref<128x1xf32, #tpu.memory_space<vmem>>) attributes {dimension_semantics = [#tpu.dimension_semantics<parallel>, #tpu.dimension_semantics<arbitrary>], iteration_bounds = array<i64: 1, 1>, scalar_prefetch = 0 : i64, scratch_operands = 4 : i64, tpu.core_type = #tpu.core_type<tc>, window_params = [{pipeline_mode = #tpu.pipeline_mode<synchronous>, transform_indices = @transform_0, window_bounds = array<i64: 128, 32>}, {pipeline_mode = #tpu.pipeline_mode<synchronous>, transform_indices = @transform_1, window_bounds = array<i64: 128, 1>}, {pipeline_mode = #tpu.pipeline_mode<synchronous>, transform_indices = @transform_2, window_bounds = array<i64: 128, 1>}, {pipeline_mode = #tpu.pipeline_mode<synchronous>, transform_indices = @transform_3, window_bounds = array<i64: 128, 1>}, {pipeline_mode = #tpu.pipeline_mode<synchronous>, transform_indices = @transform_4, window_bounds = array<i64: 32, 2048>}, {pipeline_mode = #tpu.pipeline_mode<synchronous>, transform_indices = @transform_5, window_bounds = array<i64: 1, 2048>}, {transform_indices = @transform_6, window_bounds = array<i64: 2048, 128>}, {transform_indices = @transform_7, window_bounds = array<i64: 1, 128>}, {transform_indices = @transform_8, window_bounds = array<i64: 128, 128>}, {transform_indices = @transform_9, window_bounds = array<i64: 128, 1>}]} {
    %c0_i32 = arith.constant 0 : i32
    %0 = arith.cmpi eq, %arg1, %c0_i32 : i32
    %1 = arith.extui %0 : i1 to i32
    %c0_i32_0 = arith.constant 0 : i32
    %2 = arith.cmpi ne, %1, %c0_i32_0 : i32
    scf.if %2 {
      %c0_28 = arith.constant 0 : index
      %c0_29 = arith.constant 0 : index
      %44 = vector.load %arg2[%c0_28, %c0_29] : memref<128x32xbf16, #tpu.memory_space<vmem>>, vector<128x32xbf16>
      %c0_30 = arith.constant 0 : index
      %c0_31 = arith.constant 0 : index
      %45 = vector.load %arg3[%c0_30, %c0_31] : memref<128x1xbf16, #tpu.memory_space<vmem>>, vector<128x1xbf16>
      %46 = vector.broadcast %45 : vector<128x1xbf16> to vector<128x32xbf16>
      %47 = arith.mulf %44, %46 : vector<128x32xbf16>
      %c0_32 = arith.constant 0 : index
      %c0_33 = arith.constant 0 : index
      %48 = vector.load %arg6[%c0_32, %c0_33] : memref<32x2048xbf16, #tpu.memory_space<vmem>>, vector<32x2048xbf16>
      %cst_34 = arith.constant dense<0.000000e+00> : vector<128x2048xf32>
      %49 = tpu.matmul %47, %48, %cst_34 {dimension_numbers = #tpu.dot_dimension_numbers<[1], [0], [0], [1], [0, 0, 1, 1], [], []>} : vector<128x32xbf16>, vector<32x2048xbf16>, vector<128x2048xf32> -> vector<128x2048xf32>
      %c0_35 = arith.constant 0 : index
      %c0_36 = arith.constant 0 : index
      %50 = vector.load %arg7[%c0_35, %c0_36] : memref<1x2048xf32, #tpu.memory_space<vmem>>, vector<1x2048xf32>
      %51 = vector.broadcast %50 : vector<1x2048xf32> to vector<128x2048xf32>
      %52 = arith.addf %49, %51 : vector<128x2048xf32>
      %cst_37 = arith.constant 0.000000e+00 : f32
      %53 = vector.broadcast %cst_37 : f32 to vector<128x2048xf32>
      %54 = arith.maximumf %52, %53 : vector<128x2048xf32>
      %55 = arith.truncf %54 : vector<128x2048xf32> to vector<128x2048xbf16>
      %c0_38 = arith.constant 0 : index
      %c0_39 = arith.constant 0 : index
      %56 = vector.load %arg12[%c0_38, %c0_39] : memref<128x2048xbf16, #tpu.memory_space<vmem>>, vector<128x2048xbf16>
      tpu.vector_store %arg12[%c0_38, %c0_39], %55 {strides = array<i32>} : memref<128x2048xbf16, #tpu.memory_space<vmem>>, vector<128x2048xbf16>,
      %cst_40 = arith.constant 0xFF800000 : f32
      %57 = vector.broadcast %cst_40 : f32 to vector<128x1xf32>
      %c0_41 = arith.constant 0 : index
      %c0_42 = arith.constant 0 : index
      %58 = vector.load %arg13[%c0_41, %c0_42] : memref<128x1xf32, #tpu.memory_space<vmem>>, vector<128x1xf32>
      tpu.vector_store %arg13[%c0_41, %c0_42], %57 {strides = array<i32>} : memref<128x1xf32, #tpu.memory_space<vmem>>, vector<128x1xf32>,
      %cst_43 = arith.constant 0.000000e+00 : f32
      %59 = vector.broadcast %cst_43 : f32 to vector<128x1xf32>
      %c0_44 = arith.constant 0 : index
      %c0_45 = arith.constant 0 : index
      %60 = vector.load %arg14[%c0_44, %c0_45] : memref<128x1xf32, #tpu.memory_space<vmem>>, vector<128x1xf32>
      tpu.vector_store %arg14[%c0_44, %c0_45], %59 {strides = array<i32>} : memref<128x1xf32, #tpu.memory_space<vmem>>, vector<128x1xf32>,
      %cst_46 = arith.constant 0.000000e+00 : f32
      %61 = vector.broadcast %cst_46 : f32 to vector<128x1xf32>
      %c0_47 = arith.constant 0 : index
      %c0_48 = arith.constant 0 : index
      %62 = vector.load %arg15[%c0_47, %c0_48] : memref<128x1xf32, #tpu.memory_space<vmem>>, vector<128x1xf32>
      tpu.vector_store %arg15[%c0_47, %c0_48], %61 {strides = array<i32>} : memref<128x1xf32, #tpu.memory_space<vmem>>, vector<128x1xf32>,
    } else {
    }
    %c0 = arith.constant 0 : index
    %c0_1 = arith.constant 0 : index
    %3 = vector.load %arg12[%c0, %c0_1] : memref<128x2048xbf16, #tpu.memory_space<vmem>>, vector<128x2048xbf16>
    %c0_2 = arith.constant 0 : index
    %c0_3 = arith.constant 0 : index
    %4 = vector.load %arg8[%c0_2, %c0_3] : memref<2048x128xbf16, #tpu.memory_space<vmem>>, vector<2048x128xbf16>
    %cst = arith.constant dense<0.000000e+00> : vector<128x128xf32>
    %5 = tpu.matmul %3, %4, %cst {dimension_numbers = #tpu.dot_dimension_numbers<[1], [0], [0], [1], [0, 0, 1, 1], [], []>} : vector<128x2048xbf16>, vector<2048x128xbf16>, vector<128x128xf32> -> vector<128x128xf32>
    %c0_4 = arith.constant 0 : index
    %c0_5 = arith.constant 0 : index
    %6 = vector.load %arg9[%c0_4, %c0_5] : memref<1x128xf32, #tpu.memory_space<vmem>>, vector<1x128xf32>
    %7 = vector.broadcast %6 : vector<1x128xf32> to vector<128x128xf32>
    %8 = arith.addf %5, %7 : vector<128x128xf32>
    %9 = arith.truncf %8 : vector<128x128xf32> to vector<128x128xbf16>
    %c0_6 = arith.constant 0 : index
    %c0_7 = arith.constant 0 : index
    %10 = vector.load %arg10[%c0_6, %c0_7] : memref<128x128xbf16, #tpu.memory_space<vmem>>, vector<128x128xbf16>
    tpu.vector_store %arg10[%c0_6, %c0_7], %9 {strides = array<i32>} : memref<128x128xbf16, #tpu.memory_space<vmem>>, vector<128x128xbf16>,
    %c0_8 = arith.constant 0 : index
    %c0_9 = arith.constant 0 : index
    %11 = vector.load %arg13[%c0_8, %c0_9] : memref<128x1xf32, #tpu.memory_space<vmem>>, vector<128x1xf32>
    %cst_10 = arith.constant dense<0xFF800000> : vector<128xf32>
    %12 = vector.multi_reduction <maximumf>, %8, %cst_10 [1] : vector<128x128xf32> to vector<128xf32>
    %13 = vector.shape_cast %12 : vector<128xf32> to vector<128x1xf32>
    %14 = arith.maximumf %11, %13 : vector<128x1xf32>
    %15 = arith.subf %11, %14 : vector<128x1xf32>
    %16 = math.exp %15 : vector<128x1xf32>
    %c0_11 = arith.constant 0 : index
    %c0_12 = arith.constant 0 : index
    %17 = vector.load %arg14[%c0_11, %c0_12] : memref<128x1xf32, #tpu.memory_space<vmem>>, vector<128x1xf32>
    %18 = arith.mulf %16, %17 : vector<128x1xf32>
    %19 = vector.broadcast %14 : vector<128x1xf32> to vector<128x128xf32>
    %20 = arith.subf %8, %19 : vector<128x128xf32>
    %21 = math.exp %20 : vector<128x128xf32>
    %cst_13 = arith.constant dense<0.000000e+00> : vector<128xf32>
    %22 = vector.multi_reduction <add>, %21, %cst_13 [1] : vector<128x128xf32> to vector<128xf32>
    %23 = vector.shape_cast %22 : vector<128xf32> to vector<128x1xf32>
    %24 = arith.addf %18, %23 : vector<128x1xf32>
    %c0_14 = arith.constant 0 : index
    %c0_15 = arith.constant 0 : index
    %25 = vector.load %arg14[%c0_14, %c0_15] : memref<128x1xf32, #tpu.memory_space<vmem>>, vector<128x1xf32>
    tpu.vector_store %arg14[%c0_14, %c0_15], %24 {strides = array<i32>} : memref<128x1xf32, #tpu.memory_space<vmem>>, vector<128x1xf32>,
    %c0_16 = arith.constant 0 : index
    %c0_17 = arith.constant 0 : index
    %26 = vector.load %arg13[%c0_16, %c0_17] : memref<128x1xf32, #tpu.memory_space<vmem>>, vector<128x1xf32>
    tpu.vector_store %arg13[%c0_16, %c0_17], %14 {strides = array<i32>} : memref<128x1xf32, #tpu.memory_space<vmem>>, vector<128x1xf32>,
    %27 = tpu.iota {dimensions = array<i32: 1>} : vector<128x128xi32>
    %c0_18 = arith.constant 0 : index
    %c0_19 = arith.constant 0 : index
    %28 = vector.load %arg4[%c0_18, %c0_19] : memref<128x1xi32, #tpu.memory_space<vmem>>, vector<128x1xi32>
    %c128_i32 = arith.constant 128 : i32
    %29 = arith.muli %arg1, %c128_i32 : i32
    %30 = vector.broadcast %29 : i32 to vector<128x1xi32>
    %31 = arith.subi %28, %30 : vector<128x1xi32>
    %c0_20 = arith.constant 0 : index
    %c0_21 = arith.constant 0 : index
    %32 = vector.load %arg15[%c0_20, %c0_21] : memref<128x1xf32, #tpu.memory_space<vmem>>, vector<128x1xf32>
    %33 = vector.broadcast %31 : vector<128x1xi32> to vector<128x128xi32>
    %34 = arith.cmpi eq, %27, %33 : vector<128x128xi32>
    %cst_22 = arith.constant 0.000000e+00 : f32
    %35 = vector.broadcast %cst_22 : f32 to vector<128x128xf32>
    %36 = arith.select %34, %8, %35 : vector<128x128xi1>, vector<128x128xf32>
    %cst_23 = arith.constant dense<0.000000e+00> : vector<128xf32>
    %37 = vector.multi_reduction <add>, %36, %cst_23 [1] : vector<128x128xf32> to vector<128xf32>
    %38 = vector.shape_cast %37 : vector<128xf32> to vector<128x1xf32>
    %39 = arith.addf %32, %38 : vector<128x1xf32>
    %c0_24 = arith.constant 0 : index
    %c0_25 = arith.constant 0 : index
    %40 = vector.load %arg15[%c0_24, %c0_25] : memref<128x1xf32, #tpu.memory_space<vmem>>, vector<128x1xf32>
    tpu.vector_store %arg15[%c0_24, %c0_25], %39 {strides = array<i32>} : memref<128x1xf32, #tpu.memory_space<vmem>>, vector<128x1xf32>,
    %c0_i32_26 = arith.constant 0 : i32
    %41 = arith.cmpi eq, %arg1, %c0_i32_26 : i32
    %42 = arith.extui %41 : i1 to i32
    %c0_i32_27 = arith.constant 0 : i32
    %43 = arith.cmpi ne, %42, %c0_i32_27 : i32
    scf.if %43 {
      %c0_28 = arith.constant 0 : index
      %c0_29 = arith.constant 0 : index
      %44 = vector.load %arg13[%c0_28, %c0_29] : memref<128x1xf32, #tpu.memory_space<vmem>>, vector<128x1xf32>
      %c0_30 = arith.constant 0 : index
      %c0_31 = arith.constant 0 : index
      %45 = vector.load %arg14[%c0_30, %c0_31] : memref<128x1xf32, #tpu.memory_space<vmem>>, vector<128x1xf32>
      %46 = math.log %45 : vector<128x1xf32>
      %47 = arith.addf %44, %46 : vector<128x1xf32>
      %c0_32 = arith.constant 0 : index
      %c0_33 = arith.constant 0 : index
      %48 = vector.load %arg15[%c0_32, %c0_33] : memref<128x1xf32, #tpu.memory_space<vmem>>, vector<128x1xf32>
      %49 = arith.subf %47, %48 : vector<128x1xf32>
      %c0_34 = arith.constant 0 : index
      %c0_35 = arith.constant 0 : index
      %50 = vector.load %arg5[%c0_34, %c0_35] : memref<128x1xf32, #tpu.memory_space<vmem>>, vector<128x1xf32>
      %51 = arith.mulf %49, %50 : vector<128x1xf32>
      %c0_36 = arith.constant 0 : index
      %c0_37 = arith.constant 0 : index
      %52 = vector.load %arg11[%c0_36, %c0_37] : memref<128x1xf32, #tpu.memory_space<vmem>>, vector<128x1xf32>
      tpu.vector_store %arg11[%c0_36, %c0_37], %51 {strides = array<i32>} : memref<128x1xf32, #tpu.memory_space<vmem>>, vector<128x1xf32>,
    } else {
    }
    return
  }
  func.func @transform_0(%arg0: i32, %arg1: i32) -> (i32, i32) {
    %c0_i32 = arith.constant 0 : i32
    %c0_i32_0 = arith.constant 0 : i32
    return %arg0, %c0_i32 : i32, i32
  }
  func.func @transform_1(%arg0: i32, %arg1: i32) -> (i32, i32) {
    %c0_i32 = arith.constant 0 : i32
    %c0_i32_0 = arith.constant 0 : i32
    return %arg0, %c0_i32 : i32, i32
  }
  func.func @transform_2(%arg0: i32, %arg1: i32) -> (i32, i32) {
    %c0_i32 = arith.constant 0 : i32
    %c0_i32_0 = arith.constant 0 : i32
    return %arg0, %c0_i32 : i32, i32
  }
  func.func @transform_3(%arg0: i32, %arg1: i32) -> (i32, i32) {
    %c0_i32 = arith.constant 0 : i32
    %c0_i32_0 = arith.constant 0 : i32
    return %arg0, %c0_i32 : i32, i32
  }
  func.func @transform_4(%arg0: i32, %arg1: i32) -> (i32, i32) {
    %c0_i32 = arith.constant 0 : i32
    %c0_i32_0 = arith.constant 0 : i32
    %c0_i32_1 = arith.constant 0 : i32
    return %c0_i32, %c0_i32_0 : i32, i32
  }
  func.func @transform_5(%arg0: i32, %arg1: i32) -> (i32, i32) {
    %c0_i32 = arith.constant 0 : i32
    %c0_i32_0 = arith.constant 0 : i32
    %c0_i32_1 = arith.constant 0 : i32
    return %c0_i32, %c0_i32_0 : i32, i32
  }
  func.func @transform_6(%arg0: i32, %arg1: i32) -> (i32, i32) {
    %c0_i32 = arith.constant 0 : i32
    %c0_i32_0 = arith.constant 0 : i32
    return %c0_i32, %arg1 : i32, i32
  }
  func.func @transform_7(%arg0: i32, %arg1: i32) -> (i32, i32) {
    %c0_i32 = arith.constant 0 : i32
    %c0_i32_0 = arith.constant 0 : i32
    return %c0_i32, %arg1 : i32, i32
  }
  func.func @transform_8(%arg0: i32, %arg1: i32) -> (i32, i32) {
    %c0_i32 = arith.constant 0 : i32
    return %arg0, %arg1 : i32, i32
  }
  func.func @transform_9(%arg0: i32, %arg1: i32) -> (i32, i32) {
    %c0_i32 = arith.constant 0 : i32
    %c0_i32_0 = arith.constant 0 : i32
    return %arg0, %c0_i32 : i32, i32
  }
}

module attributes {stable_mosaic.version = 11 : i64} {
  func.func @kernel(%arg0: i32, %arg1: i32, %arg2: memref<128x32xbf16, #tpu.memory_space<vmem>>, %arg3: memref<128x1xbf16, #tpu.memory_space<vmem>>, %arg4: memref<128x1xi32, #tpu.memory_space<vmem>>, %arg5: memref<128x1xf32, #tpu.memory_space<vmem>>, %arg6: memref<32x2048xbf16, #tpu.memory_space<vmem>>, %arg7: memref<1x2048xf32, #tpu.memory_space<vmem>>, %arg8: memref<2048x128xbf16, #tpu.memory_space<vmem>>, %arg9: memref<1x128xf32, #tpu.memory_space<vmem>>, %arg10: memref<128x128xbf16, #tpu.memory_space<vmem>>, %arg11: memref<128x1xf32, #tpu.memory_space<vmem>>, %arg12: memref<128x2048xbf16, #tpu.memory_space<vmem>>, %arg13: memref<128x1xf32, #tpu.memory_space<vmem>>, %arg14: memref<128x1xf32, #tpu.memory_space<vmem>>, %arg15: memref<128x1xf32, #tpu.memory_space<vmem>>) attributes {dimension_semantics = [#tpu.dimension_semantics<parallel>, #tpu.dimension_semantics<arbitrary>], iteration_bounds = array<i64: 1, 1>, scalar_prefetch = 0 : i64, scratch_operands = 4 : i64, tpu.core_type = #tpu.core_type<tc>, window_params = [{transform_indices = @transform_0, window_bounds = array<i64: 128, 32>}, {transform_indices = @transform_1, window_bounds = array<i64: 128, 1>}, {transform_indices = @transform_2, window_bounds = array<i64: 128, 1>}, {transform_indices = @transform_3, window_bounds = array<i64: 128, 1>}, {pipeline_mode = #tpu.pipeline_mode<synchronous>, transform_indices = @transform_4, window_bounds = array<i64: 32, 2048>}, {pipeline_mode = #tpu.pipeline_mode<synchronous>, transform_indices = @transform_5, window_bounds = array<i64: 1, 2048>}, {transform_indices = @transform_6, window_bounds = array<i64: 2048, 128>}, {transform_indices = @transform_7, window_bounds = array<i64: 1, 128>}, {transform_indices = @transform_8, window_bounds = array<i64: 128, 128>}, {transform_indices = @transform_9, window_bounds = array<i64: 128, 1>}]} {
    %c0_i32 = arith.constant 0 : i32
    %0 = arith.cmpi eq, %arg1, %c0_i32 : i32
    %1 = arith.extui %0 : i1 to i32
    %c0_i32_0 = arith.constant 0 : i32
    %2 = arith.cmpi ne, %1, %c0_i32_0 : i32
    scf.if %2 {
      %c0_28 = arith.constant 0 : index
      %c0_29 = arith.constant 0 : index
      %44 = vector.load %arg2[%c0_28, %c0_29] : memref<128x32xbf16, #tpu.memory_space<vmem>>, vector<128x32xbf16>
      %c0_30 = arith.constant 0 : index
      %c0_31 = arith.constant 0 : index
      %45 = vector.load %arg3[%c0_30, %c0_31] : memref<128x1xbf16, #tpu.memory_space<vmem>>, vector<128x1xbf16>
      %46 = vector.broadcast %45 : vector<128x1xbf16> to vector<128x32xbf16>
      %47 = arith.mulf %44, %46 : vector<128x32xbf16>
      %c0_32 = arith.constant 0 : index
      %c0_33 = arith.constant 0 : index
      %48 = vector.load %arg6[%c0_32, %c0_33] : memref<32x2048xbf16, #tpu.memory_space<vmem>>, vector<32x2048xbf16>
      %cst_34 = arith.constant dense<0.000000e+00> : vector<128x2048xf32>
      %49 = tpu.matmul %47, %48, %cst_34 {dimension_numbers = #tpu.dot_dimension_numbers<[1], [0], [0], [1], [0, 0, 1, 1], [], []>} : vector<128x32xbf16>, vector<32x2048xbf16>, vector<128x2048xf32> -> vector<128x2048xf32>
      %c0_35 = arith.constant 0 : index
      %c0_36 = arith.constant 0 : index
      %50 = vector.load %arg7[%c0_35, %c0_36] : memref<1x2048xf32, #tpu.memory_space<vmem>>, vector<1x2048xf32>
      %51 = vector.broadcast %50 : vector<1x2048xf32> to vector<128x2048xf32>
      %52 = arith.addf %49, %51 : vector<128x2048xf32>
      %cst_37 = arith.constant 0.000000e+00 : f32
      %53 = vector.broadcast %cst_37 : f32 to vector<128x2048xf32>
      %54 = arith.maximumf %52, %53 : vector<128x2048xf32>
      %55 = arith.truncf %54 : vector<128x2048xf32> to vector<128x2048xbf16>
      %c0_38 = arith.constant 0 : index
      %c0_39 = arith.constant 0 : index
      %56 = vector.load %arg12[%c0_38, %c0_39] : memref<128x2048xbf16, #tpu.memory_space<vmem>>, vector<128x2048xbf16>
      tpu.vector_store %arg12[%c0_38, %c0_39], %55 {strides = array<i32>} : memref<128x2048xbf16, #tpu.memory_space<vmem>>, vector<128x2048xbf16>,
      %cst_40 = arith.constant 0xFF800000 : f32
      %57 = vector.broadcast %cst_40 : f32 to vector<128x1xf32>
      %c0_41 = arith.constant 0 : index
      %c0_42 = arith.constant 0 : index
      %58 = vector.load %arg13[%c0_41, %c0_42] : memref<128x1xf32, #tpu.memory_space<vmem>>, vector<128x1xf32>
      tpu.vector_store %arg13[%c0_41, %c0_42], %57 {strides = array<i32>} : memref<128x1xf32, #tpu.memory_space<vmem>>, vector<128x1xf32>,
      %cst_43 = arith.constant 0.000000e+00 : f32
      %59 = vector.broadcast %cst_43 : f32 to vector<128x1xf32>
      %c0_44 = arith.constant 0 : index
      %c0_45 = arith.constant 0 : index
      %60 = vector.load %arg14[%c0_44, %c0_45] : memref<128x1xf32, #tpu.memory_space<vmem>>, vector<128x1xf32>
      tpu.vector_store %arg14[%c0_44, %c0_45], %59 {strides = array<i32>} : memref<128x1xf32, #tpu.memory_space<vmem>>, vector<128x1xf32>,
      %cst_46 = arith.constant 0.000000e+00 : f32
      %61 = vector.broadcast %cst_46 : f32 to vector<128x1xf32>
      %c0_47 = arith.constant 0 : index
      %c0_48 = arith.constant 0 : index
      %62 = vector.load %arg15[%c0_47, %c0_48] : memref<128x1xf32, #tpu.memory_space<vmem>>, vector<128x1xf32>
      tpu.vector_store %arg15[%c0_47, %c0_48], %61 {strides = array<i32>} : memref<128x1xf32, #tpu.memory_space<vmem>>, vector<128x1xf32>,
    } else {
    }
    %c0 = arith.constant 0 : index
    %c0_1 = arith.constant 0 : index
    %3 = vector.load %arg12[%c0, %c0_1] : memref<128x2048xbf16, #tpu.memory_space<vmem>>, vector<128x2048xbf16>
    %c0_2 = arith.constant 0 : index
    %c0_3 = arith.constant 0 : index
    %4 = vector.load %arg8[%c0_2, %c0_3] : memref<2048x128xbf16, #tpu.memory_space<vmem>>, vector<2048x128xbf16>
    %cst = arith.constant dense<0.000000e+00> : vector<128x128xf32>
    %5 = tpu.matmul %3, %4, %cst {dimension_numbers = #tpu.dot_dimension_numbers<[1], [0], [0], [1], [0, 0, 1, 1], [], []>} : vector<128x2048xbf16>, vector<2048x128xbf16>, vector<128x128xf32> -> vector<128x128xf32>
    %c0_4 = arith.constant 0 : index
    %c0_5 = arith.constant 0 : index
    %6 = vector.load %arg9[%c0_4, %c0_5] : memref<1x128xf32, #tpu.memory_space<vmem>>, vector<1x128xf32>
    %7 = vector.broadcast %6 : vector<1x128xf32> to vector<128x128xf32>
    %8 = arith.addf %5, %7 : vector<128x128xf32>
    %9 = arith.truncf %8 : vector<128x128xf32> to vector<128x128xbf16>
    %c0_6 = arith.constant 0 : index
    %c0_7 = arith.constant 0 : index
    %10 = vector.load %arg10[%c0_6, %c0_7] : memref<128x128xbf16, #tpu.memory_space<vmem>>, vector<128x128xbf16>
    tpu.vector_store %arg10[%c0_6, %c0_7], %9 {strides = array<i32>} : memref<128x128xbf16, #tpu.memory_space<vmem>>, vector<128x128xbf16>,
    %c0_8 = arith.constant 0 : index
    %c0_9 = arith.constant 0 : index
    %11 = vector.load %arg13[%c0_8, %c0_9] : memref<128x1xf32, #tpu.memory_space<vmem>>, vector<128x1xf32>
    %cst_10 = arith.constant dense<0xFF800000> : vector<128xf32>
    %12 = vector.multi_reduction <maximumf>, %8, %cst_10 [1] : vector<128x128xf32> to vector<128xf32>
    %13 = vector.shape_cast %12 : vector<128xf32> to vector<128x1xf32>
    %14 = arith.maximumf %11, %13 : vector<128x1xf32>
    %15 = arith.subf %11, %14 : vector<128x1xf32>
    %16 = math.exp %15 : vector<128x1xf32>
    %c0_11 = arith.constant 0 : index
    %c0_12 = arith.constant 0 : index
    %17 = vector.load %arg14[%c0_11, %c0_12] : memref<128x1xf32, #tpu.memory_space<vmem>>, vector<128x1xf32>
    %18 = arith.mulf %16, %17 : vector<128x1xf32>
    %19 = vector.broadcast %14 : vector<128x1xf32> to vector<128x128xf32>
    %20 = arith.subf %8, %19 : vector<128x128xf32>
    %21 = math.exp %20 : vector<128x128xf32>
    %cst_13 = arith.constant dense<0.000000e+00> : vector<128xf32>
    %22 = vector.multi_reduction <add>, %21, %cst_13 [1] : vector<128x128xf32> to vector<128xf32>
    %23 = vector.shape_cast %22 : vector<128xf32> to vector<128x1xf32>
    %24 = arith.addf %18, %23 : vector<128x1xf32>
    %c0_14 = arith.constant 0 : index
    %c0_15 = arith.constant 0 : index
    %25 = vector.load %arg14[%c0_14, %c0_15] : memref<128x1xf32, #tpu.memory_space<vmem>>, vector<128x1xf32>
    tpu.vector_store %arg14[%c0_14, %c0_15], %24 {strides = array<i32>} : memref<128x1xf32, #tpu.memory_space<vmem>>, vector<128x1xf32>,
    %c0_16 = arith.constant 0 : index
    %c0_17 = arith.constant 0 : index
    %26 = vector.load %arg13[%c0_16, %c0_17] : memref<128x1xf32, #tpu.memory_space<vmem>>, vector<128x1xf32>
    tpu.vector_store %arg13[%c0_16, %c0_17], %14 {strides = array<i32>} : memref<128x1xf32, #tpu.memory_space<vmem>>, vector<128x1xf32>,
    %27 = tpu.iota {dimensions = array<i32: 1>} : vector<128x128xi32>
    %c0_18 = arith.constant 0 : index
    %c0_19 = arith.constant 0 : index
    %28 = vector.load %arg4[%c0_18, %c0_19] : memref<128x1xi32, #tpu.memory_space<vmem>>, vector<128x1xi32>
    %c128_i32 = arith.constant 128 : i32
    %29 = arith.muli %arg1, %c128_i32 : i32
    %30 = vector.broadcast %29 : i32 to vector<128x1xi32>
    %31 = arith.subi %28, %30 : vector<128x1xi32>
    %c0_20 = arith.constant 0 : index
    %c0_21 = arith.constant 0 : index
    %32 = vector.load %arg15[%c0_20, %c0_21] : memref<128x1xf32, #tpu.memory_space<vmem>>, vector<128x1xf32>
    %33 = vector.broadcast %31 : vector<128x1xi32> to vector<128x128xi32>
    %34 = arith.cmpi eq, %27, %33 : vector<128x128xi32>
    %cst_22 = arith.constant 0.000000e+00 : f32
    %35 = vector.broadcast %cst_22 : f32 to vector<128x128xf32>
    %36 = arith.select %34, %8, %35 : vector<128x128xi1>, vector<128x128xf32>
    %cst_23 = arith.constant dense<0.000000e+00> : vector<128xf32>
    %37 = vector.multi_reduction <add>, %36, %cst_23 [1] : vector<128x128xf32> to vector<128xf32>
    %38 = vector.shape_cast %37 : vector<128xf32> to vector<128x1xf32>
    %39 = arith.addf %32, %38 : vector<128x1xf32>
    %c0_24 = arith.constant 0 : index
    %c0_25 = arith.constant 0 : index
    %40 = vector.load %arg15[%c0_24, %c0_25] : memref<128x1xf32, #tpu.memory_space<vmem>>, vector<128x1xf32>
    tpu.vector_store %arg15[%c0_24, %c0_25], %39 {strides = array<i32>} : memref<128x1xf32, #tpu.memory_space<vmem>>, vector<128x1xf32>,
    %c0_i32_26 = arith.constant 0 : i32
    %41 = arith.cmpi eq, %arg1, %c0_i32_26 : i32
    %42 = arith.extui %41 : i1 to i32
    %c0_i32_27 = arith.constant 0 : i32
    %43 = arith.cmpi ne, %42, %c0_i32_27 : i32
    scf.if %43 {
      %c0_28 = arith.constant 0 : index
      %c0_29 = arith.constant 0 : index
      %44 = vector.load %arg13[%c0_28, %c0_29] : memref<128x1xf32, #tpu.memory_space<vmem>>, vector<128x1xf32>
      %c0_30 = arith.constant 0 : index
      %c0_31 = arith.constant 0 : index
      %45 = vector.load %arg14[%c0_30, %c0_31] : memref<128x1xf32, #tpu.memory_space<vmem>>, vector<128x1xf32>
      %46 = math.log %45 : vector<128x1xf32>
      %47 = arith.addf %44, %46 : vector<128x1xf32>
      %c0_32 = arith.constant 0 : index
      %c0_33 = arith.constant 0 : index
      %48 = vector.load %arg15[%c0_32, %c0_33] : memref<128x1xf32, #tpu.memory_space<vmem>>, vector<128x1xf32>
      %49 = arith.subf %47, %48 : vector<128x1xf32>
      %c0_34 = arith.constant 0 : index
      %c0_35 = arith.constant 0 : index
      %50 = vector.load %arg5[%c0_34, %c0_35] : memref<128x1xf32, #tpu.memory_space<vmem>>, vector<128x1xf32>
      %51 = arith.mulf %49, %50 : vector<128x1xf32>
      %c0_36 = arith.constant 0 : index
      %c0_37 = arith.constant 0 : index
      %52 = vector.load %arg11[%c0_36, %c0_37] : memref<128x1xf32, #tpu.memory_space<vmem>>, vector<128x1xf32>
      tpu.vector_store %arg11[%c0_36, %c0_37], %51 {strides = array<i32>} : memref<128x1xf32, #tpu.memory_space<vmem>>, vector<128x1xf32>,
    } else {
    }
    return
  }
  func.func @transform_0(%arg0: i32, %arg1: i32) -> (i32, i32) {
    %c0_i32 = arith.constant 0 : i32
    %c0_i32_0 = arith.constant 0 : i32
    return %arg0, %c0_i32 : i32, i32
  }
  func.func @transform_1(%arg0: i32, %arg1: i32) -> (i32, i32) {
    %c0_i32 = arith.constant 0 : i32
    %c0_i32_0 = arith.constant 0 : i32
    return %arg0, %c0_i32 : i32, i32
  }
  func.func @transform_2(%arg0: i32, %arg1: i32) -> (i32, i32) {
    %c0_i32 = arith.constant 0 : i32
    %c0_i32_0 = arith.constant 0 : i32
    return %arg0, %c0_i32 : i32, i32
  }
  func.func @transform_3(%arg0: i32, %arg1: i32) -> (i32, i32) {
    %c0_i32 = arith.constant 0 : i32
    %c0_i32_0 = arith.constant 0 : i32
    return %arg0, %c0_i32 : i32, i32
  }
  func.func @transform_4(%arg0: i32, %arg1: i32) -> (i32, i32) {
    %c0_i32 = arith.constant 0 : i32
    %c0_i32_0 = arith.constant 0 : i32
    %c0_i32_1 = arith.constant 0 : i32
    return %c0_i32, %c0_i32_0 : i32, i32
  }
  func.func @transform_5(%arg0: i32, %arg1: i32) -> (i32, i32) {
    %c0_i32 = arith.constant 0 : i32
    %c0_i32_0 = arith.constant 0 : i32
    %c0_i32_1 = arith.constant 0 : i32
    return %c0_i32, %c0_i32_0 : i32, i32
  }
  func.func @transform_6(%arg0: i32, %arg1: i32) -> (i32, i32) {
    %c0_i32 = arith.constant 0 : i32
    %c0_i32_0 = arith.constant 0 : i32
    return %c0_i32, %arg1 : i32, i32
  }
  func.func @transform_7(%arg0: i32, %arg1: i32) -> (i32, i32) {
    %c0_i32 = arith.constant 0 : i32
    %c0_i32_0 = arith.constant 0 : i32
    return %c0_i32, %arg1 : i32, i32
  }
  func.func @transform_8(%arg0: i32, %arg1: i32) -> (i32, i32) {
    %c0_i32 = arith.constant 0 : i32
    return %arg0, %arg1 : i32, i32
  }
  func.func @transform_9(%arg0: i32, %arg1: i32) -> (i32, i32) {
    %c0_i32 = arith.constant 0 : i32
    %c0_i32_0 = arith.constant 0 : i32
    return %arg0, %c0_i32 : i32, i32
  }
}

</mosaic_0001>

<bundles_post_ra>
// kernel: tpu_custom_call.1
= control target key start
LH: loop header
LB: loop body
LE: loop exit
PB: predicated region body
PF: predicated region fallthrough
CT: control target
= control target key end

     0   :  { %15 = vsyncpa [#allocation7], 0  ;;  %s8064_s0 = inlined_call_operand.hbm [shape: bf16[128,32], index: 0, kind: input, shape index: {}]   ;;  %s8065_s1 = inlined_call_operand.hbm [shape: bf16[128,1], index: 1, kind: input, shape index: {}]   ;;  %s8066_s2 = inlined_call_operand.hbm [shape: s32[128,1], index: 2, kind: input, shape index: {}]   ;;  %s8067_s3 = inlined_call_operand.hbm [shape: f32[128,1], index: 3, kind: input, shape index: {}]   ;;  %s8068_s4 = inlined_call_operand.hbm [shape: bf16[32,2048], index: 4, kind: input, shape index: {}]   ;;  %s8069_s5 = inlined_call_operand.hbm [shape: f32[1,2048], index: 5, kind: input, shape index: {}]   ;;  %s8070_s6 = inlined_call_operand.hbm [shape: bf16[2048,128], index: 6, kind: input, shape index: {}]   ;;  %s8071_s7 = inlined_call_operand.hbm [shape: f32[1,128], index: 7, kind: input, shape index: {}]   ;;  %s8072_s8 = inlined_call_operand.hbm [shape: bf16[128,128], index: 8, kind: output, shape index: {0}]   ;;  %s8073_s9 = inlined_call_operand.hbm [shape: f32[128,1], index: 9, kind: output, shape index: {1}]  }
   0x1   :  { %16 = vsyncpa [#allocation10], 0 }
   0x2   :  { %17 = vsyncpa [#allocation13], 0 }
   0x3   :  { %18 = vsyncpa [#allocation16], 0 }
   0x4   :  { %19 = vsyncpa [#allocation19], 0 }
   0x5   :  { %20 = vsyncpa [#allocation8], 0 }
   0x6   :  { %21 = vsyncpa [#allocation22], 0  ;;  %s6256_s30 = smov [#allocation9]   ;;  %s6022_s13 = scalar_lea.hbm %s8065_s1, 1024 }
   0x7   :  { %s39_s10 = sshll.u32 %s6256_s30, 4  ;;  %p6023_p0 = scmp.ne.s32.totalorder %s8065_s1, %s6022_s13  ;;  %s40_s10 = int_to_ptr.vmem [resolvable:$true] %s39_s10 }
   0x8   :  { %p6026_p1 = scmp.lt.u32.totalorder %s6022_s13, %s8065_s1 }
   0xa   :  { %p6028_p2 = pnand %p6026_p1, %p6023_p0 }
   0xc   :  { %6031 = shalt.err (!%p6028_p2)
}
   0xd   :  { %s6032_s18 = scalar_lea.vmem %s40_s10, 1024  ;;  %p6037_p4 = scmp.lt.s32.totalorder %s40_s10, %s40_s10 }
   0xe   :  { %p6033_p3 = scmp.ne.s32.totalorder %s40_s10, %s6032_s18  ;;  %p6038_p5 = scmp.lt.s32.totalorder %s6032_s18, %s6032_s18 }
  0x10   :  { %p6039_p6 = por %p6038_p5, %p6037_p4 }
  0x12   :  { %p6040_p7 = pnand %p6039_p6, %p6033_p3 }
  0x14   :  { %6043 = shalt.err (!%p6040_p7)
}
  0x15   :  { %s6257_s19 = smov 64   ;;  %s6258_s20 = smov 4  }
  0x16   :  { %45 = dma.hbm_to_vmem [thread:$0]  %s8065_s1, 1024, %s40_s10, [#allocation10], %s6257_s19, %s6257_s19, %s6258_s20  }
  0x17   :  { %s6259_s23 = smov [#allocation12]   ;;  %s6260_s25 = smov [#allocation15]  }
  0x18   :  { %s63_s24 = sshll.u32 %s6259_s23, 4  ;;  %s88_s26 = sshll.u32 %s6260_s25, 4  ;;  %s64_s24 = int_to_ptr.vmem [resolvable:$true] %s63_s24  ;;  %s89_s26 = int_to_ptr.vmem [resolvable:$true] %s88_s26 }
  0x19   :  { %s6044_s29 = scalar_lea.hbm %s8067_s3, 2048 }
  0x1a   :  { %p6045_p8 = scmp.ne.s32.totalorder %s8067_s3, %s6044_s29  ;;  %p6048_p9 = scmp.lt.u32.totalorder %s6044_s29, %s8067_s3 }
  0x1c   :  { %p6050_p10 = pnand %p6048_p9, %p6045_p8 }
  0x1e   :  { %6053 = shalt.err (!%p6050_p10)
}
  0x1f   :  { %s6054_s1 = scalar_lea.vmem %s64_s24, 2048  ;;  %p6059_p12 = scmp.lt.s32.totalorder %s64_s24, %s64_s24 }
  0x20   :  { %p6055_p11 = scmp.ne.s32.totalorder %s64_s24, %s6054_s1  ;;  %p6060_p13 = scmp.lt.s32.totalorder %s6054_s1, %s6054_s1 }
  0x22   :  { %p6061_p0 = por %p6060_p13, %p6059_p12 }
  0x24   :  { %p6062_p1 = pnand %p6061_p0, %p6055_p11 }
  0x26   :  { %6065 = shalt.err (!%p6062_p1)
}
  0x27   :  { %s6261_s10 = smov 128   ;;  %s6262_s14 = smov 8  }
  0x28   :  { %69 = dma.hbm_to_vmem [thread:$0]  %s8067_s3, 2048, %s64_s24, [#allocation13], %s6261_s10, %s6261_s10, %s6262_s14  }
  0x29   :  { %s6066_s21 = scalar_lea.hbm %s8069_s5, 256 }
  0x2a   :  { %p6067_p2 = scmp.ne.s32.totalorder %s8069_s5, %s6066_s21  ;;  %p6070_p3 = scmp.lt.u32.totalorder %s6066_s21, %s8069_s5 }
  0x2c   :  { %p6072_p4 = pnand %p6070_p3, %p6067_p2 }
  0x2e   :  { %6075 = shalt.err (!%p6072_p4)
}
  0x2f   :  { %s6076_s28 = scalar_lea.vmem %s89_s26, 256  ;;  %p6081_p6 = scmp.lt.s32.totalorder %s89_s26, %s89_s26 }
  0x30   :  { %p6077_p5 = scmp.ne.s32.totalorder %s89_s26, %s6076_s28  ;;  %p6082_p7 = scmp.lt.s32.totalorder %s6076_s28, %s6076_s28 }
  0x32   :  { %p6083_p8 = por %p6082_p7, %p6081_p6 }
  0x34   :  { %p6084_p9 = pnand %p6083_p8, %p6077_p5 }
  0x36   :  { %6087 = shalt.err (!%p6084_p9)
}
  0x37   :  { %91 = dma.hbm_to_vmem [thread:$0]  %s8069_s5, 256, %s89_s26, [#allocation16]  }
  0x38   :  { %s6263_s29 = smov [#allocation6]   ;;  %s6264_s11 = smov [#allocation11]  }
  0x39   :  { %s27_s30 = sshll.u32 %s6263_s29, 4  ;;  %s51_s12 = sshll.u32 %s6264_s11, 4  ;;  %s28_s30 = int_to_ptr.vmem [resolvable:$true] %s27_s30  ;;  %s52_s12 = int_to_ptr.vmem [resolvable:$true] %s51_s12 }
  0x3a   :  { %s6088_s15 = scalar_lea.hbm %s8064_s0, 1024 }
  0x3b   :  { %p6089_p10 = scmp.ne.s32.totalorder %s8064_s0, %s6088_s15  ;;  %p6092_p11 = scmp.lt.u32.totalorder %s6088_s15, %s8064_s0 }
  0x3d   :  { %p6094_p12 = pnand %p6092_p11, %p6089_p10 }
  0x3f   :  { %6097 = shalt.err (!%p6094_p12)
}
  0x40   :  { %s6098_s5 = scalar_lea.vmem %s28_s30, 1024  ;;  %p6103_p0 = scmp.lt.s32.totalorder %s28_s30, %s28_s30 }
  0x41   :  { %p6099_p13 = scmp.ne.s32.totalorder %s28_s30, %s6098_s5  ;;  %p6104_p1 = scmp.lt.s32.totalorder %s6098_s5, %s6098_s5 }
  0x43   :  { %p6105_p2 = por %p6104_p1, %p6103_p0 }
  0x45   :  { %p6106_p3 = pnand %p6105_p2, %p6099_p13 }
  0x47   :  { %6109 = shalt.err (!%p6106_p3)
}
  0x48   :  { %33 = dma.hbm_to_vmem [thread:$0]  %s8064_s0, 1024, %s28_s30, [#allocation7], %s6257_s19, %s6257_s19, %s6258_s20  }
  0x49   :  { %s6110_s27 = scalar_lea.hbm %s8066_s2, 2048 }
  0x4a   :  { %p6111_p4 = scmp.ne.s32.totalorder %s8066_s2, %s6110_s27  ;;  %p6114_p5 = scmp.lt.u32.totalorder %s6110_s27, %s8066_s2 }
  0x4c   :  { %p6116_p6 = pnand %p6114_p5, %p6111_p4 }
  0x4e   :  { %6119 = shalt.err (!%p6116_p6)
}
  0x4f   :  { %s6120_s11 = scalar_lea.vmem %s52_s12, 2048  ;;  %p6125_p8 = scmp.lt.s32.totalorder %s52_s12, %s52_s12 }
  0x50   :  { %p6121_p7 = scmp.ne.s32.totalorder %s52_s12, %s6120_s11  ;;  %p6126_p9 = scmp.lt.s32.totalorder %s6120_s11, %s6120_s11 }
  0x52   :  { %p6127_p10 = por %p6126_p9, %p6125_p8 }
  0x54   :  { %p6128_p11 = pnand %p6127_p10, %p6121_p7 }
  0x56   :  { %6131 = shalt.err (!%p6128_p11)
}
  0x57   :  { %57 = dma.hbm_to_vmem [thread:$0]  %s8066_s2, 2048, %s52_s12, [#allocation10], %s6261_s10, %s6261_s10, %s6262_s14  }
  0x58   :  { %s6265_s13 = smov [#allocation14]   ;;  %s6132_s17 = scalar_lea.hbm %s8068_s4, 4096 }
  0x59   :  { %s75_s1 = sshll.u32 %s6265_s13, 4  ;;  %p6133_p12 = scmp.ne.s32.totalorder %s8068_s4, %s6132_s17  ;;  %s76_s1 = int_to_ptr.vmem [resolvable:$true] %s75_s1 }
  0x5a   :  { %p6136_p13 = scmp.lt.u32.totalorder %s6132_s17, %s8068_s4 }
  0x5c   :  { %p6138_p0 = pnand %p6136_p13, %p6133_p12 }
  0x5e   :  { %6141 = shalt.err (!%p6138_p0)
}
  0x5f   :  { %s6142_s22 = scalar_lea.vmem %s76_s1, 4096  ;;  %p6147_p2 = scmp.lt.s32.totalorder %s76_s1, %s76_s1 }
  0x60   :  { %p6143_p1 = scmp.ne.s32.totalorder %s76_s1, %s6142_s22  ;;  %p6148_p3 = scmp.lt.s32.totalorder %s6142_s22, %s6142_s22 }
  0x62   :  { %p6149_p4 = por %p6148_p3, %p6147_p2 }
  0x64   :  { %p6150_p5 = pnand %p6149_p4, %p6143_p1 }
  0x66   :  { %6153 = shalt.err (!%p6150_p5)
}
  0x67   :  { %s6266_s2 = smov 1024   ;;  %s6267_s25 = smov [#allocation17]  }
  0x68   :  { %81 = dma.hbm_to_vmem [thread:$0]  %s8068_s4, 4096, %s76_s1, [#allocation13], %s6266_s2, %s6266_s2, %s6257_s19  }
  0x69   :  { %s97_s27 = sshll.u32 %s6267_s25, 4  ;;  %s6268_s28 = smov [#allocation18]   ;;  %s98_s27 = int_to_ptr.vmem [resolvable:$true] %s97_s27 }
  0x6a   :  { %s110_s3 = sshll.u32 %s6268_s28, 4  ;;  %s6154_s11 = scalar_lea.hbm %s8070_s6, 16384  ;;  %s111_s3 = int_to_ptr.vmem [resolvable:$true] %s110_s3 }
  0x6b   :  { %p6155_p6 = scmp.ne.s32.totalorder %s8070_s6, %s6154_s11  ;;  %p6158_p7 = scmp.lt.u32.totalorder %s6154_s11, %s8070_s6 }
  0x6d   :  { %p6160_p8 = pnand %p6158_p7, %p6155_p6 }
  0x6f   :  { %6163 = shalt.err (!%p6160_p8)
}
  0x70   :  { %s6164_s4 = scalar_lea.vmem %s98_s27, 16384  ;;  %p6169_p10 = scmp.lt.s32.totalorder %s98_s27, %s98_s27 }
  0x71   :  { %p6165_p9 = scmp.ne.s32.totalorder %s98_s27, %s6164_s4  ;;  %p6170_p11 = scmp.lt.s32.totalorder %s6164_s4, %s6164_s4 }
  0x73   :  { %p6171_p12 = por %p6170_p11, %p6169_p10 }
  0x75   :  { %p6172_p13 = pnand %p6171_p12, %p6165_p9 }
  0x77   :  { %6175 = shalt.err (!%p6172_p13)
}
  0x78   :  { %103 = dma.hbm_to_vmem [thread:$0]  %s8070_s6, 16384, %s98_s27, [#allocation16], %s6257_s19, %s6257_s19, %s6258_s20  }
  0x79   :  { %s6176_s21 = scalar_lea.hbm %s8071_s7, 16 }
  0x7a   :  { %p6177_p0 = scmp.ne.s32.totalorder %s8071_s7, %s6176_s21  ;;  %p6180_p1 = scmp.lt.u32.totalorder %s6176_s21, %s8071_s7 }
  0x7c   :  { %p6182_p2 = pnand %p6180_p1, %p6177_p0 }
  0x7e   :  { %6185 = shalt.err (!%p6182_p2)
}
  0x7f   :  { %s6186_s12 = scalar_lea.vmem %s111_s3, 16  ;;  %s6190_s23 = scalar_lea.vmem %s111_s3, 32 }
  0x80   :  { %p6187_p3 = scmp.ne.s32.totalorder %s111_s3, %s6186_s12  ;;  %p6191_p4 = scmp.lt.s32.totalorder %s111_s3, %s111_s3 }
  0x81   :  { %p6192_p5 = scmp.lt.s32.totalorder %s6190_s23, %s6186_s12 }
  0x83   :  { %p6193_p6 = por %p6192_p5, %p6191_p4 }
  0x85   :  { %p6194_p7 = pnand %p6193_p6, %p6187_p3 }
  0x87   :  { %6197 = shalt.err (!%p6194_p7)
}
  0x88   :  { %113 = dma.hbm_to_vmem [thread:$0]  %s8071_s7, 16, %s111_s3, [#allocation19]  }
  0x89   :  { %6242 = dma.done.wait [#allocation7], 1024  }
  0x8a   :  { %6243 = vsyncadd [#allocation7], 4294966272 }
  0x8b   :  { %6244 = dma.done.wait [#allocation10], 3072  }
  0x8c   :  { %6245 = vsyncadd [#allocation10], 4294964224 }
  0x8d   :  { %6246 = dma.done.wait [#allocation13], 6144  }
  0x8e   :  { %6247 = vsyncadd [#allocation13], 4294961152 }
  0x8f   :  { %6248 = dma.done.wait [#allocation16], 16640  }
  0x90   :  { %6249 = vsyncadd [#allocation16], 4294950656 }
  0x91   :  { %6250 = dma.done.wait [#allocation19], 16  }
  0x92   :  { %6251 = vsyncadd [#allocation19], 4294967280  ;;  %v6269_v0 = vmov 0   ;;  %v161_v1 = vld [vmem:[#allocation9 + $0x8] sm:$0xf]  ;;  %v383_v7 = vld [vmem:[#allocation14] sm:$0xff]  ;;  %v183_v45 = vlaneseq }
  0x93   :  { %5797 = vset.pattern.permute.xlu1 %v6269_v0  ;;  %5796 = vset.pattern.permute.xlu0 %v6269_v0  ;;  %v159_v2 = vld [vmem:[#allocation9] sm:$0xf]  ;;  %v162_v3 = vld [vmem:[#allocation9 + $0xc] sm:$0xf]  ;;  %v160_v4 = vld [vmem:[#allocation9 + $0x4] sm:$0xf] }
  0x94   :  { %756 = vmatprep.mubr.bf16.mxu0 %v6269_v0  ;;  %869 = vmatprep.mubr.bf16.mxu1 %v6269_v0  ;;  %v164_v5 = vld [vmem:[#allocation9 + $0x14] sm:$0xf]  ;;  %v163_v6 = vld [vmem:[#allocation9 + $0x10] sm:$0xf]  ;;  %v391_v8 = vld [vmem:[#allocation14 + $0x40] sm:$0xff]  ;;  %v6454_v47 = vshrl.u32 %v183_v45, 7 }
  0x95   :  { %201 = vperm.xlu1 %5797, %v161_v1   ;;  %177 = vperm.xlu0 %5796, %v159_v2   ;;  %v384_v9 = vld [vmem:[#allocation14 + $0x8] sm:$0xff]  ;;  %v4962_v11 = vcombine.high %v383_v7, %v391_v8  ;;  %v4961_v12 = vcombine.low %v383_v7, %v391_v8  ;;  %v399_v15 = vld [vmem:[#allocation14 + $0x80] sm:$0xff]  ;;  %v166_v19 = vld [vmem:[#allocation9 + $0x1c] sm:$0xf]  ;;  %v6270_v43 = vmov 839922192  }
  0x96   :  { %v392_v10 = vld [vmem:[#allocation14 + $0x48] sm:$0xff]  ;;  %v407_v16 = vld [vmem:[#allocation14 + $0xc0] sm:$0xff]  ;;  %v165_v20 = vld [vmem:[#allocation9 + $0x18] sm:$0xf]  ;;  %v181_v44 = vunpack.c.l.s4 %v6270_v43  ;;  %vm699_vm0 = vcmask 261120   ;;  %vm2140_vm1 = vcmask 7168  }
  0x97   :  { %v4964_v13 = vcombine.high %v384_v9, %v392_v10  ;;  %v4963_v14 = vcombine.low %v384_v9, %v392_v10  ;;  %v400_v17 = vld [vmem:[#allocation14 + $0x88] sm:$0xff]  ;;  %724 = vmatprep.subr.bf16.mxu0 %v4962_v11  ;;  %v4978_v21 = vcombine.high %v399_v15, %v407_v16  ;;  %v4977_v23 = vcombine.low %v399_v15, %v407_v16  ;;  %v6441_v25 = vld [vmem:[#allocation14 + $0x10] sm:$0xff]  ;;  %v6445_v27 = vld [vmem:[#allocation14 + $0x18] sm:$0xff]  ;;  %s6273_s7 = smov [#allocation20]  }
  0x98   :  { %v408_v18 = vld [vmem:[#allocation14 + $0xc8] sm:$0xff]  ;;  %725 = vmatpush1.bf16.msra.mxu0 %v4961_v12  ;;  %v6443_v26 = vld [vmem:[#allocation14 + $0x50] sm:$0xff]  ;;  %v168_v28 = vld [vmem:[#allocation9 + $0x24] sm:$0xf]  ;;  %v182_v46 = vunpack.c.0.s8 %v181_v44  ;;  %s4921_s27 = sshll.u32 %s6273_s7, 4  ;;  %s4922_s27 = int_to_ptr.vmem [resolvable:$true] %s4921_s27 }
  0x99   :  { %213 = vperm.xlu1 %5797, %v162_v3   ;;  %189 = vperm.xlu0 %5796, %v160_v4   ;;  %v4980_v22 = vcombine.high %v400_v17, %v408_v18  ;;  %v4979_v24 = vcombine.low %v400_v17, %v408_v18  ;;  %v167_v29 = vld [vmem:[#allocation9 + $0x20] sm:$0xf]  ;;  %v4965_v30 = vcombine.low %v6441_v25, %v6443_v26  ;;  %v394_v32 = vld [vmem:[#allocation14 + $0x58] sm:$0xff]  ;;  %v170_v35 = vld [vmem:[#allocation9 + $0x2c] sm:$0xf]  ;;  %s6198_s28 = scalar_lea.vmem %s4922_s27, 1024  ;;  %p6203_p9 = scmp.lt.s32.totalorder %s4922_s27, %s4922_s27 }
  0x9a   :  { %837 = vmatprep.subr.bf16.mxu1 %v4964_v13  ;;  %726 = vmatprep.subr.bf16.mxu0 %v4978_v21  ;;  %v4966_v31 = vcombine.high %v6441_v25, %v6443_v26  ;;  %v4967_v33 = vcombine.low %v6445_v27, %v394_v32  ;;  %v4968_v34 = vcombine.high %v6445_v27, %v394_v32  ;;  %v169_v36 = vld [vmem:[#allocation9 + $0x28] sm:$0xf]  ;;  %v172_v37 = vld [vmem:[#allocation9 + $0x34] sm:$0xf]  ;;  %v171_v38 = vld [vmem:[#allocation9 + $0x30] sm:$0xf]  ;;  %p6199_p8 = scmp.ne.s32.totalorder %s4922_s27, %s6198_s28  ;;  %p6204_p10 = scmp.lt.s32.totalorder %s6198_s28, %s6198_s28 }
  0x9b   :  { %838 = vmatpush1.bf16.msra.mxu1 %v4963_v14  ;;  %v174_v39 = vld [vmem:[#allocation9 + $0x3c] sm:$0xf]  ;;  %v173_v40 = vld [vmem:[#allocation9 + $0x38] sm:$0xf]  ;;  %v4560_v41 = vld [vmem:[#allocation11 + $0x8] sm:$0xff]  ;;  %v6457_v48 = vsub.s32 %v182_v46, %v6454_v47 }
  0x9c   :  { %839 = vmatprep.subr.bf16.mxu1 %v4980_v22  ;;  %727 = vmatpush1.bf16.msra.mxu0 %v4977_v23  ;;  %v4559_v42 = vld [vmem:[#allocation11] sm:$0xff]  ;;  %v401_v56 = vld [vmem:[#allocation14 + $0x90] sm:$0xff]  ;;  %v402_v60 = vld [vmem:[#allocation14 + $0x98] sm:$0xff]  ;;  %p6205_p11 = por %p6204_p10, %p6203_p9 }
  0x9d   :  { %237 = vperm.xlu1 %5797, %v164_v5   ;;  %225 = vperm.xlu0 %5796, %v163_v6   ;;  %v143_v52 = vld [vmem:[#allocation6] sm:$0xf]  ;;  %v144_v54 = vld [vmem:[#allocation6 + $0x4] sm:$0xf]  ;;  %v409_v59 = vld [vmem:[#allocation14 + $0xd0] sm:$0xff] }
  0x9e   :  { %950 = vmatprep.subr.bf16.mxu0 %v4966_v31  ;;  %v410_v61 = vld [vmem:[#allocation14 + $0xd8] sm:$0xff]  ;;  %v145_v63 = vld [vmem:[#allocation6 + $0x8] sm:$0xf]  ;;  %v6465_v4 = vld [vmem:[#allocation14 + $0x20] sm:$0xff]  ;;  %v4982_v7 = vcombine.high %v401_v56, %v409_v59  ;;  %v4981_v11 = vcombine.low %v401_v56, %v409_v59  ;;  %p6206_p12 = pnand %p6205_p11, %p6199_p8 }
  0x9f   :  { %840 = vmatpush1.bf16.msra.mxu1 %v4979_v24  ;;  %v6467_v5 = vld [vmem:[#allocation14 + $0x60] sm:$0xff]  ;;  %v146_v6 = vld [vmem:[#allocation6 + $0xc] sm:$0xf]  ;;  %v4984_v8 = vcombine.high %v402_v60, %v410_v61  ;;  %v4983_v12 = vcombine.low %v402_v60, %v410_v61  ;;  %v148_v22 = vld [vmem:[#allocation6 + $0x14] sm:$0xf] }
  0xa0   :  { %1063 = vmatprep.subr.bf16.mxu1 %v4968_v34  ;;  %v6469_v9 = vld [vmem:[#allocation14 + $0x28] sm:$0xff]  ;;  %v4970_v13 = vcombine.high %v6465_v4, %v6467_v5  ;;  %v147_v23 = vld [vmem:[#allocation6 + $0x10] sm:$0xf]  ;;  %v150_v31 = vld [vmem:[#allocation6 + $0x1c] sm:$0xf] }
  0xa1   :  { %261 = vperm.xlu1 %5797, %v166_v19   ;;  %249 = vperm.xlu0 %5796, %v165_v20   ;;  %v6471_v10 = vld [vmem:[#allocation14 + $0x68] sm:$0xff]  ;;  %v149_v32 = vld [vmem:[#allocation6 + $0x18] sm:$0xf]  ;;  %v156_v61 = vld [vmem:[#allocation6 + $0x34] sm:$0xf] }
  0xa2   :  { %v4972_v16 = vcombine.high %v6469_v9, %v6471_v10 }
  0xa5   :  { %285 = vperm.xlu1 %5797, %v168_v28   ;;  %273 = vperm.xlu0 %5796, %v167_v29  }
  0xa9   :  { %309 = vperm.xlu1 %5797, %v170_v35   ;;  %297 = vperm.xlu0 %5796, %v169_v36  }
  0xad   :  { %333 = vperm.xlu1 %5797, %v172_v37   ;;  %321 = vperm.xlu0 %5796, %v171_v38  }
  0xb1   :  { %357 = vperm.xlu1 %5797, %v174_v39   ;;  %345 = vperm.xlu0 %5796, %v173_v40   ;;  %v152_v40 = vld [vmem:[#allocation6 + $0x24] sm:$0xf] }
  0xb5   :  { %4613 = vperm.xlu1 %5797, %v4560_v41   ;;  %4610 = vperm.xlu0 %5796, %v4559_v42   ;;  %v151_v41 = vld [vmem:[#allocation6 + $0x20] sm:$0xf] }
 0x114   :  { %v178_v49 = vpop.permute.xlu0 %177  ;;  %v202_v50 = vpop.permute.xlu1 %201 }
 0x115   :  { %v186_v51 = vrot.slane %v178_v49, %v6457_v48  ;;  %v210_v1 = vrot.slane %v202_v50, %v6457_v48 }
 0x117   :  { %v367_v57 = vmul.bf16 %v186_v51, %v143_v52  ;;  %v369_v14 = vmul.bf16 %v210_v1, %v145_v63  ;;  %v154_v52 = vld [vmem:[#allocation6 + $0x2c] sm:$0xf] }
 0x118   :  { %v190_v53 = vpop.permute.xlu0 %189  ;;  %v214_v62 = vpop.permute.xlu1 %213 }
 0x119   :  { %v198_v55 = vrot.slane %v190_v53, %v6457_v48  ;;  %v222_v2 = vrot.slane %v214_v62, %v6457_v48  ;;  %v153_v53 = vld [vmem:[#allocation6 + $0x28] sm:$0xf]  ;;  %v155_v62 = vld [vmem:[#allocation6 + $0x30] sm:$0xf] }
 0x11b   :  { %v368_v58 = vmul.bf16 %v198_v55, %v144_v54  ;;  %v370_v15 = vmul.bf16 %v222_v2, %v146_v6 }
 0x11c   :  { %v238_v17 = vpop.permute.xlu1 %237  ;;  %v226_v18 = vpop.permute.xlu0 %225 }
 0x11d   :  { %v6463_v3 = vcombine.low %v367_v57, %v368_v58  ;;  %v6483_v19 = vcombine.low %v369_v14, %v370_v15  ;;  %v246_v20 = vrot.slane %v238_v17, %v6457_v48  ;;  %v234_v21 = vrot.slane %v226_v18, %v6457_v48  ;;  %v411_v17 = vld [vmem:[#allocation14 + $0xe0] sm:$0xff]  ;;  %v404_v18 = vld [vmem:[#allocation14 + $0xa8] sm:$0xff] }
 0x11f   :  { %4993 = vmatmul.mubr.msk.bf16.vlgmr.msra.gmra.mrb[0].mxu0 %vm699_vm0, %v6463_v3  ;;  %5001 = vmatmul.mubr.msk.bf16.vlgmr.msra.gmra.mrb[0].mxu1 %vm699_vm0, %v6463_v3  ;;  %v372_v24 = vmul.bf16 %v246_v20, %v148_v22  ;;  %v371_v25 = vmul.bf16 %v234_v21, %v147_v23  ;;  %v412_v20 = vld [vmem:[#allocation14 + $0xe8] sm:$0xff]  ;;  %v4969_v21 = vcombine.low %v6465_v4, %v6467_v5  ;;  %v389_v23 = vld [vmem:[#allocation14 + $0x30] sm:$0xff] }
 0x120   :  { %951 = vmatpush1.bf16.msra.mxu0 %v4965_v30  ;;  %1064 = vmatpush1.bf16.msra.mxu1 %v4967_v33  ;;  %v262_v26 = vpop.permute.xlu1 %261  ;;  %v250_v27 = vpop.permute.xlu0 %249  ;;  %v4971_v22 = vcombine.low %v6469_v9, %v6471_v10  ;;  %v405_v9 = vld [vmem:[#allocation14 + $0xb0] sm:$0xff] }
 0x121   :  { %766 = vmatprep.mubr.bf16.mxu0 %v6269_v0  ;;  %879 = vmatprep.mubr.bf16.mxu1 %v6269_v0  ;;  %v6493_v28 = vcombine.low %v371_v25, %v372_v24  ;;  %v270_v29 = vrot.slane %v262_v26, %v6457_v48  ;;  %v258_v30 = vrot.slane %v250_v27, %v6457_v48  ;;  %v397_v26 = vld [vmem:[#allocation14 + $0x70] sm:$0xff]  ;;  %v390_v27 = vld [vmem:[#allocation14 + $0x38] sm:$0xff] }
 0x122   :  { %952 = vmatprep.subr.bf16.mxu0 %v4982_v7  ;;  %1065 = vmatprep.subr.bf16.mxu1 %v4984_v8  ;;  %v4988_v25 = vcombine.high %v404_v18, %v412_v20  ;;  %v4974_v4 = vcombine.high %v389_v23, %v397_v26  ;;  %v413_v10 = vld [vmem:[#allocation14 + $0xf0] sm:$0xff] }
 0x123   :  { %v374_v33 = vmul.bf16 %v270_v29, %v150_v31  ;;  %v373_v34 = vmul.bf16 %v258_v30, %v149_v32  ;;  %v398_v29 = vld [vmem:[#allocation14 + $0x78] sm:$0xff]  ;;  %v4987_v31 = vcombine.low %v404_v18, %v412_v20 }
 0x124   :  { %953 = vmatpush1.bf16.msra.mxu0 %v4981_v11  ;;  %1066 = vmatpush1.bf16.msra.mxu1 %v4983_v12  ;;  %v286_v35 = vpop.permute.xlu1 %285  ;;  %v274_v36 = vpop.permute.xlu0 %273  ;;  %v158_v12 = vld [vmem:[#allocation6 + $0x3c] sm:$0xf]  ;;  %v4976_v5 = vcombine.high %v390_v27, %v398_v29 }
 0x125   :  { %1176 = vmatprep.subr.bf16.mxu0 %v4970_v13  ;;  %1289 = vmatprep.subr.bf16.mxu1 %v4972_v16  ;;  %v6503_v37 = vcombine.low %v373_v34, %v374_v33  ;;  %v294_v38 = vrot.slane %v286_v35, %v6457_v48  ;;  %v282_v39 = vrot.slane %v274_v36, %v6457_v48  ;;  %v157_v13 = vld [vmem:[#allocation6 + $0x38] sm:$0xf] }
 0x126   :  { %v406_v32 = vld [vmem:[#allocation14 + $0xb8] sm:$0xff]  ;;  %v4973_v34 = vcombine.low %v389_v23, %v397_v26  ;;  %v4975_v35 = vcombine.low %v390_v27, %v398_v29  ;;  %v4990_v36 = vcombine.high %v405_v9, %v413_v10  ;;  %v5824_v23 = vld [vmem:[#allocation17 + $0xf0] sm:$0xff]  }
 0x127   :  { %4994 = vmatmul.mubr.msk.bf16.gmra.mrb[4].mxu0 %vm699_vm0, %v6483_v19  ;;  %5002 = vmatmul.mubr.msk.bf16.gmra.mrb[4].mxu1 %vm699_vm0, %v6483_v19  ;;  %v376_v42 = vmul.bf16 %v294_v38, %v152_v40  ;;  %v375_v43 = vmul.bf16 %v282_v39, %v151_v41  ;;  %v414_v33 = vld [vmem:[#allocation14 + $0xf8] sm:$0xff]  ;;  %v4989_v39 = vcombine.low %v405_v9, %v413_v10  ;;  %v5798_v41 = vld [vmem:[#allocation17 + $0x40] sm:$0xff]  }
 0x128   :  { %776 = vmatprep.mubr.bf16.mxu0 %v6269_v0  ;;  %889 = vmatprep.mubr.bf16.mxu1 %v6269_v0  ;;  %v310_v44 = vpop.permute.xlu1 %309  ;;  %v298_v46 = vpop.permute.xlu0 %297  ;;  %v4992_v38 = vcombine.high %v406_v32, %v414_v33  ;;  %v4991_v40 = vcombine.low %v406_v32, %v414_v33  ;;  %v5821_v18 = vld [vmem:[#allocation17 + $0xa8] sm:$0xff]   ;;  %v5823_v33 = vld [vmem:[#allocation17 + $0x30] sm:$0xff]  }
 0x129   :  { %v6513_v49 = vcombine.low %v375_v43, %v376_v42  ;;  %v318_v50 = vrot.slane %v310_v44, %v6457_v48  ;;  %v306_v51 = vrot.slane %v298_v46, %v6457_v48  ;;  %v5800_v42 = vld [vmem:[#allocation17 + $0xc0] sm:$0xff]   ;;  %v5802_v46 = vld [vmem:[#allocation17 + $0x48] sm:$0xff]  }
 0x12a   :  { %v5799_v43 = vld [vmem:[#allocation17] sm:$0xff]  }
 0x12b   :  { %v378_v54 = vmul.bf16 %v318_v50, %v154_v52  ;;  %v377_v55 = vmul.bf16 %v306_v51, %v153_v53  ;;  %v5801_v44 = vld [vmem:[#allocation17 + $0x80] sm:$0xff]   ;;  %v5804_v50 = vld [vmem:[#allocation17 + $0xc8] sm:$0xff]   ;;  %v5806_v53 = vld [vmem:[#allocation17 + $0x50] sm:$0xff]  }
 0x12c   :  { %v334_v56 = vpop.permute.xlu1 %333  ;;  %v322_v57 = vpop.permute.xlu0 %321  ;;  %v5803_v51 = vld [vmem:[#allocation17 + $0x8] sm:$0xff]  }
 0x12d   :  { %v6523_v58 = vcombine.low %v377_v55, %v378_v54  ;;  %v342_v59 = vrot.slane %v334_v56, %v6457_v48  ;;  %v330_v60 = vrot.slane %v322_v57, %v6457_v48  ;;  %v5805_v52 = vld [vmem:[#allocation17 + $0x88] sm:$0xff]   ;;  %v5808_v54 = vld [vmem:[#allocation17 + $0xd0] sm:$0xff]   ;;  %v5810_v57 = vld [vmem:[#allocation17 + $0x58] sm:$0xff]  }
 0x12e   :  { %v5807_v55 = vld [vmem:[#allocation17 + $0x10] sm:$0xff]  }
 0x12f   :  { %4995 = vmatmul.mubr.msk.bf16.gmra.mrb[8].mxu0 %vm699_vm0, %v6493_v28  ;;  %5003 = vmatmul.mubr.msk.bf16.gmra.mrb[8].mxu1 %vm699_vm0, %v6493_v28  ;;  %v380_v63 = vmul.bf16 %v342_v59, %v156_v61  ;;  %v379_v1 = vmul.bf16 %v330_v60, %v155_v62  ;;  %v5809_v56 = vld [vmem:[#allocation17 + $0x90] sm:$0xff]   ;;  %v5811_v59 = vld [vmem:[#allocation17 + $0x18] sm:$0xff]   ;;  %v5814_v61 = vld [vmem:[#allocation17 + $0x60] sm:$0xff]  }
 0x130   :  { %786 = vmatprep.mubr.bf16.mxu0 %v6269_v0  ;;  %899 = vmatprep.mubr.bf16.mxu1 %v6269_v0  ;;  %v358_v2 = vpop.permute.xlu1 %357  ;;  %v346_v6 = vpop.permute.xlu0 %345  ;;  %v5813_v60 = vld [vmem:[#allocation17 + $0x98] sm:$0xff]   ;;  %v5816_v62 = vld [vmem:[#allocation17 + $0xe0] sm:$0xff]  }
 0x131   :  { %v6533_v7 = vcombine.low %v379_v1, %v380_v63  ;;  %v366_v8 = vrot.slane %v358_v2, %v6457_v48  ;;  %v354_v11 = vrot.slane %v346_v6, %v6457_v48  ;;  %v403_v48 = vld [vmem:[#allocation14 + $0xa0] sm:$0xff]  ;;  %v421_v63 = vsub.s32 0, %v6454_v47 }
 0x132   :  { %v4986_v24 = vcombine.high %v403_v48, %v411_v17  ;;  %v4985_v30 = vcombine.low %v403_v48, %v411_v17  ;;  %v429_v1 = vsub.s32 2, %v6454_v47  ;;  %v6665_v2 = vld [vmem:[#allocation15] sm:$0xff]  ;;  %v433_v6 = vsub.s32 3, %v6454_v47 }
 0x133   :  { %v382_v14 = vmul.bf16 %v366_v8, %v158_v12  ;;  %v381_v15 = vmul.bf16 %v354_v11, %v157_v13  ;;  %v5815_v8 = vld [vmem:[#allocation17 + $0x20] sm:$0xff]   ;;  %v5818_v12 = vld [vmem:[#allocation17 + $0x68] sm:$0xff]  }
 0x134   :  { %v5817_v11 = vld [vmem:[#allocation17 + $0xa0] sm:$0xff]   ;;  %v5820_v13 = vld [vmem:[#allocation17 + $0xe8] sm:$0xff]   ;;  %v6691_v17 = vrot.slane %v6665_v2, %v433_v6 }
 0x135   :  { %v6543_v16 = vcombine.low %v381_v15, %v382_v14  ;;  %v6676_v14 = vrot.slane %v6665_v2, %v421_v63  ;;  %v6681_v15 = vrot.slane %v6665_v2, %v429_v1 }
 0x137   :  { %4996 = vmatmul.mubr.msk.bf16.gmra.mrb[12].mxu0 %vm699_vm0, %v6503_v37  ;;  %5004 = vmatmul.mubr.msk.bf16.gmra.mrb[12].mxu1 %vm699_vm0, %v6503_v37 }
 0x138   :  { %796 = vmatprep.mubr.bf16.mxu0 %v6269_v0  ;;  %909 = vmatprep.mubr.bf16.mxu1 %v6269_v0 }
 0x13f   :  { %4997 = vmatmul.mubr.msk.bf16.gmra.mrb[16].mxu0 %vm699_vm0, %v6513_v49  ;;  %5005 = vmatmul.mubr.msk.bf16.gmra.mrb[16].mxu1 %vm699_vm0, %v6513_v49 }
 0x140   :  { %806 = vmatprep.mubr.bf16.mxu0 %v6269_v0  ;;  %919 = vmatprep.mubr.bf16.mxu1 %v6269_v0 }
 0x147   :  { %4998 = vmatmul.mubr.msk.bf16.gmra.mrb[20].mxu0 %vm699_vm0, %v6523_v58  ;;  %5006 = vmatmul.mubr.msk.bf16.gmra.mrb[20].mxu1 %vm699_vm0, %v6523_v58 }
 0x148   :  { %816 = vmatprep.mubr.bf16.mxu0 %v6269_v0  ;;  %929 = vmatprep.mubr.bf16.mxu1 %v6269_v0 }
 0x14f   :  { %4999 = vmatmul.mubr.msk.bf16.gmra.mrb[24].mxu0 %vm699_vm0, %v6533_v7  ;;  %5007 = vmatmul.mubr.msk.bf16.gmra.mrb[24].mxu1 %vm699_vm0, %v6533_v7 }
 0x150   :  { %826 = vmatprep.mubr.bf16.mxu0 %v6269_v0  ;;  %939 = vmatprep.mubr.bf16.mxu1 %v6269_v0 }
 0x157   :  { %5000 = vmatmul.mubr.msk.bf16.gmra.mrb[28].mxu0 %vm699_vm0, %v6543_v16  ;;  %5008 = vmatmul.mubr.msk.bf16.gmra.mrb[28].mxu1 %vm699_vm0, %v6543_v16 }
 0x158   :  { %982 = vmatprep.mubr.bf16.mxu0 %v6269_v0  ;;  %1095 = vmatprep.mubr.bf16.mxu1 %v6269_v0 }
 0x15f   :  { %5009 = vmatmul.mubr.msk.bf16.vlgmr.msra.gmra.mrb[32].mxu0 %vm699_vm0, %v6463_v3  ;;  %5017 = vmatmul.mubr.msk.bf16.vlgmr.msra.gmra.mrb[32].mxu1 %vm699_vm0, %v6463_v3 }
 0x160   :  { %1177 = vmatpush1.bf16.msra.mxu0 %v4969_v21  ;;  %1290 = vmatpush1.bf16.msra.mxu1 %v4971_v22  ;;  %v5822_v22 = vld [vmem:[#allocation17 + $0x70] sm:$0xff]  }
 0x161   :  { %992 = vmatprep.mubr.bf16.mxu0 %v6269_v0  ;;  %1105 = vmatprep.mubr.bf16.mxu1 %v6269_v0 }
 0x162   :  { %1178 = vmatprep.subr.bf16.mxu0 %v4986_v24  ;;  %1291 = vmatprep.subr.bf16.mxu1 %v4988_v25 }
 0x164   :  { %1179 = vmatpush1.bf16.msra.mxu0 %v4985_v30  ;;  %1292 = vmatpush1.bf16.msra.mxu1 %v4987_v31 }
 0x165   :  { %1402 = vmatprep.subr.bf16.mxu0 %v4974_v4  ;;  %1515 = vmatprep.subr.bf16.mxu1 %v4976_v5 }
 0x167   :  { %5010 = vmatmul.mubr.msk.bf16.gmra.mrb[36].mxu0 %vm699_vm0, %v6483_v19  ;;  %5018 = vmatmul.mubr.msk.bf16.gmra.mrb[36].mxu1 %vm699_vm0, %v6483_v19 }
 0x168   :  { %1002 = vmatprep.mubr.bf16.mxu0 %v6269_v0  ;;  %1115 = vmatprep.mubr.bf16.mxu1 %v6269_v0 }
 0x16f   :  { %5011 = vmatmul.mubr.msk.bf16.gmra.mrb[40].mxu0 %vm699_vm0, %v6493_v28  ;;  %5019 = vmatmul.mubr.msk.bf16.gmra.mrb[40].mxu1 %vm699_vm0, %v6493_v28 }
 0x170   :  { %1012 = vmatprep.mubr.bf16.mxu0 %v6269_v0  ;;  %1125 = vmatprep.mubr.bf16.mxu1 %v6269_v0 }
 0x177   :  { %5012 = vmatmul.mubr.msk.bf16.gmra.mrb[44].mxu0 %vm699_vm0, %v6503_v37  ;;  %5020 = vmatmul.mubr.msk.bf16.gmra.mrb[44].mxu1 %vm699_vm0, %v6503_v37 }
 0x178   :  { %1022 = vmatprep.mubr.bf16.mxu0 %v6269_v0  ;;  %1135 = vmatprep.mubr.bf16.mxu1 %v6269_v0 }
 0x17f   :  { %5013 = vmatmul.mubr.msk.bf16.gmra.mrb[48].mxu0 %vm699_vm0, %v6513_v49  ;;  %5021 = vmatmul.mubr.msk.bf16.gmra.mrb[48].mxu1 %vm699_vm0, %v6513_v49 }
 0x180   :  { %1032 = vmatprep.mubr.bf16.mxu0 %v6269_v0  ;;  %1145 = vmatprep.mubr.bf16.mxu1 %v6269_v0 }
 0x187   :  { %5014 = vmatmul.mubr.msk.bf16.gmra.mrb[52].mxu0 %vm699_vm0, %v6523_v58  ;;  %5022 = vmatmul.mubr.msk.bf16.gmra.mrb[52].mxu1 %vm699_vm0, %v6523_v58 }
 0x188   :  { %1042 = vmatprep.mubr.bf16.mxu0 %v6269_v0  ;;  %1155 = vmatprep.mubr.bf16.mxu1 %v6269_v0 }
 0x18f   :  { %5015 = vmatmul.mubr.msk.bf16.gmra.mrb[56].mxu0 %vm699_vm0, %v6533_v7  ;;  %5023 = vmatmul.mubr.msk.bf16.gmra.mrb[56].mxu1 %vm699_vm0, %v6533_v7 }
 0x190   :  { %1052 = vmatprep.mubr.bf16.mxu0 %v6269_v0  ;;  %1165 = vmatprep.mubr.bf16.mxu1 %v6269_v0 }
 0x197   :  { %5016 = vmatmul.mubr.msk.bf16.gmra.mrb[60].mxu0 %vm699_vm0, %v6543_v16  ;;  %5024 = vmatmul.mubr.msk.bf16.gmra.mrb[60].mxu1 %vm699_vm0, %v6543_v16 }
 0x198   :  { %1208 = vmatprep.mubr.bf16.mxu0 %v6269_v0  ;;  %1321 = vmatprep.mubr.bf16.mxu1 %v6269_v0 }
 0x19f   :  { %5025 = vmatmul.mubr.msk.bf16.vlgmr.msra.gmra.mrb[64].mxu0 %vm699_vm0, %v6463_v3  ;;  %5033 = vmatmul.mubr.msk.bf16.vlgmr.msra.gmra.mrb[64].mxu1 %vm699_vm0, %v6463_v3 }
 0x1a0   :  { %1403 = vmatpush1.bf16.msra.mxu0 %v4973_v34  ;;  %1516 = vmatpush1.bf16.msra.mxu1 %v4975_v35  ;;  %v5825_v34 = vld [vmem:[#allocation17 + $0xb0] sm:$0xff]  }
 0x1a1   :  { %1218 = vmatprep.mubr.bf16.mxu0 %v6269_v0  ;;  %1331 = vmatprep.mubr.bf16.mxu1 %v6269_v0 }
 0x1a2   :  { %1404 = vmatprep.subr.bf16.mxu0 %v4990_v36  ;;  %1517 = vmatprep.subr.bf16.mxu1 %v4992_v38  ;;  %v5826_v38 = vld [vmem:[#allocation17 + $0x78] sm:$0xff]  }
 0x1a4   :  { %1405 = vmatpush1.bf16.msra.mxu0 %v4989_v39  ;;  %1518 = vmatpush1.bf16.msra.mxu1 %v4991_v40  ;;  %v5828_v39 = vld [vmem:[#allocation17 + $0xf8] sm:$0xff]  }
 0x1a5   :  { %5265 = vmatprep.subr.bf16.mxu0 %v5798_v41  ;;  %5329 = vmatprep.subr.bf16.mxu1 %v5800_v42 }
 0x1a7   :  { %5026 = vmatmul.mubr.msk.bf16.gmra.mrb[68].mxu0 %vm699_vm0, %v6483_v19  ;;  %5034 = vmatmul.mubr.msk.bf16.gmra.mrb[68].mxu1 %vm699_vm0, %v6483_v19 }
 0x1a8   :  { %1228 = vmatprep.mubr.bf16.mxu0 %v6269_v0  ;;  %1341 = vmatprep.mubr.bf16.mxu1 %v6269_v0 }
 0x1af   :  { %5027 = vmatmul.mubr.msk.bf16.gmra.mrb[72].mxu0 %vm699_vm0, %v6493_v28  ;;  %5035 = vmatmul.mubr.msk.bf16.gmra.mrb[72].mxu1 %vm699_vm0, %v6493_v28 }
 0x1b0   :  { %1238 = vmatprep.mubr.bf16.mxu0 %v6269_v0  ;;  %1351 = vmatprep.mubr.bf16.mxu1 %v6269_v0 }
 0x1b7   :  { %5028 = vmatmul.mubr.msk.bf16.gmra.mrb[76].mxu0 %vm699_vm0, %v6503_v37  ;;  %5036 = vmatmul.mubr.msk.bf16.gmra.mrb[76].mxu1 %vm699_vm0, %v6503_v37 }
 0x1b8   :  { %1248 = vmatprep.mubr.bf16.mxu0 %v6269_v0  ;;  %1361 = vmatprep.mubr.bf16.mxu1 %v6269_v0 }
 0x1bf   :  { %5029 = vmatmul.mubr.msk.bf16.gmra.mrb[80].mxu0 %vm699_vm0, %v6513_v49  ;;  %5037 = vmatmul.mubr.msk.bf16.gmra.mrb[80].mxu1 %vm699_vm0, %v6513_v49 }
 0x1c0   :  { %1258 = vmatprep.mubr.bf16.mxu0 %v6269_v0  ;;  %1371 = vmatprep.mubr.bf16.mxu1 %v6269_v0 }
 0x1c7   :  { %5030 = vmatmul.mubr.msk.bf16.gmra.mrb[84].mxu0 %vm699_vm0, %v6523_v58  ;;  %5038 = vmatmul.mubr.msk.bf16.gmra.mrb[84].mxu1 %vm699_vm0, %v6523_v58 }
 0x1c8   :  { %1268 = vmatprep.mubr.bf16.mxu0 %v6269_v0  ;;  %1381 = vmatprep.mubr.bf16.mxu1 %v6269_v0 }
 0x1cf   :  { %5031 = vmatmul.mubr.msk.bf16.gmra.mrb[88].mxu0 %vm699_vm0, %v6533_v7  ;;  %5039 = vmatmul.mubr.msk.bf16.gmra.mrb[88].mxu1 %vm699_vm0, %v6533_v7 }
 0x1d0   :  { %1278 = vmatprep.mubr.bf16.mxu0 %v6269_v0  ;;  %1391 = vmatprep.mubr.bf16.mxu1 %v6269_v0 }
 0x1d7   :  { %5032 = vmatmul.mubr.msk.bf16.gmra.mrb[92].mxu0 %vm699_vm0, %v6543_v16  ;;  %5040 = vmatmul.mubr.msk.bf16.gmra.mrb[92].mxu1 %vm699_vm0, %v6543_v16 }
 0x1d8   :  { %1434 = vmatprep.mubr.bf16.mxu0 %v6269_v0  ;;  %1547 = vmatprep.mubr.bf16.mxu1 %v6269_v0 }
 0x1df   :  { %5041 = vmatmul.mubr.msk.bf16.vlgmr.msra.gmra.mrb[96].mxu0 %vm699_vm0, %v6463_v3  ;;  %5049 = vmatmul.mubr.msk.bf16.vlgmr.msra.gmra.mrb[96].mxu1 %vm699_vm0, %v6463_v3  ;;  %v5812_v3 = vld [vmem:[#allocation17 + $0xd8] sm:$0xff]  }
 0x1e0   :  { %5266 = vmatpush3.bf16.msra.mxu0 %v5799_v43  ;;  %5330 = vmatpush3.bf16.msra.mxu1 %v5801_v44 }
 0x1e1   :  { %1444 = vmatprep.mubr.bf16.mxu0 %v6269_v0  ;;  %1557 = vmatprep.mubr.bf16.mxu1 %v6269_v0 }
 0x1e2   :  { %5267 = vmatprep.subr.bf16.mxu0 %v5802_v46  ;;  %5331 = vmatprep.subr.bf16.mxu1 %v5804_v50 }
 0x1e4   :  { %5268 = vmatpush3.bf16.msra.mxu0 %v5803_v51  ;;  %5332 = vmatpush3.bf16.msra.mxu1 %v5805_v52 }
 0x1e5   :  { %5269 = vmatprep.subr.bf16.mxu0 %v5806_v53  ;;  %5333 = vmatprep.subr.bf16.mxu1 %v5808_v54  ;;  %v5827_v54 = vld [vmem:[#allocation17 + $0x38] sm:$0xff]  }
 0x1e7   :  { %5042 = vmatmul.mubr.msk.bf16.gmra.mrb[100].mxu0 %vm699_vm0, %v6483_v19  ;;  %5050 = vmatmul.mubr.msk.bf16.gmra.mrb[100].mxu1 %vm699_vm0, %v6483_v19  ;;  %v425_v19 = vsub.s32 1, %v6454_v47 }
 0x1e8   :  { %1454 = vmatprep.mubr.bf16.mxu0 %v6269_v0  ;;  %1567 = vmatprep.mubr.bf16.mxu1 %v6269_v0 }
 0x1e9   :  { %5270 = vmatpush3.bf16.msra.mxu0 %v5807_v55  ;;  %5334 = vmatpush3.bf16.msra.mxu1 %v5809_v56  ;;  %v6686_v48 = vrot.slane %v6665_v2, %v425_v19  ;;  %v5829_v55 = vld [vmem:[#allocation17 + $0xb8] sm:$0xff]  }
 0x1ea   :  { %5271 = vmatprep.subr.bf16.mxu0 %v5810_v57  ;;  %5335 = vmatprep.subr.bf16.mxu1 %v5812_v3 }
 0x1ed   :  { %5272 = vmatpush3.bf16.msra.mxu0 %v5811_v59  ;;  %5336 = vmatpush3.bf16.msra.mxu1 %v5813_v60  ;;  %v5830_v59 = vld [vmem:[#allocation17 + $0x140] sm:$0xff]  }
 0x1ee   :  { %5273 = vmatprep.subr.bf16.mxu0 %v5814_v61  ;;  %5337 = vmatprep.subr.bf16.mxu1 %v5816_v62  ;;  %v5832_v60 = vld [vmem:[#allocation17 + $0x1c0] sm:$0xff]  }
 0x1ef   :  { %5043 = vmatmul.mubr.msk.bf16.gmra.mrb[104].mxu0 %vm699_vm0, %v6493_v28  ;;  %5051 = vmatmul.mubr.msk.bf16.gmra.mrb[104].mxu1 %vm699_vm0, %v6493_v28  ;;  %v5819_v28 = vld [vmem:[#allocation17 + $0x28] sm:$0xff]  }
 0x1f0   :  { %1464 = vmatprep.mubr.bf16.mxu0 %v6269_v0  ;;  %1577 = vmatprep.mubr.bf16.mxu1 %v6269_v0 }
 0x1f1   :  { %5274 = vmatpush3.bf16.msra.mxu0 %v5815_v8  ;;  %5338 = vmatpush3.bf16.msra.mxu1 %v5817_v11 }
 0x1f2   :  { %v758_v20 = vpop.f32.mrb[0].mxu0  ;;  %v871_v21 = vpop.f32.mrb[0].mxu1  ;;  %5275 = vmatprep.subr.bf16.mxu0 %v5818_v12  ;;  %5339 = vmatprep.subr.bf16.mxu1 %v5820_v13 }
 0x1f3   :  { %v759_v24 = vadd.f32 %v758_v20, %v6676_v14  ;;  %v872_v25 = vadd.f32 %v871_v21, %v6681_v15  ;;  %v760_v26 = vpop.f32.mrb[1].mxu0  ;;  %v873_v27 = vpop.f32.mrb[1].mxu1 }
 0x1f4   :  { %v761_v29 = vadd.f32 %v760_v26, %v6686_v48  ;;  %v874_v30 = vadd.f32 %v873_v27, %v6691_v17  ;;  %v762_v31 = vpop.f32.mrb[2].mxu0  ;;  %v875_v4 = vpop.f32.mrb[2].mxu1 }
 0x1f5   :  { %v763_v5 = vadd.f32 %v762_v31, %v6676_v14  ;;  %v876_v9 = vadd.f32 %v875_v4, %v6681_v15  ;;  %v764_v10 = vpop.f32.mrb[3].mxu0  ;;  %v877_v32 = vpop.f32.mrb[3].mxu1  ;;  %5276 = vmatpush3.bf16.msra.mxu0 %v5819_v28  ;;  %5340 = vmatpush3.bf16.msra.mxu1 %v5821_v18  ;;  %v1628_v40 = vmax.f32 %v759_v24, 0.0  ;;  %v1630_v41 = vmax.f32 %v872_v25, 0.0 }
 0x1f6   :  { %v765_v35 = vadd.f32 %v764_v10, %v6686_v48  ;;  %v878_v36 = vadd.f32 %v877_v32, %v6691_v17  ;;  %5277 = vmatprep.subr.bf16.mxu0 %v5822_v22  ;;  %5341 = vmatprep.subr.bf16.mxu1 %v5824_v23  ;;  %v1629_v44 = vmax.f32 %v761_v29, 0.0  ;;  %v1631_v46 = vmax.f32 %v874_v30, 0.0 }
 0x1f7   :  { %v1644_v42 = vmax.f32 %v763_v5, 0.0  ;;  %v1646_v43 = vmax.f32 %v876_v9, 0.0  ;;  %5044 = vmatmul.mubr.msk.bf16.gmra.mrb[108].mxu0 %vm699_vm0, %v6503_v37  ;;  %5052 = vmatmul.mubr.msk.bf16.gmra.mrb[108].mxu1 %vm699_vm0, %v6503_v37 }
 0x1f8   :  { %v1645_v50 = vmax.f32 %v765_v35, 0.0  ;;  %v1647_v51 = vmax.f32 %v878_v36, 0.0  ;;  %1474 = vmatprep.mubr.bf16.mxu0 %v6269_v0  ;;  %1587 = vmatprep.mubr.bf16.mxu1 %v6269_v0 }
 0x1f9   :  { %v6709_v52 = vpack.c.bf16 %v1644_v42, %v1628_v40  ;;  %v6711_v53 = vpack.c.bf16 %v1646_v43, %v1630_v41  ;;  %5278 = vmatpush3.bf16.msra.mxu0 %v5823_v33  ;;  %5342 = vmatpush3.bf16.msra.mxu1 %v5825_v34 }
 0x1fa   :  { %v6713_v56 = vpack.c.bf16 %v1645_v50, %v1629_v44  ;;  %v6715_v57 = vpack.c.bf16 %v1647_v51, %v1631_v46  ;;  %v768_v37 = vpop.f32.mrb[4].mxu0  ;;  %v881_v3 = vpop.f32.mrb[4].mxu1  ;;  %5279 = vmatprep.subr.bf16.mxu0 %v5826_v38  ;;  %5343 = vmatprep.subr.bf16.mxu1 %v5828_v39 }
 0x1fb   :  { %v769_v61 = vadd.f32 %v768_v37, %v6676_v14  ;;  %v882_v62 = vadd.f32 %v881_v3, %v6681_v15  ;;  %v770_v8 = vpop.f32.mrb[5].mxu0  ;;  %v883_v11 = vpop.f32.mrb[5].mxu1 }
 0x1fc   :  { %v771_v12 = vadd.f32 %v770_v8, %v6686_v48  ;;  %v884_v13 = vadd.f32 %v883_v11, %v6691_v17  ;;  %v772_v28 = vpop.f32.mrb[6].mxu0  ;;  %v885_v18 = vpop.f32.mrb[6].mxu1 }
 0x1fd   :  { %v773_v20 = vadd.f32 %v772_v28, %v6676_v14  ;;  %v886_v21 = vadd.f32 %v885_v18, %v6681_v15  ;;  %v774_v22 = vpop.f32.mrb[7].mxu0  ;;  %v887_v23 = vpop.f32.mrb[7].mxu1  ;;  %5280 = vmatpush3.bf16.msra.mxu0 %v5827_v54  ;;  %5344 = vmatpush3.bf16.msra.mxu1 %v5829_v55  ;;  %v1660_v26 = vmax.f32 %v769_v61, 0.0  ;;  %v1662_v27 = vmax.f32 %v882_v62, 0.0 }
 0x1fe   :  { %v775_v24 = vadd.f32 %v774_v22, %v6686_v48  ;;  %v888_v25 = vadd.f32 %v887_v23, %v6691_v17  ;;  %5393 = vmatprep.subr.bf16.mxu0 %v5830_v59  ;;  %5457 = vmatprep.subr.bf16.mxu1 %v5832_v60  ;;  %v1661_v31 = vmax.f32 %v771_v12, 0.0  ;;  %v1663_v4 = vmax.f32 %v884_v13, 0.0 }
 0x1ff   :  { %v1676_v29 = vmax.f32 %v773_v20, 0.0  ;;  %v1678_v30 = vmax.f32 %v886_v21, 0.0  ;;  %5045 = vmatmul.mubr.msk.bf16.gmra.mrb[112].mxu0 %vm699_vm0, %v6513_v49  ;;  %5053 = vmatmul.mubr.msk.bf16.gmra.mrb[112].mxu1 %vm699_vm0, %v6513_v49 }
 0x200   :  { %v1677_v5 = vmax.f32 %v775_v24, 0.0  ;;  %v1679_v9 = vmax.f32 %v888_v25, 0.0  ;;  %1484 = vmatprep.mubr.bf16.mxu0 %v6269_v0  ;;  %1597 = vmatprep.mubr.bf16.mxu1 %v6269_v0 }
 0x201   :  { %v6731_v10 = vpack.c.bf16 %v1676_v29, %v1660_v26  ;;  %v6733_v32 = vpack.c.bf16 %v1678_v30, %v1662_v27 }
 0x202   :  { %v6735_v33 = vpack.c.bf16 %v1677_v5, %v1661_v31  ;;  %v6737_v34 = vpack.c.bf16 %v1679_v9, %v1663_v4  ;;  %v778_v35 = vpop.f32.mrb[8].mxu0  ;;  %v891_v36 = vpop.f32.mrb[8].mxu1 }
 0x203   :  { %v779_v49 = vadd.f32 %v778_v35, %v6676_v14  ;;  %v892_v38 = vadd.f32 %v891_v36, %v6681_v15  ;;  %v780_v39 = vpop.f32.mrb[9].mxu0  ;;  %v893_v40 = vpop.f32.mrb[9].mxu1 }
 0x204   :  { %v781_v41 = vadd.f32 %v780_v39, %v6686_v48  ;;  %v894_v42 = vadd.f32 %v893_v40, %v6691_v17  ;;  %v782_v43 = vpop.f32.mrb[10].mxu0  ;;  %v895_v44 = vpop.f32.mrb[10].mxu1 }
 0x205   :  { %v783_v46 = vadd.f32 %v782_v43, %v6676_v14  ;;  %v896_v50 = vadd.f32 %v895_v44, %v6681_v15  ;;  %v784_v51 = vpop.f32.mrb[11].mxu0  ;;  %v897_v54 = vpop.f32.mrb[11].mxu1  ;;  %v1692_v3 = vmax.f32 %v779_v49, 0.0  ;;  %v1694_v59 = vmax.f32 %v892_v38, 0.0 }
 0x206   :  { %v785_v55 = vadd.f32 %v784_v51, %v6686_v48  ;;  %v898_v37 = vadd.f32 %v897_v54, %v6691_v17  ;;  %v1693_v62 = vmax.f32 %v781_v41, 0.0  ;;  %v1695_v8 = vmax.f32 %v894_v42, 0.0 }
 0x207   :  { %v1708_v60 = vmax.f32 %v783_v46, 0.0  ;;  %v1710_v61 = vmax.f32 %v896_v50, 0.0  ;;  %5046 = vmatmul.mubr.msk.bf16.gmra.mrb[116].mxu0 %vm699_vm0, %v6523_v58  ;;  %5054 = vmatmul.mubr.msk.bf16.gmra.mrb[116].mxu1 %vm699_vm0, %v6523_v58 }
 0x208   :  { %v1709_v11 = vmax.f32 %v785_v55, 0.0  ;;  %v1711_v12 = vmax.f32 %v898_v37, 0.0  ;;  %1494 = vmatprep.mubr.bf16.mxu0 %v6269_v0  ;;  %1607 = vmatprep.mubr.bf16.mxu1 %v6269_v0 }
 0x209   :  { %v6753_v13 = vpack.c.bf16 %v1708_v60, %v1692_v3  ;;  %v6755_v28 = vpack.c.bf16 %v1710_v61, %v1694_v59 }
 0x20a   :  { %v6757_v18 = vpack.c.bf16 %v1709_v11, %v1693_v62  ;;  %v6759_v20 = vpack.c.bf16 %v1711_v12, %v1695_v8  ;;  %v788_v21 = vpop.f32.mrb[12].mxu0  ;;  %v901_v22 = vpop.f32.mrb[12].mxu1 }
 0x20b   :  { %v789_v58 = vadd.f32 %v788_v21, %v6676_v14  ;;  %v902_v23 = vadd.f32 %v901_v22, %v6681_v15  ;;  %v790_v24 = vpop.f32.mrb[13].mxu0  ;;  %v903_v25 = vpop.f32.mrb[13].mxu1 }
 0x20c   :  { %v791_v26 = vadd.f32 %v790_v24, %v6686_v48  ;;  %v904_v27 = vadd.f32 %v903_v25, %v6691_v17  ;;  %v792_v29 = vpop.f32.mrb[14].mxu0  ;;  %v905_v30 = vpop.f32.mrb[14].mxu1 }
 0x20d   :  { %v793_v31 = vadd.f32 %v792_v29, %v6676_v14  ;;  %v906_v4 = vadd.f32 %v905_v30, %v6681_v15  ;;  %v794_v5 = vpop.f32.mrb[15].mxu0  ;;  %v907_v9 = vpop.f32.mrb[15].mxu1  ;;  %v1724_v49 = vmax.f32 %v789_v58, 0.0  ;;  %v1726_v38 = vmax.f32 %v902_v23, 0.0 }
 0x20e   :  { %v795_v35 = vadd.f32 %v794_v5, %v6686_v48  ;;  %v908_v36 = vadd.f32 %v907_v9, %v6691_v17  ;;  %v1725_v41 = vmax.f32 %v791_v26, 0.0  ;;  %v1727_v42 = vmax.f32 %v904_v27, 0.0 }
 0x20f   :  { %v1740_v39 = vmax.f32 %v793_v31, 0.0  ;;  %v1742_v40 = vmax.f32 %v906_v4, 0.0  ;;  %5047 = vmatmul.mubr.msk.bf16.gmra.mrb[120].mxu0 %vm699_vm0, %v6533_v7  ;;  %5055 = vmatmul.mubr.msk.bf16.gmra.mrb[120].mxu1 %vm699_vm0, %v6533_v7 }
 0x210   :  { %v1741_v43 = vmax.f32 %v795_v35, 0.0  ;;  %v1743_v44 = vmax.f32 %v908_v36, 0.0  ;;  %1504 = vmatprep.mubr.bf16.mxu0 %v6269_v0  ;;  %1617 = vmatprep.mubr.bf16.mxu1 %v6269_v0 }
 0x211   :  { %v6775_v46 = vpack.c.bf16 %v1740_v39, %v1724_v49  ;;  %v6777_v50 = vpack.c.bf16 %v1742_v40, %v1726_v38 }
 0x212   :  { %v6779_v51 = vpack.c.bf16 %v1741_v43, %v1725_v41  ;;  %v6781_v54 = vpack.c.bf16 %v1743_v44, %v1727_v42  ;;  %v798_v55 = vpop.f32.mrb[16].mxu0  ;;  %v911_v37 = vpop.f32.mrb[16].mxu1  ;;  %v5831_v44 = vld [vmem:[#allocation17 + $0x100] sm:$0xff]  }
 0x213   :  { %v799_v7 = vadd.f32 %v798_v55, %v6676_v14  ;;  %v912_v3 = vadd.f32 %v911_v37, %v6681_v15  ;;  %v800_v59 = vpop.f32.mrb[17].mxu0  ;;  %v913_v60 = vpop.f32.mrb[17].mxu1 }
 0x214   :  { %v801_v61 = vadd.f32 %v800_v59, %v6686_v48  ;;  %v914_v0 = vadd.f32 %v913_v60, %v6691_v17  ;;  %v802_v62 = vpop.f32.mrb[18].mxu0  ;;  %v915_v8 = vpop.f32.mrb[18].mxu1  ;;  %v5833_v59 = vld [vmem:[#allocation17 + $0x180] sm:$0xff]  }
 0x215   :  { %v803_v11 = vadd.f32 %v802_v62, %v6676_v14  ;;  %v916_v12 = vadd.f32 %v915_v8, %v6681_v15  ;;  %v804_v21 = vpop.f32.mrb[19].mxu0  ;;  %v917_v22 = vpop.f32.mrb[19].mxu1  ;;  %v1756_v24 = vmax.f32 %v799_v7, 0.0  ;;  %v1758_v25 = vmax.f32 %v912_v3, 0.0  ;;  %v5836_v62 = vld [vmem:[#allocation17 + $0x1c8] sm:$0xff]  }
 0x216   :  { %v805_v58 = vadd.f32 %v804_v21, %v6686_v48  ;;  %v918_v23 = vadd.f32 %v917_v22, %v6691_v17  ;;  %v1757_v29 = vmax.f32 %v801_v61, 0.0  ;;  %v1759_v30 = vmax.f32 %v914_v0, 0.0  ;;  %v5834_v0 = vld [vmem:[#allocation17 + $0x148] sm:$0xff]  }
 0x217   :  { %v1772_v26 = vmax.f32 %v803_v11, 0.0  ;;  %v1774_v27 = vmax.f32 %v916_v12, 0.0  ;;  %5048 = vmatmul.mubr.msk.bf16.gmra.mrb[124].mxu0 %vm699_vm0, %v6543_v16  ;;  %5056 = vmatmul.mubr.msk.bf16.gmra.mrb[124].mxu1 %vm699_vm0, %v6543_v16 }
 0x218   :  { %v1773_v31 = vmax.f32 %v805_v58, 0.0  ;;  %v1775_v4 = vmax.f32 %v918_v23, 0.0  ;;  %3380 = vmatprep.mubr.bf16.mxu0 %v6713_v56  ;;  %3477 = vmatprep.mubr.bf16.mxu1 %v6715_v57 }
 0x219   :  { %v6797_v5 = vpack.c.bf16 %v1772_v26, %v1756_v24  ;;  %v6799_v9 = vpack.c.bf16 %v1774_v27, %v1758_v25  ;;  %v5835_v25 = vld [vmem:[#allocation17 + $0x108] sm:$0xff]  }
 0x21a   :  { %v6801_v35 = vpack.c.bf16 %v1773_v31, %v1757_v29  ;;  %v6803_v36 = vpack.c.bf16 %v1775_v4, %v1759_v30  ;;  %v808_v49 = vpop.f32.mrb[20].mxu0  ;;  %v921_v38 = vpop.f32.mrb[20].mxu1  ;;  %v5837_v29 = vld [vmem:[#allocation17 + $0x188] sm:$0xff]   ;;  %v5838_v30 = vld [vmem:[#allocation17 + $0x150] sm:$0xff]  }
 0x21b   :  { %v809_v16 = vadd.f32 %v808_v49, %v6676_v14  ;;  %v922_v39 = vadd.f32 %v921_v38, %v6681_v15  ;;  %v810_v40 = vpop.f32.mrb[21].mxu0  ;;  %v923_v41 = vpop.f32.mrb[21].mxu1  ;;  %v5840_v49 = vld [vmem:[#allocation17 + $0x1d0] sm:$0xff]  }
 0x21c   :  { %v811_v56 = vadd.f32 %v810_v40, %v6686_v48  ;;  %v924_v57 = vadd.f32 %v923_v41, %v6691_v17  ;;  %v812_v42 = vpop.f32.mrb[22].mxu0  ;;  %v925_v43 = vpop.f32.mrb[22].mxu1 }
 0x21d   :  { %v813_v55 = vadd.f32 %v812_v42, %v6676_v14  ;;  %v926_v37 = vadd.f32 %v925_v43, %v6681_v15  ;;  %v814_v7 = vpop.f32.mrb[23].mxu0  ;;  %v927_v3 = vpop.f32.mrb[23].mxu1  ;;  %v1788_v8 = vmax.f32 %v809_v16, 0.0  ;;  %v1790_v11 = vmax.f32 %v922_v39, 0.0 }
 0x21e   :  { %v815_v60 = vadd.f32 %v814_v7, %v6686_v48  ;;  %v928_v61 = vadd.f32 %v927_v3, %v6691_v17  ;;  %v1789_v22 = vmax.f32 %v811_v56, 0.0  ;;  %v1791_v58 = vmax.f32 %v924_v57, 0.0 }
 0x21f   :  { %v1804_v12 = vmax.f32 %v813_v55, 0.0  ;;  %v1806_v21 = vmax.f32 %v926_v37, 0.0  ;;  %3381 = vmatmul.mubr.bf16.vlgmr.msra.gmra.mrb[128].mxu0 %v6709_v52  ;;  %3478 = vmatmul.mubr.bf16.vlgmr.msra.gmra.mrb[128].mxu1 %v6711_v53  ;;  %v5839_v55 = vld [vmem:[#allocation17 + $0x110] sm:$0xff]  }
 0x220   :  { %v1805_v23 = vmax.f32 %v815_v60, 0.0  ;;  %v1807_v24 = vmax.f32 %v928_v61, 0.0  ;;  %5394 = vmatpush3.bf16.msra.mxu0 %v5831_v44  ;;  %3388 = vmatprep.mubr.bf16.mxu0 %v6735_v33  ;;  %v5841_v37 = vld [vmem:[#allocation17 + $0x190] sm:$0xff]   ;;  %v445_v60 = vsub.s32 6, %v6454_v47  ;;  %v5842_v61 = vld [vmem:[#allocation17 + $0x158] sm:$0xff]  }
 0x221   :  { %v6816_v26 = vpack.c.bf16 %v1804_v12, %v1788_v8  ;;  %v6818_v27 = vpack.c.bf16 %v1806_v21, %v1790_v11  ;;  %3485 = vmatprep.mubr.bf16.mxu1 %v6737_v34  ;;  %5458 = vmatpush3.bf16.msra.mxu1 %v5833_v59  ;;  %v437_v59 = vsub.s32 4, %v6454_v47 }
 0x222   :  { %v6821_v52 = vpack.c.bf16 %v1805_v23, %v1789_v22  ;;  %v6823_v53 = vpack.c.bf16 %v1807_v24, %v1791_v58  ;;  %v818_v31 = vpop.f32.mrb[24].mxu0  ;;  %v931_v4 = vpop.f32.mrb[24].mxu1  ;;  %5395 = vmatprep.subr.bf16.mxu0 %v5834_v0  ;;  %5459 = vmatprep.subr.bf16.mxu1 %v5836_v62  ;;  %v5844_v0 = vld [vmem:[#allocation17 + $0x1d8] sm:$0xff]  }
 0x223   :  { %v819_v33 = vadd.f32 %v818_v31, %v6676_v14  ;;  %v932_v38 = vadd.f32 %v931_v4, %v6681_v15  ;;  %v820_v16 = vpop.f32.mrb[25].mxu0  ;;  %v933_v39 = vpop.f32.mrb[25].mxu1 }
 0x224   :  { %v821_v34 = vadd.f32 %v820_v16, %v6686_v48  ;;  %v934_v40 = vadd.f32 %v933_v39, %v6691_v17  ;;  %v822_v41 = vpop.f32.mrb[26].mxu0  ;;  %v935_v56 = vpop.f32.mrb[26].mxu1  ;;  %5396 = vmatpush3.bf16.msra.mxu0 %v5835_v25 }
 0x225   :  { %v823_v57 = vadd.f32 %v822_v41, %v6676_v14  ;;  %v936_v42 = vadd.f32 %v935_v56, %v6681_v15  ;;  %v824_v43 = vpop.f32.mrb[27].mxu0  ;;  %v937_v44 = vpop.f32.mrb[27].mxu1  ;;  %5460 = vmatpush3.bf16.msra.mxu1 %v5837_v29  ;;  %5397 = vmatprep.subr.bf16.mxu0 %v5838_v30  ;;  %v1820_v62 = vmax.f32 %v819_v33, 0.0  ;;  %v1822_v8 = vmax.f32 %v932_v38, 0.0  ;;  %v5843_v30 = vld [vmem:[#allocation17 + $0x118] sm:$0xff]   ;;  %v5848_v33 = vld [vmem:[#allocation17 + $0x1e0] sm:$0xff]  }
 0x226   :  { %v825_v7 = vadd.f32 %v824_v43, %v6686_v48  ;;  %v938_v3 = vadd.f32 %v937_v44, %v6691_v17  ;;  %5461 = vmatprep.subr.bf16.mxu1 %v5840_v49  ;;  %v1821_v21 = vmax.f32 %v821_v34, 0.0  ;;  %v1823_v22 = vmax.f32 %v934_v40, 0.0 }
 0x227   :  { %v1836_v11 = vmax.f32 %v823_v57, 0.0  ;;  %v1838_v12 = vmax.f32 %v936_v42, 0.0  ;;  %3389 = vmatmul.mubr.bf16.gmra.mrb[132].mxu0 %v6731_v10  ;;  %3486 = vmatmul.mubr.bf16.gmra.mrb[132].mxu1 %v6733_v32  ;;  %v441_v29 = vsub.s32 5, %v6454_v47  ;;  %v5845_v10 = vld [vmem:[#allocation17 + $0x198] sm:$0xff]   ;;  %v6856_v42 = vrot.slane %v6665_v2, %v437_v59 }
 0x228   :  { %v1837_v58 = vmax.f32 %v825_v7, 0.0  ;;  %v1839_v23 = vmax.f32 %v938_v3, 0.0  ;;  %3396 = vmatprep.mubr.bf16.mxu0 %v6757_v18  ;;  %3493 = vmatprep.mubr.bf16.mxu1 %v6759_v20  ;;  %v449_v18 = vsub.s32 7, %v6454_v47  ;;  %v5846_v20 = vld [vmem:[#allocation17 + $0x160] sm:$0xff]   ;;  %v6861_v43 = vrot.slane %v6665_v2, %v445_v60 }
 0x229   :  { %v6839_v24 = vpack.c.bf16 %v1836_v11, %v1820_v62  ;;  %v6841_v25 = vpack.c.bf16 %v1838_v12, %v1822_v8  ;;  %5398 = vmatpush3.bf16.msra.mxu0 %v5839_v55  ;;  %5462 = vmatpush3.bf16.msra.mxu1 %v5841_v37  ;;  %v6868_v3 = vrot.slane %v6665_v2, %v441_v29  ;;  %v5852_v11 = vld [vmem:[#allocation17 + $0x1e8] sm:$0xff]  }
 0x22a   :  { %v6844_v31 = vpack.c.bf16 %v1837_v58, %v1821_v21  ;;  %v6846_v32 = vpack.c.bf16 %v1839_v23, %v1823_v22  ;;  %v828_v4 = vpop.f32.mrb[28].mxu0  ;;  %v941_v49 = vpop.f32.mrb[28].mxu1  ;;  %5399 = vmatprep.subr.bf16.mxu0 %v5842_v61  ;;  %5463 = vmatprep.subr.bf16.mxu1 %v5844_v0  ;;  %v5847_v61 = vld [vmem:[#allocation17 + $0x120] sm:$0xff]  }
 0x22b   :  { %v829_v38 = vadd.f32 %v828_v4, %v6676_v14  ;;  %v942_v16 = vadd.f32 %v941_v49, %v6681_v15  ;;  %v830_v39 = vpop.f32.mrb[29].mxu0  ;;  %v943_v34 = vpop.f32.mrb[29].mxu1  ;;  %v5849_v0 = vld [vmem:[#allocation17 + $0x1a0] sm:$0xff]   ;;  %v5851_v4 = vld [vmem:[#allocation17 + $0x128] sm:$0xff]  }
 0x22c   :  { %v831_v40 = vadd.f32 %v830_v39, %v6686_v48  ;;  %v944_v41 = vadd.f32 %v943_v34, %v6691_v17  ;;  %v832_v56 = vpop.f32.mrb[30].mxu0  ;;  %v945_v57 = vpop.f32.mrb[30].mxu1  ;;  %v5853_v49 = vld [vmem:[#allocation17 + $0x1a8] sm:$0xff]  }
 0x22d   :  { %v833_v44 = vadd.f32 %v832_v56, %v6676_v14  ;;  %v946_v55 = vadd.f32 %v945_v57, %v6681_v15  ;;  %v834_v37 = vpop.f32.mrb[31].mxu0  ;;  %v947_v7 = vpop.f32.mrb[31].mxu1  ;;  %5400 = vmatpush3.bf16.msra.mxu0 %v5843_v30  ;;  %5464 = vmatpush3.bf16.msra.mxu1 %v5845_v10  ;;  %v6875_v14 = vrot.slane %v6665_v2, %v449_v18  ;;  %v5850_v15 = vld [vmem:[#allocation17 + $0x168] sm:$0xff]   ;;  %v1852_v12 = vmax.f32 %v829_v38, 0.0  ;;  %v5854_v38 = vld [vmem:[#allocation17 + $0x170] sm:$0xff]  }
 0x22e   :  { %v835_v62 = vadd.f32 %v834_v37, %v6686_v48  ;;  %v948_v8 = vadd.f32 %v947_v7, %v6691_v17  ;;  %5401 = vmatprep.subr.bf16.mxu0 %v5846_v20  ;;  %5465 = vmatprep.subr.bf16.mxu1 %v5848_v33  ;;  %v1854_v21 = vmax.f32 %v942_v16, 0.0  ;;  %v1853_v48 = vmax.f32 %v831_v40, 0.0 }
 0x22f   :  { %v1868_v22 = vmax.f32 %v833_v44, 0.0  ;;  %v1870_v58 = vmax.f32 %v946_v55, 0.0  ;;  %3397 = vmatmul.mubr.bf16.gmra.mrb[136].mxu0 %v6753_v13  ;;  %3494 = vmatmul.mubr.bf16.gmra.mrb[136].mxu1 %v6755_v28  ;;  %v1855_v23 = vmax.f32 %v944_v41, 0.0 }
 0x230   :  { %v1869_v17 = vmax.f32 %v835_v62, 0.0  ;;  %v1871_v30 = vmax.f32 %v948_v8, 0.0  ;;  %3404 = vmatprep.mubr.bf16.mxu0 %v6779_v51  ;;  %3501 = vmatprep.mubr.bf16.mxu1 %v6781_v54  ;;  %v5856_v51 = vld [vmem:[#allocation17 + $0x1f0] sm:$0xff]  }
 0x231   :  { %v6881_v2 = vpack.c.bf16 %v1868_v22, %v1852_v12  ;;  %v6883_v10 = vpack.c.bf16 %v1870_v58, %v1854_v21  ;;  %5402 = vmatpush3.bf16.msra.mxu0 %v5847_v61  ;;  %5466 = vmatpush3.bf16.msra.mxu1 %v5849_v0  ;;  %v5855_v61 = vld [vmem:[#allocation17 + $0x130] sm:$0xff]  }
 0x232   :  { %v6885_v20 = vpack.c.bf16 %v1869_v17, %v1853_v48  ;;  %v6887_v13 = vpack.c.bf16 %v1871_v30, %v1855_v23  ;;  %v984_v28 = vpop.f32.mrb[32].mxu0  ;;  %v1097_v33 = vpop.f32.mrb[32].mxu1  ;;  %5403 = vmatprep.subr.bf16.mxu0 %v5850_v15  ;;  %5467 = vmatprep.subr.bf16.mxu1 %v5852_v11  ;;  %v5857_v0 = vld [vmem:[#allocation17 + $0x1b0] sm:$0xff]   ;;  %v5858_v15 = vld [vmem:[#allocation17 + $0x178] sm:$0xff]  }
 0x233   :  { %v985_v54 = vadd.f32 %v984_v28, %v6856_v42  ;;  %v1098_v16 = vadd.f32 %v1097_v33, %v6861_v43  ;;  %v986_v39 = vpop.f32.mrb[33].mxu0  ;;  %v1099_v34 = vpop.f32.mrb[33].mxu1  ;;  %v5860_v11 = vld [vmem:[#allocation17 + $0x1f8] sm:$0xff]  }
 0x234   :  { %v987_v40 = vadd.f32 %v986_v39, %v6868_v3  ;;  %v1100_v41 = vadd.f32 %v1099_v34, %v6875_v14  ;;  %v988_v56 = vpop.f32.mrb[34].mxu0  ;;  %v1101_v57 = vpop.f32.mrb[34].mxu1  ;;  %v5859_v28 = vld [vmem:[#allocation17 + $0x138] sm:$0xff]  }
 0x235   :  { %v989_v44 = vadd.f32 %v988_v56, %v6856_v42  ;;  %v1102_v55 = vadd.f32 %v1101_v57, %v6861_v43  ;;  %v990_v37 = vpop.f32.mrb[35].mxu0  ;;  %v1103_v7 = vpop.f32.mrb[35].mxu1  ;;  %5404 = vmatpush3.bf16.msra.mxu0 %v5851_v4  ;;  %5468 = vmatpush3.bf16.msra.mxu1 %v5853_v49  ;;  %v1632_v12 = vmax.f32 %v985_v54, 0.0  ;;  %v1634_v21 = vmax.f32 %v1098_v16, 0.0  ;;  %v5861_v33 = vld [vmem:[#allocation17 + $0x1b8] sm:$0xff]   ;;  %v5862_v54 = vld [vmem:[#allocation17 + $0x240] sm:$0xff]  }
 0x236   :  { %v991_v62 = vadd.f32 %v990_v37, %v6868_v3  ;;  %v1104_v8 = vadd.f32 %v1103_v7, %v6875_v14  ;;  %5405 = vmatprep.subr.bf16.mxu0 %v5854_v38  ;;  %5469 = vmatprep.subr.bf16.mxu1 %v5856_v51  ;;  %v1633_v48 = vmax.f32 %v987_v40, 0.0  ;;  %v1635_v23 = vmax.f32 %v1100_v41, 0.0 }
 0x237   :  { %v1648_v22 = vmax.f32 %v989_v44, 0.0  ;;  %v1650_v58 = vmax.f32 %v1102_v55, 0.0  ;;  %3405 = vmatmul.mubr.bf16.gmra.mrb[140].mxu0 %v6775_v46  ;;  %3502 = vmatmul.mubr.bf16.gmra.mrb[140].mxu1 %v6777_v50 }
 0x238   :  { %v1649_v17 = vmax.f32 %v991_v62, 0.0  ;;  %v1651_v30 = vmax.f32 %v1104_v8, 0.0  ;;  %3412 = vmatprep.mubr.bf16.mxu0 %v6801_v35  ;;  %3509 = vmatprep.mubr.bf16.mxu1 %v6803_v36  ;;  %v5864_v35 = vld [vmem:[#allocation17 + $0x2c0] sm:$0xff]  }
 0x239   :  { %v6901_v4 = vpack.c.bf16 %v1648_v22, %v1632_v12  ;;  %v6903_v49 = vpack.c.bf16 %v1650_v58, %v1634_v21  ;;  %5406 = vmatpush3.bf16.msra.mxu0 %v5855_v61  ;;  %5470 = vmatpush3.bf16.msra.mxu1 %v5857_v0 }
 0x23a   :  { %v6905_v38 = vpack.c.bf16 %v1649_v17, %v1633_v48  ;;  %v6907_v46 = vpack.c.bf16 %v1651_v30, %v1635_v23  ;;  %v994_v50 = vpop.f32.mrb[36].mxu0  ;;  %v1107_v51 = vpop.f32.mrb[36].mxu1  ;;  %5407 = vmatprep.subr.bf16.mxu0 %v5858_v15  ;;  %5471 = vmatprep.subr.bf16.mxu1 %v5860_v11 }
 0x23b   :  { %v995_v36 = vadd.f32 %v994_v50, %v6856_v42  ;;  %v1108_v16 = vadd.f32 %v1107_v51, %v6861_v43  ;;  %v996_v39 = vpop.f32.mrb[37].mxu0  ;;  %v1109_v34 = vpop.f32.mrb[37].mxu1 }
 0x23c   :  { %v997_v40 = vadd.f32 %v996_v39, %v6868_v3  ;;  %v1110_v41 = vadd.f32 %v1109_v34, %v6875_v14  ;;  %v998_v56 = vpop.f32.mrb[38].mxu0  ;;  %v1111_v57 = vpop.f32.mrb[38].mxu1 }
 0x23d   :  { %v999_v44 = vadd.f32 %v998_v56, %v6856_v42  ;;  %v1112_v55 = vadd.f32 %v1111_v57, %v6861_v43  ;;  %v1000_v37 = vpop.f32.mrb[39].mxu0  ;;  %v1113_v7 = vpop.f32.mrb[39].mxu1  ;;  %5408 = vmatpush3.bf16.msra.mxu0 %v5859_v28  ;;  %5472 = vmatpush3.bf16.msra.mxu1 %v5861_v33  ;;  %v1664_v62 = vmax.f32 %v995_v36, 0.0  ;;  %v1666_v8 = vmax.f32 %v1108_v16, 0.0 }
 0x23e   :  { %v1001_v61 = vadd.f32 %v1000_v37, %v6868_v3  ;;  %v1114_v0 = vadd.f32 %v1113_v7, %v6875_v14  ;;  %5521 = vmatprep.subr.bf16.mxu0 %v5862_v54  ;;  %5585 = vmatprep.subr.bf16.mxu1 %v5864_v35  ;;  %v1665_v12 = vmax.f32 %v997_v40, 0.0  ;;  %v1667_v21 = vmax.f32 %v1110_v41, 0.0 }
 0x23f   :  { %v1680_v15 = vmax.f32 %v999_v44, 0.0  ;;  %v1682_v11 = vmax.f32 %v1112_v55, 0.0  ;;  %3413 = vmatmul.mubr.bf16.gmra.mrb[144].mxu0 %v6797_v5  ;;  %3510 = vmatmul.mubr.bf16.gmra.mrb[144].mxu1 %v6799_v9 }
 0x240   :  { %v1681_v22 = vmax.f32 %v1001_v61, 0.0  ;;  %v1683_v58 = vmax.f32 %v1114_v0, 0.0  ;;  %3420 = vmatprep.mubr.bf16.mxu0 %v6821_v52  ;;  %3517 = vmatprep.mubr.bf16.mxu1 %v6823_v53 }
 0x241   :  { %v6921_v48 = vpack.c.bf16 %v1680_v15, %v1664_v62  ;;  %v6923_v23 = vpack.c.bf16 %v1682_v11, %v1666_v8 }
 0x242   :  { %v6925_v17 = vpack.c.bf16 %v1681_v22, %v1665_v12  ;;  %v6927_v30 = vpack.c.bf16 %v1683_v58, %v1667_v21  ;;  %v1004_v28 = vpop.f32.mrb[40].mxu0  ;;  %v1117_v5 = vpop.f32.mrb[40].mxu1 }
 0x243   :  { %v1005_v9 = vadd.f32 %v1004_v28, %v6856_v42  ;;  %v1118_v33 = vadd.f32 %v1117_v5, %v6861_v43  ;;  %v1006_v50 = vpop.f32.mrb[41].mxu0  ;;  %v1119_v51 = vpop.f32.mrb[41].mxu1 }
 0x244   :  { %v1007_v52 = vadd.f32 %v1006_v50, %v6868_v3  ;;  %v1120_v53 = vadd.f32 %v1119_v51, %v6875_v14  ;;  %v1008_v54 = vpop.f32.mrb[42].mxu0  ;;  %v1121_v35 = vpop.f32.mrb[42].mxu1 }
 0x245   :  { %v1009_v36 = vadd.f32 %v1008_v54, %v6856_v42  ;;  %v1122_v16 = vadd.f32 %v1121_v35, %v6861_v43  ;;  %v1010_v39 = vpop.f32.mrb[43].mxu0  ;;  %v1123_v34 = vpop.f32.mrb[43].mxu1  ;;  %v1696_v56 = vmax.f32 %v1005_v9, 0.0  ;;  %v1698_v57 = vmax.f32 %v1118_v33, 0.0 }
 0x246   :  { %v1011_v40 = vadd.f32 %v1010_v39, %v6868_v3  ;;  %v1124_v41 = vadd.f32 %v1123_v34, %v6875_v14  ;;  %v1697_v37 = vmax.f32 %v1007_v52, 0.0  ;;  %v1699_v7 = vmax.f32 %v1120_v53, 0.0 }
 0x247   :  { %v1712_v44 = vmax.f32 %v1009_v36, 0.0  ;;  %v1714_v55 = vmax.f32 %v1122_v16, 0.0  ;;  %3421 = vmatmul.mubr.bf16.gmra.mrb[148].mxu0 %v6816_v26  ;;  %3518 = vmatmul.mubr.bf16.gmra.mrb[148].mxu1 %v6818_v27 }
 0x248   :  { %v1713_v61 = vmax.f32 %v1011_v40, 0.0  ;;  %v1715_v0 = vmax.f32 %v1124_v41, 0.0  ;;  %3428 = vmatprep.mubr.bf16.mxu0 %v6844_v31  ;;  %3525 = vmatprep.mubr.bf16.mxu1 %v6846_v32 }
 0x249   :  { %v6941_v62 = vpack.c.bf16 %v1712_v44, %v1696_v56  ;;  %v6943_v8 = vpack.c.bf16 %v1714_v55, %v1698_v57 }
 0x24a   :  { %v6945_v15 = vpack.c.bf16 %v1713_v61, %v1697_v37  ;;  %v6947_v11 = vpack.c.bf16 %v1715_v0, %v1699_v7  ;;  %v1014_v12 = vpop.f32.mrb[44].mxu0  ;;  %v1127_v26 = vpop.f32.mrb[44].mxu1 }
 0x24b   :  { %v1015_v27 = vadd.f32 %v1014_v12, %v6856_v42  ;;  %v1128_v21 = vadd.f32 %v1127_v26, %v6861_v43  ;;  %v1016_v22 = vpop.f32.mrb[45].mxu0  ;;  %v1129_v58 = vpop.f32.mrb[45].mxu1 }
 0x24c   :  { %v1017_v31 = vadd.f32 %v1016_v22, %v6868_v3  ;;  %v1130_v32 = vadd.f32 %v1129_v58, %v6875_v14  ;;  %v1018_v28 = vpop.f32.mrb[46].mxu0  ;;  %v1131_v5 = vpop.f32.mrb[46].mxu1 }
 0x24d   :  { %v1019_v9 = vadd.f32 %v1018_v28, %v6856_v42  ;;  %v1132_v33 = vadd.f32 %v1131_v5, %v6861_v43  ;;  %v1020_v50 = vpop.f32.mrb[47].mxu0  ;;  %v1133_v51 = vpop.f32.mrb[47].mxu1  ;;  %v1728_v54 = vmax.f32 %v1015_v27, 0.0  ;;  %v1730_v35 = vmax.f32 %v1128_v21, 0.0 }
 0x24e   :  { %v1021_v52 = vadd.f32 %v1020_v50, %v6868_v3  ;;  %v1134_v53 = vadd.f32 %v1133_v51, %v6875_v14  ;;  %v1729_v39 = vmax.f32 %v1017_v31, 0.0  ;;  %v1731_v34 = vmax.f32 %v1130_v32, 0.0 }
 0x24f   :  { %v1744_v36 = vmax.f32 %v1019_v9, 0.0  ;;  %v1746_v16 = vmax.f32 %v1132_v33, 0.0  ;;  %3429 = vmatmul.mubr.bf16.gmra.mrb[152].mxu0 %v6839_v24  ;;  %3526 = vmatmul.mubr.bf16.gmra.mrb[152].mxu1 %v6841_v25 }
 0x250   :  { %v1745_v40 = vmax.f32 %v1021_v52, 0.0  ;;  %v1747_v41 = vmax.f32 %v1134_v53, 0.0  ;;  %3436 = vmatprep.mubr.bf16.mxu0 %v6885_v20  ;;  %3533 = vmatprep.mubr.bf16.mxu1 %v6887_v13 }
 0x251   :  { %v6961_v56 = vpack.c.bf16 %v1744_v36, %v1728_v54  ;;  %v6963_v57 = vpack.c.bf16 %v1746_v16, %v1730_v35 }
 0x252   :  { %v6965_v44 = vpack.c.bf16 %v1745_v40, %v1729_v39  ;;  %v6967_v55 = vpack.c.bf16 %v1747_v41, %v1731_v34  ;;  %v1024_v37 = vpop.f32.mrb[48].mxu0  ;;  %v1137_v24 = vpop.f32.mrb[48].mxu1 }
 0x253   :  { %v1025_v25 = vadd.f32 %v1024_v37, %v6856_v42  ;;  %v1138_v7 = vadd.f32 %v1137_v24, %v6861_v43  ;;  %v1026_v61 = vpop.f32.mrb[49].mxu0  ;;  %v1139_v0 = vpop.f32.mrb[49].mxu1 }
 0x254   :  { %v1027_v20 = vadd.f32 %v1026_v61, %v6868_v3  ;;  %v1140_v13 = vadd.f32 %v1139_v0, %v6875_v14  ;;  %v1028_v12 = vpop.f32.mrb[50].mxu0  ;;  %v1141_v26 = vpop.f32.mrb[50].mxu1 }
 0x255   :  { %v1029_v27 = vadd.f32 %v1028_v12, %v6856_v42  ;;  %v1142_v21 = vadd.f32 %v1141_v26, %v6861_v43  ;;  %v1030_v22 = vpop.f32.mrb[51].mxu0  ;;  %v1143_v58 = vpop.f32.mrb[51].mxu1  ;;  %v1760_v28 = vmax.f32 %v1025_v25, 0.0  ;;  %v1762_v5 = vmax.f32 %v1138_v7, 0.0  ;;  %v5863_v25 = vld [vmem:[#allocation17 + $0x200] sm:$0xff]  }
 0x256   :  { %v1031_v31 = vadd.f32 %v1030_v22, %v6868_v3  ;;  %v1144_v32 = vadd.f32 %v1143_v58, %v6875_v14  ;;  %v1761_v50 = vmax.f32 %v1027_v20, 0.0  ;;  %v1763_v51 = vmax.f32 %v1140_v13, 0.0  ;;  %v5865_v13 = vld [vmem:[#allocation17 + $0x280] sm:$0xff]  }
 0x257   :  { %v1776_v9 = vmax.f32 %v1029_v27, 0.0  ;;  %v1778_v33 = vmax.f32 %v1142_v21, 0.0  ;;  %3437 = vmatmul.mubr.bf16.gmra.mrb[156].mxu0 %v6881_v2  ;;  %3534 = vmatmul.mubr.bf16.gmra.mrb[156].mxu1 %v6883_v10  ;;  %v5866_v27 = vld [vmem:[#allocation17 + $0x248] sm:$0xff]  }
 0x258   :  { %v1777_v52 = vmax.f32 %v1031_v31, 0.0  ;;  %v1779_v53 = vmax.f32 %v1144_v32, 0.0  ;;  %3574 = vmatprep.mubr.bf16.mxu0 %v6905_v38  ;;  %3671 = vmatprep.mubr.bf16.mxu1 %v6907_v46  ;;  %v5868_v21 = vld [vmem:[#allocation17 + $0x2c8] sm:$0xff]  }
 0x259   :  { %v6981_v54 = vpack.c.bf16 %v1776_v9, %v1760_v28  ;;  %v6983_v35 = vpack.c.bf16 %v1778_v33, %v1762_v5 }
 0x25a   :  { %v6985_v36 = vpack.c.bf16 %v1777_v52, %v1761_v50  ;;  %v6987_v16 = vpack.c.bf16 %v1779_v53, %v1763_v51  ;;  %v1034_v39 = vpop.f32.mrb[52].mxu0  ;;  %v1147_v2 = vpop.f32.mrb[52].mxu1  ;;  %v5867_v50 = vld [vmem:[#allocation17 + $0x208] sm:$0xff]  }
 0x25b   :  { %v1035_v10 = vadd.f32 %v1034_v39, %v6856_v42  ;;  %v1148_v34 = vadd.f32 %v1147_v2, %v6861_v43  ;;  %v1036_v40 = vpop.f32.mrb[53].mxu0  ;;  %v1149_v41 = vpop.f32.mrb[53].mxu1  ;;  %v5869_v53 = vld [vmem:[#allocation17 + $0x288] sm:$0xff]   ;;  %v5870_v39 = vld [vmem:[#allocation17 + $0x250] sm:$0xff]  }
 0x25c   :  { %v1037_v38 = vadd.f32 %v1036_v40, %v6868_v3  ;;  %v1150_v46 = vadd.f32 %v1149_v41, %v6875_v14  ;;  %v1038_v37 = vpop.f32.mrb[54].mxu0  ;;  %v1151_v24 = vpop.f32.mrb[54].mxu1 }
 0x25d   :  { %v1039_v7 = vadd.f32 %v1038_v37, %v6856_v42  ;;  %v1152_v61 = vadd.f32 %v1151_v24, %v6861_v43  ;;  %v1040_v0 = vpop.f32.mrb[55].mxu0  ;;  %v1153_v20 = vpop.f32.mrb[55].mxu1  ;;  %v1792_v22 = vmax.f32 %v1035_v10, 0.0  ;;  %v1794_v58 = vmax.f32 %v1148_v34, 0.0  ;;  %v5872_v34 = vld [vmem:[#allocation17 + $0x2d0] sm:$0xff]  }
 0x25e   :  { %v1041_v12 = vadd.f32 %v1040_v0, %v6868_v3  ;;  %v1154_v26 = vadd.f32 %v1153_v20, %v6875_v14  ;;  %v1793_v28 = vmax.f32 %v1037_v38, 0.0  ;;  %v1795_v5 = vmax.f32 %v1150_v46, 0.0  ;;  %v5871_v20 = vld [vmem:[#allocation17 + $0x210] sm:$0xff]  }
 0x25f   :  { %v1808_v31 = vmax.f32 %v1039_v7, 0.0  ;;  %v1810_v32 = vmax.f32 %v1152_v61, 0.0  ;;  %3575 = vmatmul.mubr.bf16.vlgmr.msra.gmra.mrb[160].mxu0 %v6901_v4  ;;  %3672 = vmatmul.mubr.bf16.vlgmr.msra.gmra.mrb[160].mxu1 %v6903_v49 }
 0x260   :  { %v1809_v9 = vmax.f32 %v1041_v12, 0.0  ;;  %v1811_v33 = vmax.f32 %v1154_v26, 0.0  ;;  %5522 = vmatpush3.bf16.msra.mxu0 %v5863_v25  ;;  %3582 = vmatprep.mubr.bf16.mxu0 %v6925_v17 }
 0x261   :  { %v7000_v51 = vpack.c.bf16 %v1808_v31, %v1792_v22  ;;  %v7002_v52 = vpack.c.bf16 %v1810_v32, %v1794_v58  ;;  %3679 = vmatprep.mubr.bf16.mxu1 %v6927_v30  ;;  %5586 = vmatpush3.bf16.msra.mxu1 %v5865_v13  ;;  %v5873_v13 = vld [vmem:[#allocation17 + $0x290] sm:$0xff]  }
 0x262   :  { %v7005_v4 = vpack.c.bf16 %v1809_v9, %v1793_v28  ;;  %v7007_v49 = vpack.c.bf16 %v1811_v33, %v1795_v5  ;;  %v1044_v2 = vpop.f32.mrb[56].mxu0  ;;  %v1157_v10 = vpop.f32.mrb[56].mxu1  ;;  %5523 = vmatprep.subr.bf16.mxu0 %v5866_v27  ;;  %5587 = vmatprep.subr.bf16.mxu1 %v5868_v21  ;;  %v5874_v27 = vld [vmem:[#allocation17 + $0x258] sm:$0xff]  }
 0x263   :  { %v1045_v17 = vadd.f32 %v1044_v2, %v6856_v42  ;;  %v1158_v40 = vadd.f32 %v1157_v10, %v6861_v43  ;;  %v1046_v41 = vpop.f32.mrb[57].mxu0  ;;  %v1159_v38 = vpop.f32.mrb[57].mxu1  ;;  %v5876_v21 = vld [vmem:[#allocation17 + $0x2d8] sm:$0xff]  }
 0x264   :  { %v1047_v30 = vadd.f32 %v1046_v41, %v6868_v3  ;;  %v1160_v46 = vadd.f32 %v1159_v38, %v6875_v14  ;;  %v1048_v37 = vpop.f32.mrb[58].mxu0  ;;  %v1161_v24 = vpop.f32.mrb[58].mxu1  ;;  %5524 = vmatpush3.bf16.msra.mxu0 %v5867_v50  ;;  %v5875_v2 = vld [vmem:[#allocation17 + $0x218] sm:$0xff]  }
 0x265   :  { %v1049_v25 = vadd.f32 %v1048_v37, %v6856_v42  ;;  %v1162_v7 = vadd.f32 %v1161_v24, %v6861_v43  ;;  %v1050_v61 = vpop.f32.mrb[59].mxu0  ;;  %v1163_v0 = vpop.f32.mrb[59].mxu1  ;;  %5588 = vmatpush3.bf16.msra.mxu1 %v5869_v53  ;;  %5525 = vmatprep.subr.bf16.mxu0 %v5870_v39  ;;  %v1824_v22 = vmax.f32 %v1045_v17, 0.0  ;;  %v1826_v58 = vmax.f32 %v1158_v40, 0.0  ;;  %v7025_v39 = vld [vmem:[#allocation15 + $0x8] sm:$0xff] }
 0x266   :  { %v1051_v12 = vadd.f32 %v1050_v61, %v6868_v3  ;;  %v1164_v26 = vadd.f32 %v1163_v0, %v6875_v14  ;;  %5589 = vmatprep.subr.bf16.mxu1 %v5872_v34  ;;  %v1825_v28 = vmax.f32 %v1047_v30, 0.0  ;;  %v1827_v5 = vmax.f32 %v1160_v46, 0.0 }
 0x267   :  { %v1840_v31 = vmax.f32 %v1049_v25, 0.0  ;;  %v1842_v32 = vmax.f32 %v1162_v7, 0.0  ;;  %3583 = vmatmul.mubr.bf16.gmra.mrb[164].mxu0 %v6921_v48  ;;  %3680 = vmatmul.mubr.bf16.gmra.mrb[164].mxu1 %v6923_v23  ;;  %v5877_v48 = vld [vmem:[#allocation17 + $0x298] sm:$0xff]   ;;  %v7038_v7 = vrot.slane %v7025_v39, %v421_v63  ;;  %v7043_v61 = vrot.slane %v7025_v39, %v429_v1  ;;  %v5879_v63 = vld [vmem:[#allocation17 + $0x220] sm:$0xff]  }
 0x268   :  { %v1841_v9 = vmax.f32 %v1051_v12, 0.0  ;;  %v1843_v33 = vmax.f32 %v1164_v26, 0.0  ;;  %3590 = vmatprep.mubr.bf16.mxu0 %v6945_v15  ;;  %3687 = vmatprep.mubr.bf16.mxu1 %v6947_v11  ;;  %v5878_v15 = vld [vmem:[#allocation17 + $0x260] sm:$0xff]   ;;  %v7050_v26 = vrot.slane %v7025_v39, %v425_v19 }
 0x269   :  { %v7021_v50 = vpack.c.bf16 %v1840_v31, %v1824_v22  ;;  %v7023_v53 = vpack.c.bf16 %v1842_v32, %v1826_v58  ;;  %5526 = vmatpush3.bf16.msra.mxu0 %v5871_v20  ;;  %5590 = vmatpush3.bf16.msra.mxu1 %v5873_v13  ;;  %v5880_v11 = vld [vmem:[#allocation17 + $0x2e0] sm:$0xff]   ;;  %v5884_v22 = vld [vmem:[#allocation17 + $0x2e8] sm:$0xff]  }
 0x26a   :  { %v7027_v10 = vpack.c.bf16 %v1841_v9, %v1825_v28  ;;  %v7029_v23 = vpack.c.bf16 %v1843_v33, %v1827_v5  ;;  %v1054_v34 = vpop.f32.mrb[60].mxu0  ;;  %v1167_v17 = vpop.f32.mrb[60].mxu1  ;;  %5527 = vmatprep.subr.bf16.mxu0 %v5874_v27  ;;  %5591 = vmatprep.subr.bf16.mxu1 %v5876_v21  ;;  %v5881_v27 = vld [vmem:[#allocation17 + $0x2a0] sm:$0xff]   ;;  %v5883_v33 = vld [vmem:[#allocation17 + $0x228] sm:$0xff]  }
 0x26b   :  { %v1055_v40 = vadd.f32 %v1054_v34, %v6856_v42  ;;  %v1168_v41 = vadd.f32 %v1167_v17, %v6861_v43  ;;  %v1056_v38 = vpop.f32.mrb[61].mxu0  ;;  %v1169_v30 = vpop.f32.mrb[61].mxu1  ;;  %v5886_v17 = vld [vmem:[#allocation17 + $0x270] sm:$0xff]  }
 0x26c   :  { %v1057_v46 = vadd.f32 %v1056_v38, %v6868_v3  ;;  %v1170_v37 = vadd.f32 %v1169_v30, %v6875_v14  ;;  %v1058_v24 = vpop.f32.mrb[62].mxu0  ;;  %v1171_v25 = vpop.f32.mrb[62].mxu1 }
 0x26d   :  { %v1059_v0 = vadd.f32 %v1058_v24, %v6856_v42  ;;  %v1172_v20 = vadd.f32 %v1171_v25, %v6861_v43  ;;  %v1060_v13 = vpop.f32.mrb[63].mxu0  ;;  %v1173_v12 = vpop.f32.mrb[63].mxu1  ;;  %5528 = vmatpush3.bf16.msra.mxu0 %v5875_v2  ;;  %5592 = vmatpush3.bf16.msra.mxu1 %v5877_v48  ;;  %v7057_v42 = vrot.slane %v7025_v39, %v433_v6  ;;  %v5882_v43 = vld [vmem:[#allocation17 + $0x268] sm:$0xff]   ;;  %v1856_v58 = vmax.f32 %v1055_v40, 0.0 }
 0x26e   :  { %v1061_v21 = vadd.f32 %v1060_v13, %v6868_v3  ;;  %v1174_v1 = vadd.f32 %v1173_v12, %v6875_v14  ;;  %5529 = vmatprep.subr.bf16.mxu0 %v5878_v15  ;;  %5593 = vmatprep.subr.bf16.mxu1 %v5880_v11  ;;  %v1858_v19 = vmax.f32 %v1168_v41, 0.0  ;;  %v1857_v3 = vmax.f32 %v1057_v46, 0.0  ;;  %v5885_v2 = vld [vmem:[#allocation17 + $0x2a8] sm:$0xff]   ;;  %v5889_v13 = vld [vmem:[#allocation17 + $0x2b0] sm:$0xff]  }
 0x26f   :  { %v1872_v31 = vmax.f32 %v1059_v0, 0.0  ;;  %v1874_v32 = vmax.f32 %v1172_v20, 0.0  ;;  %3591 = vmatmul.mubr.bf16.gmra.mrb[168].mxu0 %v6941_v62  ;;  %3688 = vmatmul.mubr.bf16.gmra.mrb[168].mxu1 %v6943_v8  ;;  %v1859_v28 = vmax.f32 %v1170_v37, 0.0  ;;  %v5887_v20 = vld [vmem:[#allocation17 + $0x230] sm:$0xff]  }
 0x270   :  { %v1873_v14 = vmax.f32 %v1061_v21, 0.0  ;;  %v1875_v5 = vmax.f32 %v1174_v1, 0.0  ;;  %3598 = vmatprep.mubr.bf16.mxu0 %v6965_v44  ;;  %3695 = vmatprep.mubr.bf16.mxu1 %v6967_v55  ;;  %v5888_v44 = vld [vmem:[#allocation17 + $0x2f0] sm:$0xff]   ;;  %v5892_v21 = vld [vmem:[#allocation17 + $0x2f8] sm:$0xff]  }
 0x271   :  { %v7063_v6 = vpack.c.bf16 %v1872_v31, %v1856_v58  ;;  %v7065_v9 = vpack.c.bf16 %v1874_v32, %v1858_v19  ;;  %5530 = vmatpush3.bf16.msra.mxu0 %v5879_v63  ;;  %5594 = vmatpush3.bf16.msra.mxu1 %v5881_v27  ;;  %v5890_v27 = vld [vmem:[#allocation17 + $0x278] sm:$0xff]  }
 0x272   :  { %v7067_v48 = vpack.c.bf16 %v1873_v14, %v1857_v3  ;;  %v7069_v62 = vpack.c.bf16 %v1875_v5, %v1859_v28  ;;  %v1210_v8 = vpop.f32.mrb[64].mxu0  ;;  %v1323_v34 = vpop.f32.mrb[64].mxu1  ;;  %5531 = vmatprep.subr.bf16.mxu0 %v5882_v43  ;;  %5595 = vmatprep.subr.bf16.mxu1 %v5884_v22  ;;  %v5891_v5 = vld [vmem:[#allocation17 + $0x238] sm:$0xff]  }
 0x273   :  { %v1211_v55 = vadd.f32 %v1210_v8, %v7038_v7  ;;  %v1324_v15 = vadd.f32 %v1323_v34, %v7043_v61  ;;  %v1212_v11 = vpop.f32.mrb[65].mxu0  ;;  %v1325_v40 = vpop.f32.mrb[65].mxu1  ;;  %v5894_v34 = vld [vmem:[#allocation17 + $0x340] sm:$0xff]  }
 0x274   :  { %v1213_v41 = vadd.f32 %v1212_v11, %v7050_v26  ;;  %v1326_v38 = vadd.f32 %v1325_v40, %v7057_v42  ;;  %v1214_v30 = vpop.f32.mrb[66].mxu0  ;;  %v1327_v46 = vpop.f32.mrb[66].mxu1 }
 0x275   :  { %v1215_v37 = vadd.f32 %v1214_v30, %v7038_v7  ;;  %v1328_v24 = vadd.f32 %v1327_v46, %v7043_v61  ;;  %v1216_v25 = vpop.f32.mrb[67].mxu0  ;;  %v1329_v0 = vpop.f32.mrb[67].mxu1  ;;  %5532 = vmatpush3.bf16.msra.mxu0 %v5883_v33  ;;  %5596 = vmatpush3.bf16.msra.mxu1 %v5885_v2  ;;  %v1636_v1 = vmax.f32 %v1211_v55, 0.0  ;;  %v1638_v43 = vmax.f32 %v1324_v15, 0.0  ;;  %v5893_v33 = vld [vmem:[#allocation17 + $0x2b8] sm:$0xff]  }
 0x276   :  { %v1217_v12 = vadd.f32 %v1216_v25, %v7050_v26  ;;  %v1330_v63 = vadd.f32 %v1329_v0, %v7057_v42  ;;  %5533 = vmatprep.subr.bf16.mxu0 %v5886_v17  ;;  %5597 = vmatprep.subr.bf16.mxu1 %v5888_v44  ;;  %v1637_v19 = vmax.f32 %v1213_v41, 0.0  ;;  %v1639_v31 = vmax.f32 %v1326_v38, 0.0 }
 0x277   :  { %v1652_v22 = vmax.f32 %v1215_v37, 0.0  ;;  %v1654_v58 = vmax.f32 %v1328_v24, 0.0  ;;  %3599 = vmatmul.mubr.bf16.gmra.mrb[172].mxu0 %v6961_v56  ;;  %3696 = vmatmul.mubr.bf16.gmra.mrb[172].mxu1 %v6963_v57 }
 0x278   :  { %v1653_v32 = vmax.f32 %v1217_v12, 0.0  ;;  %v1655_v3 = vmax.f32 %v1330_v63, 0.0  ;;  %3606 = vmatprep.mubr.bf16.mxu0 %v6985_v36  ;;  %3703 = vmatprep.mubr.bf16.mxu1 %v6987_v16  ;;  %v5896_v36 = vld [vmem:[#allocation17 + $0x3c0] sm:$0xff]  }
 0x279   :  { %v7083_v28 = vpack.c.bf16 %v1652_v22, %v1636_v1  ;;  %v7085_v14 = vpack.c.bf16 %v1654_v58, %v1638_v43  ;;  %5534 = vmatpush3.bf16.msra.mxu0 %v5887_v20  ;;  %5598 = vmatpush3.bf16.msra.mxu1 %v5889_v13 }
 0x27a   :  { %v7087_v2 = vpack.c.bf16 %v1653_v32, %v1637_v19  ;;  %v7089_v56 = vpack.c.bf16 %v1655_v3, %v1639_v31  ;;  %v1220_v57 = vpop.f32.mrb[68].mxu0  ;;  %v1333_v8 = vpop.f32.mrb[68].mxu1  ;;  %5535 = vmatprep.subr.bf16.mxu0 %v5890_v27  ;;  %5599 = vmatprep.subr.bf16.mxu1 %v5892_v21 }
 0x27b   :  { %v1221_v16 = vadd.f32 %v1220_v57, %v7038_v7  ;;  %v1334_v17 = vadd.f32 %v1333_v8, %v7043_v61  ;;  %v1222_v44 = vpop.f32.mrb[69].mxu0  ;;  %v1335_v55 = vpop.f32.mrb[69].mxu1 }
 0x27c   :  { %v1223_v15 = vadd.f32 %v1222_v44, %v7050_v26  ;;  %v1336_v11 = vadd.f32 %v1335_v55, %v7057_v42  ;;  %v1224_v40 = vpop.f32.mrb[70].mxu0  ;;  %v1337_v41 = vpop.f32.mrb[70].mxu1 }
 0x27d   :  { %v1225_v38 = vadd.f32 %v1224_v40, %v7038_v7  ;;  %v1338_v30 = vadd.f32 %v1337_v41, %v7043_v61  ;;  %v1226_v46 = vpop.f32.mrb[71].mxu0  ;;  %v1339_v37 = vpop.f32.mrb[71].mxu1  ;;  %5536 = vmatpush3.bf16.msra.mxu0 %v5891_v5  ;;  %5600 = vmatpush3.bf16.msra.mxu1 %v5893_v33  ;;  %v1668_v0 = vmax.f32 %v1221_v16, 0.0  ;;  %v1670_v20 = vmax.f32 %v1334_v17, 0.0 }
 0x27e   :  { %v1227_v24 = vadd.f32 %v1226_v46, %v7050_v26  ;;  %v1340_v25 = vadd.f32 %v1339_v37, %v7057_v42  ;;  %5649 = vmatprep.subr.bf16.mxu0 %v5894_v34  ;;  %5713 = vmatprep.subr.bf16.mxu1 %v5896_v36  ;;  %v1669_v63 = vmax.f32 %v1223_v15, 0.0  ;;  %v1671_v27 = vmax.f32 %v1336_v11, 0.0 }
 0x27f   :  { %v1684_v13 = vmax.f32 %v1225_v38, 0.0  ;;  %v1686_v12 = vmax.f32 %v1338_v30, 0.0  ;;  %3607 = vmatmul.mubr.bf16.gmra.mrb[176].mxu0 %v6981_v54  ;;  %3704 = vmatmul.mubr.bf16.gmra.mrb[176].mxu1 %v6983_v35 }
 0x280   :  { %v1685_v21 = vmax.f32 %v1227_v24, 0.0  ;;  %v1687_v1 = vmax.f32 %v1340_v25, 0.0  ;;  %3614 = vmatprep.mubr.bf16.mxu0 %v7005_v4  ;;  %3711 = vmatprep.mubr.bf16.mxu1 %v7007_v49 }
 0x281   :  { %v7103_v43 = vpack.c.bf16 %v1684_v13, %v1668_v0  ;;  %v7105_v22 = vpack.c.bf16 %v1686_v12, %v1670_v20 }
 0x282   :  { %v7107_v58 = vpack.c.bf16 %v1685_v21, %v1669_v63  ;;  %v7109_v19 = vpack.c.bf16 %v1687_v1, %v1671_v27  ;;  %v1230_v31 = vpop.f32.mrb[72].mxu0  ;;  %v1343_v54 = vpop.f32.mrb[72].mxu1 }
 0x283   :  { %v1231_v35 = vadd.f32 %v1230_v31, %v7038_v7  ;;  %v1344_v32 = vadd.f32 %v1343_v54, %v7043_v61  ;;  %v1232_v3 = vpop.f32.mrb[73].mxu0  ;;  %v1345_v5 = vpop.f32.mrb[73].mxu1 }
 0x284   :  { %v1233_v4 = vadd.f32 %v1232_v3, %v7050_v26  ;;  %v1346_v49 = vadd.f32 %v1345_v5, %v7057_v42  ;;  %v1234_v33 = vpop.f32.mrb[74].mxu0  ;;  %v1347_v57 = vpop.f32.mrb[74].mxu1 }
 0x285   :  { %v1235_v8 = vadd.f32 %v1234_v33, %v7038_v7  ;;  %v1348_v34 = vadd.f32 %v1347_v57, %v7043_v61  ;;  %v1236_v36 = vpop.f32.mrb[75].mxu0  ;;  %v1349_v16 = vpop.f32.mrb[75].mxu1  ;;  %v1700_v55 = vmax.f32 %v1231_v35, 0.0  ;;  %v1702_v15 = vmax.f32 %v1344_v32, 0.0 }
 0x286   :  { %v1237_v17 = vadd.f32 %v1236_v36, %v7050_v26  ;;  %v1350_v44 = vadd.f32 %v1349_v16, %v7057_v42  ;;  %v1701_v41 = vmax.f32 %v1233_v4, 0.0  ;;  %v1703_v38 = vmax.f32 %v1346_v49, 0.0 }
 0x287   :  { %v1716_v11 = vmax.f32 %v1235_v8, 0.0  ;;  %v1718_v40 = vmax.f32 %v1348_v34, 0.0  ;;  %3615 = vmatmul.mubr.bf16.gmra.mrb[180].mxu0 %v7000_v51  ;;  %3712 = vmatmul.mubr.bf16.gmra.mrb[180].mxu1 %v7002_v52 }
 0x288   :  { %v1717_v30 = vmax.f32 %v1237_v17, 0.0  ;;  %v1719_v46 = vmax.f32 %v1350_v44, 0.0  ;;  %3622 = vmatprep.mubr.bf16.mxu0 %v7027_v10  ;;  %3719 = vmatprep.mubr.bf16.mxu1 %v7029_v23 }
 0x289   :  { %v7123_v37 = vpack.c.bf16 %v1716_v11, %v1700_v55  ;;  %v7125_v24 = vpack.c.bf16 %v1718_v40, %v1702_v15 }
 0x28a   :  { %v7127_v25 = vpack.c.bf16 %v1717_v30, %v1701_v41  ;;  %v7129_v0 = vpack.c.bf16 %v1719_v46, %v1703_v38  ;;  %v1240_v20 = vpop.f32.mrb[76].mxu0  ;;  %v1353_v51 = vpop.f32.mrb[76].mxu1 }
 0x28b   :  { %v1241_v52 = vadd.f32 %v1240_v20, %v7038_v7  ;;  %v1354_v13 = vadd.f32 %v1353_v51, %v7043_v61  ;;  %v1242_v12 = vpop.f32.mrb[77].mxu0  ;;  %v1355_v63 = vpop.f32.mrb[77].mxu1 }
 0x28c   :  { %v1243_v10 = vadd.f32 %v1242_v12, %v7050_v26  ;;  %v1356_v23 = vadd.f32 %v1355_v63, %v7057_v42  ;;  %v1244_v27 = vpop.f32.mrb[78].mxu0  ;;  %v1357_v21 = vpop.f32.mrb[78].mxu1 }
 0x28d   :  { %v1245_v1 = vadd.f32 %v1244_v27, %v7038_v7  ;;  %v1358_v31 = vadd.f32 %v1357_v21, %v7043_v61  ;;  %v1246_v54 = vpop.f32.mrb[79].mxu0  ;;  %v1359_v35 = vpop.f32.mrb[79].mxu1  ;;  %v1732_v5 = vmax.f32 %v1241_v52, 0.0  ;;  %v1734_v4 = vmax.f32 %v1354_v13, 0.0 }
 0x28e   :  { %v1247_v32 = vadd.f32 %v1246_v54, %v7050_v26  ;;  %v1360_v3 = vadd.f32 %v1359_v35, %v7057_v42  ;;  %v1733_v57 = vmax.f32 %v1243_v10, 0.0  ;;  %v1735_v8 = vmax.f32 %v1356_v23, 0.0 }
 0x28f   :  { %v1748_v49 = vmax.f32 %v1245_v1, 0.0  ;;  %v1750_v33 = vmax.f32 %v1358_v31, 0.0  ;;  %3623 = vmatmul.mubr.bf16.gmra.mrb[184].mxu0 %v7021_v50  ;;  %3720 = vmatmul.mubr.bf16.gmra.mrb[184].mxu1 %v7023_v53 }
 0x290   :  { %v1749_v34 = vmax.f32 %v1247_v32, 0.0  ;;  %v1751_v36 = vmax.f32 %v1360_v3, 0.0  ;;  %3630 = vmatprep.mubr.bf16.mxu0 %v7067_v48  ;;  %3727 = vmatprep.mubr.bf16.mxu1 %v7069_v62 }
 0x291   :  { %v7143_v16 = vpack.c.bf16 %v1748_v49, %v1732_v5  ;;  %v7145_v17 = vpack.c.bf16 %v1750_v33, %v1734_v4 }
 0x292   :  { %v7147_v44 = vpack.c.bf16 %v1749_v34, %v1733_v57  ;;  %v7149_v55 = vpack.c.bf16 %v1751_v36, %v1735_v8  ;;  %v1250_v15 = vpop.f32.mrb[80].mxu0  ;;  %v1363_v50 = vpop.f32.mrb[80].mxu1  ;;  %v5895_v36 = vld [vmem:[#allocation17 + $0x300] sm:$0xff]  }
 0x293   :  { %v1251_v53 = vadd.f32 %v1250_v15, %v7038_v7  ;;  %v1364_v11 = vadd.f32 %v1363_v50, %v7043_v61  ;;  %v1252_v40 = vpop.f32.mrb[81].mxu0  ;;  %v1365_v41 = vpop.f32.mrb[81].mxu1 }
 0x294   :  { %v1253_v48 = vadd.f32 %v1252_v40, %v7050_v26  ;;  %v1366_v62 = vadd.f32 %v1365_v41, %v7057_v42  ;;  %v1254_v38 = vpop.f32.mrb[82].mxu0  ;;  %v1367_v30 = vpop.f32.mrb[82].mxu1  ;;  %v5897_v40 = vld [vmem:[#allocation17 + $0x380] sm:$0xff]  }
 0x295   :  { %v1255_v46 = vadd.f32 %v1254_v38, %v7038_v7  ;;  %v1368_v20 = vadd.f32 %v1367_v30, %v7043_v61  ;;  %v1256_v51 = vpop.f32.mrb[83].mxu0  ;;  %v1369_v52 = vpop.f32.mrb[83].mxu1  ;;  %v1764_v63 = vmax.f32 %v1251_v53, 0.0  ;;  %v1766_v10 = vmax.f32 %v1364_v11, 0.0  ;;  %v5900_v38 = vld [vmem:[#allocation17 + $0x3c8] sm:$0xff]  }
 0x296   :  { %v1257_v13 = vadd.f32 %v1256_v51, %v7050_v26  ;;  %v1370_v12 = vadd.f32 %v1369_v52, %v7057_v42  ;;  %v1765_v21 = vmax.f32 %v1253_v48, 0.0  ;;  %v1767_v1 = vmax.f32 %v1366_v62, 0.0  ;;  %v5898_v62 = vld [vmem:[#allocation17 + $0x348] sm:$0xff]  }
 0x297   :  { %v1780_v23 = vmax.f32 %v1255_v46, 0.0  ;;  %v1782_v27 = vmax.f32 %v1368_v20, 0.0  ;;  %3631 = vmatmul.mubr.bf16.gmra.mrb[188].mxu0 %v7063_v6  ;;  %3728 = vmatmul.mubr.bf16.gmra.mrb[188].mxu1 %v7065_v9 }
 0x298   :  { %v1781_v31 = vmax.f32 %v1257_v13, 0.0  ;;  %v1783_v54 = vmax.f32 %v1370_v12, 0.0  ;;  %3768 = vmatprep.mubr.bf16.mxu0 %v7087_v2  ;;  %3865 = vmatprep.mubr.bf16.mxu1 %v7089_v56 }
 0x299   :  { %v7163_v35 = vpack.c.bf16 %v1780_v23, %v1764_v63  ;;  %v7165_v32 = vpack.c.bf16 %v1782_v27, %v1766_v10  ;;  %v5899_v10 = vld [vmem:[#allocation17 + $0x308] sm:$0xff]  }
 0x29a   :  { %v7167_v3 = vpack.c.bf16 %v1781_v31, %v1765_v21  ;;  %v7169_v5 = vpack.c.bf16 %v1783_v54, %v1767_v1  ;;  %v1260_v4 = vpop.f32.mrb[84].mxu0  ;;  %v1373_v6 = vpop.f32.mrb[84].mxu1  ;;  %v5901_v21 = vld [vmem:[#allocation17 + $0x388] sm:$0xff]   ;;  %v5902_v1 = vld [vmem:[#allocation17 + $0x350] sm:$0xff]  }
 0x29b   :  { %v1261_v9 = vadd.f32 %v1260_v4, %v7038_v7  ;;  %v1374_v49 = vadd.f32 %v1373_v6, %v7043_v61  ;;  %v1262_v33 = vpop.f32.mrb[85].mxu0  ;;  %v1375_v57 = vpop.f32.mrb[85].mxu1  ;;  %v5904_v4 = vld [vmem:[#allocation17 + $0x3d0] sm:$0xff]  }
 0x29c   :  { %v1263_v2 = vadd.f32 %v1262_v33, %v7050_v26  ;;  %v1376_v56 = vadd.f32 %v1375_v57, %v7057_v42  ;;  %v1264_v8 = vpop.f32.mrb[86].mxu0  ;;  %v1377_v34 = vpop.f32.mrb[86].mxu1 }
 0x29d   :  { %v1265_v15 = vadd.f32 %v1264_v8, %v7038_v7  ;;  %v1378_v50 = vadd.f32 %v1377_v34, %v7043_v61  ;;  %v1266_v53 = vpop.f32.mrb[87].mxu0  ;;  %v1379_v11 = vpop.f32.mrb[87].mxu1  ;;  %v1796_v30 = vmax.f32 %v1261_v9, 0.0  ;;  %v1798_v46 = vmax.f32 %v1374_v49, 0.0 }
 0x29e   :  { %v1267_v41 = vadd.f32 %v1266_v53, %v7050_v26  ;;  %v1380_v48 = vadd.f32 %v1379_v11, %v7057_v42  ;;  %v1797_v52 = vmax.f32 %v1263_v2, 0.0  ;;  %v1799_v13 = vmax.f32 %v1376_v56, 0.0 }
 0x29f   :  { %v1812_v20 = vmax.f32 %v1265_v15, 0.0  ;;  %v1814_v51 = vmax.f32 %v1378_v50, 0.0  ;;  %3769 = vmatmul.mubr.bf16.vlgmr.msra.gmra.mrb[192].mxu0 %v7083_v28  ;;  %3866 = vmatmul.mubr.bf16.vlgmr.msra.gmra.mrb[192].mxu1 %v7085_v14  ;;  %v5903_v15 = vld [vmem:[#allocation17 + $0x310] sm:$0xff]  }
 0x2a0   :  { %v1813_v12 = vmax.f32 %v1267_v41, 0.0  ;;  %v1815_v63 = vmax.f32 %v1380_v48, 0.0  ;;  %5650 = vmatpush3.bf16.msra.mxu0 %v5895_v36  ;;  %3776 = vmatprep.mubr.bf16.mxu0 %v7107_v58  ;;  %v5905_v50 = vld [vmem:[#allocation17 + $0x390] sm:$0xff]   ;;  %v5908_v41 = vld [vmem:[#allocation17 + $0x3d8] sm:$0xff]  }
 0x2a1   :  { %v7182_v23 = vpack.c.bf16 %v1812_v20, %v1796_v30  ;;  %v7184_v27 = vpack.c.bf16 %v1814_v51, %v1798_v46  ;;  %3873 = vmatprep.mubr.bf16.mxu1 %v7109_v19  ;;  %5714 = vmatpush3.bf16.msra.mxu1 %v5897_v40  ;;  %v5906_v40 = vld [vmem:[#allocation17 + $0x358] sm:$0xff]  }
 0x2a2   :  { %v7187_v28 = vpack.c.bf16 %v1813_v12, %v1797_v52  ;;  %v7189_v14 = vpack.c.bf16 %v1815_v63, %v1799_v13  ;;  %v1270_v31 = vpop.f32.mrb[88].mxu0  ;;  %v1383_v54 = vpop.f32.mrb[88].mxu1  ;;  %5651 = vmatprep.subr.bf16.mxu0 %v5898_v62  ;;  %5715 = vmatprep.subr.bf16.mxu1 %v5900_v38  ;;  %v5907_v63 = vld [vmem:[#allocation17 + $0x318] sm:$0xff]  }
 0x2a3   :  { %v1271_v58 = vadd.f32 %v1270_v31, %v7038_v7  ;;  %v1384_v6 = vadd.f32 %v1383_v54, %v7043_v61  ;;  %v1272_v9 = vpop.f32.mrb[89].mxu0  ;;  %v1385_v49 = vpop.f32.mrb[89].mxu1  ;;  %v5910_v31 = vld [vmem:[#allocation17 + $0x360] sm:$0xff]  }
 0x2a4   :  { %v1273_v19 = vadd.f32 %v1272_v9, %v7050_v26  ;;  %v1386_v33 = vadd.f32 %v1385_v49, %v7057_v42  ;;  %v1274_v57 = vpop.f32.mrb[90].mxu0  ;;  %v1387_v2 = vpop.f32.mrb[90].mxu1  ;;  %5652 = vmatpush3.bf16.msra.mxu0 %v5899_v10  ;;  %v5909_v10 = vld [vmem:[#allocation17 + $0x398] sm:$0xff]  }
 0x2a5   :  { %v1275_v56 = vadd.f32 %v1274_v57, %v7038_v7  ;;  %v1388_v8 = vadd.f32 %v1387_v2, %v7043_v61  ;;  %v1276_v34 = vpop.f32.mrb[91].mxu0  ;;  %v1389_v36 = vpop.f32.mrb[91].mxu1  ;;  %5716 = vmatpush3.bf16.msra.mxu1 %v5901_v21  ;;  %5653 = vmatprep.subr.bf16.mxu0 %v5902_v1  ;;  %v1828_v48 = vmax.f32 %v1271_v58, 0.0  ;;  %v1830_v62 = vmax.f32 %v1384_v6, 0.0 }
 0x2a6   :  { %v1277_v53 = vadd.f32 %v1276_v34, %v7050_v26  ;;  %v1390_v11 = vadd.f32 %v1389_v36, %v7057_v42  ;;  %5717 = vmatprep.subr.bf16.mxu1 %v5904_v4  ;;  %v1829_v46 = vmax.f32 %v1273_v19, 0.0  ;;  %v1831_v20 = vmax.f32 %v1386_v33, 0.0 }
 0x2a7   :  { %v1844_v38 = vmax.f32 %v1275_v56, 0.0  ;;  %v1846_v30 = vmax.f32 %v1388_v8, 0.0  ;;  %3777 = vmatmul.mubr.bf16.gmra.mrb[196].mxu0 %v7103_v43  ;;  %3874 = vmatmul.mubr.bf16.gmra.mrb[196].mxu1 %v7105_v22  ;;  %v7218_v33 = vrot.slane %v7025_v39, %v437_v59  ;;  %v7223_v57 = vrot.slane %v7025_v39, %v445_v60  ;;  %v5911_v59 = vld [vmem:[#allocation17 + $0x320] sm:$0xff]  }
 0x2a8   :  { %v1845_v51 = vmax.f32 %v1277_v53, 0.0  ;;  %v1847_v52 = vmax.f32 %v1390_v11, 0.0  ;;  %3784 = vmatprep.mubr.bf16.mxu0 %v7127_v25  ;;  %3881 = vmatprep.mubr.bf16.mxu1 %v7129_v0  ;;  %v5912_v25 = vld [vmem:[#allocation17 + $0x3e0] sm:$0xff]   ;;  %v7230_v36 = vrot.slane %v7025_v39, %v441_v29  ;;  %v5916_v53 = vld [vmem:[#allocation17 + $0x3e8] sm:$0xff]  }
 0x2a9   :  { %v7203_v13 = vpack.c.bf16 %v1844_v38, %v1828_v48  ;;  %v7205_v12 = vpack.c.bf16 %v1846_v30, %v1830_v62  ;;  %5654 = vmatpush3.bf16.msra.mxu0 %v5903_v15  ;;  %5718 = vmatpush3.bf16.msra.mxu1 %v5905_v50  ;;  %v5913_v15 = vld [vmem:[#allocation17 + $0x3a0] sm:$0xff]   ;;  %v5917_v38 = vld [vmem:[#allocation17 + $0x3a8] sm:$0xff]  }
 0x2aa   :  { %v7207_v21 = vpack.c.bf16 %v1845_v51, %v1829_v46  ;;  %v7209_v43 = vpack.c.bf16 %v1847_v52, %v1831_v20  ;;  %v1280_v22 = vpop.f32.mrb[92].mxu0  ;;  %v1393_v1 = vpop.f32.mrb[92].mxu1  ;;  %5655 = vmatprep.subr.bf16.mxu0 %v5906_v40  ;;  %5719 = vmatprep.subr.bf16.mxu1 %v5908_v41  ;;  %v5918_v20 = vld [vmem:[#allocation17 + $0x370] sm:$0xff]  }
 0x2ab   :  { %v1281_v0 = vadd.f32 %v1280_v22, %v7038_v7  ;;  %v1394_v54 = vadd.f32 %v1393_v1, %v7043_v61  ;;  %v1282_v4 = vpop.f32.mrb[93].mxu0  ;;  %v1395_v58 = vpop.f32.mrb[93].mxu1 }
 0x2ac   :  { %v1283_v6 = vadd.f32 %v1282_v4, %v7050_v26  ;;  %v1396_v9 = vadd.f32 %v1395_v58, %v7057_v42  ;;  %v1284_v49 = vpop.f32.mrb[94].mxu0  ;;  %v1397_v19 = vpop.f32.mrb[94].mxu1  ;;  %v5919_v58 = vld [vmem:[#allocation17 + $0x330] sm:$0xff]  }
 0x2ad   :  { %v1285_v2 = vadd.f32 %v1284_v49, %v7038_v7  ;;  %v1398_v56 = vadd.f32 %v1397_v19, %v7043_v61  ;;  %v1286_v8 = vpop.f32.mrb[95].mxu0  ;;  %v1399_v34 = vpop.f32.mrb[95].mxu1  ;;  %5656 = vmatpush3.bf16.msra.mxu0 %v5907_v63  ;;  %5720 = vmatpush3.bf16.msra.mxu1 %v5909_v10  ;;  %v7237_v7 = vrot.slane %v7025_v39, %v449_v18  ;;  %v5914_v61 = vld [vmem:[#allocation17 + $0x368] sm:$0xff]   ;;  %v1860_v11 = vmax.f32 %v1281_v0, 0.0  ;;  %v5922_v19 = vld [vmem:[#allocation17 + $0x378] sm:$0xff]  }
 0x2ae   :  { %v1287_v50 = vadd.f32 %v1286_v8, %v7050_v26  ;;  %v1400_v60 = vadd.f32 %v1399_v34, %v7057_v42  ;;  %5657 = vmatprep.subr.bf16.mxu0 %v5910_v31  ;;  %5721 = vmatprep.subr.bf16.mxu1 %v5912_v25  ;;  %v1862_v29 = vmax.f32 %v1394_v54, 0.0  ;;  %v1861_v26 = vmax.f32 %v1283_v6, 0.0  ;;  %v5915_v39 = vld [vmem:[#allocation17 + $0x328] sm:$0xff]   ;;  %v5921_v6 = vld [vmem:[#allocation17 + $0x3b0] sm:$0xff]  }
 0x2af   :  { %v1876_v40 = vmax.f32 %v1285_v2, 0.0  ;;  %v1878_v41 = vmax.f32 %v1398_v56, 0.0  ;;  %3785 = vmatmul.mubr.bf16.gmra.mrb[200].mxu0 %v7123_v37  ;;  %3882 = vmatmul.mubr.bf16.gmra.mrb[200].mxu1 %v7125_v24  ;;  %v1863_v48 = vmax.f32 %v1396_v9, 0.0  ;;  %v5924_v2 = vld [vmem:[#allocation17 + $0x3f8] sm:$0xff]  }
 0x2b0   :  { %v1877_v42 = vmax.f32 %v1287_v50, 0.0  ;;  %v1879_v62 = vmax.f32 %v1400_v60, 0.0  ;;  %3792 = vmatprep.mubr.bf16.mxu0 %v7147_v44  ;;  %3889 = vmatprep.mubr.bf16.mxu1 %v7149_v55  ;;  %v5920_v44 = vld [vmem:[#allocation17 + $0x3f0] sm:$0xff]  }
 0x2b1   :  { %v7243_v47 = vpack.c.bf16 %v1876_v40, %v1860_v11  ;;  %v7245_v18 = vpack.c.bf16 %v1878_v41, %v1862_v29  ;;  %5658 = vmatpush3.bf16.msra.mxu0 %v5911_v59  ;;  %5722 = vmatpush3.bf16.msra.mxu1 %v5913_v15  ;;  %v5923_v29 = vld [vmem:[#allocation17 + $0x338] sm:$0xff]  }
 0x2b2   :  { %v7247_v30 = vpack.c.bf16 %v1877_v42, %v1861_v26  ;;  %v7249_v37 = vpack.c.bf16 %v1879_v62, %v1863_v48  ;;  %v1436_v24 = vpop.f32.mrb[96].mxu0  ;;  %v1549_v46 = vpop.f32.mrb[96].mxu1  ;;  %5659 = vmatprep.subr.bf16.mxu0 %v5914_v61  ;;  %5723 = vmatprep.subr.bf16.mxu1 %v5916_v53  ;;  %v5925_v40 = vld [vmem:[#allocation17 + $0x3b8] sm:$0xff]  }
 0x2b3   :  { %v1437_v55 = vadd.f32 %v1436_v24, %v7218_v33  ;;  %v1550_v51 = vadd.f32 %v1549_v46, %v7223_v57  ;;  %v1438_v52 = vpop.f32.mrb[97].mxu0  ;;  %v1551_v63 = vpop.f32.mrb[97].mxu1 }
 0x2b4   :  { %v1439_v10 = vadd.f32 %v1438_v52, %v7230_v36  ;;  %v1552_v22 = vadd.f32 %v1551_v63, %v7237_v7  ;;  %v1440_v1 = vpop.f32.mrb[98].mxu0  ;;  %v1553_v31 = vpop.f32.mrb[98].mxu1 }
 0x2b5   :  { %v1441_v25 = vadd.f32 %v1440_v1, %v7218_v33  ;;  %v1554_v0 = vadd.f32 %v1553_v31, %v7223_v57  ;;  %v1442_v54 = vpop.f32.mrb[99].mxu0  ;;  %v1555_v4 = vpop.f32.mrb[99].mxu1  ;;  %5660 = vmatpush3.bf16.msra.mxu0 %v5915_v39  ;;  %5724 = vmatpush3.bf16.msra.mxu1 %v5917_v38  ;;  %v1640_v56 = vmax.f32 %v1437_v55, 0.0  ;;  %v1642_v8 = vmax.f32 %v1550_v51, 0.0 }
 0x2b6   :  { %v1443_v9 = vadd.f32 %v1442_v54, %v7230_v36  ;;  %v1556_v49 = vadd.f32 %v1555_v4, %v7237_v7  ;;  %5661 = vmatprep.subr.bf16.mxu0 %v5918_v20  ;;  %5725 = vmatprep.subr.bf16.mxu1 %v5920_v44  ;;  %v1641_v15 = vmax.f32 %v1439_v10, 0.0  ;;  %v1643_v50 = vmax.f32 %v1552_v22, 0.0 }
 0x2b7   :  { %v1656_v34 = vmax.f32 %v1441_v25, 0.0  ;;  %v1658_v59 = vmax.f32 %v1554_v0, 0.0  ;;  %3793 = vmatmul.mubr.bf16.gmra.mrb[204].mxu0 %v7143_v16  ;;  %3890 = vmatmul.mubr.bf16.gmra.mrb[204].mxu1 %v7145_v17 }
 0x2b8   :  { %v1657_v60 = vmax.f32 %v1443_v9, 0.0  ;;  %v1659_v61 = vmax.f32 %v1556_v49, 0.0  ;;  %3800 = vmatprep.mubr.bf16.mxu0 %v7167_v3  ;;  %3897 = vmatprep.mubr.bf16.mxu1 %v7169_v5 }
 0x2b9   :  { %v7263_v53 = vpack.c.bf16 %v1656_v34, %v1640_v56  ;;  %v7265_v11 = vpack.c.bf16 %v1658_v59, %v1642_v8  ;;  %5662 = vmatpush3.bf16.msra.mxu0 %v5919_v58  ;;  %5726 = vmatpush3.bf16.msra.mxu1 %v5921_v6 }
 0x2ba   :  { %v7267_v41 = vpack.c.bf16 %v1657_v60, %v1641_v15  ;;  %v7269_v16 = vpack.c.bf16 %v1659_v61, %v1643_v50  ;;  %v1446_v17 = vpop.f32.mrb[100].mxu0  ;;  %v1559_v26 = vpop.f32.mrb[100].mxu1  ;;  %5663 = vmatprep.subr.bf16.mxu0 %v5922_v19  ;;  %5727 = vmatprep.subr.bf16.mxu1 %v5924_v2 }
 0x2bb   :  { %v1447_v3 = vadd.f32 %v1446_v17, %v7218_v33  ;;  %v1560_v5 = vadd.f32 %v1559_v26, %v7223_v57  ;;  %v1448_v48 = vpop.f32.mrb[101].mxu0  ;;  %v1561_v42 = vpop.f32.mrb[101].mxu1 }
 0x2bc   :  { %v1449_v62 = vadd.f32 %v1448_v48, %v7230_v36  ;;  %v1562_v39 = vadd.f32 %v1561_v42, %v7237_v7  ;;  %v1450_v38 = vpop.f32.mrb[102].mxu0  ;;  %v1563_v24 = vpop.f32.mrb[102].mxu1 }
 0x2bd   :  { %v1451_v46 = vadd.f32 %v1450_v38, %v7218_v33  ;;  %v1564_v20 = vadd.f32 %v1563_v24, %v7223_v57  ;;  %v1452_v44 = vpop.f32.mrb[103].mxu0  ;;  %v1565_v55 = vpop.f32.mrb[103].mxu1  ;;  %5664 = vmatpush3.bf16.msra.mxu0 %v5923_v29  ;;  %5728 = vmatpush3.bf16.msra.mxu1 %v5925_v40  ;;  %v1672_v63 = vmax.f32 %v1447_v3, 0.0  ;;  %v1674_v10 = vmax.f32 %v1560_v5, 0.0 }
 0x2be   :  { %v1453_v51 = vadd.f32 %v1452_v44, %v7230_v36  ;;  %v1566_v52 = vadd.f32 %v1565_v55, %v7237_v7  ;;  %v1673_v31 = vmax.f32 %v1449_v62, 0.0  ;;  %v1675_v25 = vmax.f32 %v1562_v39, 0.0 }
 0x2bf   :  { %v1688_v22 = vmax.f32 %v1451_v46, 0.0  ;;  %v1690_v1 = vmax.f32 %v1564_v20, 0.0  ;;  %3801 = vmatmul.mubr.bf16.gmra.mrb[208].mxu0 %v7163_v35  ;;  %3898 = vmatmul.mubr.bf16.gmra.mrb[208].mxu1 %v7165_v32 }
 0x2c0   :  { %v1689_v0 = vmax.f32 %v1453_v51, 0.0  ;;  %v1691_v54 = vmax.f32 %v1566_v52, 0.0  ;;  %3808 = vmatprep.mubr.bf16.mxu0 %v7187_v28  ;;  %3905 = vmatprep.mubr.bf16.mxu1 %v7189_v14 }
 0x2c1   :  { %v7283_v4 = vpack.c.bf16 %v1688_v22, %v1672_v63  ;;  %v7285_v58 = vpack.c.bf16 %v1690_v1, %v1674_v10 }
 0x2c2   :  { %v7287_v6 = vpack.c.bf16 %v1689_v0, %v1673_v31  ;;  %v7289_v9 = vpack.c.bf16 %v1691_v54, %v1675_v25  ;;  %v1456_v49 = vpop.f32.mrb[104].mxu0  ;;  %v1569_v35 = vpop.f32.mrb[104].mxu1 }
 0x2c3   :  { %v1457_v32 = vadd.f32 %v1456_v49, %v7218_v33  ;;  %v1570_v19 = vadd.f32 %v1569_v35, %v7223_v57  ;;  %v1458_v2 = vpop.f32.mrb[105].mxu0  ;;  %v1571_v56 = vpop.f32.mrb[105].mxu1 }
 0x2c4   :  { %v1459_v28 = vadd.f32 %v1458_v2, %v7230_v36  ;;  %v1572_v14 = vadd.f32 %v1571_v56, %v7237_v7  ;;  %v1460_v8 = vpop.f32.mrb[106].mxu0  ;;  %v1573_v34 = vpop.f32.mrb[106].mxu1 }
 0x2c5   :  { %v1461_v59 = vadd.f32 %v1460_v8, %v7218_v33  ;;  %v1574_v15 = vadd.f32 %v1573_v34, %v7223_v57  ;;  %v1462_v50 = vpop.f32.mrb[107].mxu0  ;;  %v1575_v60 = vpop.f32.mrb[107].mxu1  ;;  %v1704_v40 = vmax.f32 %v1457_v32, 0.0  ;;  %v1706_v17 = vmax.f32 %v1570_v19, 0.0 }
 0x2c6   :  { %v1463_v61 = vadd.f32 %v1462_v50, %v7230_v36  ;;  %v1576_v29 = vadd.f32 %v1575_v60, %v7237_v7  ;;  %v1705_v5 = vmax.f32 %v1459_v28, 0.0  ;;  %v1707_v48 = vmax.f32 %v1572_v14, 0.0 }
 0x2c7   :  { %v1720_v26 = vmax.f32 %v1461_v59, 0.0  ;;  %v1722_v3 = vmax.f32 %v1574_v15, 0.0  ;;  %3809 = vmatmul.mubr.bf16.gmra.mrb[212].mxu0 %v7182_v23  ;;  %3906 = vmatmul.mubr.bf16.gmra.mrb[212].mxu1 %v7184_v27 }
 0x2c8   :  { %v1721_v42 = vmax.f32 %v1463_v61, 0.0  ;;  %v1723_v62 = vmax.f32 %v1576_v29, 0.0  ;;  %3816 = vmatprep.mubr.bf16.mxu0 %v7207_v21  ;;  %3913 = vmatprep.mubr.bf16.mxu1 %v7209_v43 }
 0x2c9   :  { %v7303_v39 = vpack.c.bf16 %v1720_v26, %v1704_v40  ;;  %v7305_v38 = vpack.c.bf16 %v1722_v3, %v1706_v17 }
 0x2ca   :  { %v7307_v24 = vpack.c.bf16 %v1721_v42, %v1705_v5  ;;  %v7309_v46 = vpack.c.bf16 %v1723_v62, %v1707_v48  ;;  %v1466_v20 = vpop.f32.mrb[108].mxu0  ;;  %v1579_v23 = vpop.f32.mrb[108].mxu1 }
 0x2cb   :  { %v1467_v27 = vadd.f32 %v1466_v20, %v7218_v33  ;;  %v1580_v44 = vadd.f32 %v1579_v23, %v7223_v57  ;;  %v1468_v55 = vpop.f32.mrb[109].mxu0  ;;  %v1581_v51 = vpop.f32.mrb[109].mxu1 }
 0x2cc   :  { %v1469_v21 = vadd.f32 %v1468_v55, %v7230_v36  ;;  %v1582_v43 = vadd.f32 %v1581_v51, %v7237_v7  ;;  %v1470_v52 = vpop.f32.mrb[110].mxu0  ;;  %v1583_v63 = vpop.f32.mrb[110].mxu1 }
 0x2cd   :  { %v1471_v10 = vadd.f32 %v1470_v52, %v7218_v33  ;;  %v1584_v22 = vadd.f32 %v1583_v63, %v7223_v57  ;;  %v1472_v1 = vpop.f32.mrb[111].mxu0  ;;  %v1585_v31 = vpop.f32.mrb[111].mxu1  ;;  %v1736_v54 = vmax.f32 %v1467_v27, 0.0  ;;  %v1738_v49 = vmax.f32 %v1580_v44, 0.0 }
 0x2ce   :  { %v1473_v25 = vadd.f32 %v1472_v1, %v7230_v36  ;;  %v1586_v0 = vadd.f32 %v1585_v31, %v7237_v7  ;;  %v1737_v19 = vmax.f32 %v1469_v21, 0.0  ;;  %v1739_v2 = vmax.f32 %v1582_v43, 0.0 }
 0x2cf   :  { %v1752_v35 = vmax.f32 %v1471_v10, 0.0  ;;  %v1754_v32 = vmax.f32 %v1584_v22, 0.0  ;;  %3817 = vmatmul.mubr.bf16.gmra.mrb[216].mxu0 %v7203_v13  ;;  %3914 = vmatmul.mubr.bf16.gmra.mrb[216].mxu1 %v7205_v12 }
 0x2d0   :  { %v1753_v56 = vmax.f32 %v1473_v25, 0.0  ;;  %v1755_v28 = vmax.f32 %v1586_v0, 0.0  ;;  %3824 = vmatprep.mubr.bf16.mxu0 %v7247_v30  ;;  %3921 = vmatprep.mubr.bf16.mxu1 %v7249_v37 }
 0x2d1   :  { %v7323_v14 = vpack.c.bf16 %v1752_v35, %v1736_v54  ;;  %v7325_v8 = vpack.c.bf16 %v1754_v32, %v1738_v49 }
 0x2d2   :  { %v7327_v34 = vpack.c.bf16 %v1753_v56, %v1737_v19  ;;  %v7329_v59 = vpack.c.bf16 %v1755_v28, %v1739_v2  ;;  %v1476_v15 = vpop.f32.mrb[112].mxu0  ;;  %v1589_v13 = vpop.f32.mrb[112].mxu1 }
 0x2d3   :  { %v1477_v12 = vadd.f32 %v1476_v15, %v7218_v33  ;;  %v1590_v50 = vadd.f32 %v1589_v13, %v7223_v57  ;;  %v1478_v60 = vpop.f32.mrb[113].mxu0  ;;  %v1591_v61 = vpop.f32.mrb[113].mxu1 }
 0x2d4   :  { %v1479_v30 = vadd.f32 %v1478_v60, %v7230_v36  ;;  %v1592_v37 = vadd.f32 %v1591_v61, %v7237_v7  ;;  %v1480_v29 = vpop.f32.mrb[114].mxu0  ;;  %v1593_v40 = vpop.f32.mrb[114].mxu1 }
 0x2d5   :  { %v1481_v17 = vadd.f32 %v1480_v29, %v7218_v33  ;;  %v1594_v26 = vadd.f32 %v1593_v40, %v7223_v57  ;;  %v1482_v3 = vpop.f32.mrb[115].mxu0  ;;  %v1595_v5 = vpop.f32.mrb[115].mxu1  ;;  %v1768_v62 = vmax.f32 %v1477_v12, 0.0  ;;  %v1770_v20 = vmax.f32 %v1590_v50, 0.0 }
 0x2d6   :  { %v1483_v48 = vadd.f32 %v1482_v3, %v7230_v36  ;;  %v1596_v42 = vadd.f32 %v1595_v5, %v7237_v7  ;;  %v1769_v44 = vmax.f32 %v1479_v30, 0.0  ;;  %v1771_v55 = vmax.f32 %v1592_v37, 0.0 }
 0x2d7   :  { %v1784_v23 = vmax.f32 %v1481_v17, 0.0  ;;  %v1786_v27 = vmax.f32 %v1594_v26, 0.0  ;;  %3825 = vmatmul.mubr.bf16.gmra.mrb[220].mxu0 %v7243_v47  ;;  %3922 = vmatmul.mubr.bf16.gmra.mrb[220].mxu1 %v7245_v18 }
 0x2d8   :  { %v1785_v51 = vmax.f32 %v1483_v48, 0.0  ;;  %v1787_v21 = vmax.f32 %v1596_v42, 0.0  ;;  %3962 = vmatprep.mubr.bf16.mxu0 %v7267_v41  ;;  %4059 = vmatprep.mubr.bf16.mxu1 %v7269_v16 }
 0x2d9   :  { %v7343_v43 = vpack.c.bf16 %v1784_v23, %v1768_v62  ;;  %v7345_v52 = vpack.c.bf16 %v1786_v27, %v1770_v20 }
 0x2da   :  { %v7347_v63 = vpack.c.bf16 %v1785_v51, %v1769_v44  ;;  %v7349_v10 = vpack.c.bf16 %v1787_v21, %v1771_v55  ;;  %v1486_v22 = vpop.f32.mrb[116].mxu0  ;;  %v1599_v47 = vpop.f32.mrb[116].mxu1 }
 0x2db   :  { %v1487_v18 = vadd.f32 %v1486_v22, %v7218_v33  ;;  %v1600_v1 = vadd.f32 %v1599_v47, %v7223_v57  ;;  %v1488_v31 = vpop.f32.mrb[117].mxu0  ;;  %v1601_v25 = vpop.f32.mrb[117].mxu1 }
 0x2dc   :  { %v1489_v41 = vadd.f32 %v1488_v31, %v7230_v36  ;;  %v1602_v16 = vadd.f32 %v1601_v25, %v7237_v7  ;;  %v1490_v0 = vpop.f32.mrb[118].mxu0  ;;  %v1603_v54 = vpop.f32.mrb[118].mxu1 }
 0x2dd   :  { %v1491_v49 = vadd.f32 %v1490_v0, %v7218_v33  ;;  %v1604_v35 = vadd.f32 %v1603_v54, %v7223_v57  ;;  %v1492_v32 = vpop.f32.mrb[119].mxu0  ;;  %v1605_v19 = vpop.f32.mrb[119].mxu1  ;;  %v1800_v28 = vmax.f32 %v1487_v18, 0.0  ;;  %v1802_v15 = vmax.f32 %v1600_v1, 0.0 }
 0x2de   :  { %v1493_v2 = vadd.f32 %v1492_v32, %v7230_v36  ;;  %v1606_v56 = vadd.f32 %v1605_v19, %v7237_v7  ;;  %v1801_v50 = vmax.f32 %v1489_v41, 0.0  ;;  %v1803_v60 = vmax.f32 %v1602_v16, 0.0 }
 0x2df   :  { %v1816_v13 = vmax.f32 %v1491_v49, 0.0  ;;  %v1818_v12 = vmax.f32 %v1604_v35, 0.0  ;;  %3963 = vmatmul.mubr.bf16.vlgmr.msra.gmra.mrb[224].mxu0 %v7263_v53  ;;  %4060 = vmatmul.mubr.bf16.vlgmr.msra.gmra.mrb[224].mxu1 %v7265_v11 }
 0x2e0   :  { %v1817_v61 = vmax.f32 %v1493_v2, 0.0  ;;  %v1819_v30 = vmax.f32 %v1606_v56, 0.0  ;;  %3970 = vmatprep.mubr.bf16.mxu0 %v7287_v6  ;;  %4067 = vmatprep.mubr.bf16.mxu1 %v7289_v9 }
 0x2e1   :  { %v7363_v37 = vpack.c.bf16 %v1816_v13, %v1800_v28  ;;  %v7365_v29 = vpack.c.bf16 %v1818_v12, %v1802_v15 }
 0x2e2   :  { %v7367_v40 = vpack.c.bf16 %v1817_v61, %v1801_v50  ;;  %v7369_v17 = vpack.c.bf16 %v1819_v30, %v1803_v60  ;;  %v1496_v26 = vpop.f32.mrb[120].mxu0  ;;  %v1609_v53 = vpop.f32.mrb[120].mxu1 }
 0x2e3   :  { %v1497_v11 = vadd.f32 %v1496_v26, %v7218_v33  ;;  %v1610_v3 = vadd.f32 %v1609_v53, %v7223_v57  ;;  %v1498_v5 = vpop.f32.mrb[121].mxu0  ;;  %v1611_v48 = vpop.f32.mrb[121].mxu1 }
 0x2e4   :  { %v1499_v6 = vadd.f32 %v1498_v5, %v7230_v36  ;;  %v1612_v9 = vadd.f32 %v1611_v48, %v7237_v7  ;;  %v1500_v42 = vpop.f32.mrb[122].mxu0  ;;  %v1613_v62 = vpop.f32.mrb[122].mxu1 }
 0x2e5   :  { %v1501_v20 = vadd.f32 %v1500_v42, %v7218_v33  ;;  %v1614_v23 = vadd.f32 %v1613_v62, %v7223_v57  ;;  %v1502_v27 = vpop.f32.mrb[123].mxu0  ;;  %v1615_v44 = vpop.f32.mrb[123].mxu1  ;;  %v1832_v21 = vmax.f32 %v1497_v11, 0.0  ;;  %v1834_v22 = vmax.f32 %v1610_v3, 0.0  ;;  %v7411_v42 = vld [vmem:[#allocation18] ss:$0 sm:$0xff] }
 0x2e6   :  { %v1503_v55 = vadd.f32 %v1502_v27, %v7230_v36  ;;  %v1616_v51 = vadd.f32 %v1615_v44, %v7237_v7  ;;  %v1833_v1 = vmax.f32 %v1499_v6, 0.0  ;;  %v1835_v31 = vmax.f32 %v1612_v9, 0.0 }
 0x2e7   :  { %v1848_v47 = vmax.f32 %v1501_v20, 0.0  ;;  %v1850_v18 = vmax.f32 %v1614_v23, 0.0  ;;  %3971 = vmatmul.mubr.bf16.gmra.mrb[228].mxu0 %v7283_v4  ;;  %4068 = vmatmul.mubr.bf16.gmra.mrb[228].mxu1 %v7285_v58 }
 0x2e8   :  { %v1849_v25 = vmax.f32 %v1503_v55, 0.0  ;;  %v1851_v41 = vmax.f32 %v1616_v51, 0.0  ;;  %3978 = vmatprep.mubr.bf16.mxu0 %v7307_v24  ;;  %4075 = vmatprep.mubr.bf16.mxu1 %v7309_v46 }
 0x2e9   :  { %v7383_v16 = vpack.c.bf16 %v1848_v47, %v1832_v21  ;;  %v7385_v0 = vpack.c.bf16 %v1850_v18, %v1834_v22 }
 0x2ea   :  { %v7387_v54 = vpack.c.bf16 %v1849_v25, %v1833_v1  ;;  %v7389_v49 = vpack.c.bf16 %v1851_v41, %v1835_v31  ;;  %v1506_v35 = vpop.f32.mrb[124].mxu0  ;;  %v1619_v4 = vpop.f32.mrb[124].mxu1 }
 0x2eb   :  { %v1507_v58 = vadd.f32 %v1506_v35, %v7218_v33  ;;  %v1620_v32 = vadd.f32 %v1619_v4, %v7223_v57  ;;  %v1508_v19 = vpop.f32.mrb[125].mxu0  ;;  %v1621_v2 = vpop.f32.mrb[125].mxu1 }
 0x2ec   :  { %v1509_v24 = vadd.f32 %v1508_v19, %v7230_v36  ;;  %v1622_v46 = vadd.f32 %v1621_v2, %v7237_v7  ;;  %v1510_v56 = vpop.f32.mrb[126].mxu0  ;;  %v1623_v28 = vpop.f32.mrb[126].mxu1 }
 0x2ed   :  { %v1511_v15 = vadd.f32 %v1510_v56, %v7218_v33  ;;  %v1624_v13 = vadd.f32 %v1623_v28, %v7223_v57  ;;  %v1512_v12 = vpop.f32.mrb[127].mxu0  ;;  %v1625_v50 = vpop.f32.mrb[127].mxu1  ;;  %v1864_v30 = vmax.f32 %v1507_v58, 0.0  ;;  %v1866_v26 = vmax.f32 %v1620_v32, 0.0 }
 0x2ee   :  { %v1513_v60 = vadd.f32 %v1512_v12, %v7230_v36  ;;  %v1626_v61 = vadd.f32 %v1625_v50, %v7237_v7  ;;  %v1865_v3 = vmax.f32 %v1509_v24, 0.0  ;;  %v1867_v5 = vmax.f32 %v1622_v46, 0.0 }
 0x2ef   :  { %v1880_v53 = vmax.f32 %v1511_v15, 0.0  ;;  %v1882_v11 = vmax.f32 %v1624_v13, 0.0  ;;  %3979 = vmatmul.mubr.bf16.gmra.mrb[232].mxu0 %v7303_v39  ;;  %4076 = vmatmul.mubr.bf16.gmra.mrb[232].mxu1 %v7305_v38 }
 0x2f0   :  { %v1881_v48 = vmax.f32 %v1513_v60, 0.0  ;;  %v1883_v33 = vmax.f32 %v1626_v61, 0.0  ;;  %3986 = vmatprep.mubr.bf16.mxu0 %v7327_v34  ;;  %4083 = vmatprep.mubr.bf16.mxu1 %v7329_v59 }
 0x2f1   :  { %v7403_v57 = vpack.c.bf16 %v1880_v53, %v1864_v30  ;;  %v7405_v36 = vpack.c.bf16 %v1882_v11, %v1866_v26 }
 0x2f2   :  { %v7407_v7 = vpack.c.bf16 %v1881_v48, %v1865_v3  ;;  %v7409_v6 = vpack.c.bf16 %v1883_v33, %v1867_v5  ;;  %v5281_v9 = vpop.f32.mrb[128].mxu0  ;;  %v5345_v39 = vpop.f32.mrb[128].mxu1 }
 0x2f3   :  { %v5282_v38 = vpop.f32.mrb[129].mxu0  ;;  %v5346_v62 = vpop.f32.mrb[129].mxu1 }
 0x2f4   :  { %v5283_v20 = vadd.f32 %v5282_v38, %v5281_v9  ;;  %v5347_v23 = vadd.f32 %v5346_v62, %v5345_v39  ;;  %v5284_v27 = vpop.f32.mrb[130].mxu0  ;;  %v5348_v34 = vpop.f32.mrb[130].mxu1 }
 0x2f5   :  { %v5285_v44 = vpop.f32.mrb[131].mxu0  ;;  %v5349_v59 = vpop.f32.mrb[131].mxu1 }
 0x2f6   :  { %v3383_v55 = vadd.f32 %v5283_v20, %v7411_v42  ;;  %v5286_v51 = vadd.f32 %v5285_v44, %v5284_v27  ;;  %v5350_v21 = vadd.f32 %v5349_v59, %v5348_v34 }
 0x2f7   :  { %3987 = vmatmul.mubr.bf16.gmra.mrb[236].mxu0 %v7323_v14  ;;  %4084 = vmatmul.mubr.bf16.gmra.mrb[236].mxu1 %v7325_v8 }
 0x2f8   :  { %v7416_v22 = vadd.f32 %v5347_v23, %v3383_v55  ;;  %v3386_v47 = vadd.f32 %v5286_v51, %v7411_v42  ;;  %3994 = vmatprep.mubr.bf16.mxu0 %v7347_v63  ;;  %4091 = vmatprep.mubr.bf16.mxu1 %v7349_v10 }
 0x2fa   :  { %v7421_v18 = vadd.f32 %v5350_v21, %v3386_v47  ;;  %v5287_v1 = vpop.f32.mrb[132].mxu0  ;;  %v5351_v31 = vpop.f32.mrb[132].mxu1 }
 0x2fb   :  { %v5288_v25 = vpop.f32.mrb[133].mxu0  ;;  %v5352_v41 = vpop.f32.mrb[133].mxu1 }
 0x2fc   :  { %v5289_v35 = vadd.f32 %v5288_v25, %v5287_v1  ;;  %v5353_v4 = vadd.f32 %v5352_v41, %v5351_v31  ;;  %v5290_v58 = vpop.f32.mrb[134].mxu0  ;;  %v5354_v14 = vpop.f32.mrb[134].mxu1 }
 0x2fd   :  { %v5291_v32 = vpop.f32.mrb[135].mxu0  ;;  %v5355_v8 = vpop.f32.mrb[135].mxu1 }
 0x2fe   :  { %v3391_v19 = vadd.f32 %v5289_v35, %v7411_v42  ;;  %v5292_v2 = vadd.f32 %v5291_v32, %v5290_v58  ;;  %v5356_v24 = vadd.f32 %v5355_v8, %v5354_v14 }
 0x2ff   :  { %3995 = vmatmul.mubr.bf16.gmra.mrb[240].mxu0 %v7343_v43  ;;  %4092 = vmatmul.mubr.bf16.gmra.mrb[240].mxu1 %v7345_v52 }
 0x300   :  { %v7426_v63 = vadd.f32 %v5353_v4, %v3391_v19  ;;  %v3394_v10 = vadd.f32 %v5292_v2, %v7411_v42  ;;  %4002 = vmatprep.mubr.bf16.mxu0 %v7367_v40  ;;  %4099 = vmatprep.mubr.bf16.mxu1 %v7369_v17 }
 0x302   :  { %v7431_v46 = vadd.f32 %v5356_v24, %v3394_v10  ;;  %v5293_v56 = vpop.f32.mrb[136].mxu0  ;;  %v5357_v28 = vpop.f32.mrb[136].mxu1 }
 0x303   :  { %v5294_v15 = vpop.f32.mrb[137].mxu0  ;;  %v5358_v13 = vpop.f32.mrb[137].mxu1 }
 0x304   :  { %v5295_v12 = vadd.f32 %v5294_v15, %v5293_v56  ;;  %v5359_v50 = vadd.f32 %v5358_v13, %v5357_v28  ;;  %v5296_v60 = vpop.f32.mrb[138].mxu0  ;;  %v5360_v43 = vpop.f32.mrb[138].mxu1 }
 0x305   :  { %v5297_v61 = vpop.f32.mrb[139].mxu0  ;;  %v5361_v52 = vpop.f32.mrb[139].mxu1 }
 0x306   :  { %v3399_v30 = vadd.f32 %v5295_v12, %v7411_v42  ;;  %v5298_v26 = vadd.f32 %v5297_v61, %v5296_v60  ;;  %v5362_v53 = vadd.f32 %v5361_v52, %v5360_v43 }
 0x307   :  { %4003 = vmatmul.mubr.bf16.gmra.mrb[244].mxu0 %v7363_v37  ;;  %4100 = vmatmul.mubr.bf16.gmra.mrb[244].mxu1 %v7365_v29 }
 0x308   :  { %v7436_v40 = vadd.f32 %v5359_v50, %v3399_v30  ;;  %v3402_v17 = vadd.f32 %v5298_v26, %v7411_v42  ;;  %4010 = vmatprep.mubr.bf16.mxu0 %v7387_v54  ;;  %4107 = vmatprep.mubr.bf16.mxu1 %v7389_v49 }
 0x30a   :  { %v7441_v11 = vadd.f32 %v5362_v53, %v3402_v17  ;;  %v5299_v3 = vpop.f32.mrb[140].mxu0  ;;  %v5363_v5 = vpop.f32.mrb[140].mxu1 }
 0x30b   :  { %v5300_v48 = vpop.f32.mrb[141].mxu0  ;;  %v5364_v33 = vpop.f32.mrb[141].mxu1 }
 0x30c   :  { %v5301_v9 = vadd.f32 %v5300_v48, %v5299_v3  ;;  %v5365_v39 = vadd.f32 %v5364_v33, %v5363_v5  ;;  %v5302_v38 = vpop.f32.mrb[142].mxu0  ;;  %v5366_v37 = vpop.f32.mrb[142].mxu1 }
 0x30d   :  { %v5303_v62 = vpop.f32.mrb[143].mxu0  ;;  %v5367_v29 = vpop.f32.mrb[143].mxu1 }
 0x30e   :  { %v3407_v20 = vadd.f32 %v5301_v9, %v7411_v42  ;;  %v5304_v23 = vadd.f32 %v5303_v62, %v5302_v38  ;;  %v5368_v27 = vadd.f32 %v5367_v29, %v5366_v37 }
 0x30f   :  { %4011 = vmatmul.mubr.bf16.gmra.mrb[248].mxu0 %v7383_v16  ;;  %4108 = vmatmul.mubr.bf16.gmra.mrb[248].mxu1 %v7385_v0 }
 0x310   :  { %v7446_v54 = vadd.f32 %v5365_v39, %v3407_v20  ;;  %v3410_v49 = vadd.f32 %v5304_v23, %v7411_v42  ;;  %4018 = vmatprep.mubr.bf16.mxu0 %v7407_v7  ;;  %4115 = vmatprep.mubr.bf16.mxu1 %v7409_v6 }
 0x312   :  { %v7451_v34 = vadd.f32 %v5368_v27, %v3410_v49  ;;  %v5305_v44 = vpop.f32.mrb[144].mxu0  ;;  %v5369_v59 = vpop.f32.mrb[144].mxu1 }
 0x313   :  { %v5306_v55 = vpop.f32.mrb[145].mxu0  ;;  %v5370_v51 = vpop.f32.mrb[145].mxu1 }
 0x314   :  { %v5307_v21 = vadd.f32 %v5306_v55, %v5305_v44  ;;  %v5371_v47 = vadd.f32 %v5370_v51, %v5369_v59  ;;  %v5308_v1 = vpop.f32.mrb[146].mxu0  ;;  %v5372_v16 = vpop.f32.mrb[146].mxu1 }
 0x315   :  { %v5309_v31 = vpop.f32.mrb[147].mxu0  ;;  %v5373_v0 = vpop.f32.mrb[147].mxu1 }
 0x316   :  { %v3415_v25 = vadd.f32 %v5307_v21, %v7411_v42  ;;  %v5310_v41 = vadd.f32 %v5309_v31, %v5308_v1  ;;  %v5374_v35 = vadd.f32 %v5373_v0, %v5372_v16 }
 0x317   :  { %4019 = vmatmul.mubr.bf16.gmra.mrb[252].mxu0 %v7403_v57  ;;  %4116 = vmatmul.mubr.bf16.gmra.mrb[252].mxu1 %v7405_v36 }
 0x318   :  { %v7456_v7 = vadd.f32 %v5371_v47, %v3415_v25  ;;  %v3418_v6 = vadd.f32 %v5310_v41, %v7411_v42 }
 0x31a   :  { %v7459_v4 = vadd.f32 %v5374_v35, %v3418_v6  ;;  %v5311_v58 = vpop.f32.mrb[148].mxu0  ;;  %v5375_v14 = vpop.f32.mrb[148].mxu1 }
 0x31b   :  { %v5312_v32 = vpop.f32.mrb[149].mxu0  ;;  %v5376_v8 = vpop.f32.mrb[149].mxu1 }
 0x31c   :  { %v5313_v19 = vadd.f32 %v5312_v32, %v5311_v58  ;;  %v5377_v2 = vadd.f32 %v5376_v8, %v5375_v14  ;;  %v5314_v24 = vpop.f32.mrb[150].mxu0  ;;  %v5378_v10 = vpop.f32.mrb[150].mxu1 }
 0x31d   :  { %v5315_v56 = vpop.f32.mrb[151].mxu0  ;;  %v5379_v28 = vpop.f32.mrb[151].mxu1 }
 0x31e   :  { %v3423_v57 = vadd.f32 %v5313_v19, %v7411_v42  ;;  %v5316_v15 = vadd.f32 %v5315_v56, %v5314_v24  ;;  %v5380_v36 = vadd.f32 %v5379_v28, %v5378_v10 }
 0x320   :  { %v7462_v13 = vadd.f32 %v5377_v2, %v3423_v57  ;;  %v3426_v12 = vadd.f32 %v5316_v15, %v7411_v42 }
 0x322   :  { %v7465_v50 = vadd.f32 %v5380_v36, %v3426_v12  ;;  %v5317_v60 = vpop.f32.mrb[152].mxu0  ;;  %v5381_v43 = vpop.f32.mrb[152].mxu1 }
 0x323   :  { %v5318_v61 = vpop.f32.mrb[153].mxu0  ;;  %v5382_v52 = vpop.f32.mrb[153].mxu1 }
 0x324   :  { %v5319_v30 = vadd.f32 %v5318_v61, %v5317_v60  ;;  %v5383_v26 = vadd.f32 %v5382_v52, %v5381_v43  ;;  %v5320_v53 = vpop.f32.mrb[154].mxu0  ;;  %v5384_v17 = vpop.f32.mrb[154].mxu1 }
 0x325   :  { %v5321_v3 = vpop.f32.mrb[155].mxu0  ;;  %v5385_v5 = vpop.f32.mrb[155].mxu1 }
 0x326   :  { %v3431_v48 = vadd.f32 %v5319_v30, %v7411_v42  ;;  %v5322_v33 = vadd.f32 %v5321_v3, %v5320_v53  ;;  %v5386_v9 = vadd.f32 %v5385_v5, %v5384_v17 }
 0x328   :  { %v7468_v39 = vadd.f32 %v5383_v26, %v3431_v48  ;;  %v3434_v38 = vadd.f32 %v5322_v33, %v7411_v42 }
 0x32a   :  { %v7471_v37 = vadd.f32 %v5386_v9, %v3434_v38  ;;  %v5323_v62 = vpop.f32.mrb[156].mxu0  ;;  %v5387_v29 = vpop.f32.mrb[156].mxu1 }
 0x32b   :  { %v5324_v20 = vpop.f32.mrb[157].mxu0  ;;  %v5388_v23 = vpop.f32.mrb[157].mxu1 }
 0x32c   :  { %v5325_v27 = vadd.f32 %v5324_v20, %v5323_v62  ;;  %v5389_v49 = vadd.f32 %v5388_v23, %v5387_v29  ;;  %v5326_v44 = vpop.f32.mrb[158].mxu0  ;;  %v5390_v59 = vpop.f32.mrb[158].mxu1 }
 0x32d   :  { %v5327_v55 = vpop.f32.mrb[159].mxu0  ;;  %v5391_v51 = vpop.f32.mrb[159].mxu1 }
 0x32e   :  { %v3439_v21 = vadd.f32 %v5325_v27, %v7411_v42  ;;  %v5328_v47 = vadd.f32 %v5327_v55, %v5326_v44  ;;  %v5392_v1 = vadd.f32 %v5391_v51, %v5390_v59 }
 0x330   :  { %v7474_v16 = vadd.f32 %v5389_v49, %v3439_v21  ;;  %v3442_v31 = vadd.f32 %v5328_v47, %v7411_v42 }
 0x332   :  { %v7477_v0 = vadd.f32 %v5392_v1, %v3442_v31  ;;  %v5409_v25 = vpop.f32.mrb[160].mxu0  ;;  %v5473_v41 = vpop.f32.mrb[160].mxu1 }
 0x333   :  { %v5410_v35 = vpop.f32.mrb[161].mxu0  ;;  %v5474_v6 = vpop.f32.mrb[161].mxu1 }
 0x334   :  { %v5411_v58 = vadd.f32 %v5410_v35, %v5409_v25  ;;  %v5475_v14 = vadd.f32 %v5474_v6, %v5473_v41  ;;  %v5412_v32 = vpop.f32.mrb[162].mxu0  ;;  %v5476_v8 = vpop.f32.mrb[162].mxu1 }
 0x335   :  { %v5413_v19 = vpop.f32.mrb[163].mxu0  ;;  %v5477_v2 = vpop.f32.mrb[163].mxu1 }
 0x336   :  { %v3577_v24 = vadd.f32 %v5411_v58, %v7416_v22  ;;  %v5414_v10 = vadd.f32 %v5413_v19, %v5412_v32  ;;  %v5478_v56 = vadd.f32 %v5477_v2, %v5476_v8 }
 0x338   :  { %v7480_v28 = vadd.f32 %v5475_v14, %v3577_v24  ;;  %v3580_v42 = vadd.f32 %v5414_v10, %v7421_v18 }
 0x33a   :  { %v7483_v57 = vadd.f32 %v5478_v56, %v3580_v42  ;;  %v5415_v15 = vpop.f32.mrb[164].mxu0  ;;  %v5479_v36 = vpop.f32.mrb[164].mxu1 }
 0x33b   :  { %v5416_v12 = vpop.f32.mrb[165].mxu0  ;;  %v5480_v60 = vpop.f32.mrb[165].mxu1 }
 0x33c   :  { %v5417_v43 = vadd.f32 %v5416_v12, %v5415_v15  ;;  %v5481_v61 = vadd.f32 %v5480_v60, %v5479_v36  ;;  %v5418_v52 = vpop.f32.mrb[166].mxu0  ;;  %v5482_v30 = vpop.f32.mrb[166].mxu1 }
 0x33d   :  { %v5419_v26 = vpop.f32.mrb[167].mxu0  ;;  %v5483_v53 = vpop.f32.mrb[167].mxu1 }
 0x33e   :  { %v3585_v22 = vadd.f32 %v5417_v43, %v7426_v63  ;;  %v5420_v17 = vadd.f32 %v5419_v26, %v5418_v52  ;;  %v5484_v3 = vadd.f32 %v5483_v53, %v5482_v30 }
 0x340   :  { %v7486_v5 = vadd.f32 %v5481_v61, %v3585_v22  ;;  %v3588_v18 = vadd.f32 %v5420_v17, %v7431_v46 }
 0x342   :  { %v7489_v48 = vadd.f32 %v5484_v3, %v3588_v18  ;;  %v5421_v33 = vpop.f32.mrb[168].mxu0  ;;  %v5485_v9 = vpop.f32.mrb[168].mxu1 }
 0x343   :  { %v5422_v38 = vpop.f32.mrb[169].mxu0  ;;  %v5486_v62 = vpop.f32.mrb[169].mxu1 }
 0x344   :  { %v5423_v29 = vadd.f32 %v5422_v38, %v5421_v33  ;;  %v5487_v20 = vadd.f32 %v5486_v62, %v5485_v9  ;;  %v5424_v23 = vpop.f32.mrb[170].mxu0  ;;  %v5488_v27 = vpop.f32.mrb[170].mxu1 }
 0x345   :  { %v5425_v49 = vpop.f32.mrb[171].mxu0  ;;  %v5489_v44 = vpop.f32.mrb[171].mxu1 }
 0x346   :  { %v3593_v63 = vadd.f32 %v5423_v29, %v7436_v40  ;;  %v5426_v59 = vadd.f32 %v5425_v49, %v5424_v23  ;;  %v5490_v55 = vadd.f32 %v5489_v44, %v5488_v27 }
 0x348   :  { %v7492_v51 = vadd.f32 %v5487_v20, %v3593_v63  ;;  %v3596_v46 = vadd.f32 %v5426_v59, %v7441_v11 }
 0x34a   :  { %v7495_v21 = vadd.f32 %v5490_v55, %v3596_v46  ;;  %v5427_v47 = vpop.f32.mrb[172].mxu0  ;;  %v5491_v1 = vpop.f32.mrb[172].mxu1 }
 0x34b   :  { %v5428_v31 = vpop.f32.mrb[173].mxu0  ;;  %v5492_v25 = vpop.f32.mrb[173].mxu1 }
 0x34c   :  { %v5429_v41 = vadd.f32 %v5428_v31, %v5427_v47  ;;  %v5493_v35 = vadd.f32 %v5492_v25, %v5491_v1  ;;  %v5430_v6 = vpop.f32.mrb[174].mxu0  ;;  %v5494_v58 = vpop.f32.mrb[174].mxu1 }
 0x34d   :  { %v5431_v14 = vpop.f32.mrb[175].mxu0  ;;  %v5495_v32 = vpop.f32.mrb[175].mxu1 }
 0x34e   :  { %v3601_v40 = vadd.f32 %v5429_v41, %v7446_v54  ;;  %v5432_v8 = vadd.f32 %v5431_v14, %v5430_v6  ;;  %v5496_v19 = vadd.f32 %v5495_v32, %v5494_v58 }
 0x350   :  { %v7498_v2 = vadd.f32 %v5493_v35, %v3601_v40  ;;  %v3604_v11 = vadd.f32 %v5432_v8, %v7451_v34 }
 0x352   :  { %v7501_v24 = vadd.f32 %v5496_v19, %v3604_v11  ;;  %v5433_v10 = vpop.f32.mrb[176].mxu0  ;;  %v5497_v56 = vpop.f32.mrb[176].mxu1 }
 0x353   :  { %v5434_v42 = vpop.f32.mrb[177].mxu0  ;;  %v5498_v15 = vpop.f32.mrb[177].mxu1 }
 0x354   :  { %v5435_v36 = vadd.f32 %v5434_v42, %v5433_v10  ;;  %v5499_v12 = vadd.f32 %v5498_v15, %v5497_v56  ;;  %v5436_v60 = vpop.f32.mrb[178].mxu0  ;;  %v5500_v43 = vpop.f32.mrb[178].mxu1 }
 0x355   :  { %v5437_v61 = vpop.f32.mrb[179].mxu0  ;;  %v5501_v52 = vpop.f32.mrb[179].mxu1 }
 0x356   :  { %v3609_v54 = vadd.f32 %v5435_v36, %v7456_v7  ;;  %v5438_v30 = vadd.f32 %v5437_v61, %v5436_v60  ;;  %v5502_v26 = vadd.f32 %v5501_v52, %v5500_v43 }
 0x358   :  { %v7504_v53 = vadd.f32 %v5499_v12, %v3609_v54  ;;  %v3612_v34 = vadd.f32 %v5438_v30, %v7459_v4 }
 0x35a   :  { %v7507_v22 = vadd.f32 %v5502_v26, %v3612_v34  ;;  %v5439_v17 = vpop.f32.mrb[180].mxu0  ;;  %v5503_v3 = vpop.f32.mrb[180].mxu1 }
 0x35b   :  { %v5440_v18 = vpop.f32.mrb[181].mxu0  ;;  %v5504_v33 = vpop.f32.mrb[181].mxu1 }
 0x35c   :  { %v5441_v9 = vadd.f32 %v5440_v18, %v5439_v17  ;;  %v5505_v38 = vadd.f32 %v5504_v33, %v5503_v3  ;;  %v5442_v62 = vpop.f32.mrb[182].mxu0  ;;  %v5506_v29 = vpop.f32.mrb[182].mxu1 }
 0x35d   :  { %v5443_v20 = vpop.f32.mrb[183].mxu0  ;;  %v5507_v23 = vpop.f32.mrb[183].mxu1 }
 0x35e   :  { %v3617_v7 = vadd.f32 %v5441_v9, %v7462_v13  ;;  %v5444_v27 = vadd.f32 %v5443_v20, %v5442_v62  ;;  %v5508_v49 = vadd.f32 %v5507_v23, %v5506_v29 }
 0x360   :  { %v7510_v44 = vadd.f32 %v5505_v38, %v3617_v7  ;;  %v3620_v4 = vadd.f32 %v5444_v27, %v7465_v50 }
 0x362   :  { %v7513_v63 = vadd.f32 %v5508_v49, %v3620_v4  ;;  %v5445_v59 = vpop.f32.mrb[184].mxu0  ;;  %v5509_v55 = vpop.f32.mrb[184].mxu1 }
 0x363   :  { %v5446_v46 = vpop.f32.mrb[185].mxu0  ;;  %v5510_v47 = vpop.f32.mrb[185].mxu1 }
 0x364   :  { %v5447_v1 = vadd.f32 %v5446_v46, %v5445_v59  ;;  %v5511_v31 = vadd.f32 %v5510_v47, %v5509_v55  ;;  %v5448_v25 = vpop.f32.mrb[186].mxu0  ;;  %v5512_v41 = vpop.f32.mrb[186].mxu1 }
 0x365   :  { %v5449_v35 = vpop.f32.mrb[187].mxu0  ;;  %v5513_v6 = vpop.f32.mrb[187].mxu1 }
 0x366   :  { %v3625_v13 = vadd.f32 %v5447_v1, %v7468_v39  ;;  %v5450_v58 = vadd.f32 %v5449_v35, %v5448_v25  ;;  %v5514_v14 = vadd.f32 %v5513_v6, %v5512_v41 }
 0x368   :  { %v7516_v32 = vadd.f32 %v5511_v31, %v3625_v13  ;;  %v3628_v50 = vadd.f32 %v5450_v58, %v7471_v37 }
 0x36a   :  { %v7519_v40 = vadd.f32 %v5514_v14, %v3628_v50  ;;  %v5451_v8 = vpop.f32.mrb[188].mxu0  ;;  %v5515_v19 = vpop.f32.mrb[188].mxu1 }
 0x36b   :  { %v5452_v11 = vpop.f32.mrb[189].mxu0  ;;  %v5516_v10 = vpop.f32.mrb[189].mxu1 }
 0x36c   :  { %v5453_v56 = vadd.f32 %v5452_v11, %v5451_v8  ;;  %v5517_v42 = vadd.f32 %v5516_v10, %v5515_v19  ;;  %v5454_v15 = vpop.f32.mrb[190].mxu0  ;;  %v5518_v36 = vpop.f32.mrb[190].mxu1 }
 0x36d   :  { %v5455_v12 = vpop.f32.mrb[191].mxu0  ;;  %v5519_v60 = vpop.f32.mrb[191].mxu1 }
 0x36e   :  { %v3633_v39 = vadd.f32 %v5453_v56, %v7474_v16  ;;  %v5456_v43 = vadd.f32 %v5455_v12, %v5454_v15  ;;  %v5520_v61 = vadd.f32 %v5519_v60, %v5518_v36 }
 0x370   :  { %v7522_v52 = vadd.f32 %v5517_v42, %v3633_v39  ;;  %v3636_v37 = vadd.f32 %v5456_v43, %v7477_v0 }
 0x372   :  { %v7525_v54 = vadd.f32 %v5520_v61, %v3636_v37  ;;  %v5537_v30 = vpop.f32.mrb[192].mxu0  ;;  %v5601_v26 = vpop.f32.mrb[192].mxu1 }
 0x373   :  { %v5538_v34 = vpop.f32.mrb[193].mxu0  ;;  %v5602_v17 = vpop.f32.mrb[193].mxu1 }
 0x374   :  { %v5539_v3 = vadd.f32 %v5538_v34, %v5537_v30  ;;  %v5603_v18 = vadd.f32 %v5602_v17, %v5601_v26  ;;  %v5540_v33 = vpop.f32.mrb[194].mxu0  ;;  %v5604_v9 = vpop.f32.mrb[194].mxu1 }
 0x375   :  { %v5541_v38 = vpop.f32.mrb[195].mxu0  ;;  %v5605_v62 = vpop.f32.mrb[195].mxu1 }
 0x376   :  { %v3771_v16 = vadd.f32 %v5539_v3, %v7480_v28  ;;  %v5542_v29 = vadd.f32 %v5541_v38, %v5540_v33  ;;  %v5606_v20 = vadd.f32 %v5605_v62, %v5604_v9 }
 0x378   :  { %v7528_v23 = vadd.f32 %v5603_v18, %v3771_v16  ;;  %v3774_v0 = vadd.f32 %v5542_v29, %v7483_v57 }
 0x37a   :  { %v7531_v7 = vadd.f32 %v5606_v20, %v3774_v0  ;;  %v5543_v27 = vpop.f32.mrb[196].mxu0  ;;  %v5607_v49 = vpop.f32.mrb[196].mxu1 }
 0x37b   :  { %v5544_v4 = vpop.f32.mrb[197].mxu0  ;;  %v5608_v59 = vpop.f32.mrb[197].mxu1 }
 0x37c   :  { %v5545_v55 = vadd.f32 %v5544_v4, %v5543_v27  ;;  %v5609_v46 = vadd.f32 %v5608_v59, %v5607_v49  ;;  %v5546_v47 = vpop.f32.mrb[198].mxu0  ;;  %v5610_v1 = vpop.f32.mrb[198].mxu1 }
 0x37d   :  { %v5547_v31 = vpop.f32.mrb[199].mxu0  ;;  %v5611_v25 = vpop.f32.mrb[199].mxu1 }
 0x37e   :  { %v3779_v28 = vadd.f32 %v5545_v55, %v7486_v5  ;;  %v5548_v41 = vadd.f32 %v5547_v31, %v5546_v47  ;;  %v5612_v35 = vadd.f32 %v5611_v25, %v5610_v1 }
 0x380   :  { %v7534_v6 = vadd.f32 %v5609_v46, %v3779_v28  ;;  %v3782_v57 = vadd.f32 %v5548_v41, %v7489_v48 }
 0x382   :  { %v7537_v13 = vadd.f32 %v5612_v35, %v3782_v57  ;;  %v5549_v58 = vpop.f32.mrb[200].mxu0  ;;  %v5613_v14 = vpop.f32.mrb[200].mxu1 }
 0x383   :  { %v5550_v50 = vpop.f32.mrb[201].mxu0  ;;  %v5614_v8 = vpop.f32.mrb[201].mxu1 }
 0x384   :  { %v5551_v19 = vadd.f32 %v5550_v50, %v5549_v58  ;;  %v5615_v11 = vadd.f32 %v5614_v8, %v5613_v14  ;;  %v5552_v10 = vpop.f32.mrb[202].mxu0  ;;  %v5616_v56 = vpop.f32.mrb[202].mxu1 }
 0x385   :  { %v5553_v42 = vpop.f32.mrb[203].mxu0  ;;  %v5617_v15 = vpop.f32.mrb[203].mxu1 }
 0x386   :  { %v3787_v5 = vadd.f32 %v5551_v19, %v7492_v51  ;;  %v5554_v36 = vadd.f32 %v5553_v42, %v5552_v10  ;;  %v5618_v12 = vadd.f32 %v5617_v15, %v5616_v56 }
 0x388   :  { %v7540_v60 = vadd.f32 %v5615_v11, %v3787_v5  ;;  %v3790_v48 = vadd.f32 %v5554_v36, %v7495_v21 }
 0x38a   :  { %v7543_v39 = vadd.f32 %v5618_v12, %v3790_v48  ;;  %v5555_v43 = vpop.f32.mrb[204].mxu0  ;;  %v5619_v61 = vpop.f32.mrb[204].mxu1  ;;  %v6271_v48 = vmov -inf  }
 0x38b   :  { %v5556_v37 = vpop.f32.mrb[205].mxu0  ;;  %v5620_v30 = vpop.f32.mrb[205].mxu1  ;;  %2141 = vst.msk [vmem:[#allocation3] sm:$0xff] %vm2140_vm1, %v6271_v48  ;;  %2142 = vst.msk [vmem:[#allocation3 + $0x8] sm:$0xff] %vm2140_vm1, %v6271_v48 }
 0x38c   :  { %v5557_v26 = vadd.f32 %v5556_v37, %v5555_v43  ;;  %v5621_v34 = vadd.f32 %v5620_v30, %v5619_v61  ;;  %v5558_v17 = vpop.f32.mrb[206].mxu0  ;;  %v5622_v3 = vpop.f32.mrb[206].mxu1  ;;  %2143 = vst.msk [vmem:[#allocation3 + $0x10] sm:$0xff] %vm2140_vm1, %v6271_v48  ;;  %2144 = vst.msk [vmem:[#allocation3 + $0x18] sm:$0xff] %vm2140_vm1, %v6271_v48 }
 0x38d   :  { %v5559_v18 = vpop.f32.mrb[207].mxu0  ;;  %v5623_v33 = vpop.f32.mrb[207].mxu1  ;;  %2145 = vst.msk [vmem:[#allocation3 + $0x20] sm:$0xff] %vm2140_vm1, %v6271_v48  ;;  %2146 = vst.msk [vmem:[#allocation3 + $0x28] sm:$0xff] %vm2140_vm1, %v6271_v48 }
 0x38e   :  { %v3795_v51 = vadd.f32 %v5557_v26, %v7498_v2  ;;  %v5560_v9 = vadd.f32 %v5559_v18, %v5558_v17  ;;  %v5624_v38 = vadd.f32 %v5623_v33, %v5622_v3  ;;  %2147 = vst.msk [vmem:[#allocation3 + $0x30] sm:$0xff] %vm2140_vm1, %v6271_v48  ;;  %2148 = vst.msk [vmem:[#allocation3 + $0x38] sm:$0xff] %vm2140_vm1, %v6271_v48 }
 0x38f   :  { %2149 = vst.msk [vmem:[#allocation3 + $0x40] sm:$0xff] %vm2140_vm1, %v6271_v48  ;;  %2150 = vst.msk [vmem:[#allocation3 + $0x48] sm:$0xff] %vm2140_vm1, %v6271_v48 }
 0x390   :  { %v7546_v62 = vadd.f32 %v5621_v34, %v3795_v51  ;;  %v3798_v21 = vadd.f32 %v5560_v9, %v7501_v24  ;;  %2151 = vst.msk [vmem:[#allocation3 + $0x50] sm:$0xff] %vm2140_vm1, %v6271_v48  ;;  %2152 = vst.msk [vmem:[#allocation3 + $0x58] sm:$0xff] %vm2140_vm1, %v6271_v48 }
 0x391   :  { %2153 = vst.msk [vmem:[#allocation3 + $0x60] sm:$0xff] %vm2140_vm1, %v6271_v48  ;;  %2154 = vst.msk [vmem:[#allocation3 + $0x68] sm:$0xff] %vm2140_vm1, %v6271_v48 }
 0x392   :  { %v7549_v16 = vadd.f32 %v5624_v38, %v3798_v21  ;;  %v5561_v29 = vpop.f32.mrb[208].mxu0  ;;  %v5625_v20 = vpop.f32.mrb[208].mxu1  ;;  %2155 = vst.msk [vmem:[#allocation3 + $0x70] sm:$0xff] %vm2140_vm1, %v6271_v48  ;;  %2156 = vst.msk [vmem:[#allocation3 + $0x78] sm:$0xff] %vm2140_vm1, %v6271_v48 }
 0x393   :  { %v5562_v0 = vpop.f32.mrb[209].mxu0  ;;  %v5626_v27 = vpop.f32.mrb[209].mxu1 }
 0x394   :  { %v5563_v49 = vadd.f32 %v5562_v0, %v5561_v29  ;;  %v5627_v4 = vadd.f32 %v5626_v27, %v5625_v20  ;;  %v5564_v59 = vpop.f32.mrb[210].mxu0  ;;  %v5628_v55 = vpop.f32.mrb[210].mxu1 }
 0x395   :  { %v5565_v46 = vpop.f32.mrb[211].mxu0  ;;  %v5629_v47 = vpop.f32.mrb[211].mxu1 }
 0x396   :  { %v3803_v2 = vadd.f32 %v5563_v49, %v7504_v53  ;;  %v5566_v1 = vadd.f32 %v5565_v46, %v5564_v59  ;;  %v5630_v31 = vadd.f32 %v5629_v47, %v5628_v55 }
 0x398   :  { %v7552_v25 = vadd.f32 %v5627_v4, %v3803_v2  ;;  %v3806_v24 = vadd.f32 %v5566_v1, %v7507_v22 }
 0x39a   :  { %v7555_v28 = vadd.f32 %v5630_v31, %v3806_v24  ;;  %v5567_v41 = vpop.f32.mrb[212].mxu0  ;;  %v5631_v35 = vpop.f32.mrb[212].mxu1 }
 0x39b   :  { %v5568_v57 = vpop.f32.mrb[213].mxu0  ;;  %v5632_v58 = vpop.f32.mrb[213].mxu1 }
 0x39c   :  { %v5569_v14 = vadd.f32 %v5568_v57, %v5567_v41  ;;  %v5633_v50 = vadd.f32 %v5632_v58, %v5631_v35  ;;  %v5570_v8 = vpop.f32.mrb[214].mxu0  ;;  %v5634_v19 = vpop.f32.mrb[214].mxu1 }
 0x39d   :  { %v5571_v11 = vpop.f32.mrb[215].mxu0  ;;  %v5635_v10 = vpop.f32.mrb[215].mxu1 }
 0x39e   :  { %v3811_v53 = vadd.f32 %v5569_v14, %v7510_v44  ;;  %v5572_v56 = vadd.f32 %v5571_v11, %v5570_v8  ;;  %v5636_v42 = vadd.f32 %v5635_v10, %v5634_v19 }
 0x3a0   :  { %v7558_v15 = vadd.f32 %v5633_v50, %v3811_v53  ;;  %v3814_v22 = vadd.f32 %v5572_v56, %v7513_v63 }
 0x3a2   :  { %v7561_v5 = vadd.f32 %v5636_v42, %v3814_v22  ;;  %v5573_v36 = vpop.f32.mrb[216].mxu0  ;;  %v5637_v12 = vpop.f32.mrb[216].mxu1 }
 0x3a3   :  { %v5574_v44 = vpop.f32.mrb[217].mxu0  ;;  %v5638_v63 = vpop.f32.mrb[217].mxu1 }
 0x3a4   :  { %v5575_v43 = vadd.f32 %v5574_v44, %v5573_v36  ;;  %v5639_v61 = vadd.f32 %v5638_v63, %v5637_v12  ;;  %v5576_v37 = vpop.f32.mrb[218].mxu0  ;;  %v5640_v30 = vpop.f32.mrb[218].mxu1 }
 0x3a5   :  { %v5577_v26 = vpop.f32.mrb[219].mxu0  ;;  %v5641_v34 = vpop.f32.mrb[219].mxu1 }
 0x3a6   :  { %v3819_v17 = vadd.f32 %v5575_v43, %v7516_v32  ;;  %v5578_v3 = vadd.f32 %v5577_v26, %v5576_v37  ;;  %v5642_v18 = vadd.f32 %v5641_v34, %v5640_v30 }
 0x3a8   :  { %v7580_v33 = vadd.f32 %v5639_v61, %v3819_v17  ;;  %v3822_v51 = vadd.f32 %v5578_v3, %v7519_v40 }
 0x3aa   :  { %v7583_v9 = vadd.f32 %v5642_v18, %v3822_v51  ;;  %v5579_v38 = vpop.f32.mrb[220].mxu0  ;;  %v5643_v21 = vpop.f32.mrb[220].mxu1 }
 0x3ab   :  { %v5580_v29 = vpop.f32.mrb[221].mxu0  ;;  %v5644_v20 = vpop.f32.mrb[221].mxu1 }
 0x3ac   :  { %v5581_v0 = vadd.f32 %v5580_v29, %v5579_v38  ;;  %v5645_v27 = vadd.f32 %v5644_v20, %v5643_v21  ;;  %v5582_v49 = vpop.f32.mrb[222].mxu0  ;;  %v5646_v4 = vpop.f32.mrb[222].mxu1 }
 0x3ad   :  { %v5583_v59 = vpop.f32.mrb[223].mxu0  ;;  %v5647_v55 = vpop.f32.mrb[223].mxu1 }
 0x3ae   :  { %v3827_v32 = vadd.f32 %v5581_v0, %v7522_v52  ;;  %v5584_v46 = vadd.f32 %v5583_v59, %v5582_v49  ;;  %v5648_v47 = vadd.f32 %v5647_v55, %v5646_v4 }
 0x3b0   :  { %v7586_v2 = vadd.f32 %v5645_v27, %v3827_v32  ;;  %v3830_v40 = vadd.f32 %v5584_v46, %v7525_v54 }
 0x3b2   :  { %v7589_v1 = vadd.f32 %v5648_v47, %v3830_v40  ;;  %v5665_v31 = vpop.f32.mrb[224].mxu0  ;;  %v5729_v24 = vpop.f32.mrb[224].mxu1 }
 0x3b3   :  { %v5666_v41 = vpop.f32.mrb[225].mxu0  ;;  %v5730_v35 = vpop.f32.mrb[225].mxu1 }
 0x3b4   :  { %v5667_v57 = vadd.f32 %v5666_v41, %v5665_v31  ;;  %v5731_v58 = vadd.f32 %v5730_v35, %v5729_v24  ;;  %v5668_v14 = vpop.f32.mrb[226].mxu0  ;;  %v5732_v50 = vpop.f32.mrb[226].mxu1 }
 0x3b5   :  { %v5669_v8 = vpop.f32.mrb[227].mxu0  ;;  %v5733_v19 = vpop.f32.mrb[227].mxu1 }
 0x3b6   :  { %v3965_v52 = vadd.f32 %v5667_v57, %v7528_v23  ;;  %v5670_v11 = vadd.f32 %v5669_v8, %v5668_v14  ;;  %v5734_v10 = vadd.f32 %v5733_v19, %v5732_v50 }
 0x3b8   :  { %v7592_v53 = vadd.f32 %v5731_v58, %v3965_v52  ;;  %v3968_v54 = vadd.f32 %v5670_v11, %v7531_v7 }
 0x3ba   :  { %v7595_v56 = vadd.f32 %v5734_v10, %v3968_v54  ;;  %v5671_v42 = vpop.f32.mrb[228].mxu0  ;;  %v5735_v22 = vpop.f32.mrb[228].mxu1  ;;  %4220 = vmax.xlane.f32.xlu0 %v7592_v53 }
 0x3bb   :  { %v5672_v36 = vpop.f32.mrb[229].mxu0  ;;  %v5736_v12 = vpop.f32.mrb[229].mxu1 }
 0x3bc   :  { %v5221_v48 = vpack.c.bf16 %v7595_v56, %v7592_v53  ;;  %v5673_v44 = vadd.f32 %v5672_v36, %v5671_v42  ;;  %v5737_v63 = vadd.f32 %v5736_v12, %v5735_v22  ;;  %v5674_v23 = vpop.f32.mrb[230].mxu0  ;;  %v5738_v43 = vpop.f32.mrb[230].mxu1  ;;  %4222 = vmax.xlane.f32.xlu1 %v7595_v56  ;;  %v6272_v36 = vmov 0.0  }
 0x3bd   :  { %v5675_v61 = vpop.f32.mrb[231].mxu0  ;;  %v5739_v37 = vpop.f32.mrb[231].mxu1  ;;  %2174 = vst.msk [vmem:[#allocation5 + $0x8] sm:$0xff] %vm2140_vm1, %v6272_v36  ;;  %2157 = vst.msk [vmem:[#allocation4] sm:$0xff] %vm2140_vm1, %v6272_v36 }
 0x3be   :  { %5222 = vst [vmem:[#allocation20] sm:$0xff] %v5221_v48   ;;  %v3973_v7 = vadd.f32 %v5673_v44, %v7534_v6  ;;  %v5676_v30 = vadd.f32 %v5675_v61, %v5674_v23  ;;  %v5740_v26 = vadd.f32 %v5739_v37, %v5738_v43  ;;  %2158 = vst.msk [vmem:[#allocation4 + $0x8] sm:$0xff] %vm2140_vm1, %v6272_v36 }
 0x3bf   :  { %2159 = vst.msk [vmem:[#allocation4 + $0x10] sm:$0xff] %vm2140_vm1, %v6272_v36  ;;  %2160 = vst.msk [vmem:[#allocation4 + $0x18] sm:$0xff] %vm2140_vm1, %v6272_v36 }
 0x3c0   :  { %v7602_v34 = vadd.f32 %v5737_v63, %v3973_v7  ;;  %v3976_v17 = vadd.f32 %v5676_v30, %v7537_v13  ;;  %2161 = vst.msk [vmem:[#allocation4 + $0x20] sm:$0xff] %vm2140_vm1, %v6272_v36  ;;  %2162 = vst.msk [vmem:[#allocation4 + $0x28] sm:$0xff] %vm2140_vm1, %v6272_v36 }
 0x3c1   :  { %2163 = vst.msk [vmem:[#allocation4 + $0x30] sm:$0xff] %vm2140_vm1, %v6272_v36  ;;  %2164 = vst.msk [vmem:[#allocation4 + $0x38] sm:$0xff] %vm2140_vm1, %v6272_v36 }
 0x3c2   :  { %v7605_v3 = vadd.f32 %v5740_v26, %v3976_v17  ;;  %v5677_v18 = vpop.f32.mrb[232].mxu0  ;;  %v5741_v51 = vpop.f32.mrb[232].mxu1  ;;  %4224 = vmax.xlane.f32.xlu0 %v7602_v34  ;;  %2165 = vst.msk [vmem:[#allocation4 + $0x40] sm:$0xff] %vm2140_vm1, %v6272_v36  ;;  %2166 = vst.msk [vmem:[#allocation4 + $0x48] sm:$0xff] %vm2140_vm1, %v6272_v36 }
 0x3c3   :  { %v5678_v38 = vpop.f32.mrb[233].mxu0  ;;  %v5742_v21 = vpop.f32.mrb[233].mxu1  ;;  %2167 = vst.msk [vmem:[#allocation4 + $0x50] sm:$0xff] %vm2140_vm1, %v6272_v36  ;;  %2168 = vst.msk [vmem:[#allocation4 + $0x58] sm:$0xff] %vm2140_vm1, %v6272_v36 }
 0x3c4   :  { %v5226_v29 = vpack.c.bf16 %v7605_v3, %v7602_v34  ;;  %v5679_v20 = vadd.f32 %v5678_v38, %v5677_v18  ;;  %v5743_v0 = vadd.f32 %v5742_v21, %v5741_v51  ;;  %v5680_v6 = vpop.f32.mrb[234].mxu0  ;;  %v5744_v27 = vpop.f32.mrb[234].mxu1  ;;  %2169 = vst.msk [vmem:[#allocation4 + $0x60] sm:$0xff] %vm2140_vm1, %v6272_v36  ;;  %2170 = vst.msk [vmem:[#allocation4 + $0x68] sm:$0xff] %vm2140_vm1, %v6272_v36 }
 0x3c5   :  { %v5681_v49 = vpop.f32.mrb[235].mxu0  ;;  %v5745_v4 = vpop.f32.mrb[235].mxu1  ;;  %2171 = vst.msk [vmem:[#allocation4 + $0x70] sm:$0xff] %vm2140_vm1, %v6272_v36  ;;  %2172 = vst.msk [vmem:[#allocation4 + $0x78] sm:$0xff] %vm2140_vm1, %v6272_v36 }
 0x3c6   :  { %5258 = vst [vmem:[#allocation20 + $0x8] sm:$0xff] %v5226_v29   ;;  %v3981_v13 = vadd.f32 %v5679_v20, %v7540_v60  ;;  %v5682_v59 = vadd.f32 %v5681_v49, %v5680_v6  ;;  %v5746_v55 = vadd.f32 %v5745_v4, %v5744_v27  ;;  %4226 = vmax.xlane.f32.xlu0 %v7605_v3  ;;  %2173 = vst.msk [vmem:[#allocation5] sm:$0xff] %vm2140_vm1, %v6272_v36 }
 0x3c7   :  { %2175 = vst.msk [vmem:[#allocation5 + $0x10] sm:$0xff] %vm2140_vm1, %v6272_v36  ;;  %2176 = vst.msk [vmem:[#allocation5 + $0x18] sm:$0xff] %vm2140_vm1, %v6272_v36 }
 0x3c8   :  { %v7612_v32 = vadd.f32 %v5743_v0, %v3981_v13  ;;  %v3984_v46 = vadd.f32 %v5682_v59, %v7543_v39  ;;  %2177 = vst.msk [vmem:[#allocation5 + $0x20] sm:$0xff] %vm2140_vm1, %v6272_v36  ;;  %2178 = vst.msk [vmem:[#allocation5 + $0x28] sm:$0xff] %vm2140_vm1, %v6272_v36 }
 0x3c9   :  { %2179 = vst.msk [vmem:[#allocation5 + $0x30] sm:$0xff] %vm2140_vm1, %v6272_v36  ;;  %2180 = vst.msk [vmem:[#allocation5 + $0x38] sm:$0xff] %vm2140_vm1, %v6272_v36 }
 0x3ca   :  { %v7615_v47 = vadd.f32 %v5746_v55, %v3984_v46  ;;  %v5683_v40 = vpop.f32.mrb[236].mxu0  ;;  %v5747_v31 = vpop.f32.mrb[236].mxu1  ;;  %4228 = vmax.xlane.f32.xlu1 %v7612_v32  ;;  %2181 = vst.msk [vmem:[#allocation5 + $0x40] sm:$0xff] %vm2140_vm1, %v6272_v36  ;;  %2182 = vst.msk [vmem:[#allocation5 + $0x48] sm:$0xff] %vm2140_vm1, %v6272_v36 }
 0x3cb   :  { %v5684_v24 = vpop.f32.mrb[237].mxu0  ;;  %v5748_v41 = vpop.f32.mrb[237].mxu1  ;;  %2183 = vst.msk [vmem:[#allocation5 + $0x50] sm:$0xff] %vm2140_vm1, %v6272_v36  ;;  %2184 = vst.msk [vmem:[#allocation5 + $0x58] sm:$0xff] %vm2140_vm1, %v6272_v36 }
 0x3cc   :  { %v5231_v35 = vpack.c.bf16 %v7615_v47, %v7612_v32  ;;  %v5685_v60 = vadd.f32 %v5684_v24, %v5683_v40  ;;  %v5749_v57 = vadd.f32 %v5748_v41, %v5747_v31  ;;  %v5686_v58 = vpop.f32.mrb[238].mxu0  ;;  %v5750_v14 = vpop.f32.mrb[238].mxu1  ;;  %4230 = vmax.xlane.f32.xlu0 %v7615_v47  ;;  %2185 = vst.msk [vmem:[#allocation5 + $0x60] sm:$0xff] %vm2140_vm1, %v6272_v36  ;;  %2186 = vst.msk [vmem:[#allocation5 + $0x68] sm:$0xff] %vm2140_vm1, %v6272_v36 }
 0x3cd   :  { %v5687_v50 = vpop.f32.mrb[239].mxu0  ;;  %v5751_v8 = vpop.f32.mrb[239].mxu1  ;;  %2187 = vst.msk [vmem:[#allocation5 + $0x70] sm:$0xff] %vm2140_vm1, %v6272_v36  ;;  %2188 = vst.msk [vmem:[#allocation5 + $0x78] sm:$0xff] %vm2140_vm1, %v6272_v36 }
 0x3ce   :  { %5259 = vst [vmem:[#allocation20 + $0x10] sm:$0xff] %v5231_v35   ;;  %v3989_v39 = vadd.f32 %v5685_v60, %v7546_v62  ;;  %v5688_v19 = vadd.f32 %v5687_v50, %v5686_v58  ;;  %v5752_v52 = vadd.f32 %v5751_v8, %v5750_v14 }
 0x3d0   :  { %v7622_v11 = vadd.f32 %v5749_v57, %v3989_v39  ;;  %v3992_v10 = vadd.f32 %v5688_v19, %v7549_v16 }
 0x3d2   :  { %v7625_v54 = vadd.f32 %v5752_v52, %v3992_v10  ;;  %v5689_v42 = vpop.f32.mrb[240].mxu0  ;;  %v5753_v22 = vpop.f32.mrb[240].mxu1  ;;  %4232 = vmax.xlane.f32.xlu1 %v7622_v11 }
 0x3d3   :  { %v5690_v62 = vpop.f32.mrb[241].mxu0  ;;  %v5754_v16 = vpop.f32.mrb[241].mxu1 }
 0x3d4   :  { %v5236_v12 = vpack.c.bf16 %v7625_v54, %v7622_v11  ;;  %v5691_v48 = vadd.f32 %v5690_v62, %v5689_v42  ;;  %v5755_v44 = vadd.f32 %v5754_v16, %v5753_v22  ;;  %v5692_v63 = vpop.f32.mrb[242].mxu0  ;;  %v5756_v23 = vpop.f32.mrb[242].mxu1  ;;  %4234 = vmax.xlane.f32.xlu0 %v7625_v54 }
 0x3d5   :  { %v5693_v43 = vpop.f32.mrb[243].mxu0  ;;  %v5757_v61 = vpop.f32.mrb[243].mxu1 }
 0x3d6   :  { %5260 = vst [vmem:[#allocation20 + $0x18] sm:$0xff] %v5236_v12   ;;  %v3997_v37 = vadd.f32 %v5691_v48, %v7552_v25  ;;  %v5694_v7 = vadd.f32 %v5693_v43, %v5692_v63  ;;  %v5758_v30 = vadd.f32 %v5757_v61, %v5756_v23 }
 0x3d8   :  { %v7664_v26 = vadd.f32 %v5755_v44, %v3997_v37  ;;  %v4000_v17 = vadd.f32 %v5694_v7, %v7555_v28 }
 0x3da   :  { %v7667_v18 = vadd.f32 %v5758_v30, %v4000_v17  ;;  %v5695_v51 = vpop.f32.mrb[244].mxu0  ;;  %v5759_v38 = vpop.f32.mrb[244].mxu1  ;;  %4236 = vmax.xlane.f32.xlu1 %v7664_v26 }
 0x3db   :  { %v5696_v21 = vpop.f32.mrb[245].mxu0  ;;  %v5760_v29 = vpop.f32.mrb[245].mxu1 }
 0x3dc   :  { %v5241_v20 = vpack.c.bf16 %v7667_v18, %v7664_v26  ;;  %v5697_v0 = vadd.f32 %v5696_v21, %v5695_v51  ;;  %v5761_v6 = vadd.f32 %v5760_v29, %v5759_v38  ;;  %v5698_v25 = vpop.f32.mrb[246].mxu0  ;;  %v5762_v27 = vpop.f32.mrb[246].mxu1  ;;  %4238 = vmax.xlane.f32.xlu0 %v7667_v18  ;;  %v4562_v38 = vld [vmem:[#allocation11 + $0x18] sm:$0xff]  ;;  %v4561_v21 = vld [vmem:[#allocation11 + $0x10] sm:$0xff] }
 0x3dd   :  { %v5699_v49 = vpop.f32.mrb[247].mxu0  ;;  %v5763_v4 = vpop.f32.mrb[247].mxu1 }
 0x3de   :  { %5261 = vst [vmem:[#allocation20 + $0x20] sm:$0xff] %v5241_v20   ;;  %v4005_v28 = vadd.f32 %v5697_v0, %v7558_v15  ;;  %v5700_v13 = vadd.f32 %v5699_v49, %v5698_v25  ;;  %v5764_v59 = vadd.f32 %v5763_v4, %v5762_v27  ;;  %v7705_v29 = vpop.permute.xlu1 %4613  ;;  %v7707_v20 = vld [vmem:[#allocation3] sm:$0xff]  ;;  %v7709_v0 = vld [vmem:[#allocation3 + $0x8] sm:$0xff] }
 0x3df   :  { %v4572_v4 = vld [vmem:[#allocation11 + $0x68] sm:$0xff] }
 0x3e0   :  { %v7674_v55 = vadd.f32 %v5761_v6, %v4005_v28  ;;  %v4008_v46 = vadd.f32 %v5700_v13, %v7561_v5  ;;  %v7727_v28 = vld [vmem:[#allocation3 + $0x10] sm:$0xff] }
 0x3e2   :  { %v7677_v40 = vadd.f32 %v5764_v59, %v4008_v46  ;;  %v5701_v31 = vpop.f32.mrb[248].mxu0  ;;  %v5765_v24 = vpop.f32.mrb[248].mxu1  ;;  %4240 = vmax.xlane.f32.xlu1 %v7674_v55  ;;  %v7732_v46 = vld [vmem:[#allocation3 + $0x18] sm:$0xff] }
 0x3e3   :  { %v5702_v41 = vpop.f32.mrb[249].mxu0  ;;  %v5766_v35 = vpop.f32.mrb[249].mxu1 }
 0x3e4   :  { %v5246_v60 = vpack.c.bf16 %v7677_v40, %v7674_v55  ;;  %v5703_v57 = vadd.f32 %v5702_v41, %v5701_v31  ;;  %v5767_v58 = vadd.f32 %v5766_v35, %v5765_v24  ;;  %v5704_v15 = vpop.f32.mrb[250].mxu0  ;;  %v5768_v14 = vpop.f32.mrb[250].mxu1  ;;  %4242 = vmax.xlane.f32.xlu0 %v7677_v40  ;;  %v7742_v35 = vld [vmem:[#allocation3 + $0x20] sm:$0xff] }
 0x3e5   :  { %v5705_v50 = vpop.f32.mrb[251].mxu0  ;;  %v5769_v8 = vpop.f32.mrb[251].mxu1 }
 0x3e6   :  { %5262 = vst [vmem:[#allocation20 + $0x28] sm:$0xff] %v5246_v60   ;;  %v4013_v5 = vadd.f32 %v5703_v57, %v7580_v33  ;;  %v5706_v39 = vadd.f32 %v5705_v50, %v5704_v15  ;;  %v5770_v19 = vadd.f32 %v5769_v8, %v5768_v14  ;;  %v4570_v60 = vld [vmem:[#allocation11 + $0x58] sm:$0xff] }
 0x3e8   :  { %v7684_v52 = vadd.f32 %v5767_v58, %v4013_v5  ;;  %v4016_v10 = vadd.f32 %v5706_v39, %v7583_v9  ;;  %v7749_v58 = vld [vmem:[#allocation3 + $0x28] sm:$0xff]  ;;  %v7767_v39 = vld [vmem:[#allocation3 + $0x30] sm:$0xff] }
 0x3ea   :  { %v7687_v42 = vadd.f32 %v5770_v19, %v4016_v10  ;;  %v5707_v22 = vpop.f32.mrb[252].mxu0  ;;  %v5771_v36 = vpop.f32.mrb[252].mxu1  ;;  %4244 = vmax.xlane.f32.xlu1 %v7684_v52  ;;  %v7769_v10 = vld [vmem:[#allocation3 + $0x38] sm:$0xff] }
 0x3eb   :  { %v5708_v62 = vpop.f32.mrb[253].mxu0  ;;  %v5772_v16 = vpop.f32.mrb[253].mxu1 }
 0x3ec   :  { %v5251_v12 = vpack.c.bf16 %v7687_v42, %v7684_v52  ;;  %v5709_v48 = vadd.f32 %v5708_v62, %v5707_v22  ;;  %v5773_v44 = vadd.f32 %v5772_v16, %v5771_v36  ;;  %v5710_v33 = vpop.f32.mrb[254].mxu0  ;;  %v5774_v63 = vpop.f32.mrb[254].mxu1  ;;  %4246 = vmax.xlane.f32.xlu0 %v7687_v42  ;;  %v4568_v62 = vld [vmem:[#allocation11 + $0x48] sm:$0xff] }
 0x3ed   :  { %v5711_v23 = vpop.f32.mrb[255].mxu0  ;;  %v5775_v43 = vpop.f32.mrb[255].mxu1 }
 0x3ee   :  { %5263 = vst [vmem:[#allocation20 + $0x30] sm:$0xff] %v5251_v12   ;;  %v4021_v9 = vadd.f32 %v5709_v48, %v7586_v2  ;;  %v5712_v61 = vadd.f32 %v5711_v23, %v5710_v33  ;;  %v5776_v37 = vadd.f32 %v5775_v43, %v5774_v63  ;;  %v7703_v2 = vpop.permute.xlu0 %4610  ;;  %v7787_v48 = vld [vmem:[#allocation3 + $0x40] sm:$0xff]  ;;  %v7789_v33 = vld [vmem:[#allocation3 + $0x48] sm:$0xff]  ;;  %v4566_v43 = vld [vmem:[#allocation11 + $0x38] sm:$0xff] }
 0x3f0   :  { %v7694_v7 = vadd.f32 %v5773_v44, %v4021_v9  ;;  %v4024_v30 = vadd.f32 %v5712_v61, %v7589_v1 }
 0x3f2   :  { %v7697_v17 = vadd.f32 %v5776_v37, %v4024_v30  ;;  %4248 = vmax.xlane.f32.xlu1 %v7694_v7  ;;  %v7807_v37 = vld [vmem:[#allocation3 + $0x50] sm:$0xff] }
 0x3f4   :  { %v5256_v51 = vpack.c.bf16 %v7697_v17, %v7694_v7 }
 0x3f6   :  { %5264 = vst [vmem:[#allocation20 + $0x38] sm:$0xff] %v5256_v51   ;;  %v7809_v51 = vld [vmem:[#allocation3 + $0x58] sm:$0xff] }
 0x402   :  { %4619 = vperm.xlu0 %5796, %v4562_v38  }
 0x403   :  { %4616 = vperm.xlu1 %5797, %v4561_v21  }
 0x421   :  { %4250 = vmax.xlane.f32.xlu0 %v7697_v17 }
 0x447   :  { %v4221_v1 = vpop.xlane.xlu0 %4220 }
 0x448   :  { %v7712_v6 = vmax.f32 %v7707_v20, %v4221_v1  ;;  %v4564_v1 = vld [vmem:[#allocation11 + $0x28] sm:$0xff] }
 0x449   :  { %v4223_v25 = vpop.xlane.xlu1 %4222 }
 0x44a   :  { %4541 = vst.msk [vmem:[#allocation3] sm:$0xff] %vm2140_vm1, %v7712_v6  ;;  %v7719_v49 = vmax.f32 %v7709_v0, %v4223_v25  ;;  %4350 = vperm.xlu1 %5797, %v7712_v6  }
 0x44c   :  { %4542 = vst.msk [vmem:[#allocation3 + $0x8] sm:$0xff] %vm2140_vm1, %v7719_v49  ;;  %4355 = vperm.xlu0 %5796, %v7719_v49  }
 0x44f   :  { %v4225_v13 = vpop.xlane.xlu0 %4224 }
 0x450   :  { %v7730_v59 = vmax.f32 %v7727_v28, %v4225_v13  ;;  %v7857_v13 = vld [vmem:[#allocation3 + $0x78] sm:$0xff] }
 0x452   :  { %4543 = vst.msk [vmem:[#allocation3 + $0x10] sm:$0xff] %vm2140_vm1, %v7730_v59  ;;  %4360 = vperm.xlu1 %5797, %v7730_v59  }
 0x453   :  { %v4227_v24 = vpop.xlane.xlu0 %4226 }
 0x454   :  { %v7740_v41 = vmax.f32 %v7732_v46, %v4227_v24  ;;  %v7827_v24 = vld [vmem:[#allocation3 + $0x60] sm:$0xff] }
 0x455   :  { %8078 = vst [vmem:[#allocation30_spill] sm:$0xff] %v7827_v24 }
 0x456   :  { %4544 = vst.msk [vmem:[#allocation3 + $0x18] sm:$0xff] %vm2140_vm1, %v7740_v41  ;;  %4365 = vperm.xlu1 %5797, %v7740_v41  }
 0x457   :  { %v4229_v57 = vpop.xlane.xlu1 %4228 }
 0x458   :  { %v7752_v15 = vmax.f32 %v7742_v35, %v4229_v57 }
 0x459   :  { %v4231_v14 = vpop.xlane.xlu0 %4230 }
 0x45a   :  { %4545 = vst.msk [vmem:[#allocation3 + $0x20] sm:$0xff] %vm2140_vm1, %v7752_v15  ;;  %v7759_v8 = vmax.f32 %v7749_v58, %v4231_v14  ;;  %4370 = vperm.xlu0 %5796, %v7752_v15   ;;  %v7829_v14 = vld [vmem:[#allocation3 + $0x68] sm:$0xff] }
 0x45c   :  { %4546 = vst.msk [vmem:[#allocation3 + $0x28] sm:$0xff] %vm2140_vm1, %v7759_v8  ;;  %4375 = vperm.xlu1 %5797, %v7759_v8  }
 0x45f   :  { %v4233_v19 = vpop.xlane.xlu1 %4232 }
 0x460   :  { %v7772_v22 = vmax.f32 %v7767_v39, %v4233_v19 }
 0x461   :  { %v4235_v36 = vpop.xlane.xlu0 %4234 }
 0x462   :  { %4547 = vst.msk [vmem:[#allocation3 + $0x30] sm:$0xff] %vm2140_vm1, %v7772_v22  ;;  %v7779_v16 = vmax.f32 %v7769_v10, %v4235_v36  ;;  %4380 = vperm.xlu0 %5796, %v7772_v22  }
 0x464   :  { %4548 = vst.msk [vmem:[#allocation3 + $0x38] sm:$0xff] %vm2140_vm1, %v7779_v16  ;;  %4385 = vperm.xlu1 %5797, %v7779_v16  }
 0x467   :  { %v4237_v44 = vpop.xlane.xlu1 %4236 }
 0x468   :  { %v7792_v63 = vmax.f32 %v7787_v48, %v4237_v44 }
 0x469   :  { %v4239_v23 = vpop.xlane.xlu0 %4238 }
 0x46a   :  { %4549 = vst.msk [vmem:[#allocation3 + $0x40] sm:$0xff] %vm2140_vm1, %v7792_v63  ;;  %v7799_v9 = vmax.f32 %v7789_v33, %v4239_v23  ;;  %4390 = vperm.xlu0 %5796, %v7792_v63  }
 0x46c   :  { %4550 = vst.msk [vmem:[#allocation3 + $0x48] sm:$0xff] %vm2140_vm1, %v7799_v9  ;;  %4395 = vperm.xlu1 %5797, %v7799_v9  }
 0x46f   :  { %v4241_v30 = vpop.xlane.xlu1 %4240 }
 0x470   :  { %v7812_v38 = vmax.f32 %v7807_v37, %v4241_v30 }
 0x471   :  { %v4243_v21 = vpop.xlane.xlu0 %4242 }
 0x472   :  { %4551 = vst.msk [vmem:[#allocation3 + $0x50] sm:$0xff] %vm2140_vm1, %v7812_v38  ;;  %v7819_v25 = vmax.f32 %v7809_v51, %v4243_v21  ;;  %4400 = vperm.xlu0 %5796, %v7812_v38   ;;  %v7847_v21 = vld [vmem:[#allocation3 + $0x70] sm:$0xff] }
 0x473   :  { %8080 = vst [vmem:[#allocation32_spill] sm:$0xff] %v7847_v21 }
 0x474   :  { %4552 = vst.msk [vmem:[#allocation3 + $0x58] sm:$0xff] %vm2140_vm1, %v7819_v25  ;;  %4405 = vperm.xlu1 %5797, %v7819_v25  }
 0x477   :  { %v4245_v57 = vpop.xlane.xlu1 %4244 }
 0x478   :  { %v7832_v19 = vmax.f32 %v7827_v24, %v4245_v57 }
 0x479   :  { %v4247_v36 = vpop.xlane.xlu0 %4246 }
 0x47a   :  { %8079 = vst [vmem:[#allocation31_spill] sm:$0xff] %v7832_v19  ;;  %4553 = vst.msk [vmem:[#allocation3 + $0x60] sm:$0xff] %vm2140_vm1, %v7832_v19  ;;  %v7839_v23 = vmax.f32 %v7829_v14, %v4247_v36  ;;  %4410 = vperm.xlu0 %5796, %v7832_v19  }
 0x47c   :  { %4554 = vst.msk [vmem:[#allocation3 + $0x68] sm:$0xff] %vm2140_vm1, %v7839_v23  ;;  %4415 = vperm.xlu1 %5797, %v7839_v23  }
 0x47f   :  { %v4249_v57 = vpop.xlane.xlu1 %4248 }
 0x480   :  { %v7850_v44 = vmax.f32 %v7847_v21, %v4249_v57  ;;  %v4574_v57 = vld [vmem:[#allocation11 + $0x78] sm:$0xff] }
 0x481   :  { %v4620_v30 = vpop.permute.xlu0 %4619 }
 0x482   :  { %8081 = vst [vmem:[#allocation33_spill] sm:$0xff] %v7850_v44  ;;  %4555 = vst.msk [vmem:[#allocation3 + $0x70] sm:$0xff] %vm2140_vm1, %v7850_v44  ;;  %4420 = vperm.xlu0 %5796, %v7850_v44  }
 0x486   :  { %4625 = vperm.xlu0 %5796, %v4564_v1   ;;  %v4569_v1 = vld [vmem:[#allocation11 + $0x50] sm:$0xff] }
 0x48a   :  { %4631 = vperm.xlu0 %5796, %v4566_v43  }
 0x48e   :  { %4637 = vperm.xlu0 %5796, %v4568_v62   ;;  %v4565_v62 = vld [vmem:[#allocation11 + $0x30] sm:$0xff] }
 0x492   :  { %4643 = vperm.xlu0 %5796, %v4570_v60   ;;  %v4563_v60 = vld [vmem:[#allocation11 + $0x20] sm:$0xff] }
 0x496   :  { %4649 = vperm.xlu0 %5796, %v4572_v4   ;;  %v7868_v4 = vand.u32 127, %v183_v45  ;;  %v4571_v45 = vld [vmem:[#allocation11 + $0x60] sm:$0xff] }
 0x498   :  { %vm4658_vm2 = vcmp.eq.s32.totalorder %v7868_v4, %v7705_v29  ;;  %vm4660_vm3 = vcmp.eq.s32.totalorder %v7868_v4, %v4620_v30  ;;  %v4617_v29 = vpop.permute.xlu1 %4616  ;;  %vm4657_vm4 = vcmp.eq.s32.totalorder %v7868_v4, %v7703_v2 }
 0x499   :  { %v4674_v43 = vsel %vm4658_vm2, %v7595_v56, 0.0  ;;  %v4673_v30 = vsel %vm4657_vm4, %v7592_v53, 0.0  ;;  %vm4659_vm5 = vcmp.eq.s32.totalorder %v7868_v4, %v4617_v29 }
 0x49a   :  { %4655 = vperm.xlu0 %5796, %v4574_v57   ;;  %v4676_v57 = vsel %vm4660_vm3, %v7605_v3, 0.0 }
 0x4ae   :  { %v4251_v36 = vpop.xlane.xlu0 %4250 }
 0x4af   :  { %v7860_v61 = vmax.f32 %v7857_v13, %v4251_v36  ;;  %v4567_v36 = vld [vmem:[#allocation11 + $0x40] sm:$0xff] }
 0x4b1   :  { %4556 = vst.msk [vmem:[#allocation3 + $0x78] sm:$0xff] %vm2140_vm1, %v7860_v61  ;;  %4425 = vperm.xlu1 %5797, %v7860_v61  }
 0x4b5   :  { %4622 = vperm.xlu1 %5797, %v4563_v60   ;;  %v4573_v60 = vld [vmem:[#allocation11 + $0x70] sm:$0xff] }
 0x4b9   :  { %4691 = vadd.xlane.f32.xlu0 %v4674_v43  ;;  %4628 = vperm.xlu1 %5797, %v4565_v62   ;;  %v4675_v43 = vsel %vm4659_vm5, %v7602_v34, 0.0 }
 0x4bd   :  { %4695 = vadd.xlane.f32.xlu0 %v4676_v57  ;;  %4634 = vperm.xlu1 %5797, %v4567_v36  }
 0x4c1   :  { %4640 = vperm.xlu1 %5797, %v4569_v1  }
 0x4c5   :  { %4646 = vperm.xlu1 %5797, %v4571_v45  }
 0x4c9   :  { %4652 = vperm.xlu1 %5797, %v4573_v60   ;;  %v4351_v57 = vpop.permute.xlu1 %4350 }
 0x4ca   :  { %v4428_v5 = vsub.f32 %v7592_v53, %v4351_v57 }
 0x4cb   :  { %v7875_v12 = vpop.permute.xlu0 %4355 }
 0x4cc   :  { %v4444_v50 = vmul.f32 1.442695, %v4428_v5 }
 0x4ce   :  { %5926 = vpow2.f32 %v4444_v50 }
 0x4d1   :  { %v4361_v60 = vpop.permute.xlu1 %4360 }
 0x4d2   :  { %v4430_v29 = vsub.f32 %v7602_v34, %v4361_v60 }
 0x4d4   :  { %v4448_v27 = vmul.f32 1.442695, %v4430_v29 }
 0x4d6   :  { %5928 = vpow2.f32 %v4448_v27 }
 0x4d9   :  { %v4371_v62 = vpop.permute.xlu0 %4370 }
 0x4e1   :  { %v7882_v36 = vpop.permute.xlu0 %4380 }
 0x4e9   :  { %v7884_v1 = vpop.permute.xlu0 %4390 }
 0x4ed   :  { %4689 = vadd.xlane.f32.xlu1 %v4673_v30  ;;  %v4366_v30 = vpop.permute.xlu1 %4365 }
 0x4f1   :  { %4693 = vadd.xlane.f32.xlu1 %v4675_v43  ;;  %v7886_v45 = vpop.permute.xlu0 %4400  ;;  %v4432_v43 = vsub.f32 %v7612_v32, %v4371_v62  ;;  %v4376_v21 = vpop.permute.xlu1 %4375 }
 0x4f2   :  { %v4433_v5 = vsub.f32 %v7615_v47, %v4376_v21 }
 0x4f3   :  { %v4452_v53 = vmul.f32 1.442695, %v4432_v43 }
 0x4f4   :  { %v4454_v62 = vmul.f32 1.442695, %v4433_v5 }
 0x4f5   :  { %v4386_v34 = vpop.permute.xlu1 %4385  ;;  %5930 = vpow2.f32 %v4452_v53 }
 0x4f6   :  { %v4435_v60 = vsub.f32 %v7625_v54, %v4386_v34  ;;  %5932 = vpow2.f32 %v4454_v62 }
 0x4f9   :  { %v7889_v2 = vpop.permute.xlu0 %4410  ;;  %v4396_v29 = vpop.permute.xlu1 %4395 }
 0x4fa   :  { %v4437_v27 = vsub.f32 %v7667_v18, %v4396_v29 }
 0x4fc   :  { %v4462_v21 = vmul.f32 1.442695, %v4437_v27 }
 0x4fd   :  { %v4406_v43 = vpop.permute.xlu1 %4405 }
 0x501   :  { %v7892_v31 = vpop.permute.xlu0 %4420  ;;  %v4416_v24 = vpop.permute.xlu1 %4415 }
 0x505   :  { %v4626_v44 = vpop.permute.xlu0 %4625 }
 0x506   :  { %vm4662_vm6 = vcmp.eq.s32.totalorder %v7868_v4, %v4626_v44  ;;  %v5927_v44 = vpop.eup %5926 }
 0x507   :  { %v4678_v19 = vsel %vm4662_vm6, %v7615_v47, 0.0  ;;  %v5929_v47 = vpop.eup %5928 }
 0x508   :  { %4699 = vadd.xlane.f32.xlu0 %v4678_v19  ;;  %v4458_v19 = vmul.f32 1.442695, %v4435_v60 }
 0x509   :  { %v4632_v57 = vpop.permute.xlu0 %4631 }
 0x50a   :  { %vm4664_vm7 = vcmp.eq.s32.totalorder %v7868_v4, %v4632_v57  ;;  %5934 = vpow2.f32 %v4458_v19  ;;  %v4439_v57 = vsub.f32 %v7677_v40, %v4406_v43  ;;  %v4429_v19 = vsub.f32 %v7595_v56, %v7875_v12 }
 0x50b   :  { %v4680_v50 = vsel %vm4664_vm7, %v7625_v54, 0.0  ;;  %5936 = vpow2.f32 %v4462_v21  ;;  %v4441_v54 = vsub.f32 %v7687_v42, %v4416_v24  ;;  %v4431_v43 = vsub.f32 %v7605_v3, %v4366_v30 }
 0x50c   :  { %4703 = vadd.xlane.f32.xlu0 %v4680_v50  ;;  %v5931_v50 = vpop.eup %5930  ;;  %v4466_v53 = vmul.f32 1.442695, %v4439_v57  ;;  %v4446_v27 = vmul.f32 1.442695, %v4429_v19  ;;  %v4436_v12 = vsub.f32 %v7664_v26, %v7884_v1  ;;  %v4440_v1 = vsub.f32 %v7684_v52, %v7889_v2 }
 0x50d   :  { %v5933_v5 = vpop.eup %5932  ;;  %v4470_v34 = vmul.f32 1.442695, %v4441_v54  ;;  %v4638_v24 = vpop.permute.xlu0 %4637 }
 0x50e   :  { %5938 = vpow2.f32 %v4466_v53  ;;  %v4434_v53 = vsub.f32 %v7622_v11, %v7882_v36  ;;  %v4460_v36 = vmul.f32 1.442695, %v4436_v12  ;;  %vm4666_vm10 = vcmp.eq.s32.totalorder %v7868_v4, %v4638_v24 }
 0x50f   :  { %5940 = vpow2.f32 %v4470_v34 }
 0x510   :  { %4476 = vadd.xlane.f32.xlu0 %v5927_v44  ;;  %5942 = vpow2.f32 %v4446_v27  ;;  %v4456_v3 = vmul.f32 1.442695, %v4434_v53  ;;  %v4682_v27 = vsel %vm4666_vm10, %v7667_v18, 0.0  ;;  %v4596_v18 = vld [vmem:[#allocation5 + $0x18] sm:$0xff] }
 0x514   :  { %4480 = vadd.xlane.f32.xlu0 %v5929_v47  ;;  %v5935_v62 = vpop.eup %5934 }
 0x515   :  { %v5937_v60 = vpop.eup %5936 }
 0x518   :  { %4484 = vadd.xlane.f32.xlu0 %v5931_v50  ;;  %v5939_v29 = vpop.eup %5938  ;;  %v4450_v50 = vmul.f32 1.442695, %v4431_v43  ;;  %v4468_v43 = vmul.f32 1.442695, %v4440_v1  ;;  %v4595_v1 = vld [vmem:[#allocation5 + $0x10] sm:$0xff] }
 0x519   :  { %v5941_v44 = vpop.eup %5940 }
 0x51c   :  { %4486 = vadd.xlane.f32.xlu0 %v5933_v5  ;;  %v4644_v5 = vpop.permute.xlu0 %4643 }
 0x51d   :  { %vm4668_vm11 = vcmp.eq.s32.totalorder %v7868_v4, %v4644_v5 }
 0x51e   :  { %v4684_v24 = vsel %vm4668_vm11, %v7677_v40, 0.0 }
 0x520   :  { %4490 = vadd.xlane.f32.xlu0 %v5935_v62  ;;  %v4438_v62 = vsub.f32 %v7674_v55, %v7886_v45  ;;  %v4442_v45 = vsub.f32 %v7694_v7, %v7892_v31 }
 0x524   :  { %4494 = vadd.xlane.f32.xlu0 %v5937_v60  ;;  %v4650_v60 = vpop.permute.xlu0 %4649 }
 0x525   :  { %vm4670_vm12 = vcmp.eq.s32.totalorder %v7868_v4, %v4650_v60 }
 0x526   :  { %v4686_v5 = vsel %vm4670_vm12, %v7687_v42, 0.0 }
 0x528   :  { %4498 = vadd.xlane.f32.xlu0 %v5939_v29  ;;  %v5943_v29 = vpop.eup %5942 }
 0x52c   :  { %4502 = vadd.xlane.f32.xlu0 %v5941_v44  ;;  %v4464_v44 = vmul.f32 1.442695, %v4438_v62 }
 0x530   :  { %v4426_v47 = vpop.permute.xlu1 %4425 }
 0x531   :  { %v4443_v21 = vsub.f32 %v7697_v17, %v4426_v47  ;;  %v4594_v47 = vld [vmem:[#allocation5 + $0x8] sm:$0xff] }
 0x533   :  { %v4474_v57 = vmul.f32 1.442695, %v4443_v21 }
 0x534   :  { %v4623_v54 = vpop.permute.xlu1 %4622 }
 0x535   :  { %5944 = vpow2.f32 %v4474_v57  ;;  %vm4661_vm8 = vcmp.eq.s32.totalorder %v7868_v4, %v4623_v54 }
 0x536   :  { %v4677_v56 = vsel %vm4661_vm8, %v7612_v32, 0.0  ;;  %5946 = vpow2.f32 %v4450_v50  ;;  %v4472_v50 = vmul.f32 1.442695, %v4442_v45 }
 0x537   :  { %4697 = vadd.xlane.f32.xlu1 %v4677_v56  ;;  %5948 = vpow2.f32 %v4456_v3 }
 0x538   :  { %v4629_v30 = vpop.permute.xlu1 %4628  ;;  %5950 = vpow2.f32 %v4460_v36 }
 0x539   :  { %vm4663_vm9 = vcmp.eq.s32.totalorder %v7868_v4, %v4629_v30  ;;  %5952 = vpow2.f32 %v4464_v44 }
 0x53a   :  { %v4679_v34 = vsel %vm4663_vm9, %v7622_v11, 0.0  ;;  %v4656_v11 = vpop.permute.xlu0 %4655  ;;  %5954 = vpow2.f32 %v4468_v43 }
 0x53b   :  { %4701 = vadd.xlane.f32.xlu1 %v4679_v34  ;;  %5956 = vpow2.f32 %v4472_v50  ;;  %vm4672_vm13 = vcmp.eq.s32.totalorder %v7868_v4, %v4656_v11 }
 0x53c   :  { %v4635_v56 = vpop.permute.xlu1 %4634  ;;  %v4688_v3 = vsel %vm4672_vm13, %v7697_v17, 0.0 }
 0x53d   :  { %vm4665_vm14 = vcmp.eq.s32.totalorder %v7868_v4, %v4635_v56 }
 0x53e   :  { %v4681_v36 = vsel %vm4665_vm14, %v7664_v26, 0.0 }
 0x53f   :  { %v5945_v32 = vpop.eup %5944  ;;  %4478 = vadd.xlane.f32.xlu1 %v5943_v29 }
 0x540   :  { %4506 = vadd.xlane.f32.xlu0 %v5945_v32  ;;  %v5947_v19 = vpop.eup %5946  ;;  %v4641_v30 = vpop.permute.xlu1 %4640  ;;  %v4593_v32 = vld [vmem:[#allocation5] sm:$0xff] }
 0x541   :  { %v5949_v21 = vpop.eup %5948  ;;  %vm4667_vm15 = vcmp.eq.s32.totalorder %v7868_v4, %v4641_v30 }
 0x542   :  { %v5951_v53 = vpop.eup %5950  ;;  %v4683_v62 = vsel %vm4667_vm15, %v7674_v55, 0.0 }
 0x543   :  { %4482 = vadd.xlane.f32.xlu1 %v5947_v19  ;;  %v5953_v40 = vpop.eup %5952 }
 0x544   :  { %4707 = vadd.xlane.f32.xlu0 %v4682_v27  ;;  %v5955_v12 = vpop.eup %5954  ;;  %v4647_v42 = vpop.permute.xlu1 %4646 }
 0x545   :  { %v5957_v34 = vpop.eup %5956  ;;  %vm4669_vm0 = vcmp.eq.s32.totalorder %v7868_v4, %v4647_v42 }
 0x546   :  { %v4692_v57 = vpop.xlane.xlu0 %4691  ;;  %v4685_v60 = vsel %vm4669_vm0, %v7684_v52, 0.0 }
 0x547   :  { %v4722_v2 = vadd.f32 %v4692_v57, %v4594_v47  ;;  %4488 = vadd.xlane.f32.xlu1 %v5949_v21 }
 0x548   :  { %4711 = vadd.xlane.f32.xlu0 %v4684_v24  ;;  %v4653_v17 = vpop.permute.xlu1 %4652 }
 0x549   :  { %4738 = vst.msk [vmem:[#allocation5 + $0x8] sm:$0xff] %vm2140_vm1, %v4722_v2  ;;  %vm4671_vm2 = vcmp.eq.s32.totalorder %v7868_v4, %v4653_v17 }
 0x54a   :  { %v4696_v31 = vpop.xlane.xlu0 %4695  ;;  %v4687_v29 = vsel %vm4671_vm2, %v7694_v7, 0.0 }
 0x54b   :  { %v4724_v54 = vadd.f32 %v4696_v31, %v4596_v18  ;;  %4492 = vadd.xlane.f32.xlu1 %v5951_v53 }
 0x54c   :  { %4715 = vadd.xlane.f32.xlu0 %v4686_v5 }
 0x54d   :  { %4740 = vst.msk [vmem:[#allocation5 + $0x18] sm:$0xff] %vm2140_vm1, %v4724_v54 }
 0x54f   :  { %4496 = vadd.xlane.f32.xlu1 %v5953_v40 }
 0x550   :  { %4719 = vadd.xlane.f32.xlu0 %v4688_v3 }
 0x553   :  { %4500 = vadd.xlane.f32.xlu1 %v5955_v12 }
 0x557   :  { %4504 = vadd.xlane.f32.xlu1 %v5957_v34 }
 0x55b   :  { %4705 = vadd.xlane.f32.xlu1 %v4681_v36 }
 0x55f   :  { %4709 = vadd.xlane.f32.xlu1 %v4683_v62 }
 0x563   :  { %4713 = vadd.xlane.f32.xlu1 %v4685_v60 }
 0x567   :  { %4717 = vadd.xlane.f32.xlu1 %v4687_v29 }
 0x57a   :  { %v4690_v44 = vpop.xlane.xlu1 %4689 }
 0x57b   :  { %v4721_v26 = vadd.f32 %v4690_v44, %v4593_v32 }
 0x57d   :  { %4737 = vst.msk [vmem:[#allocation5] sm:$0xff] %vm2140_vm1, %v4721_v26 }
 0x57e   :  { %v4694_v19 = vpop.xlane.xlu1 %4693 }
 0x57f   :  { %v4723_v55 = vadd.f32 %v4694_v19, %v4595_v1 }
 0x581   :  { %4739 = vst.msk [vmem:[#allocation5 + $0x10] sm:$0xff] %vm2140_vm1, %v4723_v55 }
 0x582   :  { %6209 = shalt.err (!%p6206_p12)
}
 0x583   :  { %s6210_s29 = scalar_lea.hbm %s8072_s8, 1024 }
 0x584   :  { %p6211_p13 = scmp.ne.s32.totalorder %s8072_s8, %s6210_s29  ;;  %p6214_p0 = scmp.lt.u32.totalorder %s6210_s29, %s8072_s8 }
 0x586   :  { %p6216_p1 = pnand %p6214_p0, %p6211_p13 }
 0x588   :  { %6219 = shalt.err (!%p6216_p1)
}
 0x589   :  { %4927 = dma.vmem_to_hbm [thread:$0]  %s4922_s27, 1024, %s8072_s8, [#allocation8], %s6257_s19, %s6257_s19, %s6258_s20   ;;  %v8082_v52 = vsub.f32 %v7707_v20, %v7712_v6  ;;  %v8083_v4 = vsub.f32 %v7727_v28, %v7730_v59  ;;  %v8084_v27 = vsub.f32 %v7742_v35, %v7752_v15  ;;  %v4598_v45 = vld [vmem:[#allocation5 + $0x28] sm:$0xff]  ;;  %v8085_v57 = vsub.f32 %v7749_v58, %v7759_v8  ;;  %v4600_v20 = vld [vmem:[#allocation5 + $0x38] sm:$0xff]  ;;  %v4316_v28 = vld [vmem:[#allocation4] sm:$0xff] }
 0x58a   :  { %v8086_v35 = vsub.f32 %v7769_v10, %v7779_v16  ;;  %v4318_v31 = vld [vmem:[#allocation4 + $0x10] sm:$0xff]  ;;  %v8087_v8 = vsub.f32 %v7789_v33, %v7799_v9  ;;  %v4320_v3 = vld [vmem:[#allocation4 + $0x20] sm:$0xff]  ;;  %v8088_v16 = vsub.f32 %v7809_v51, %v7819_v25  ;;  %v4321_v36 = vld [vmem:[#allocation4 + $0x28] sm:$0xff]  ;;  %v8089_v9 = vsub.f32 %v7829_v14, %v7839_v23  ;;  %s6274_s8 = smov [#allocation21]  }
 0x58b   :  { %v4284_v7 = vmul.f32 1.442695, %v8082_v52  ;;  %v4288_v11 = vmul.f32 1.442695, %v8083_v4  ;;  %v4292_v43 = vmul.f32 1.442695, %v8084_v27 }
 0x58c   :  { %v4294_v2 = vmul.f32 1.442695, %v8085_v57  ;;  %v4298_v15 = vmul.f32 1.442695, %v8086_v35  ;;  %v4302_v54 = vmul.f32 1.442695, %v8087_v8 }
 0x58d   :  { %5958 = vpow2.f32 %v4284_v7  ;;  %v4306_v12 = vmul.f32 1.442695, %v8088_v16  ;;  %v4310_v62 = vmul.f32 1.442695, %v8089_v9  ;;  %v4323_v25 = vld [vmem:[#allocation4 + $0x38] sm:$0xff]  ;;  %v4325_v55 = vld [vmem:[#allocation4 + $0x48] sm:$0xff] }
 0x58e   :  { %5960 = vpow2.f32 %v4288_v11  ;;  %v4327_v4 = vld [vmem:[#allocation4 + $0x58] sm:$0xff]  ;;  %v4761_v9 = vld [vmem:[#allocation3 + $0x28] sm:$0xff]  ;;  %s4933_s19 = sshll.u32 %s6274_s8, 4  ;;  %s4934_s19 = int_to_ptr.vmem [resolvable:$true] %s4933_s19 }
 0x58f   :  { %5962 = vpow2.f32 %v4292_v43  ;;  %s6220_s20 = scalar_lea.vmem %s4934_s19, 2048  ;;  %p6225_p3 = scmp.lt.s32.totalorder %s4934_s19, %s4934_s19 }
 0x590   :  { %5964 = vpow2.f32 %v4294_v2  ;;  %p6221_p2 = scmp.ne.s32.totalorder %s4934_s19, %s6220_s20  ;;  %p6226_p4 = scmp.lt.s32.totalorder %s6220_s20, %s6220_s20 }
 0x591   :  { %5966 = vpow2.f32 %v4298_v15 }
 0x592   :  { %5968 = vpow2.f32 %v4302_v54  ;;  %p6227_p5 = por %p6226_p4, %p6225_p3 }
 0x593   :  { %5970 = vpow2.f32 %v4306_v12  ;;  %v8091_v12 = vsub.f32 %v7857_v13, %v7860_v61 }
 0x594   :  { %p6228_p6 = pnand %p6227_p5, %p6221_p2 }
 0x595   :  { %v4700_v47 = vpop.xlane.xlu0 %4699 }
 0x596   :  { %v4726_v21 = vadd.f32 %v4700_v47, %v4598_v45  ;;  %v4756_v47 = vld [vmem:[#allocation3] sm:$0xff] }
 0x597   :  { %v5959_v6 = vpop.eup %5958 }
 0x598   :  { %4742 = vst.msk [vmem:[#allocation5 + $0x28] sm:$0xff] %vm2140_vm1, %v4726_v21  ;;  %v4332_v50 = vmul.f32 %v5959_v6, %v4316_v28  ;;  %v5961_v18 = vpop.eup %5960  ;;  %v4329_v6 = vld [vmem:[#allocation4 + $0x68] sm:$0xff]  ;;  %v4836_v28 = vld [vmem:[#allocation5] sm:$0xff] }
 0x599   :  { %v4704_v24 = vpop.xlane.xlu0 %4703  ;;  %v4334_v5 = vmul.f32 %v5961_v18, %v4318_v31  ;;  %v5963_v40 = vpop.eup %5962 }
 0x59a   :  { %v4728_v59 = vadd.f32 %v4704_v24, %v4600_v20  ;;  %v4336_v30 = vmul.f32 %v5963_v40, %v4320_v3  ;;  %v5965_v34 = vpop.eup %5964  ;;  %v8090_v40 = vsub.f32 %v7709_v0, %v7719_v49  ;;  %v4838_v3 = vld [vmem:[#allocation5 + $0x10] sm:$0xff]  ;;  %v8092_v0 = vsub.f32 %v7732_v46, %v7740_v41 }
 0x59b   :  { %v4337_v60 = vmul.f32 %v5965_v34, %v4321_v36  ;;  %v5967_v29 = vpop.eup %5966 }
 0x59c   :  { %4744 = vst.msk [vmem:[#allocation5 + $0x38] sm:$0xff] %vm2140_vm1, %v4728_v59  ;;  %v4339_v26 = vmul.f32 %v5967_v29, %v4323_v25  ;;  %v5969_v1 = vpop.eup %5968  ;;  %v4868_v59 = vld [vmem:[#allocation12] sm:$0xff]  ;;  %v4290_v49 = vmul.f32 1.442695, %v8092_v0  ;;  %v4873_v29 = vld [vmem:[#allocation12 + $0x28] sm:$0xff] }
 0x59d   :  { %v4477_v53 = vpop.xlane.xlu0 %4476  ;;  %v4341_v23 = vmul.f32 %v5969_v1, %v4325_v55  ;;  %v5971_v52 = vpop.eup %5970  ;;  %v8100_v0 = vld [vmem:[#allocation33_spill] sm:$0xff] }
 0x59e   :  { %v4508_v58 = vadd.f32 %v4477_v53, %v4332_v50  ;;  %v4343_v21 = vmul.f32 %v5971_v52, %v4327_v4  ;;  %v4758_v53 = vld [vmem:[#allocation3 + $0x10] sm:$0xff] }
 0x5a0   :  { %4525 = vst.msk [vmem:[#allocation4] sm:$0xff] %vm2140_vm1, %v4508_v58 }
 0x5a1   :  { %v4481_v56 = vpop.xlane.xlu0 %4480 }
 0x5a2   :  { %v4510_v10 = vadd.f32 %v4481_v56, %v4334_v5  ;;  %v4286_v56 = vmul.f32 1.442695, %v8090_v40 }
 0x5a3   :  { %v4843_v52 = vld [vmem:[#allocation5 + $0x38] sm:$0xff] }
 0x5a4   :  { %4527 = vst.msk [vmem:[#allocation4 + $0x10] sm:$0xff] %vm2140_vm1, %v4510_v10  ;;  %v4870_v10 = vld [vmem:[#allocation12 + $0x10] sm:$0xff] }
 0x5a5   :  { %v4485_v42 = vpop.xlane.xlu0 %4484 }
 0x5a6   :  { %v4512_v33 = vadd.f32 %v4485_v42, %v4336_v30  ;;  %v4314_v30 = vmul.f32 1.442695, %v8091_v12  ;;  %v4322_v12 = vld [vmem:[#allocation4 + $0x30] sm:$0xff] }
 0x5a7   :  { %v4772_v17 = vld [vmem:[#allocation4] sm:$0xff] }
 0x5a8   :  { %5972 = vlog2.f32 %v4772_v17  ;;  %4529 = vst.msk [vmem:[#allocation4 + $0x20] sm:$0xff] %vm2140_vm1, %v4512_v33 }
 0x5a9   :  { %v4487_v51 = vpop.xlane.xlu0 %4486  ;;  %5974 = vpow2.f32 %v4310_v62  ;;  %v8093_v62 = vsub.f32 %v7767_v39, %v7772_v22  ;;  %v4599_v22 = vld [vmem:[#allocation5 + $0x30] sm:$0xff] }
 0x5aa   :  { %v4513_v32 = vadd.f32 %v4487_v51, %v4337_v60  ;;  %v4841_v60 = vld [vmem:[#allocation5 + $0x28] sm:$0xff]  ;;  %v4597_v51 = vld [vmem:[#allocation5 + $0x20] sm:$0xff] }
 0x5ab   :  { %v4774_v44 = vld [vmem:[#allocation4 + $0x10] sm:$0xff]  ;;  %v4296_v17 = vmul.f32 1.442695, %v8093_v62  ;;  %v4604_v62 = vld [vmem:[#allocation5 + $0x58] sm:$0xff] }
 0x5ac   :  { %5976 = vlog2.f32 %v4774_v44  ;;  %4530 = vst.msk [vmem:[#allocation4 + $0x28] sm:$0xff] %vm2140_vm1, %v4513_v32  ;;  %v4763_v44 = vld [vmem:[#allocation3 + $0x38] sm:$0xff] }
 0x5ad   :  { %v4491_v19 = vpop.xlane.xlu0 %4490 }
 0x5ae   :  { %v4515_v14 = vadd.f32 %v4491_v19, %v4339_v26  ;;  %v4875_v26 = vld [vmem:[#allocation12 + $0x38] sm:$0xff] }
 0x5af   :  { %v4776_v54 = vld [vmem:[#allocation4 + $0x20] sm:$0xff] }
 0x5b0   :  { %4532 = vst.msk [vmem:[#allocation4 + $0x38] sm:$0xff] %vm2140_vm1, %v4515_v14  ;;  %v8094_v14 = vsub.f32 %v7787_v48, %v7792_v63  ;;  %v8095_v48 = vsub.f32 %v7807_v37, %v7812_v38 }
 0x5b1   :  { %v4495_v7 = vpop.xlane.xlu0 %4494 }
 0x5b2   :  { %v5973_v11 = vpop.eup %5972  ;;  %v4517_v27 = vadd.f32 %v4495_v7, %v4341_v23  ;;  %v4300_v23 = vmul.f32 1.442695, %v8094_v14  ;;  %v4304_v63 = vmul.f32 1.442695, %v8095_v48 }
 0x5b3   :  { %v4789_v43 = vmul.f32 0.6931472, %v5973_v11  ;;  %v4777_v45 = vld [vmem:[#allocation4 + $0x28] sm:$0xff]  ;;  %v5975_v57 = vpop.eup %5974 }
 0x5b4   :  { %5978 = vlog2.f32 %v4777_v45  ;;  %4534 = vst.msk [vmem:[#allocation4 + $0x48] sm:$0xff] %vm2140_vm1, %v4517_v27  ;;  %v4345_v31 = vmul.f32 %v5975_v57, %v4329_v6  ;;  %v4317_v27 = vld [vmem:[#allocation4 + $0x8] sm:$0xff]  ;;  %v4331_v57 = vld [vmem:[#allocation4 + $0x78] sm:$0xff] }
 0x5b5   :  { %v4820_v2 = vadd.f32 %v4789_v43, %v4756_v47  ;;  %v4499_v20 = vpop.xlane.xlu0 %4498 }
 0x5b6   :  { %v5977_v24 = vpop.eup %5976  ;;  %v4519_v35 = vadd.f32 %v4499_v20, %v4343_v21 }
 0x5b7   :  { %v4852_v15 = vsub.f32 %v4820_v2, %v4836_v28  ;;  %v4793_v50 = vmul.f32 0.6931472, %v5977_v24  ;;  %v4779_v18 = vld [vmem:[#allocation4 + $0x38] sm:$0xff]  ;;  %v4760_v24 = vld [vmem:[#allocation3 + $0x20] sm:$0xff] }
 0x5b8   :  { %5980 = vlog2.f32 %v4779_v18  ;;  %4536 = vst.msk [vmem:[#allocation4 + $0x58] sm:$0xff] %vm2140_vm1, %v4519_v35  ;;  %v4319_v35 = vld [vmem:[#allocation4 + $0x18] sm:$0xff] }
 0x5b9   :  { %v4884_v58 = vmul.f32 %v4868_v59, %v4852_v15  ;;  %v4822_v8 = vadd.f32 %v4793_v50, %v4758_v53  ;;  %v4503_v5 = vpop.xlane.xlu0 %4502  ;;  %5982 = vlog2.f32 %v4776_v54  ;;  %v8096_v53 = vld [vmem:[#allocation30_spill] sm:$0xff] }
 0x5ba   :  { %v4521_v16 = vadd.f32 %v4503_v5, %v4345_v31  ;;  %5984 = vpow2.f32 %v4286_v56  ;;  %v8097_v31 = vld [vmem:[#allocation31_spill] sm:$0xff] }
 0x5bb   :  { %4900 = vst.msk [vmem:[#allocation21] sm:$0xff] %vm2140_vm1, %v4884_v58  ;;  %v4854_v34 = vsub.f32 %v4822_v8, %v4838_v3  ;;  %5986 = vpow2.f32 %v4314_v30  ;;  %v4781_v39 = vld [vmem:[#allocation4 + $0x48] sm:$0xff]  ;;  %v8098_v37 = vsub.f32 %v8096_v53, %v8097_v31  ;;  %v4872_v8 = vld [vmem:[#allocation12 + $0x20] sm:$0xff]  ;;  %v4879_v53 = vld [vmem:[#allocation12 + $0x58] sm:$0xff] }
 0x5bc   :  { %4538 = vst.msk [vmem:[#allocation4 + $0x68] sm:$0xff] %vm2140_vm1, %v4521_v16  ;;  %5988 = vpow2.f32 %v4290_v49  ;;  %v4602_v3 = vld [vmem:[#allocation5 + $0x48] sm:$0xff] }
 0x5bd   :  { %v4886_v42 = vmul.f32 %v4870_v10, %v4854_v34  ;;  %5990 = vpow2.f32 %v4296_v17  ;;  %v4308_v38 = vmul.f32 1.442695, %v8098_v37 }
 0x5be   :  { %v5979_v36 = vpop.eup %5978  ;;  %5992 = vlog2.f32 %v4781_v39 }
 0x5bf   :  { %4902 = vst.msk [vmem:[#allocation21 + $0x10] sm:$0xff] %vm2140_vm1, %v4886_v42  ;;  %v4799_v33 = vmul.f32 0.6931472, %v5979_v36  ;;  %5994 = vpow2.f32 %v4300_v23  ;;  %v4783_v2 = vld [vmem:[#allocation4 + $0x58] sm:$0xff]  ;;  %v8099_v36 = vld [vmem:[#allocation32_spill] sm:$0xff]  ;;  %v4326_v23 = vld [vmem:[#allocation4 + $0x50] sm:$0xff] }
 0x5c0   :  { %5996 = vlog2.f32 %v4783_v2  ;;  %v8101_v49 = vsub.f32 %v8099_v36, %v8100_v0 }
 0x5c1   :  { %v4825_v61 = vadd.f32 %v4799_v33, %v4761_v9  ;;  %5998 = vpow2.f32 %v4304_v63 }
 0x5c2   :  { %v5981_v13 = vpop.eup %5980  ;;  %v4312_v33 = vmul.f32 1.442695, %v8101_v49 }
 0x5c3   :  { %v4857_v25 = vsub.f32 %v4825_v61, %v4841_v60  ;;  %v4803_v32 = vmul.f32 0.6931472, %v5981_v13  ;;  %v5983_v55 = vpop.eup %5982  ;;  %v4785_v58 = vld [vmem:[#allocation4 + $0x68] sm:$0xff] }
 0x5c4   :  { %v4698_v46 = vpop.xlane.xlu1 %4697  ;;  %v5985_v4 = vpop.eup %5984  ;;  %v4797_v47 = vmul.f32 0.6931472, %v5983_v55  ;;  %6000 = vlog2.f32 %v4785_v58 }
 0x5c5   :  { %v4889_v41 = vmul.f32 %v4873_v29, %v4857_v25  ;;  %v4827_v1 = vadd.f32 %v4803_v32, %v4763_v44  ;;  %v4725_v19 = vadd.f32 %v4698_v46, %v4597_v51  ;;  %v5987_v43 = vpop.eup %5986  ;;  %v4333_v20 = vmul.f32 %v5985_v4, %v4317_v27  ;;  %v4324_v29 = vld [vmem:[#allocation4 + $0x40] sm:$0xff] }
 0x5c6   :  { %v5989_v6 = vpop.eup %5988  ;;  %v4347_v59 = vmul.f32 %v5987_v43, %v4331_v57  ;;  %v4824_v15 = vadd.f32 %v4797_v47, %v4760_v24  ;;  %6002 = vpow2.f32 %v4308_v38  ;;  %v4608_v57 = vld [vmem:[#allocation5 + $0x78] sm:$0xff] }
 0x5c7   :  { %4905 = vst.msk [vmem:[#allocation21 + $0x28] sm:$0xff] %vm2140_vm1, %v4889_v41  ;;  %v4859_v7 = vsub.f32 %v4827_v1, %v4843_v52  ;;  %4741 = vst.msk [vmem:[#allocation5 + $0x20] sm:$0xff] %vm2140_vm1, %v4725_v19  ;;  %v4335_v56 = vmul.f32 %v5989_v6, %v4319_v35  ;;  %v5991_v10 = vpop.eup %5990  ;;  %6004 = vpow2.f32 %v4312_v33  ;;  %v4606_v19 = vld [vmem:[#allocation5 + $0x68] sm:$0xff]  ;;  %v4767_v6 = vld [vmem:[#allocation3 + $0x58] sm:$0xff] }
 0x5c8   :  { %v4702_v11 = vpop.xlane.xlu1 %4701  ;;  %v5993_v61 = vpop.eup %5992  ;;  %v4338_v13 = vmul.f32 %v5991_v10, %v4322_v12  ;;  %v4765_v52 = vld [vmem:[#allocation3 + $0x48] sm:$0xff]  ;;  %v4771_v33 = vld [vmem:[#allocation3 + $0x78] sm:$0xff] }
 0x5c9   :  { %v4891_v45 = vmul.f32 %v4875_v26, %v4859_v7  ;;  %v4727_v21 = vadd.f32 %v4702_v11, %v4599_v22  ;;  %v5995_v17 = vpop.eup %5994  ;;  %v4807_v44 = vmul.f32 0.6931472, %v5993_v61 }
 0x5ca   :  { %v5997_v41 = vpop.eup %5996  ;;  %v4340_v1 = vmul.f32 %v5995_v17, %v4324_v29  ;;  %v4837_v17 = vld [vmem:[#allocation5 + $0x8] sm:$0xff] }
 0x5cb   :  { %4907 = vst.msk [vmem:[#allocation21 + $0x38] sm:$0xff] %vm2140_vm1, %v4891_v45  ;;  %4743 = vst.msk [vmem:[#allocation5 + $0x30] sm:$0xff] %vm2140_vm1, %v4727_v21  ;;  %v5999_v55 = vpop.eup %5998  ;;  %v4829_v4 = vadd.f32 %v4807_v44, %v4765_v52  ;;  %v4811_v11 = vmul.f32 0.6931472, %v5997_v41  ;;  %v4877_v45 = vld [vmem:[#allocation12 + $0x48] sm:$0xff]  ;;  %v4601_v41 = vld [vmem:[#allocation5 + $0x40] sm:$0xff] }
 0x5cc   :  { %v4479_v28 = vpop.xlane.xlu1 %4478  ;;  %v4342_v21 = vmul.f32 %v5999_v55, %v4326_v23 }
 0x5cd   :  { %v4509_v50 = vadd.f32 %v4479_v28, %v4333_v20  ;;  %v4507_v18 = vpop.xlane.xlu0 %4506  ;;  %v4328_v20 = vld [vmem:[#allocation4 + $0x60] sm:$0xff] }
 0x5ce   :  { %v4840_v54 = vld [vmem:[#allocation5 + $0x20] sm:$0xff]  ;;  %v4523_v5 = vadd.f32 %v4507_v18, %v4347_v59  ;;  %v6001_v43 = vpop.eup %6000 }
 0x5cf   :  { %v4856_v40 = vsub.f32 %v4824_v15, %v4840_v54  ;;  %4526 = vst.msk [vmem:[#allocation4 + $0x8] sm:$0xff] %vm2140_vm1, %v4509_v50  ;;  %v4831_v15 = vadd.f32 %v4811_v11, %v4767_v6  ;;  %v4815_v50 = vmul.f32 0.6931472, %v6001_v43  ;;  %v4330_v54 = vld [vmem:[#allocation4 + $0x70] sm:$0xff] }
 0x5d0   :  { %4540 = vst.msk [vmem:[#allocation4 + $0x78] sm:$0xff] %vm2140_vm1, %v4523_v5  ;;  %v4483_v16 = vpop.xlane.xlu1 %4482  ;;  %v6003_v48 = vpop.eup %6002  ;;  %v4874_v6 = vld [vmem:[#allocation12 + $0x30] sm:$0xff] }
 0x5d1   :  { %v4888_v30 = vmul.f32 %v4872_v8, %v4856_v40  ;;  %v4511_v34 = vadd.f32 %v4483_v16, %v4335_v56  ;;  %v4708_v42 = vpop.xlane.xlu0 %4707  ;;  %v4344_v37 = vmul.f32 %v6003_v48, %v4328_v20  ;;  %v6005_v38 = vpop.eup %6004  ;;  %v4769_v40 = vld [vmem:[#allocation3 + $0x68] sm:$0xff] }
 0x5d2   :  { %v4730_v9 = vadd.f32 %v4708_v42, %v4602_v3  ;;  %v4881_v42 = vld [vmem:[#allocation12 + $0x68] sm:$0xff]  ;;  %v4346_v49 = vmul.f32 %v6005_v38, %v4330_v54  ;;  %v4842_v20 = vld [vmem:[#allocation5 + $0x30] sm:$0xff] }
 0x5d3   :  { %4904 = vst.msk [vmem:[#allocation21 + $0x20] sm:$0xff] %vm2140_vm1, %v4888_v30  ;;  %4528 = vst.msk [vmem:[#allocation4 + $0x18] sm:$0xff] %vm2140_vm1, %v4511_v34  ;;  %v4833_v30 = vadd.f32 %v4815_v50, %v4769_v40  ;;  %v4757_v34 = vld [vmem:[#allocation3 + $0x8] sm:$0xff]  ;;  %v4764_v50 = vld [vmem:[#allocation3 + $0x40] sm:$0xff] }
 0x5d4   :  { %4746 = vst.msk [vmem:[#allocation5 + $0x48] sm:$0xff] %vm2140_vm1, %v4730_v9  ;;  %v4489_v60 = vpop.xlane.xlu1 %4488  ;;  %v4766_v40 = vld [vmem:[#allocation3 + $0x50] sm:$0xff] }
 0x5d5   :  { %v4514_v51 = vadd.f32 %v4489_v60, %v4338_v13  ;;  %v4712_v25 = vpop.xlane.xlu0 %4711  ;;  %v4869_v60 = vld [vmem:[#allocation12 + $0x8] sm:$0xff] }
 0x5d6   :  { %v4773_v32 = vld [vmem:[#allocation4 + $0x8] sm:$0xff]  ;;  %v4732_v46 = vadd.f32 %v4712_v25, %v4604_v62 }
 0x5d7   :  { %6006 = vlog2.f32 %v4773_v32  ;;  %v4787_v26 = vld [vmem:[#allocation4 + $0x78] sm:$0xff]  ;;  %4531 = vst.msk [vmem:[#allocation4 + $0x30] sm:$0xff] %vm2140_vm1, %v4514_v51 }
 0x5d8   :  { %6008 = vlog2.f32 %v4787_v26  ;;  %4748 = vst.msk [vmem:[#allocation5 + $0x58] sm:$0xff] %vm2140_vm1, %v4732_v46  ;;  %v4493_v14 = vpop.xlane.xlu1 %4492  ;;  %v4759_v26 = vld [vmem:[#allocation3 + $0x18] sm:$0xff] }
 0x5d9   :  { %v4516_v39 = vadd.f32 %v4493_v14, %v4340_v1  ;;  %v4716_v22 = vpop.xlane.xlu0 %4715  ;;  %v4883_v1 = vld [vmem:[#allocation12 + $0x78] sm:$0xff] }
 0x5da   :  { %v4775_v7 = vld [vmem:[#allocation4 + $0x18] sm:$0xff]  ;;  %v4734_v27 = vadd.f32 %v4716_v22, %v4606_v19 }
 0x5db   :  { %6010 = vlog2.f32 %v4775_v7  ;;  %v4845_v47 = vld [vmem:[#allocation5 + $0x48] sm:$0xff]  ;;  %4533 = vst.msk [vmem:[#allocation4 + $0x40] sm:$0xff] %vm2140_vm1, %v4516_v39  ;;  %v4839_v22 = vld [vmem:[#allocation5 + $0x18] sm:$0xff] }
 0x5dc   :  { %v4861_v63 = vsub.f32 %v4829_v4, %v4845_v47  ;;  %4750 = vst.msk [vmem:[#allocation5 + $0x68] sm:$0xff] %vm2140_vm1, %v4734_v27  ;;  %v4497_v2 = vpop.xlane.xlu1 %4496  ;;  %v4871_v7 = vld [vmem:[#allocation12 + $0x18] sm:$0xff]  ;;  %v4603_v47 = vld [vmem:[#allocation5 + $0x50] sm:$0xff] }
 0x5dd   :  { %v4518_v24 = vadd.f32 %v4497_v2, %v4342_v21  ;;  %v4720_v28 = vpop.xlane.xlu0 %4719  ;;  %v4762_v21 = vld [vmem:[#allocation3 + $0x30] sm:$0xff] }
 0x5de   :  { %v4893_v59 = vmul.f32 %v4877_v45, %v4861_v63  ;;  %v4778_v35 = vld [vmem:[#allocation4 + $0x30] sm:$0xff]  ;;  %v4736_v18 = vadd.f32 %v4720_v28, %v4608_v57 }
 0x5df   :  { %6012 = vlog2.f32 %v4778_v35  ;;  %v4847_v31 = vld [vmem:[#allocation5 + $0x58] sm:$0xff]  ;;  %4535 = vst.msk [vmem:[#allocation4 + $0x50] sm:$0xff] %vm2140_vm1, %v4518_v24 }
 0x5e0   :  { %4909 = vst.msk [vmem:[#allocation21 + $0x48] sm:$0xff] %vm2140_vm1, %v4893_v59  ;;  %v4863_v58 = vsub.f32 %v4831_v15, %v4847_v31  ;;  %4752 = vst.msk [vmem:[#allocation5 + $0x78] sm:$0xff] %vm2140_vm1, %v4736_v18  ;;  %v4501_v8 = vpop.xlane.xlu1 %4500  ;;  %v4605_v15 = vld [vmem:[#allocation5 + $0x60] sm:$0xff] }
 0x5e1   :  { %v6007_v5 = vpop.eup %6006  ;;  %v4520_v56 = vadd.f32 %v4501_v8, %v4344_v37 }
 0x5e2   :  { %v6009_v3 = vpop.eup %6008  ;;  %v4791_v10 = vmul.f32 0.6931472, %v6007_v5  ;;  %v4895_v16 = vmul.f32 %v4879_v53, %v4863_v58  ;;  %v4780_v12 = vld [vmem:[#allocation4 + $0x40] sm:$0xff]  ;;  %v4607_v5 = vld [vmem:[#allocation5 + $0x70] sm:$0xff] }
 0x5e3   :  { %6014 = vlog2.f32 %v4780_v12  ;;  %v4849_v36 = vld [vmem:[#allocation5 + $0x68] sm:$0xff]  ;;  %v4819_v0 = vmul.f32 0.6931472, %v6009_v3  ;;  %4537 = vst.msk [vmem:[#allocation4 + $0x60] sm:$0xff] %vm2140_vm1, %v4520_v56  ;;  %v4876_v58 = vld [vmem:[#allocation12 + $0x40] sm:$0xff] }
 0x5e4   :  { %v4821_v9 = vadd.f32 %v4791_v10, %v4757_v34  ;;  %4911 = vst.msk [vmem:[#allocation21 + $0x58] sm:$0xff] %vm2140_vm1, %v4895_v16  ;;  %v4865_v61 = vsub.f32 %v4833_v30, %v4849_v36  ;;  %v4505_v13 = vpop.xlane.xlu1 %4504  ;;  %v4878_v34 = vld [vmem:[#allocation12 + $0x50] sm:$0xff] }
 0x5e5   :  { %v6011_v62 = vpop.eup %6010  ;;  %v4835_v29 = vadd.f32 %v4819_v0, %v4771_v33  ;;  %v4522_v51 = vadd.f32 %v4505_v13, %v4346_v49  ;;  %v4768_v0 = vld [vmem:[#allocation3 + $0x60] sm:$0xff] }
 0x5e6   :  { %v4853_v25 = vsub.f32 %v4821_v9, %v4837_v17  ;;  %v4795_v32 = vmul.f32 0.6931472, %v6011_v62  ;;  %v4897_v44 = vmul.f32 %v4881_v42, %v4865_v61  ;;  %v4782_v46 = vld [vmem:[#allocation4 + $0x50] sm:$0xff]  ;;  %v4880_v13 = vld [vmem:[#allocation12 + $0x60] sm:$0xff] }
 0x5e7   :  { %6016 = vlog2.f32 %v4782_v46  ;;  %v4851_v19 = vld [vmem:[#allocation5 + $0x78] sm:$0xff]  ;;  %4539 = vst.msk [vmem:[#allocation4 + $0x70] sm:$0xff] %vm2140_vm1, %v4522_v51 }
 0x5e8   :  { %v4885_v55 = vmul.f32 %v4869_v60, %v4853_v25  ;;  %v4823_v14 = vadd.f32 %v4795_v32, %v4759_v26  ;;  %4913 = vst.msk [vmem:[#allocation21 + $0x68] sm:$0xff] %vm2140_vm1, %v4897_v44  ;;  %v4867_v23 = vsub.f32 %v4835_v29, %v4851_v19  ;;  %v4706_v52 = vpop.xlane.xlu1 %4705  ;;  %v4770_v60 = vld [vmem:[#allocation3 + $0x70] sm:$0xff] }
 0x5e9   :  { %v6013_v39 = vpop.eup %6012  ;;  %v4729_v4 = vadd.f32 %v4706_v52, %v4601_v41  ;;  %v4882_v32 = vld [vmem:[#allocation12 + $0x70] sm:$0xff] }
 0x5ea   :  { %4901 = vst.msk [vmem:[#allocation21 + $0x8] sm:$0xff] %vm2140_vm1, %v4885_v55  ;;  %v4855_v11 = vsub.f32 %v4823_v14, %v4839_v22  ;;  %v4801_v27 = vmul.f32 0.6931472, %v6013_v39  ;;  %v4899_v43 = vmul.f32 %v4883_v1, %v4867_v23  ;;  %v4784_v45 = vld [vmem:[#allocation4 + $0x60] sm:$0xff] }
 0x5eb   :  { %6018 = vlog2.f32 %v4784_v45  ;;  %4745 = vst.msk [vmem:[#allocation5 + $0x40] sm:$0xff] %vm2140_vm1, %v4729_v4 }
 0x5ec   :  { %v4887_v57 = vmul.f32 %v4871_v7, %v4855_v11  ;;  %v4826_v48 = vadd.f32 %v4801_v27, %v4762_v21  ;;  %4915 = vst.msk [vmem:[#allocation21 + $0x78] sm:$0xff] %vm2140_vm1, %v4899_v43  ;;  %v4710_v63 = vpop.xlane.xlu1 %4709 }
 0x5ed   :  { %v6015_v2 = vpop.eup %6014  ;;  %v4731_v24 = vadd.f32 %v4710_v63, %v4603_v47 }
 0x5ee   :  { %4903 = vst.msk [vmem:[#allocation21 + $0x18] sm:$0xff] %vm2140_vm1, %v4887_v57  ;;  %v4858_v28 = vsub.f32 %v4826_v48, %v4842_v20  ;;  %v4786_v59 = vld [vmem:[#allocation4 + $0x70] sm:$0xff]  ;;  %v4805_v35 = vmul.f32 0.6931472, %v6015_v2 }
 0x5ef   :  { %6020 = vlog2.f32 %v4786_v59  ;;  %4747 = vst.msk [vmem:[#allocation5 + $0x50] sm:$0xff] %vm2140_vm1, %v4731_v24 }
 0x5f0   :  { %v4890_v18 = vmul.f32 %v4874_v6, %v4858_v28  ;;  %v4828_v53 = vadd.f32 %v4805_v35, %v4764_v50  ;;  %v4714_v31 = vpop.xlane.xlu1 %4713 }
 0x5f1   :  { %v6017_v37 = vpop.eup %6016  ;;  %v4733_v38 = vadd.f32 %v4714_v31, %v4605_v15 }
 0x5f2   :  { %4906 = vst.msk [vmem:[#allocation21 + $0x30] sm:$0xff] %vm2140_vm1, %v4890_v18  ;;  %v4844_v8 = vld [vmem:[#allocation5 + $0x40] sm:$0xff]  ;;  %v4809_v54 = vmul.f32 0.6931472, %v6017_v37 }
 0x5f3   :  { %v4860_v56 = vsub.f32 %v4828_v53, %v4844_v8  ;;  %4749 = vst.msk [vmem:[#allocation5 + $0x60] sm:$0xff] %vm2140_vm1, %v4733_v38 }
 0x5f4   :  { %v4830_v3 = vadd.f32 %v4809_v54, %v4766_v40  ;;  %v4718_v10 = vpop.xlane.xlu1 %4717 }
 0x5f5   :  { %v6019_v16 = vpop.eup %6018  ;;  %v4892_v12 = vmul.f32 %v4876_v58, %v4860_v56  ;;  %v4735_v30 = vadd.f32 %v4718_v10, %v4607_v5 }
 0x5f6   :  { %v4846_v42 = vld [vmem:[#allocation5 + $0x50] sm:$0xff]  ;;  %v4813_v36 = vmul.f32 0.6931472, %v6019_v16 }
 0x5f7   :  { %4908 = vst.msk [vmem:[#allocation21 + $0x40] sm:$0xff] %vm2140_vm1, %v4892_v12  ;;  %v4862_v49 = vsub.f32 %v4830_v3, %v4846_v42  ;;  %4751 = vst.msk [vmem:[#allocation5 + $0x70] sm:$0xff] %vm2140_vm1, %v4735_v30 }
 0x5f8   :  { %v4832_v33 = vadd.f32 %v4813_v36, %v4768_v0 }
 0x5f9   :  { %v6021_v9 = vpop.eup %6020  ;;  %v4894_v61 = vmul.f32 %v4878_v34, %v4862_v49 }
 0x5fa   :  { %v4848_v62 = vld [vmem:[#allocation5 + $0x60] sm:$0xff]  ;;  %v4817_v17 = vmul.f32 0.6931472, %v6021_v9 }
 0x5fb   :  { %4910 = vst.msk [vmem:[#allocation21 + $0x50] sm:$0xff] %vm2140_vm1, %v4894_v61  ;;  %v4864_v29 = vsub.f32 %v4832_v33, %v4848_v62 }
 0x5fc   :  { %v4834_v51 = vadd.f32 %v4817_v17, %v4770_v60 }
 0x5fd   :  { %v4896_v25 = vmul.f32 %v4880_v13, %v4864_v29 }
 0x5fe   :  { %v4850_v44 = vld [vmem:[#allocation5 + $0x70] sm:$0xff] }
 0x5ff   :  { %4912 = vst.msk [vmem:[#allocation21 + $0x60] sm:$0xff] %vm2140_vm1, %v4896_v25  ;;  %v4866_v46 = vsub.f32 %v4834_v51, %v4850_v44 }
 0x601   :  { %v4898_v41 = vmul.f32 %v4882_v32, %v4866_v46 }
 0x603   :  { %4914 = vst.msk [vmem:[#allocation21 + $0x70] sm:$0xff] %vm2140_vm1, %v4898_v41 }
 0x604   :  { %6231 = shalt.err (!%p6228_p6)
}
 0x605   :  { %s6232_s17 = scalar_lea.hbm %s8073_s9, 2048 }
 0x606   :  { %p6233_p7 = scmp.ne.s32.totalorder %s8073_s9, %s6232_s17  ;;  %p6236_p8 = scmp.lt.u32.totalorder %s6232_s17, %s8073_s9 }
 0x608   :  { %p6238_p9 = pnand %p6236_p8, %p6233_p7 }
 0x60a   :  { %6241 = shalt.err (!%p6238_p9)
}
 0x60b   :  { %4939 = dma.vmem_to_hbm [thread:$0]  %s4934_s19, 2048, %s8073_s9, [#allocation22], %s6261_s10, %s6261_s10, %s6262_s14  }
 0x60c   :  { %6252 = dma.done.wait [#allocation8], 1024  }
 0x60d   :  { %6253 = vsyncadd [#allocation8], 4294966272 }
 0x60e   :  { %6254 = dma.done.wait [#allocation22], 2048  }
 0x60f   :  { %6255 = vsyncadd [#allocation22], 4294965248 }
 0x610   :  { %4946 = vsyncpa [#allocation7], 1 }
 0x611   :  { %4947 = vsyncpa [#allocation10], 1 }
 0x612   :  { %4948 = vsyncpa [#allocation13], 1 }
 0x613   :  { %4949 = vsyncpa [#allocation16], 1 }
 0x614   :  { %4950 = vsyncpa [#allocation19], 1 }
 0x615   :  { %4951 = vsyncpa [#allocation8], 1 }
 0x616   :  { %4952 = vsyncpa [#allocation22], 1 }

// kernel: tpu_custom_call.1
= control target key start
LH: loop header
LB: loop body
LE: loop exit
PB: predicated region body
PF: predicated region fallthrough
CT: control target
= control target key end

     0   :  { %15 = vsyncpa [#allocation7], 0  ;;  %s8064_s0 = inlined_call_operand.hbm [shape: bf16[128,32], index: 0, kind: input, shape index: {}]   ;;  %s8065_s1 = inlined_call_operand.hbm [shape: bf16[128,1], index: 1, kind: input, shape index: {}]   ;;  %s8066_s2 = inlined_call_operand.hbm [shape: s32[128,1], index: 2, kind: input, shape index: {}]   ;;  %s8067_s3 = inlined_call_operand.hbm [shape: f32[128,1], index: 3, kind: input, shape index: {}]   ;;  %s8068_s4 = inlined_call_operand.hbm [shape: bf16[32,2048], index: 4, kind: input, shape index: {}]   ;;  %s8069_s5 = inlined_call_operand.hbm [shape: f32[1,2048], index: 5, kind: input, shape index: {}]   ;;  %s8070_s6 = inlined_call_operand.hbm [shape: bf16[2048,128], index: 6, kind: input, shape index: {}]   ;;  %s8071_s7 = inlined_call_operand.hbm [shape: f32[1,128], index: 7, kind: input, shape index: {}]   ;;  %s8072_s8 = inlined_call_operand.hbm [shape: bf16[128,128], index: 8, kind: output, shape index: {0}]   ;;  %s8073_s9 = inlined_call_operand.hbm [shape: f32[128,1], index: 9, kind: output, shape index: {1}]  }
   0x1   :  { %16 = vsyncpa [#allocation10], 0 }
   0x2   :  { %17 = vsyncpa [#allocation13], 0 }
   0x3   :  { %18 = vsyncpa [#allocation16], 0 }
   0x4   :  { %19 = vsyncpa [#allocation19], 0 }
   0x5   :  { %20 = vsyncpa [#allocation8], 0 }
   0x6   :  { %21 = vsyncpa [#allocation22], 0  ;;  %s6256_s30 = smov [#allocation9]   ;;  %s6022_s13 = scalar_lea.hbm %s8065_s1, 1024 }
   0x7   :  { %s39_s10 = sshll.u32 %s6256_s30, 4  ;;  %p6023_p0 = scmp.ne.s32.totalorder %s8065_s1, %s6022_s13  ;;  %s40_s10 = int_to_ptr.vmem [resolvable:$true] %s39_s10 }
   0x8   :  { %p6026_p1 = scmp.lt.u32.totalorder %s6022_s13, %s8065_s1 }
   0xa   :  { %p6028_p2 = pnand %p6026_p1, %p6023_p0 }
   0xc   :  { %6031 = shalt.err (!%p6028_p2)
}
   0xd   :  { %s6032_s18 = scalar_lea.vmem %s40_s10, 1024  ;;  %p6037_p4 = scmp.lt.s32.totalorder %s40_s10, %s40_s10 }
   0xe   :  { %p6033_p3 = scmp.ne.s32.totalorder %s40_s10, %s6032_s18  ;;  %p6038_p5 = scmp.lt.s32.totalorder %s6032_s18, %s6032_s18 }
  0x10   :  { %p6039_p6 = por %p6038_p5, %p6037_p4 }
  0x12   :  { %p6040_p7 = pnand %p6039_p6, %p6033_p3 }
  0x14   :  { %6043 = shalt.err (!%p6040_p7)
}
  0x15   :  { %s6257_s19 = smov 64   ;;  %s6258_s20 = smov 4  }
  0x16   :  { %45 = dma.hbm_to_vmem [thread:$0]  %s8065_s1, 1024, %s40_s10, [#allocation10], %s6257_s19, %s6257_s19, %s6258_s20  }
  0x17   :  { %s6259_s23 = smov [#allocation12]   ;;  %s6260_s25 = smov [#allocation15]  }
  0x18   :  { %s63_s24 = sshll.u32 %s6259_s23, 4  ;;  %s88_s26 = sshll.u32 %s6260_s25, 4  ;;  %s64_s24 = int_to_ptr.vmem [resolvable:$true] %s63_s24  ;;  %s89_s26 = int_to_ptr.vmem [resolvable:$true] %s88_s26 }
  0x19   :  { %s6044_s29 = scalar_lea.hbm %s8067_s3, 2048 }
  0x1a   :  { %p6045_p8 = scmp.ne.s32.totalorder %s8067_s3, %s6044_s29  ;;  %p6048_p9 = scmp.lt.u32.totalorder %s6044_s29, %s8067_s3 }
  0x1c   :  { %p6050_p10 = pnand %p6048_p9, %p6045_p8 }
  0x1e   :  { %6053 = shalt.err (!%p6050_p10)
}
  0x1f   :  { %s6054_s1 = scalar_lea.vmem %s64_s24, 2048  ;;  %p6059_p12 = scmp.lt.s32.totalorder %s64_s24, %s64_s24 }
  0x20   :  { %p6055_p11 = scmp.ne.s32.totalorder %s64_s24, %s6054_s1  ;;  %p6060_p13 = scmp.lt.s32.totalorder %s6054_s1, %s6054_s1 }
  0x22   :  { %p6061_p0 = por %p6060_p13, %p6059_p12 }
  0x24   :  { %p6062_p1 = pnand %p6061_p0, %p6055_p11 }
  0x26   :  { %6065 = shalt.err (!%p6062_p1)
}
  0x27   :  { %s6261_s10 = smov 128   ;;  %s6262_s14 = smov 8  }
  0x28   :  { %69 = dma.hbm_to_vmem [thread:$0]  %s8067_s3, 2048, %s64_s24, [#allocation13], %s6261_s10, %s6261_s10, %s6262_s14  }
  0x29   :  { %s6066_s21 = scalar_lea.hbm %s8069_s5, 256 }
  0x2a   :  { %p6067_p2 = scmp.ne.s32.totalorder %s8069_s5, %s6066_s21  ;;  %p6070_p3 = scmp.lt.u32.totalorder %s6066_s21, %s8069_s5 }
  0x2c   :  { %p6072_p4 = pnand %p6070_p3, %p6067_p2 }
  0x2e   :  { %6075 = shalt.err (!%p6072_p4)
}
  0x2f   :  { %s6076_s28 = scalar_lea.vmem %s89_s26, 256  ;;  %p6081_p6 = scmp.lt.s32.totalorder %s89_s26, %s89_s26 }
  0x30   :  { %p6077_p5 = scmp.ne.s32.totalorder %s89_s26, %s6076_s28  ;;  %p6082_p7 = scmp.lt.s32.totalorder %s6076_s28, %s6076_s28 }
  0x32   :  { %p6083_p8 = por %p6082_p7, %p6081_p6 }
  0x34   :  { %p6084_p9 = pnand %p6083_p8, %p6077_p5 }
  0x36   :  { %6087 = shalt.err (!%p6084_p9)
}
  0x37   :  { %91 = dma.hbm_to_vmem [thread:$0]  %s8069_s5, 256, %s89_s26, [#allocation16]  }
  0x38   :  { %s6263_s29 = smov [#allocation6]   ;;  %s6264_s11 = smov [#allocation11]  }
  0x39   :  { %s27_s30 = sshll.u32 %s6263_s29, 4  ;;  %s51_s12 = sshll.u32 %s6264_s11, 4  ;;  %s28_s30 = int_to_ptr.vmem [resolvable:$true] %s27_s30  ;;  %s52_s12 = int_to_ptr.vmem [resolvable:$true] %s51_s12 }
  0x3a   :  { %s6088_s15 = scalar_lea.hbm %s8064_s0, 1024 }
  0x3b   :  { %p6089_p10 = scmp.ne.s32.totalorder %s8064_s0, %s6088_s15  ;;  %p6092_p11 = scmp.lt.u32.totalorder %s6088_s15, %s8064_s0 }
  0x3d   :  { %p6094_p12 = pnand %p6092_p11, %p6089_p10 }
  0x3f   :  { %6097 = shalt.err (!%p6094_p12)
}
  0x40   :  { %s6098_s5 = scalar_lea.vmem %s28_s30, 1024  ;;  %p6103_p0 = scmp.lt.s32.totalorder %s28_s30, %s28_s30 }
  0x41   :  { %p6099_p13 = scmp.ne.s32.totalorder %s28_s30, %s6098_s5  ;;  %p6104_p1 = scmp.lt.s32.totalorder %s6098_s5, %s6098_s5 }
  0x43   :  { %p6105_p2 = por %p6104_p1, %p6103_p0 }
  0x45   :  { %p6106_p3 = pnand %p6105_p2, %p6099_p13 }
  0x47   :  { %6109 = shalt.err (!%p6106_p3)
}
  0x48   :  { %33 = dma.hbm_to_vmem [thread:$0]  %s8064_s0, 1024, %s28_s30, [#allocation7], %s6257_s19, %s6257_s19, %s6258_s20  }
  0x49   :  { %s6110_s27 = scalar_lea.hbm %s8066_s2, 2048 }
  0x4a   :  { %p6111_p4 = scmp.ne.s32.totalorder %s8066_s2, %s6110_s27  ;;  %p6114_p5 = scmp.lt.u32.totalorder %s6110_s27, %s8066_s2 }
  0x4c   :  { %p6116_p6 = pnand %p6114_p5, %p6111_p4 }
  0x4e   :  { %6119 = shalt.err (!%p6116_p6)
}
  0x4f   :  { %s6120_s11 = scalar_lea.vmem %s52_s12, 2048  ;;  %p6125_p8 = scmp.lt.s32.totalorder %s52_s12, %s52_s12 }
  0x50   :  { %p6121_p7 = scmp.ne.s32.totalorder %s52_s12, %s6120_s11  ;;  %p6126_p9 = scmp.lt.s32.totalorder %s6120_s11, %s6120_s11 }
  0x52   :  { %p6127_p10 = por %p6126_p9, %p6125_p8 }
  0x54   :  { %p6128_p11 = pnand %p6127_p10, %p6121_p7 }
  0x56   :  { %6131 = shalt.err (!%p6128_p11)
}
  0x57   :  { %57 = dma.hbm_to_vmem [thread:$0]  %s8066_s2, 2048, %s52_s12, [#allocation10], %s6261_s10, %s6261_s10, %s6262_s14  }
  0x58   :  { %s6265_s13 = smov [#allocation14]   ;;  %s6132_s17 = scalar_lea.hbm %s8068_s4, 4096 }
  0x59   :  { %s75_s1 = sshll.u32 %s6265_s13, 4  ;;  %p6133_p12 = scmp.ne.s32.totalorder %s8068_s4, %s6132_s17  ;;  %s76_s1 = int_to_ptr.vmem [resolvable:$true] %s75_s1 }
  0x5a   :  { %p6136_p13 = scmp.lt.u32.totalorder %s6132_s17, %s8068_s4 }
  0x5c   :  { %p6138_p0 = pnand %p6136_p13, %p6133_p12 }
  0x5e   :  { %6141 = shalt.err (!%p6138_p0)
}
  0x5f   :  { %s6142_s22 = scalar_lea.vmem %s76_s1, 4096  ;;  %p6147_p2 = scmp.lt.s32.totalorder %s76_s1, %s76_s1 }
  0x60   :  { %p6143_p1 = scmp.ne.s32.totalorder %s76_s1, %s6142_s22  ;;  %p6148_p3 = scmp.lt.s32.totalorder %s6142_s22, %s6142_s22 }
  0x62   :  { %p6149_p4 = por %p6148_p3, %p6147_p2 }
  0x64   :  { %p6150_p5 = pnand %p6149_p4, %p6143_p1 }
  0x66   :  { %6153 = shalt.err (!%p6150_p5)
}
  0x67   :  { %s6266_s2 = smov 1024   ;;  %s6267_s25 = smov [#allocation17]  }
  0x68   :  { %81 = dma.hbm_to_vmem [thread:$0]  %s8068_s4, 4096, %s76_s1, [#allocation13], %s6266_s2, %s6266_s2, %s6257_s19  }
  0x69   :  { %s97_s27 = sshll.u32 %s6267_s25, 4  ;;  %s6268_s28 = smov [#allocation18]   ;;  %s98_s27 = int_to_ptr.vmem [resolvable:$true] %s97_s27 }
  0x6a   :  { %s110_s3 = sshll.u32 %s6268_s28, 4  ;;  %s6154_s11 = scalar_lea.hbm %s8070_s6, 16384  ;;  %s111_s3 = int_to_ptr.vmem [resolvable:$true] %s110_s3 }
  0x6b   :  { %p6155_p6 = scmp.ne.s32.totalorder %s8070_s6, %s6154_s11  ;;  %p6158_p7 = scmp.lt.u32.totalorder %s6154_s11, %s8070_s6 }
  0x6d   :  { %p6160_p8 = pnand %p6158_p7, %p6155_p6 }
  0x6f   :  { %6163 = shalt.err (!%p6160_p8)
}
  0x70   :  { %s6164_s4 = scalar_lea.vmem %s98_s27, 16384  ;;  %p6169_p10 = scmp.lt.s32.totalorder %s98_s27, %s98_s27 }
  0x71   :  { %p6165_p9 = scmp.ne.s32.totalorder %s98_s27, %s6164_s4  ;;  %p6170_p11 = scmp.lt.s32.totalorder %s6164_s4, %s6164_s4 }
  0x73   :  { %p6171_p12 = por %p6170_p11, %p6169_p10 }
  0x75   :  { %p6172_p13 = pnand %p6171_p12, %p6165_p9 }
  0x77   :  { %6175 = shalt.err (!%p6172_p13)
}
  0x78   :  { %103 = dma.hbm_to_vmem [thread:$0]  %s8070_s6, 16384, %s98_s27, [#allocation16], %s6257_s19, %s6257_s19, %s6258_s20  }
  0x79   :  { %s6176_s21 = scalar_lea.hbm %s8071_s7, 16 }
  0x7a   :  { %p6177_p0 = scmp.ne.s32.totalorder %s8071_s7, %s6176_s21  ;;  %p6180_p1 = scmp.lt.u32.totalorder %s6176_s21, %s8071_s7 }
  0x7c   :  { %p6182_p2 = pnand %p6180_p1, %p6177_p0 }
  0x7e   :  { %6185 = shalt.err (!%p6182_p2)
}
  0x7f   :  { %s6186_s12 = scalar_lea.vmem %s111_s3, 16  ;;  %s6190_s23 = scalar_lea.vmem %s111_s3, 32 }
  0x80   :  { %p6187_p3 = scmp.ne.s32.totalorder %s111_s3, %s6186_s12  ;;  %p6191_p4 = scmp.lt.s32.totalorder %s111_s3, %s111_s3 }
  0x81   :  { %p6192_p5 = scmp.lt.s32.totalorder %s6190_s23, %s6186_s12 }
  0x83   :  { %p6193_p6 = por %p6192_p5, %p6191_p4 }
  0x85   :  { %p6194_p7 = pnand %p6193_p6, %p6187_p3 }
  0x87   :  { %6197 = shalt.err (!%p6194_p7)
}
  0x88   :  { %113 = dma.hbm_to_vmem [thread:$0]  %s8071_s7, 16, %s111_s3, [#allocation19]  }
  0x89   :  { %6242 = dma.done.wait [#allocation7], 1024  }
  0x8a   :  { %6243 = vsyncadd [#allocation7], 4294966272 }
  0x8b   :  { %6244 = dma.done.wait [#allocation10], 3072  }
  0x8c   :  { %6245 = vsyncadd [#allocation10], 4294964224 }
  0x8d   :  { %6246 = dma.done.wait [#allocation13], 6144  }
  0x8e   :  { %6247 = vsyncadd [#allocation13], 4294961152 }
  0x8f   :  { %6248 = dma.done.wait [#allocation16], 16640  }
  0x90   :  { %6249 = vsyncadd [#allocation16], 4294950656 }
  0x91   :  { %6250 = dma.done.wait [#allocation19], 16  }
  0x92   :  { %6251 = vsyncadd [#allocation19], 4294967280  ;;  %v6269_v0 = vmov 0   ;;  %v161_v1 = vld [vmem:[#allocation9 + $0x8] sm:$0xf]  ;;  %v383_v7 = vld [vmem:[#allocation14] sm:$0xff]  ;;  %v183_v45 = vlaneseq }
  0x93   :  { %5797 = vset.pattern.permute.xlu1 %v6269_v0  ;;  %5796 = vset.pattern.permute.xlu0 %v6269_v0  ;;  %v159_v2 = vld [vmem:[#allocation9] sm:$0xf]  ;;  %v162_v3 = vld [vmem:[#allocation9 + $0xc] sm:$0xf]  ;;  %v160_v4 = vld [vmem:[#allocation9 + $0x4] sm:$0xf] }
  0x94   :  { %756 = vmatprep.mubr.bf16.mxu0 %v6269_v0  ;;  %869 = vmatprep.mubr.bf16.mxu1 %v6269_v0  ;;  %v164_v5 = vld [vmem:[#allocation9 + $0x14] sm:$0xf]  ;;  %v163_v6 = vld [vmem:[#allocation9 + $0x10] sm:$0xf]  ;;  %v391_v8 = vld [vmem:[#allocation14 + $0x40] sm:$0xff]  ;;  %v6454_v47 = vshrl.u32 %v183_v45, 7 }
  0x95   :  { %201 = vperm.xlu1 %5797, %v161_v1   ;;  %177 = vperm.xlu0 %5796, %v159_v2   ;;  %v384_v9 = vld [vmem:[#allocation14 + $0x8] sm:$0xff]  ;;  %v4962_v11 = vcombine.high %v383_v7, %v391_v8  ;;  %v4961_v12 = vcombine.low %v383_v7, %v391_v8  ;;  %v399_v15 = vld [vmem:[#allocation14 + $0x80] sm:$0xff]  ;;  %v166_v19 = vld [vmem:[#allocation9 + $0x1c] sm:$0xf]  ;;  %v6270_v43 = vmov 839922192  }
  0x96   :  { %v392_v10 = vld [vmem:[#allocation14 + $0x48] sm:$0xff]  ;;  %v407_v16 = vld [vmem:[#allocation14 + $0xc0] sm:$0xff]  ;;  %v165_v20 = vld [vmem:[#allocation9 + $0x18] sm:$0xf]  ;;  %v181_v44 = vunpack.c.l.s4 %v6270_v43  ;;  %vm699_vm0 = vcmask 261120   ;;  %vm2140_vm1 = vcmask 7168  }
  0x97   :  { %v4964_v13 = vcombine.high %v384_v9, %v392_v10  ;;  %v4963_v14 = vcombine.low %v384_v9, %v392_v10  ;;  %v400_v17 = vld [vmem:[#allocation14 + $0x88] sm:$0xff]  ;;  %724 = vmatprep.subr.bf16.mxu0 %v4962_v11  ;;  %v4978_v21 = vcombine.high %v399_v15, %v407_v16  ;;  %v4977_v23 = vcombine.low %v399_v15, %v407_v16  ;;  %v6441_v25 = vld [vmem:[#allocation14 + $0x10] sm:$0xff]  ;;  %v6445_v27 = vld [vmem:[#allocation14 + $0x18] sm:$0xff]  ;;  %s6273_s7 = smov [#allocation20]  }
  0x98   :  { %v408_v18 = vld [vmem:[#allocation14 + $0xc8] sm:$0xff]  ;;  %725 = vmatpush1.bf16.msra.mxu0 %v4961_v12  ;;  %v6443_v26 = vld [vmem:[#allocation14 + $0x50] sm:$0xff]  ;;  %v168_v28 = vld [vmem:[#allocation9 + $0x24] sm:$0xf]  ;;  %v182_v46 = vunpack.c.0.s8 %v181_v44  ;;  %s4921_s27 = sshll.u32 %s6273_s7, 4  ;;  %s4922_s27 = int_to_ptr.vmem [resolvable:$true] %s4921_s27 }
  0x99   :  { %213 = vperm.xlu1 %5797, %v162_v3   ;;  %189 = vperm.xlu0 %5796, %v160_v4   ;;  %v4980_v22 = vcombine.high %v400_v17, %v408_v18  ;;  %v4979_v24 = vcombine.low %v400_v17, %v408_v18  ;;  %v167_v29 = vld [vmem:[#allocation9 + $0x20] sm:$0xf]  ;;  %v4965_v30 = vcombine.low %v6441_v25, %v6443_v26  ;;  %v394_v32 = vld [vmem:[#allocation14 + $0x58] sm:$0xff]  ;;  %v170_v35 = vld [vmem:[#allocation9 + $0x2c] sm:$0xf]  ;;  %s6198_s28 = scalar_lea.vmem %s4922_s27, 1024  ;;  %p6203_p9 = scmp.lt.s32.totalorder %s4922_s27, %s4922_s27 }
  0x9a   :  { %837 = vmatprep.subr.bf16.mxu1 %v4964_v13  ;;  %726 = vmatprep.subr.bf16.mxu0 %v4978_v21  ;;  %v4966_v31 = vcombine.high %v6441_v25, %v6443_v26  ;;  %v4967_v33 = vcombine.low %v6445_v27, %v394_v32  ;;  %v4968_v34 = vcombine.high %v6445_v27, %v394_v32  ;;  %v169_v36 = vld [vmem:[#allocation9 + $0x28] sm:$0xf]  ;;  %v172_v37 = vld [vmem:[#allocation9 + $0x34] sm:$0xf]  ;;  %v171_v38 = vld [vmem:[#allocation9 + $0x30] sm:$0xf]  ;;  %p6199_p8 = scmp.ne.s32.totalorder %s4922_s27, %s6198_s28  ;;  %p6204_p10 = scmp.lt.s32.totalorder %s6198_s28, %s6198_s28 }
  0x9b   :  { %838 = vmatpush1.bf16.msra.mxu1 %v4963_v14  ;;  %v174_v39 = vld [vmem:[#allocation9 + $0x3c] sm:$0xf]  ;;  %v173_v40 = vld [vmem:[#allocation9 + $0x38] sm:$0xf]  ;;  %v4560_v41 = vld [vmem:[#allocation11 + $0x8] sm:$0xff]  ;;  %v6457_v48 = vsub.s32 %v182_v46, %v6454_v47 }
  0x9c   :  { %839 = vmatprep.subr.bf16.mxu1 %v4980_v22  ;;  %727 = vmatpush1.bf16.msra.mxu0 %v4977_v23  ;;  %v4559_v42 = vld [vmem:[#allocation11] sm:$0xff]  ;;  %v401_v56 = vld [vmem:[#allocation14 + $0x90] sm:$0xff]  ;;  %v402_v60 = vld [vmem:[#allocation14 + $0x98] sm:$0xff]  ;;  %p6205_p11 = por %p6204_p10, %p6203_p9 }
  0x9d   :  { %237 = vperm.xlu1 %5797, %v164_v5   ;;  %225 = vperm.xlu0 %5796, %v163_v6   ;;  %v143_v52 = vld [vmem:[#allocation6] sm:$0xf]  ;;  %v144_v54 = vld [vmem:[#allocation6 + $0x4] sm:$0xf]  ;;  %v409_v59 = vld [vmem:[#allocation14 + $0xd0] sm:$0xff] }
  0x9e   :  { %950 = vmatprep.subr.bf16.mxu0 %v4966_v31  ;;  %v410_v61 = vld [vmem:[#allocation14 + $0xd8] sm:$0xff]  ;;  %v145_v63 = vld [vmem:[#allocation6 + $0x8] sm:$0xf]  ;;  %v6465_v4 = vld [vmem:[#allocation14 + $0x20] sm:$0xff]  ;;  %v4982_v7 = vcombine.high %v401_v56, %v409_v59  ;;  %v4981_v11 = vcombine.low %v401_v56, %v409_v59  ;;  %p6206_p12 = pnand %p6205_p11, %p6199_p8 }
  0x9f   :  { %840 = vmatpush1.bf16.msra.mxu1 %v4979_v24  ;;  %v6467_v5 = vld [vmem:[#allocation14 + $0x60] sm:$0xff]  ;;  %v146_v6 = vld [vmem:[#allocation6 + $0xc] sm:$0xf]  ;;  %v4984_v8 = vcombine.high %v402_v60, %v410_v61  ;;  %v4983_v12 = vcombine.low %v402_v60, %v410_v61  ;;  %v148_v22 = vld [vmem:[#allocation6 + $0x14] sm:$0xf] }
  0xa0   :  { %1063 = vmatprep.subr.bf16.mxu1 %v4968_v34  ;;  %v6469_v9 = vld [vmem:[#allocation14 + $0x28] sm:$0xff]  ;;  %v4970_v13 = vcombine.high %v6465_v4, %v6467_v5  ;;  %v147_v23 = vld [vmem:[#allocation6 + $0x10] sm:$0xf]  ;;  %v150_v31 = vld [vmem:[#allocation6 + $0x1c] sm:$0xf] }
  0xa1   :  { %261 = vperm.xlu1 %5797, %v166_v19   ;;  %249 = vperm.xlu0 %5796, %v165_v20   ;;  %v6471_v10 = vld [vmem:[#allocation14 + $0x68] sm:$0xff]  ;;  %v149_v32 = vld [vmem:[#allocation6 + $0x18] sm:$0xf]  ;;  %v156_v61 = vld [vmem:[#allocation6 + $0x34] sm:$0xf] }
  0xa2   :  { %v4972_v16 = vcombine.high %v6469_v9, %v6471_v10 }
  0xa5   :  { %285 = vperm.xlu1 %5797, %v168_v28   ;;  %273 = vperm.xlu0 %5796, %v167_v29  }
  0xa9   :  { %309 = vperm.xlu1 %5797, %v170_v35   ;;  %297 = vperm.xlu0 %5796, %v169_v36  }
  0xad   :  { %333 = vperm.xlu1 %5797, %v172_v37   ;;  %321 = vperm.xlu0 %5796, %v171_v38  }
  0xb1   :  { %357 = vperm.xlu1 %5797, %v174_v39   ;;  %345 = vperm.xlu0 %5796, %v173_v40   ;;  %v152_v40 = vld [vmem:[#allocation6 + $0x24] sm:$0xf] }
  0xb5   :  { %4613 = vperm.xlu1 %5797, %v4560_v41   ;;  %4610 = vperm.xlu0 %5796, %v4559_v42   ;;  %v151_v41 = vld [vmem:[#allocation6 + $0x20] sm:$0xf] }
 0x114   :  { %v178_v49 = vpop.permute.xlu0 %177  ;;  %v202_v50 = vpop.permute.xlu1 %201 }
 0x115   :  { %v186_v51 = vrot.slane %v178_v49, %v6457_v48  ;;  %v210_v1 = vrot.slane %v202_v50, %v6457_v48 }
 0x117   :  { %v367_v57 = vmul.bf16 %v186_v51, %v143_v52  ;;  %v369_v14 = vmul.bf16 %v210_v1, %v145_v63  ;;  %v154_v52 = vld [vmem:[#allocation6 + $0x2c] sm:$0xf] }
 0x118   :  { %v190_v53 = vpop.permute.xlu0 %189  ;;  %v214_v62 = vpop.permute.xlu1 %213 }
 0x119   :  { %v198_v55 = vrot.slane %v190_v53, %v6457_v48  ;;  %v222_v2 = vrot.slane %v214_v62, %v6457_v48  ;;  %v153_v53 = vld [vmem:[#allocation6 + $0x28] sm:$0xf]  ;;  %v155_v62 = vld [vmem:[#allocation6 + $0x30] sm:$0xf] }
 0x11b   :  { %v368_v58 = vmul.bf16 %v198_v55, %v144_v54  ;;  %v370_v15 = vmul.bf16 %v222_v2, %v146_v6 }
 0x11c   :  { %v238_v17 = vpop.permute.xlu1 %237  ;;  %v226_v18 = vpop.permute.xlu0 %225 }
 0x11d   :  { %v6463_v3 = vcombine.low %v367_v57, %v368_v58  ;;  %v6483_v19 = vcombine.low %v369_v14, %v370_v15  ;;  %v246_v20 = vrot.slane %v238_v17, %v6457_v48  ;;  %v234_v21 = vrot.slane %v226_v18, %v6457_v48  ;;  %v411_v17 = vld [vmem:[#allocation14 + $0xe0] sm:$0xff]  ;;  %v404_v18 = vld [vmem:[#allocation14 + $0xa8] sm:$0xff] }
 0x11f   :  { %4993 = vmatmul.mubr.msk.bf16.vlgmr.msra.gmra.mrb[0].mxu0 %vm699_vm0, %v6463_v3  ;;  %5001 = vmatmul.mubr.msk.bf16.vlgmr.msra.gmra.mrb[0].mxu1 %vm699_vm0, %v6463_v3  ;;  %v372_v24 = vmul.bf16 %v246_v20, %v148_v22  ;;  %v371_v25 = vmul.bf16 %v234_v21, %v147_v23  ;;  %v412_v20 = vld [vmem:[#allocation14 + $0xe8] sm:$0xff]  ;;  %v4969_v21 = vcombine.low %v6465_v4, %v6467_v5  ;;  %v389_v23 = vld [vmem:[#allocation14 + $0x30] sm:$0xff] }
 0x120   :  { %951 = vmatpush1.bf16.msra.mxu0 %v4965_v30  ;;  %1064 = vmatpush1.bf16.msra.mxu1 %v4967_v33  ;;  %v262_v26 = vpop.permute.xlu1 %261  ;;  %v250_v27 = vpop.permute.xlu0 %249  ;;  %v4971_v22 = vcombine.low %v6469_v9, %v6471_v10  ;;  %v405_v9 = vld [vmem:[#allocation14 + $0xb0] sm:$0xff] }
 0x121   :  { %766 = vmatprep.mubr.bf16.mxu0 %v6269_v0  ;;  %879 = vmatprep.mubr.bf16.mxu1 %v6269_v0  ;;  %v6493_v28 = vcombine.low %v371_v25, %v372_v24  ;;  %v270_v29 = vrot.slane %v262_v26, %v6457_v48  ;;  %v258_v30 = vrot.slane %v250_v27, %v6457_v48  ;;  %v397_v26 = vld [vmem:[#allocation14 + $0x70] sm:$0xff]  ;;  %v390_v27 = vld [vmem:[#allocation14 + $0x38] sm:$0xff] }
 0x122   :  { %952 = vmatprep.subr.bf16.mxu0 %v4982_v7  ;;  %1065 = vmatprep.subr.bf16.mxu1 %v4984_v8  ;;  %v4988_v25 = vcombine.high %v404_v18, %v412_v20  ;;  %v4974_v4 = vcombine.high %v389_v23, %v397_v26  ;;  %v413_v10 = vld [vmem:[#allocation14 + $0xf0] sm:$0xff] }
 0x123   :  { %v374_v33 = vmul.bf16 %v270_v29, %v150_v31  ;;  %v373_v34 = vmul.bf16 %v258_v30, %v149_v32  ;;  %v398_v29 = vld [vmem:[#allocation14 + $0x78] sm:$0xff]  ;;  %v4987_v31 = vcombine.low %v404_v18, %v412_v20 }
 0x124   :  { %953 = vmatpush1.bf16.msra.mxu0 %v4981_v11  ;;  %1066 = vmatpush1.bf16.msra.mxu1 %v4983_v12  ;;  %v286_v35 = vpop.permute.xlu1 %285  ;;  %v274_v36 = vpop.permute.xlu0 %273  ;;  %v158_v12 = vld [vmem:[#allocation6 + $0x3c] sm:$0xf]  ;;  %v4976_v5 = vcombine.high %v390_v27, %v398_v29 }
 0x125   :  { %1176 = vmatprep.subr.bf16.mxu0 %v4970_v13  ;;  %1289 = vmatprep.subr.bf16.mxu1 %v4972_v16  ;;  %v6503_v37 = vcombine.low %v373_v34, %v374_v33  ;;  %v294_v38 = vrot.slane %v286_v35, %v6457_v48  ;;  %v282_v39 = vrot.slane %v274_v36, %v6457_v48  ;;  %v157_v13 = vld [vmem:[#allocation6 + $0x38] sm:$0xf] }
 0x126   :  { %v406_v32 = vld [vmem:[#allocation14 + $0xb8] sm:$0xff]  ;;  %v4973_v34 = vcombine.low %v389_v23, %v397_v26  ;;  %v4975_v35 = vcombine.low %v390_v27, %v398_v29  ;;  %v4990_v36 = vcombine.high %v405_v9, %v413_v10  ;;  %v5824_v23 = vld [vmem:[#allocation17 + $0xf0] sm:$0xff]  }
 0x127   :  { %4994 = vmatmul.mubr.msk.bf16.gmra.mrb[4].mxu0 %vm699_vm0, %v6483_v19  ;;  %5002 = vmatmul.mubr.msk.bf16.gmra.mrb[4].mxu1 %vm699_vm0, %v6483_v19  ;;  %v376_v42 = vmul.bf16 %v294_v38, %v152_v40  ;;  %v375_v43 = vmul.bf16 %v282_v39, %v151_v41  ;;  %v414_v33 = vld [vmem:[#allocation14 + $0xf8] sm:$0xff]  ;;  %v4989_v39 = vcombine.low %v405_v9, %v413_v10  ;;  %v5798_v41 = vld [vmem:[#allocation17 + $0x40] sm:$0xff]  }
 0x128   :  { %776 = vmatprep.mubr.bf16.mxu0 %v6269_v0  ;;  %889 = vmatprep.mubr.bf16.mxu1 %v6269_v0  ;;  %v310_v44 = vpop.permute.xlu1 %309  ;;  %v298_v46 = vpop.permute.xlu0 %297  ;;  %v4992_v38 = vcombine.high %v406_v32, %v414_v33  ;;  %v4991_v40 = vcombine.low %v406_v32, %v414_v33  ;;  %v5821_v18 = vld [vmem:[#allocation17 + $0xa8] sm:$0xff]   ;;  %v5823_v33 = vld [vmem:[#allocation17 + $0x30] sm:$0xff]  }
 0x129   :  { %v6513_v49 = vcombine.low %v375_v43, %v376_v42  ;;  %v318_v50 = vrot.slane %v310_v44, %v6457_v48  ;;  %v306_v51 = vrot.slane %v298_v46, %v6457_v48  ;;  %v5800_v42 = vld [vmem:[#allocation17 + $0xc0] sm:$0xff]   ;;  %v5802_v46 = vld [vmem:[#allocation17 + $0x48] sm:$0xff]  }
 0x12a   :  { %v5799_v43 = vld [vmem:[#allocation17] sm:$0xff]  }
 0x12b   :  { %v378_v54 = vmul.bf16 %v318_v50, %v154_v52  ;;  %v377_v55 = vmul.bf16 %v306_v51, %v153_v53  ;;  %v5801_v44 = vld [vmem:[#allocation17 + $0x80] sm:$0xff]   ;;  %v5804_v50 = vld [vmem:[#allocation17 + $0xc8] sm:$0xff]   ;;  %v5806_v53 = vld [vmem:[#allocation17 + $0x50] sm:$0xff]  }
 0x12c   :  { %v334_v56 = vpop.permute.xlu1 %333  ;;  %v322_v57 = vpop.permute.xlu0 %321  ;;  %v5803_v51 = vld [vmem:[#allocation17 + $0x8] sm:$0xff]  }
 0x12d   :  { %v6523_v58 = vcombine.low %v377_v55, %v378_v54  ;;  %v342_v59 = vrot.slane %v334_v56, %v6457_v48  ;;  %v330_v60 = vrot.slane %v322_v57, %v6457_v48  ;;  %v5805_v52 = vld [vmem:[#allocation17 + $0x88] sm:$0xff]   ;;  %v5808_v54 = vld [vmem:[#allocation17 + $0xd0] sm:$0xff]   ;;  %v5810_v57 = vld [vmem:[#allocation17 + $0x58] sm:$0xff]  }
 0x12e   :  { %v5807_v55 = vld [vmem:[#allocation17 + $0x10] sm:$0xff]  }
 0x12f   :  { %4995 = vmatmul.mubr.msk.bf16.gmra.mrb[8].mxu0 %vm699_vm0, %v6493_v28  ;;  %5003 = vmatmul.mubr.msk.bf16.gmra.mrb[8].mxu1 %vm699_vm0, %v6493_v28  ;;  %v380_v63 = vmul.bf16 %v342_v59, %v156_v61  ;;  %v379_v1 = vmul.bf16 %v330_v60, %v155_v62  ;;  %v5809_v56 = vld [vmem:[#allocation17 + $0x90] sm:$0xff]   ;;  %v5811_v59 = vld [vmem:[#allocation17 + $0x18] sm:$0xff]   ;;  %v5814_v61 = vld [vmem:[#allocation17 + $0x60] sm:$0xff]  }
 0x130   :  { %786 = vmatprep.mubr.bf16.mxu0 %v6269_v0  ;;  %899 = vmatprep.mubr.bf16.mxu1 %v6269_v0  ;;  %v358_v2 = vpop.permute.xlu1 %357  ;;  %v346_v6 = vpop.permute.xlu0 %345  ;;  %v5813_v60 = vld [vmem:[#allocation17 + $0x98] sm:$0xff]   ;;  %v5816_v62 = vld [vmem:[#allocation17 + $0xe0] sm:$0xff]  }
 0x131   :  { %v6533_v7 = vcombine.low %v379_v1, %v380_v63  ;;  %v366_v8 = vrot.slane %v358_v2, %v6457_v48  ;;  %v354_v11 = vrot.slane %v346_v6, %v6457_v48  ;;  %v403_v48 = vld [vmem:[#allocation14 + $0xa0] sm:$0xff]  ;;  %v421_v63 = vsub.s32 0, %v6454_v47 }
 0x132   :  { %v4986_v24 = vcombine.high %v403_v48, %v411_v17  ;;  %v4985_v30 = vcombine.low %v403_v48, %v411_v17  ;;  %v429_v1 = vsub.s32 2, %v6454_v47  ;;  %v6665_v2 = vld [vmem:[#allocation15] sm:$0xff]  ;;  %v433_v6 = vsub.s32 3, %v6454_v47 }
 0x133   :  { %v382_v14 = vmul.bf16 %v366_v8, %v158_v12  ;;  %v381_v15 = vmul.bf16 %v354_v11, %v157_v13  ;;  %v5815_v8 = vld [vmem:[#allocation17 + $0x20] sm:$0xff]   ;;  %v5818_v12 = vld [vmem:[#allocation17 + $0x68] sm:$0xff]  }
 0x134   :  { %v5817_v11 = vld [vmem:[#allocation17 + $0xa0] sm:$0xff]   ;;  %v5820_v13 = vld [vmem:[#allocation17 + $0xe8] sm:$0xff]   ;;  %v6691_v17 = vrot.slane %v6665_v2, %v433_v6 }
 0x135   :  { %v6543_v16 = vcombine.low %v381_v15, %v382_v14  ;;  %v6676_v14 = vrot.slane %v6665_v2, %v421_v63  ;;  %v6681_v15 = vrot.slane %v6665_v2, %v429_v1 }
 0x137   :  { %4996 = vmatmul.mubr.msk.bf16.gmra.mrb[12].mxu0 %vm699_vm0, %v6503_v37  ;;  %5004 = vmatmul.mubr.msk.bf16.gmra.mrb[12].mxu1 %vm699_vm0, %v6503_v37 }
 0x138   :  { %796 = vmatprep.mubr.bf16.mxu0 %v6269_v0  ;;  %909 = vmatprep.mubr.bf16.mxu1 %v6269_v0 }
 0x13f   :  { %4997 = vmatmul.mubr.msk.bf16.gmra.mrb[16].mxu0 %vm699_vm0, %v6513_v49  ;;  %5005 = vmatmul.mubr.msk.bf16.gmra.mrb[16].mxu1 %vm699_vm0, %v6513_v49 }
 0x140   :  { %806 = vmatprep.mubr.bf16.mxu0 %v6269_v0  ;;  %919 = vmatprep.mubr.bf16.mxu1 %v6269_v0 }
 0x147   :  { %4998 = vmatmul.mubr.msk.bf16.gmra.mrb[20].mxu0 %vm699_vm0, %v6523_v58  ;;  %5006 = vmatmul.mubr.msk.bf16.gmra.mrb[20].mxu1 %vm699_vm0, %v6523_v58 }
 0x148   :  { %816 = vmatprep.mubr.bf16.mxu0 %v6269_v0  ;;  %929 = vmatprep.mubr.bf16.mxu1 %v6269_v0 }
 0x14f   :  { %4999 = vmatmul.mubr.msk.bf16.gmra.mrb[24].mxu0 %vm699_vm0, %v6533_v7  ;;  %5007 = vmatmul.mubr.msk.bf16.gmra.mrb[24].mxu1 %vm699_vm0, %v6533_v7 }
 0x150   :  { %826 = vmatprep.mubr.bf16.mxu0 %v6269_v0  ;;  %939 = vmatprep.mubr.bf16.mxu1 %v6269_v0 }
 0x157   :  { %5000 = vmatmul.mubr.msk.bf16.gmra.mrb[28].mxu0 %vm699_vm0, %v6543_v16  ;;  %5008 = vmatmul.mubr.msk.bf16.gmra.mrb[28].mxu1 %vm699_vm0, %v6543_v16 }
 0x158   :  { %982 = vmatprep.mubr.bf16.mxu0 %v6269_v0  ;;  %1095 = vmatprep.mubr.bf16.mxu1 %v6269_v0 }
 0x15f   :  { %5009 = vmatmul.mubr.msk.bf16.vlgmr.msra.gmra.mrb[32].mxu0 %vm699_vm0, %v6463_v3  ;;  %5017 = vmatmul.mubr.msk.bf16.vlgmr.msra.gmra.mrb[32].mxu1 %vm699_vm0, %v6463_v3 }
 0x160   :  { %1177 = vmatpush1.bf16.msra.mxu0 %v4969_v21  ;;  %1290 = vmatpush1.bf16.msra.mxu1 %v4971_v22  ;;  %v5822_v22 = vld [vmem:[#allocation17 + $0x70] sm:$0xff]  }
 0x161   :  { %992 = vmatprep.mubr.bf16.mxu0 %v6269_v0  ;;  %1105 = vmatprep.mubr.bf16.mxu1 %v6269_v0 }
 0x162   :  { %1178 = vmatprep.subr.bf16.mxu0 %v4986_v24  ;;  %1291 = vmatprep.subr.bf16.mxu1 %v4988_v25 }
 0x164   :  { %1179 = vmatpush1.bf16.msra.mxu0 %v4985_v30  ;;  %1292 = vmatpush1.bf16.msra.mxu1 %v4987_v31 }
 0x165   :  { %1402 = vmatprep.subr.bf16.mxu0 %v4974_v4  ;;  %1515 = vmatprep.subr.bf16.mxu1 %v4976_v5 }
 0x167   :  { %5010 = vmatmul.mubr.msk.bf16.gmra.mrb[36].mxu0 %vm699_vm0, %v6483_v19  ;;  %5018 = vmatmul.mubr.msk.bf16.gmra.mrb[36].mxu1 %vm699_vm0, %v6483_v19 }
 0x168   :  { %1002 = vmatprep.mubr.bf16.mxu0 %v6269_v0  ;;  %1115 = vmatprep.mubr.bf16.mxu1 %v6269_v0 }
 0x16f   :  { %5011 = vmatmul.mubr.msk.bf16.gmra.mrb[40].mxu0 %vm699_vm0, %v6493_v28  ;;  %5019 = vmatmul.mubr.msk.bf16.gmra.mrb[40].mxu1 %vm699_vm0, %v6493_v28 }
 0x170   :  { %1012 = vmatprep.mubr.bf16.mxu0 %v6269_v0  ;;  %1125 = vmatprep.mubr.bf16.mxu1 %v6269_v0 }
 0x177   :  { %5012 = vmatmul.mubr.msk.bf16.gmra.mrb[44].mxu0 %vm699_vm0, %v6503_v37  ;;  %5020 = vmatmul.mubr.msk.bf16.gmra.mrb[44].mxu1 %vm699_vm0, %v6503_v37 }
 0x178   :  { %1022 = vmatprep.mubr.bf16.mxu0 %v6269_v0  ;;  %1135 = vmatprep.mubr.bf16.mxu1 %v6269_v0 }
 0x17f   :  { %5013 = vmatmul.mubr.msk.bf16.gmra.mrb[48].mxu0 %vm699_vm0, %v6513_v49  ;;  %5021 = vmatmul.mubr.msk.bf16.gmra.mrb[48].mxu1 %vm699_vm0, %v6513_v49 }
 0x180   :  { %1032 = vmatprep.mubr.bf16.mxu0 %v6269_v0  ;;  %1145 = vmatprep.mubr.bf16.mxu1 %v6269_v0 }
 0x187   :  { %5014 = vmatmul.mubr.msk.bf16.gmra.mrb[52].mxu0 %vm699_vm0, %v6523_v58  ;;  %5022 = vmatmul.mubr.msk.bf16.gmra.mrb[52].mxu1 %vm699_vm0, %v6523_v58 }
 0x188   :  { %1042 = vmatprep.mubr.bf16.mxu0 %v6269_v0  ;;  %1155 = vmatprep.mubr.bf16.mxu1 %v6269_v0 }
 0x18f   :  { %5015 = vmatmul.mubr.msk.bf16.gmra.mrb[56].mxu0 %vm699_vm0, %v6533_v7  ;;  %5023 = vmatmul.mubr.msk.bf16.gmra.mrb[56].mxu1 %vm699_vm0, %v6533_v7 }
 0x190   :  { %1052 = vmatprep.mubr.bf16.mxu0 %v6269_v0  ;;  %1165 = vmatprep.mubr.bf16.mxu1 %v6269_v0 }
 0x197   :  { %5016 = vmatmul.mubr.msk.bf16.gmra.mrb[60].mxu0 %vm699_vm0, %v6543_v16  ;;  %5024 = vmatmul.mubr.msk.bf16.gmra.mrb[60].mxu1 %vm699_vm0, %v6543_v16 }
 0x198   :  { %1208 = vmatprep.mubr.bf16.mxu0 %v6269_v0  ;;  %1321 = vmatprep.mubr.bf16.mxu1 %v6269_v0 }
 0x19f   :  { %5025 = vmatmul.mubr.msk.bf16.vlgmr.msra.gmra.mrb[64].mxu0 %vm699_vm0, %v6463_v3  ;;  %5033 = vmatmul.mubr.msk.bf16.vlgmr.msra.gmra.mrb[64].mxu1 %vm699_vm0, %v6463_v3 }
 0x1a0   :  { %1403 = vmatpush1.bf16.msra.mxu0 %v4973_v34  ;;  %1516 = vmatpush1.bf16.msra.mxu1 %v4975_v35  ;;  %v5825_v34 = vld [vmem:[#allocation17 + $0xb0] sm:$0xff]  }
 0x1a1   :  { %1218 = vmatprep.mubr.bf16.mxu0 %v6269_v0  ;;  %1331 = vmatprep.mubr.bf16.mxu1 %v6269_v0 }
 0x1a2   :  { %1404 = vmatprep.subr.bf16.mxu0 %v4990_v36  ;;  %1517 = vmatprep.subr.bf16.mxu1 %v4992_v38  ;;  %v5826_v38 = vld [vmem:[#allocation17 + $0x78] sm:$0xff]  }
 0x1a4   :  { %1405 = vmatpush1.bf16.msra.mxu0 %v4989_v39  ;;  %1518 = vmatpush1.bf16.msra.mxu1 %v4991_v40  ;;  %v5828_v39 = vld [vmem:[#allocation17 + $0xf8] sm:$0xff]  }
 0x1a5   :  { %5265 = vmatprep.subr.bf16.mxu0 %v5798_v41  ;;  %5329 = vmatprep.subr.bf16.mxu1 %v5800_v42 }
 0x1a7   :  { %5026 = vmatmul.mubr.msk.bf16.gmra.mrb[68].mxu0 %vm699_vm0, %v6483_v19  ;;  %5034 = vmatmul.mubr.msk.bf16.gmra.mrb[68].mxu1 %vm699_vm0, %v6483_v19 }
 0x1a8   :  { %1228 = vmatprep.mubr.bf16.mxu0 %v6269_v0  ;;  %1341 = vmatprep.mubr.bf16.mxu1 %v6269_v0 }
 0x1af   :  { %5027 = vmatmul.mubr.msk.bf16.gmra.mrb[72].mxu0 %vm699_vm0, %v6493_v28  ;;  %5035 = vmatmul.mubr.msk.bf16.gmra.mrb[72].mxu1 %vm699_vm0, %v6493_v28 }
 0x1b0   :  { %1238 = vmatprep.mubr.bf16.mxu0 %v6269_v0  ;;  %1351 = vmatprep.mubr.bf16.mxu1 %v6269_v0 }
 0x1b7   :  { %5028 = vmatmul.mubr.msk.bf16.gmra.mrb[76].mxu0 %vm699_vm0, %v6503_v37  ;;  %5036 = vmatmul.mubr.msk.bf16.gmra.mrb[76].mxu1 %vm699_vm0, %v6503_v37 }
 0x1b8   :  { %1248 = vmatprep.mubr.bf16.mxu0 %v6269_v0  ;;  %1361 = vmatprep.mubr.bf16.mxu1 %v6269_v0 }
 0x1bf   :  { %5029 = vmatmul.mubr.msk.bf16.gmra.mrb[80].mxu0 %vm699_vm0, %v6513_v49  ;;  %5037 = vmatmul.mubr.msk.bf16.gmra.mrb[80].mxu1 %vm699_vm0, %v6513_v49 }
 0x1c0   :  { %1258 = vmatprep.mubr.bf16.mxu0 %v6269_v0  ;;  %1371 = vmatprep.mubr.bf16.mxu1 %v6269_v0 }
 0x1c7   :  { %5030 = vmatmul.mubr.msk.bf16.gmra.mrb[84].mxu0 %vm699_vm0, %v6523_v58  ;;  %5038 = vmatmul.mubr.msk.bf16.gmra.mrb[84].mxu1 %vm699_vm0, %v6523_v58 }
 0x1c8   :  { %1268 = vmatprep.mubr.bf16.mxu0 %v6269_v0  ;;  %1381 = vmatprep.mubr.bf16.mxu1 %v6269_v0 }
 0x1cf   :  { %5031 = vmatmul.mubr.msk.bf16.gmra.mrb[88].mxu0 %vm699_vm0, %v6533_v7  ;;  %5039 = vmatmul.mubr.msk.bf16.gmra.mrb[88].mxu1 %vm699_vm0, %v6533_v7 }
 0x1d0   :  { %1278 = vmatprep.mubr.bf16.mxu0 %v6269_v0  ;;  %1391 = vmatprep.mubr.bf16.mxu1 %v6269_v0 }
 0x1d7   :  { %5032 = vmatmul.mubr.msk.bf16.gmra.mrb[92].mxu0 %vm699_vm0, %v6543_v16  ;;  %5040 = vmatmul.mubr.msk.bf16.gmra.mrb[92].mxu1 %vm699_vm0, %v6543_v16 }
 0x1d8   :  { %1434 = vmatprep.mubr.bf16.mxu0 %v6269_v0  ;;  %1547 = vmatprep.mubr.bf16.mxu1 %v6269_v0 }
 0x1df   :  { %5041 = vmatmul.mubr.msk.bf16.vlgmr.msra.gmra.mrb[96].mxu0 %vm699_vm0, %v6463_v3  ;;  %5049 = vmatmul.mubr.msk.bf16.vlgmr.msra.gmra.mrb[96].mxu1 %vm699_vm0, %v6463_v3  ;;  %v5812_v3 = vld [vmem:[#allocation17 + $0xd8] sm:$0xff]  }
 0x1e0   :  { %5266 = vmatpush3.bf16.msra.mxu0 %v5799_v43  ;;  %5330 = vmatpush3.bf16.msra.mxu1 %v5801_v44 }
 0x1e1   :  { %1444 = vmatprep.mubr.bf16.mxu0 %v6269_v0  ;;  %1557 = vmatprep.mubr.bf16.mxu1 %v6269_v0 }
 0x1e2   :  { %5267 = vmatprep.subr.bf16.mxu0 %v5802_v46  ;;  %5331 = vmatprep.subr.bf16.mxu1 %v5804_v50 }
 0x1e4   :  { %5268 = vmatpush3.bf16.msra.mxu0 %v5803_v51  ;;  %5332 = vmatpush3.bf16.msra.mxu1 %v5805_v52 }
 0x1e5   :  { %5269 = vmatprep.subr.bf16.mxu0 %v5806_v53  ;;  %5333 = vmatprep.subr.bf16.mxu1 %v5808_v54  ;;  %v5827_v54 = vld [vmem:[#allocation17 + $0x38] sm:$0xff]  }
 0x1e7   :  { %5042 = vmatmul.mubr.msk.bf16.gmra.mrb[100].mxu0 %vm699_vm0, %v6483_v19  ;;  %5050 = vmatmul.mubr.msk.bf16.gmra.mrb[100].mxu1 %vm699_vm0, %v6483_v19  ;;  %v425_v19 = vsub.s32 1, %v6454_v47 }
 0x1e8   :  { %1454 = vmatprep.mubr.bf16.mxu0 %v6269_v0  ;;  %1567 = vmatprep.mubr.bf16.mxu1 %v6269_v0 }
 0x1e9   :  { %5270 = vmatpush3.bf16.msra.mxu0 %v5807_v55  ;;  %5334 = vmatpush3.bf16.msra.mxu1 %v5809_v56  ;;  %v6686_v48 = vrot.slane %v6665_v2, %v425_v19  ;;  %v5829_v55 = vld [vmem:[#allocation17 + $0xb8] sm:$0xff]  }
 0x1ea   :  { %5271 = vmatprep.subr.bf16.mxu0 %v5810_v57  ;;  %5335 = vmatprep.subr.bf16.mxu1 %v5812_v3 }
 0x1ed   :  { %5272 = vmatpush3.bf16.msra.mxu0 %v5811_v59  ;;  %5336 = vmatpush3.bf16.msra.mxu1 %v5813_v60  ;;  %v5830_v59 = vld [vmem:[#allocation17 + $0x140] sm:$0xff]  }
 0x1ee   :  { %5273 = vmatprep.subr.bf16.mxu0 %v5814_v61  ;;  %5337 = vmatprep.subr.bf16.mxu1 %v5816_v62  ;;  %v5832_v60 = vld [vmem:[#allocation17 + $0x1c0] sm:$0xff]  }
 0x1ef   :  { %5043 = vmatmul.mubr.msk.bf16.gmra.mrb[104].mxu0 %vm699_vm0, %v6493_v28  ;;  %5051 = vmatmul.mubr.msk.bf16.gmra.mrb[104].mxu1 %vm699_vm0, %v6493_v28  ;;  %v5819_v28 = vld [vmem:[#allocation17 + $0x28] sm:$0xff]  }
 0x1f0   :  { %1464 = vmatprep.mubr.bf16.mxu0 %v6269_v0  ;;  %1577 = vmatprep.mubr.bf16.mxu1 %v6269_v0 }
 0x1f1   :  { %5274 = vmatpush3.bf16.msra.mxu0 %v5815_v8  ;;  %5338 = vmatpush3.bf16.msra.mxu1 %v5817_v11 }
 0x1f2   :  { %v758_v20 = vpop.f32.mrb[0].mxu0  ;;  %v871_v21 = vpop.f32.mrb[0].mxu1  ;;  %5275 = vmatprep.subr.bf16.mxu0 %v5818_v12  ;;  %5339 = vmatprep.subr.bf16.mxu1 %v5820_v13 }
 0x1f3   :  { %v759_v24 = vadd.f32 %v758_v20, %v6676_v14  ;;  %v872_v25 = vadd.f32 %v871_v21, %v6681_v15  ;;  %v760_v26 = vpop.f32.mrb[1].mxu0  ;;  %v873_v27 = vpop.f32.mrb[1].mxu1 }
 0x1f4   :  { %v761_v29 = vadd.f32 %v760_v26, %v6686_v48  ;;  %v874_v30 = vadd.f32 %v873_v27, %v6691_v17  ;;  %v762_v31 = vpop.f32.mrb[2].mxu0  ;;  %v875_v4 = vpop.f32.mrb[2].mxu1 }
 0x1f5   :  { %v763_v5 = vadd.f32 %v762_v31, %v6676_v14  ;;  %v876_v9 = vadd.f32 %v875_v4, %v6681_v15  ;;  %v764_v10 = vpop.f32.mrb[3].mxu0  ;;  %v877_v32 = vpop.f32.mrb[3].mxu1  ;;  %5276 = vmatpush3.bf16.msra.mxu0 %v5819_v28  ;;  %5340 = vmatpush3.bf16.msra.mxu1 %v5821_v18  ;;  %v1628_v40 = vmax.f32 %v759_v24, 0.0  ;;  %v1630_v41 = vmax.f32 %v872_v25, 0.0 }
 0x1f6   :  { %v765_v35 = vadd.f32 %v764_v10, %v6686_v48  ;;  %v878_v36 = vadd.f32 %v877_v32, %v6691_v17  ;;  %5277 = vmatprep.subr.bf16.mxu0 %v5822_v22  ;;  %5341 = vmatprep.subr.bf16.mxu1 %v5824_v23  ;;  %v1629_v44 = vmax.f32 %v761_v29, 0.0  ;;  %v1631_v46 = vmax.f32 %v874_v30, 0.0 }
 0x1f7   :  { %v1644_v42 = vmax.f32 %v763_v5, 0.0  ;;  %v1646_v43 = vmax.f32 %v876_v9, 0.0  ;;  %5044 = vmatmul.mubr.msk.bf16.gmra.mrb[108].mxu0 %vm699_vm0, %v6503_v37  ;;  %5052 = vmatmul.mubr.msk.bf16.gmra.mrb[108].mxu1 %vm699_vm0, %v6503_v37 }
 0x1f8   :  { %v1645_v50 = vmax.f32 %v765_v35, 0.0  ;;  %v1647_v51 = vmax.f32 %v878_v36, 0.0  ;;  %1474 = vmatprep.mubr.bf16.mxu0 %v6269_v0  ;;  %1587 = vmatprep.mubr.bf16.mxu1 %v6269_v0 }
 0x1f9   :  { %v6709_v52 = vpack.c.bf16 %v1644_v42, %v1628_v40  ;;  %v6711_v53 = vpack.c.bf16 %v1646_v43, %v1630_v41  ;;  %5278 = vmatpush3.bf16.msra.mxu0 %v5823_v33  ;;  %5342 = vmatpush3.bf16.msra.mxu1 %v5825_v34 }
 0x1fa   :  { %v6713_v56 = vpack.c.bf16 %v1645_v50, %v1629_v44  ;;  %v6715_v57 = vpack.c.bf16 %v1647_v51, %v1631_v46  ;;  %v768_v37 = vpop.f32.mrb[4].mxu0  ;;  %v881_v3 = vpop.f32.mrb[4].mxu1  ;;  %5279 = vmatprep.subr.bf16.mxu0 %v5826_v38  ;;  %5343 = vmatprep.subr.bf16.mxu1 %v5828_v39 }
 0x1fb   :  { %v769_v61 = vadd.f32 %v768_v37, %v6676_v14  ;;  %v882_v62 = vadd.f32 %v881_v3, %v6681_v15  ;;  %v770_v8 = vpop.f32.mrb[5].mxu0  ;;  %v883_v11 = vpop.f32.mrb[5].mxu1 }
 0x1fc   :  { %v771_v12 = vadd.f32 %v770_v8, %v6686_v48  ;;  %v884_v13 = vadd.f32 %v883_v11, %v6691_v17  ;;  %v772_v28 = vpop.f32.mrb[6].mxu0  ;;  %v885_v18 = vpop.f32.mrb[6].mxu1 }
 0x1fd   :  { %v773_v20 = vadd.f32 %v772_v28, %v6676_v14  ;;  %v886_v21 = vadd.f32 %v885_v18, %v6681_v15  ;;  %v774_v22 = vpop.f32.mrb[7].mxu0  ;;  %v887_v23 = vpop.f32.mrb[7].mxu1  ;;  %5280 = vmatpush3.bf16.msra.mxu0 %v5827_v54  ;;  %5344 = vmatpush3.bf16.msra.mxu1 %v5829_v55  ;;  %v1660_v26 = vmax.f32 %v769_v61, 0.0  ;;  %v1662_v27 = vmax.f32 %v882_v62, 0.0 }
 0x1fe   :  { %v775_v24 = vadd.f32 %v774_v22, %v6686_v48  ;;  %v888_v25 = vadd.f32 %v887_v23, %v6691_v17  ;;  %5393 = vmatprep.subr.bf16.mxu0 %v5830_v59  ;;  %5457 = vmatprep.subr.bf16.mxu1 %v5832_v60  ;;  %v1661_v31 = vmax.f32 %v771_v12, 0.0  ;;  %v1663_v4 = vmax.f32 %v884_v13, 0.0 }
 0x1ff   :  { %v1676_v29 = vmax.f32 %v773_v20, 0.0  ;;  %v1678_v30 = vmax.f32 %v886_v21, 0.0  ;;  %5045 = vmatmul.mubr.msk.bf16.gmra.mrb[112].mxu0 %vm699_vm0, %v6513_v49  ;;  %5053 = vmatmul.mubr.msk.bf16.gmra.mrb[112].mxu1 %vm699_vm0, %v6513_v49 }
 0x200   :  { %v1677_v5 = vmax.f32 %v775_v24, 0.0  ;;  %v1679_v9 = vmax.f32 %v888_v25, 0.0  ;;  %1484 = vmatprep.mubr.bf16.mxu0 %v6269_v0  ;;  %1597 = vmatprep.mubr.bf16.mxu1 %v6269_v0 }
 0x201   :  { %v6731_v10 = vpack.c.bf16 %v1676_v29, %v1660_v26  ;;  %v6733_v32 = vpack.c.bf16 %v1678_v30, %v1662_v27 }
 0x202   :  { %v6735_v33 = vpack.c.bf16 %v1677_v5, %v1661_v31  ;;  %v6737_v34 = vpack.c.bf16 %v1679_v9, %v1663_v4  ;;  %v778_v35 = vpop.f32.mrb[8].mxu0  ;;  %v891_v36 = vpop.f32.mrb[8].mxu1 }
 0x203   :  { %v779_v49 = vadd.f32 %v778_v35, %v6676_v14  ;;  %v892_v38 = vadd.f32 %v891_v36, %v6681_v15  ;;  %v780_v39 = vpop.f32.mrb[9].mxu0  ;;  %v893_v40 = vpop.f32.mrb[9].mxu1 }
 0x204   :  { %v781_v41 = vadd.f32 %v780_v39, %v6686_v48  ;;  %v894_v42 = vadd.f32 %v893_v40, %v6691_v17  ;;  %v782_v43 = vpop.f32.mrb[10].mxu0  ;;  %v895_v44 = vpop.f32.mrb[10].mxu1 }
 0x205   :  { %v783_v46 = vadd.f32 %v782_v43, %v6676_v14  ;;  %v896_v50 = vadd.f32 %v895_v44, %v6681_v15  ;;  %v784_v51 = vpop.f32.mrb[11].mxu0  ;;  %v897_v54 = vpop.f32.mrb[11].mxu1  ;;  %v1692_v3 = vmax.f32 %v779_v49, 0.0  ;;  %v1694_v59 = vmax.f32 %v892_v38, 0.0 }
 0x206   :  { %v785_v55 = vadd.f32 %v784_v51, %v6686_v48  ;;  %v898_v37 = vadd.f32 %v897_v54, %v6691_v17  ;;  %v1693_v62 = vmax.f32 %v781_v41, 0.0  ;;  %v1695_v8 = vmax.f32 %v894_v42, 0.0 }
 0x207   :  { %v1708_v60 = vmax.f32 %v783_v46, 0.0  ;;  %v1710_v61 = vmax.f32 %v896_v50, 0.0  ;;  %5046 = vmatmul.mubr.msk.bf16.gmra.mrb[116].mxu0 %vm699_vm0, %v6523_v58  ;;  %5054 = vmatmul.mubr.msk.bf16.gmra.mrb[116].mxu1 %vm699_vm0, %v6523_v58 }
 0x208   :  { %v1709_v11 = vmax.f32 %v785_v55, 0.0  ;;  %v1711_v12 = vmax.f32 %v898_v37, 0.0  ;;  %1494 = vmatprep.mubr.bf16.mxu0 %v6269_v0  ;;  %1607 = vmatprep.mubr.bf16.mxu1 %v6269_v0 }
 0x209   :  { %v6753_v13 = vpack.c.bf16 %v1708_v60, %v1692_v3  ;;  %v6755_v28 = vpack.c.bf16 %v1710_v61, %v1694_v59 }
 0x20a   :  { %v6757_v18 = vpack.c.bf16 %v1709_v11, %v1693_v62  ;;  %v6759_v20 = vpack.c.bf16 %v1711_v12, %v1695_v8  ;;  %v788_v21 = vpop.f32.mrb[12].mxu0  ;;  %v901_v22 = vpop.f32.mrb[12].mxu1 }
 0x20b   :  { %v789_v58 = vadd.f32 %v788_v21, %v6676_v14  ;;  %v902_v23 = vadd.f32 %v901_v22, %v6681_v15  ;;  %v790_v24 = vpop.f32.mrb[13].mxu0  ;;  %v903_v25 = vpop.f32.mrb[13].mxu1 }
 0x20c   :  { %v791_v26 = vadd.f32 %v790_v24, %v6686_v48  ;;  %v904_v27 = vadd.f32 %v903_v25, %v6691_v17  ;;  %v792_v29 = vpop.f32.mrb[14].mxu0  ;;  %v905_v30 = vpop.f32.mrb[14].mxu1 }
 0x20d   :  { %v793_v31 = vadd.f32 %v792_v29, %v6676_v14  ;;  %v906_v4 = vadd.f32 %v905_v30, %v6681_v15  ;;  %v794_v5 = vpop.f32.mrb[15].mxu0  ;;  %v907_v9 = vpop.f32.mrb[15].mxu1  ;;  %v1724_v49 = vmax.f32 %v789_v58, 0.0  ;;  %v1726_v38 = vmax.f32 %v902_v23, 0.0 }
 0x20e   :  { %v795_v35 = vadd.f32 %v794_v5, %v6686_v48  ;;  %v908_v36 = vadd.f32 %v907_v9, %v6691_v17  ;;  %v1725_v41 = vmax.f32 %v791_v26, 0.0  ;;  %v1727_v42 = vmax.f32 %v904_v27, 0.0 }
 0x20f   :  { %v1740_v39 = vmax.f32 %v793_v31, 0.0  ;;  %v1742_v40 = vmax.f32 %v906_v4, 0.0  ;;  %5047 = vmatmul.mubr.msk.bf16.gmra.mrb[120].mxu0 %vm699_vm0, %v6533_v7  ;;  %5055 = vmatmul.mubr.msk.bf16.gmra.mrb[120].mxu1 %vm699_vm0, %v6533_v7 }
 0x210   :  { %v1741_v43 = vmax.f32 %v795_v35, 0.0  ;;  %v1743_v44 = vmax.f32 %v908_v36, 0.0  ;;  %1504 = vmatprep.mubr.bf16.mxu0 %v6269_v0  ;;  %1617 = vmatprep.mubr.bf16.mxu1 %v6269_v0 }
 0x211   :  { %v6775_v46 = vpack.c.bf16 %v1740_v39, %v1724_v49  ;;  %v6777_v50 = vpack.c.bf16 %v1742_v40, %v1726_v38 }
 0x212   :  { %v6779_v51 = vpack.c.bf16 %v1741_v43, %v1725_v41  ;;  %v6781_v54 = vpack.c.bf16 %v1743_v44, %v1727_v42  ;;  %v798_v55 = vpop.f32.mrb[16].mxu0  ;;  %v911_v37 = vpop.f32.mrb[16].mxu1  ;;  %v5831_v44 = vld [vmem:[#allocation17 + $0x100] sm:$0xff]  }
 0x213   :  { %v799_v7 = vadd.f32 %v798_v55, %v6676_v14  ;;  %v912_v3 = vadd.f32 %v911_v37, %v6681_v15  ;;  %v800_v59 = vpop.f32.mrb[17].mxu0  ;;  %v913_v60 = vpop.f32.mrb[17].mxu1 }
 0x214   :  { %v801_v61 = vadd.f32 %v800_v59, %v6686_v48  ;;  %v914_v0 = vadd.f32 %v913_v60, %v6691_v17  ;;  %v802_v62 = vpop.f32.mrb[18].mxu0  ;;  %v915_v8 = vpop.f32.mrb[18].mxu1  ;;  %v5833_v59 = vld [vmem:[#allocation17 + $0x180] sm:$0xff]  }
 0x215   :  { %v803_v11 = vadd.f32 %v802_v62, %v6676_v14  ;;  %v916_v12 = vadd.f32 %v915_v8, %v6681_v15  ;;  %v804_v21 = vpop.f32.mrb[19].mxu0  ;;  %v917_v22 = vpop.f32.mrb[19].mxu1  ;;  %v1756_v24 = vmax.f32 %v799_v7, 0.0  ;;  %v1758_v25 = vmax.f32 %v912_v3, 0.0  ;;  %v5836_v62 = vld [vmem:[#allocation17 + $0x1c8] sm:$0xff]  }
 0x216   :  { %v805_v58 = vadd.f32 %v804_v21, %v6686_v48  ;;  %v918_v23 = vadd.f32 %v917_v22, %v6691_v17  ;;  %v1757_v29 = vmax.f32 %v801_v61, 0.0  ;;  %v1759_v30 = vmax.f32 %v914_v0, 0.0  ;;  %v5834_v0 = vld [vmem:[#allocation17 + $0x148] sm:$0xff]  }
 0x217   :  { %v1772_v26 = vmax.f32 %v803_v11, 0.0  ;;  %v1774_v27 = vmax.f32 %v916_v12, 0.0  ;;  %5048 = vmatmul.mubr.msk.bf16.gmra.mrb[124].mxu0 %vm699_vm0, %v6543_v16  ;;  %5056 = vmatmul.mubr.msk.bf16.gmra.mrb[124].mxu1 %vm699_vm0, %v6543_v16 }
 0x218   :  { %v1773_v31 = vmax.f32 %v805_v58, 0.0  ;;  %v1775_v4 = vmax.f32 %v918_v23, 0.0  ;;  %3380 = vmatprep.mubr.bf16.mxu0 %v6713_v56  ;;  %3477 = vmatprep.mubr.bf16.mxu1 %v6715_v57 }
 0x219   :  { %v6797_v5 = vpack.c.bf16 %v1772_v26, %v1756_v24  ;;  %v6799_v9 = vpack.c.bf16 %v1774_v27, %v1758_v25  ;;  %v5835_v25 = vld [vmem:[#allocation17 + $0x108] sm:$0xff]  }
 0x21a   :  { %v6801_v35 = vpack.c.bf16 %v1773_v31, %v1757_v29  ;;  %v6803_v36 = vpack.c.bf16 %v1775_v4, %v1759_v30  ;;  %v808_v49 = vpop.f32.mrb[20].mxu0  ;;  %v921_v38 = vpop.f32.mrb[20].mxu1  ;;  %v5837_v29 = vld [vmem:[#allocation17 + $0x188] sm:$0xff]   ;;  %v5838_v30 = vld [vmem:[#allocation17 + $0x150] sm:$0xff]  }
 0x21b   :  { %v809_v16 = vadd.f32 %v808_v49, %v6676_v14  ;;  %v922_v39 = vadd.f32 %v921_v38, %v6681_v15  ;;  %v810_v40 = vpop.f32.mrb[21].mxu0  ;;  %v923_v41 = vpop.f32.mrb[21].mxu1  ;;  %v5840_v49 = vld [vmem:[#allocation17 + $0x1d0] sm:$0xff]  }
 0x21c   :  { %v811_v56 = vadd.f32 %v810_v40, %v6686_v48  ;;  %v924_v57 = vadd.f32 %v923_v41, %v6691_v17  ;;  %v812_v42 = vpop.f32.mrb[22].mxu0  ;;  %v925_v43 = vpop.f32.mrb[22].mxu1 }
 0x21d   :  { %v813_v55 = vadd.f32 %v812_v42, %v6676_v14  ;;  %v926_v37 = vadd.f32 %v925_v43, %v6681_v15  ;;  %v814_v7 = vpop.f32.mrb[23].mxu0  ;;  %v927_v3 = vpop.f32.mrb[23].mxu1  ;;  %v1788_v8 = vmax.f32 %v809_v16, 0.0  ;;  %v1790_v11 = vmax.f32 %v922_v39, 0.0 }
 0x21e   :  { %v815_v60 = vadd.f32 %v814_v7, %v6686_v48  ;;  %v928_v61 = vadd.f32 %v927_v3, %v6691_v17  ;;  %v1789_v22 = vmax.f32 %v811_v56, 0.0  ;;  %v1791_v58 = vmax.f32 %v924_v57, 0.0 }
 0x21f   :  { %v1804_v12 = vmax.f32 %v813_v55, 0.0  ;;  %v1806_v21 = vmax.f32 %v926_v37, 0.0  ;;  %3381 = vmatmul.mubr.bf16.vlgmr.msra.gmra.mrb[128].mxu0 %v6709_v52  ;;  %3478 = vmatmul.mubr.bf16.vlgmr.msra.gmra.mrb[128].mxu1 %v6711_v53  ;;  %v5839_v55 = vld [vmem:[#allocation17 + $0x110] sm:$0xff]  }
 0x220   :  { %v1805_v23 = vmax.f32 %v815_v60, 0.0  ;;  %v1807_v24 = vmax.f32 %v928_v61, 0.0  ;;  %5394 = vmatpush3.bf16.msra.mxu0 %v5831_v44  ;;  %3388 = vmatprep.mubr.bf16.mxu0 %v6735_v33  ;;  %v5841_v37 = vld [vmem:[#allocation17 + $0x190] sm:$0xff]   ;;  %v445_v60 = vsub.s32 6, %v6454_v47  ;;  %v5842_v61 = vld [vmem:[#allocation17 + $0x158] sm:$0xff]  }
 0x221   :  { %v6816_v26 = vpack.c.bf16 %v1804_v12, %v1788_v8  ;;  %v6818_v27 = vpack.c.bf16 %v1806_v21, %v1790_v11  ;;  %3485 = vmatprep.mubr.bf16.mxu1 %v6737_v34  ;;  %5458 = vmatpush3.bf16.msra.mxu1 %v5833_v59  ;;  %v437_v59 = vsub.s32 4, %v6454_v47 }
 0x222   :  { %v6821_v52 = vpack.c.bf16 %v1805_v23, %v1789_v22  ;;  %v6823_v53 = vpack.c.bf16 %v1807_v24, %v1791_v58  ;;  %v818_v31 = vpop.f32.mrb[24].mxu0  ;;  %v931_v4 = vpop.f32.mrb[24].mxu1  ;;  %5395 = vmatprep.subr.bf16.mxu0 %v5834_v0  ;;  %5459 = vmatprep.subr.bf16.mxu1 %v5836_v62  ;;  %v5844_v0 = vld [vmem:[#allocation17 + $0x1d8] sm:$0xff]  }
 0x223   :  { %v819_v33 = vadd.f32 %v818_v31, %v6676_v14  ;;  %v932_v38 = vadd.f32 %v931_v4, %v6681_v15  ;;  %v820_v16 = vpop.f32.mrb[25].mxu0  ;;  %v933_v39 = vpop.f32.mrb[25].mxu1 }
 0x224   :  { %v821_v34 = vadd.f32 %v820_v16, %v6686_v48  ;;  %v934_v40 = vadd.f32 %v933_v39, %v6691_v17  ;;  %v822_v41 = vpop.f32.mrb[26].mxu0  ;;  %v935_v56 = vpop.f32.mrb[26].mxu1  ;;  %5396 = vmatpush3.bf16.msra.mxu0 %v5835_v25 }
 0x225   :  { %v823_v57 = vadd.f32 %v822_v41, %v6676_v14  ;;  %v936_v42 = vadd.f32 %v935_v56, %v6681_v15  ;;  %v824_v43 = vpop.f32.mrb[27].mxu0  ;;  %v937_v44 = vpop.f32.mrb[27].mxu1  ;;  %5460 = vmatpush3.bf16.msra.mxu1 %v5837_v29  ;;  %5397 = vmatprep.subr.bf16.mxu0 %v5838_v30  ;;  %v1820_v62 = vmax.f32 %v819_v33, 0.0  ;;  %v1822_v8 = vmax.f32 %v932_v38, 0.0  ;;  %v5843_v30 = vld [vmem:[#allocation17 + $0x118] sm:$0xff]   ;;  %v5848_v33 = vld [vmem:[#allocation17 + $0x1e0] sm:$0xff]  }
 0x226   :  { %v825_v7 = vadd.f32 %v824_v43, %v6686_v48  ;;  %v938_v3 = vadd.f32 %v937_v44, %v6691_v17  ;;  %5461 = vmatprep.subr.bf16.mxu1 %v5840_v49  ;;  %v1821_v21 = vmax.f32 %v821_v34, 0.0  ;;  %v1823_v22 = vmax.f32 %v934_v40, 0.0 }
 0x227   :  { %v1836_v11 = vmax.f32 %v823_v57, 0.0  ;;  %v1838_v12 = vmax.f32 %v936_v42, 0.0  ;;  %3389 = vmatmul.mubr.bf16.gmra.mrb[132].mxu0 %v6731_v10  ;;  %3486 = vmatmul.mubr.bf16.gmra.mrb[132].mxu1 %v6733_v32  ;;  %v441_v29 = vsub.s32 5, %v6454_v47  ;;  %v5845_v10 = vld [vmem:[#allocation17 + $0x198] sm:$0xff]   ;;  %v6856_v42 = vrot.slane %v6665_v2, %v437_v59 }
 0x228   :  { %v1837_v58 = vmax.f32 %v825_v7, 0.0  ;;  %v1839_v23 = vmax.f32 %v938_v3, 0.0  ;;  %3396 = vmatprep.mubr.bf16.mxu0 %v6757_v18  ;;  %3493 = vmatprep.mubr.bf16.mxu1 %v6759_v20  ;;  %v449_v18 = vsub.s32 7, %v6454_v47  ;;  %v5846_v20 = vld [vmem:[#allocation17 + $0x160] sm:$0xff]   ;;  %v6861_v43 = vrot.slane %v6665_v2, %v445_v60 }
 0x229   :  { %v6839_v24 = vpack.c.bf16 %v1836_v11, %v1820_v62  ;;  %v6841_v25 = vpack.c.bf16 %v1838_v12, %v1822_v8  ;;  %5398 = vmatpush3.bf16.msra.mxu0 %v5839_v55  ;;  %5462 = vmatpush3.bf16.msra.mxu1 %v5841_v37  ;;  %v6868_v3 = vrot.slane %v6665_v2, %v441_v29  ;;  %v5852_v11 = vld [vmem:[#allocation17 + $0x1e8] sm:$0xff]  }
 0x22a   :  { %v6844_v31 = vpack.c.bf16 %v1837_v58, %v1821_v21  ;;  %v6846_v32 = vpack.c.bf16 %v1839_v23, %v1823_v22  ;;  %v828_v4 = vpop.f32.mrb[28].mxu0  ;;  %v941_v49 = vpop.f32.mrb[28].mxu1  ;;  %5399 = vmatprep.subr.bf16.mxu0 %v5842_v61  ;;  %5463 = vmatprep.subr.bf16.mxu1 %v5844_v0  ;;  %v5847_v61 = vld [vmem:[#allocation17 + $0x120] sm:$0xff]  }
 0x22b   :  { %v829_v38 = vadd.f32 %v828_v4, %v6676_v14  ;;  %v942_v16 = vadd.f32 %v941_v49, %v6681_v15  ;;  %v830_v39 = vpop.f32.mrb[29].mxu0  ;;  %v943_v34 = vpop.f32.mrb[29].mxu1  ;;  %v5849_v0 = vld [vmem:[#allocation17 + $0x1a0] sm:$0xff]   ;;  %v5851_v4 = vld [vmem:[#allocation17 + $0x128] sm:$0xff]  }
 0x22c   :  { %v831_v40 = vadd.f32 %v830_v39, %v6686_v48  ;;  %v944_v41 = vadd.f32 %v943_v34, %v6691_v17  ;;  %v832_v56 = vpop.f32.mrb[30].mxu0  ;;  %v945_v57 = vpop.f32.mrb[30].mxu1  ;;  %v5853_v49 = vld [vmem:[#allocation17 + $0x1a8] sm:$0xff]  }
 0x22d   :  { %v833_v44 = vadd.f32 %v832_v56, %v6676_v14  ;;  %v946_v55 = vadd.f32 %v945_v57, %v6681_v15  ;;  %v834_v37 = vpop.f32.mrb[31].mxu0  ;;  %v947_v7 = vpop.f32.mrb[31].mxu1  ;;  %5400 = vmatpush3.bf16.msra.mxu0 %v5843_v30  ;;  %5464 = vmatpush3.bf16.msra.mxu1 %v5845_v10  ;;  %v6875_v14 = vrot.slane %v6665_v2, %v449_v18  ;;  %v5850_v15 = vld [vmem:[#allocation17 + $0x168] sm:$0xff]   ;;  %v1852_v12 = vmax.f32 %v829_v38, 0.0  ;;  %v5854_v38 = vld [vmem:[#allocation17 + $0x170] sm:$0xff]  }
 0x22e   :  { %v835_v62 = vadd.f32 %v834_v37, %v6686_v48  ;;  %v948_v8 = vadd.f32 %v947_v7, %v6691_v17  ;;  %5401 = vmatprep.subr.bf16.mxu0 %v5846_v20  ;;  %5465 = vmatprep.subr.bf16.mxu1 %v5848_v33  ;;  %v1854_v21 = vmax.f32 %v942_v16, 0.0  ;;  %v1853_v48 = vmax.f32 %v831_v40, 0.0 }
 0x22f   :  { %v1868_v22 = vmax.f32 %v833_v44, 0.0  ;;  %v1870_v58 = vmax.f32 %v946_v55, 0.0  ;;  %3397 = vmatmul.mubr.bf16.gmra.mrb[136].mxu0 %v6753_v13  ;;  %3494 = vmatmul.mubr.bf16.gmra.mrb[136].mxu1 %v6755_v28  ;;  %v1855_v23 = vmax.f32 %v944_v41, 0.0 }
 0x230   :  { %v1869_v17 = vmax.f32 %v835_v62, 0.0  ;;  %v1871_v30 = vmax.f32 %v948_v8, 0.0  ;;  %3404 = vmatprep.mubr.bf16.mxu0 %v6779_v51  ;;  %3501 = vmatprep.mubr.bf16.mxu1 %v6781_v54  ;;  %v5856_v51 = vld [vmem:[#allocation17 + $0x1f0] sm:$0xff]  }
 0x231   :  { %v6881_v2 = vpack.c.bf16 %v1868_v22, %v1852_v12  ;;  %v6883_v10 = vpack.c.bf16 %v1870_v58, %v1854_v21  ;;  %5402 = vmatpush3.bf16.msra.mxu0 %v5847_v61  ;;  %5466 = vmatpush3.bf16.msra.mxu1 %v5849_v0  ;;  %v5855_v61 = vld [vmem:[#allocation17 + $0x130] sm:$0xff]  }
 0x232   :  { %v6885_v20 = vpack.c.bf16 %v1869_v17, %v1853_v48  ;;  %v6887_v13 = vpack.c.bf16 %v1871_v30, %v1855_v23  ;;  %v984_v28 = vpop.f32.mrb[32].mxu0  ;;  %v1097_v33 = vpop.f32.mrb[32].mxu1  ;;  %5403 = vmatprep.subr.bf16.mxu0 %v5850_v15  ;;  %5467 = vmatprep.subr.bf16.mxu1 %v5852_v11  ;;  %v5857_v0 = vld [vmem:[#allocation17 + $0x1b0] sm:$0xff]   ;;  %v5858_v15 = vld [vmem:[#allocation17 + $0x178] sm:$0xff]  }
 0x233   :  { %v985_v54 = vadd.f32 %v984_v28, %v6856_v42  ;;  %v1098_v16 = vadd.f32 %v1097_v33, %v6861_v43  ;;  %v986_v39 = vpop.f32.mrb[33].mxu0  ;;  %v1099_v34 = vpop.f32.mrb[33].mxu1  ;;  %v5860_v11 = vld [vmem:[#allocation17 + $0x1f8] sm:$0xff]  }
 0x234   :  { %v987_v40 = vadd.f32 %v986_v39, %v6868_v3  ;;  %v1100_v41 = vadd.f32 %v1099_v34, %v6875_v14  ;;  %v988_v56 = vpop.f32.mrb[34].mxu0  ;;  %v1101_v57 = vpop.f32.mrb[34].mxu1  ;;  %v5859_v28 = vld [vmem:[#allocation17 + $0x138] sm:$0xff]  }
 0x235   :  { %v989_v44 = vadd.f32 %v988_v56, %v6856_v42  ;;  %v1102_v55 = vadd.f32 %v1101_v57, %v6861_v43  ;;  %v990_v37 = vpop.f32.mrb[35].mxu0  ;;  %v1103_v7 = vpop.f32.mrb[35].mxu1  ;;  %5404 = vmatpush3.bf16.msra.mxu0 %v5851_v4  ;;  %5468 = vmatpush3.bf16.msra.mxu1 %v5853_v49  ;;  %v1632_v12 = vmax.f32 %v985_v54, 0.0  ;;  %v1634_v21 = vmax.f32 %v1098_v16, 0.0  ;;  %v5861_v33 = vld [vmem:[#allocation17 + $0x1b8] sm:$0xff]   ;;  %v5862_v54 = vld [vmem:[#allocation17 + $0x240] sm:$0xff]  }
 0x236   :  { %v991_v62 = vadd.f32 %v990_v37, %v6868_v3  ;;  %v1104_v8 = vadd.f32 %v1103_v7, %v6875_v14  ;;  %5405 = vmatprep.subr.bf16.mxu0 %v5854_v38  ;;  %5469 = vmatprep.subr.bf16.mxu1 %v5856_v51  ;;  %v1633_v48 = vmax.f32 %v987_v40, 0.0  ;;  %v1635_v23 = vmax.f32 %v1100_v41, 0.0 }
 0x237   :  { %v1648_v22 = vmax.f32 %v989_v44, 0.0  ;;  %v1650_v58 = vmax.f32 %v1102_v55, 0.0  ;;  %3405 = vmatmul.mubr.bf16.gmra.mrb[140].mxu0 %v6775_v46  ;;  %3502 = vmatmul.mubr.bf16.gmra.mrb[140].mxu1 %v6777_v50 }
 0x238   :  { %v1649_v17 = vmax.f32 %v991_v62, 0.0  ;;  %v1651_v30 = vmax.f32 %v1104_v8, 0.0  ;;  %3412 = vmatprep.mubr.bf16.mxu0 %v6801_v35  ;;  %3509 = vmatprep.mubr.bf16.mxu1 %v6803_v36  ;;  %v5864_v35 = vld [vmem:[#allocation17 + $0x2c0] sm:$0xff]  }
 0x239   :  { %v6901_v4 = vpack.c.bf16 %v1648_v22, %v1632_v12  ;;  %v6903_v49 = vpack.c.bf16 %v1650_v58, %v1634_v21  ;;  %5406 = vmatpush3.bf16.msra.mxu0 %v5855_v61  ;;  %5470 = vmatpush3.bf16.msra.mxu1 %v5857_v0 }
 0x23a   :  { %v6905_v38 = vpack.c.bf16 %v1649_v17, %v1633_v48  ;;  %v6907_v46 = vpack.c.bf16 %v1651_v30, %v1635_v23  ;;  %v994_v50 = vpop.f32.mrb[36].mxu0  ;;  %v1107_v51 = vpop.f32.mrb[36].mxu1  ;;  %5407 = vmatprep.subr.bf16.mxu0 %v5858_v15  ;;  %5471 = vmatprep.subr.bf16.mxu1 %v5860_v11 }
 0x23b   :  { %v995_v36 = vadd.f32 %v994_v50, %v6856_v42  ;;  %v1108_v16 = vadd.f32 %v1107_v51, %v6861_v43  ;;  %v996_v39 = vpop.f32.mrb[37].mxu0  ;;  %v1109_v34 = vpop.f32.mrb[37].mxu1 }
 0x23c   :  { %v997_v40 = vadd.f32 %v996_v39, %v6868_v3  ;;  %v1110_v41 = vadd.f32 %v1109_v34, %v6875_v14  ;;  %v998_v56 = vpop.f32.mrb[38].mxu0  ;;  %v1111_v57 = vpop.f32.mrb[38].mxu1 }
 0x23d   :  { %v999_v44 = vadd.f32 %v998_v56, %v6856_v42  ;;  %v1112_v55 = vadd.f32 %v1111_v57, %v6861_v43  ;;  %v1000_v37 = vpop.f32.mrb[39].mxu0  ;;  %v1113_v7 = vpop.f32.mrb[39].mxu1  ;;  %5408 = vmatpush3.bf16.msra.mxu0 %v5859_v28  ;;  %5472 = vmatpush3.bf16.msra.mxu1 %v5861_v33  ;;  %v1664_v62 = vmax.f32 %v995_v36, 0.0  ;;  %v1666_v8 = vmax.f32 %v1108_v16, 0.0 }
 0x23e   :  { %v1001_v61 = vadd.f32 %v1000_v37, %v6868_v3  ;;  %v1114_v0 = vadd.f32 %v1113_v7, %v6875_v14  ;;  %5521 = vmatprep.subr.bf16.mxu0 %v5862_v54  ;;  %5585 = vmatprep.subr.bf16.mxu1 %v5864_v35  ;;  %v1665_v12 = vmax.f32 %v997_v40, 0.0  ;;  %v1667_v21 = vmax.f32 %v1110_v41, 0.0 }
 0x23f   :  { %v1680_v15 = vmax.f32 %v999_v44, 0.0  ;;  %v1682_v11 = vmax.f32 %v1112_v55, 0.0  ;;  %3413 = vmatmul.mubr.bf16.gmra.mrb[144].mxu0 %v6797_v5  ;;  %3510 = vmatmul.mubr.bf16.gmra.mrb[144].mxu1 %v6799_v9 }
 0x240   :  { %v1681_v22 = vmax.f32 %v1001_v61, 0.0  ;;  %v1683_v58 = vmax.f32 %v1114_v0, 0.0  ;;  %3420 = vmatprep.mubr.bf16.mxu0 %v6821_v52  ;;  %3517 = vmatprep.mubr.bf16.mxu1 %v6823_v53 }
 0x241   :  { %v6921_v48 = vpack.c.bf16 %v1680_v15, %v1664_v62  ;;  %v6923_v23 = vpack.c.bf16 %v1682_v11, %v1666_v8 }
 0x242   :  { %v6925_v17 = vpack.c.bf16 %v1681_v22, %v1665_v12  ;;  %v6927_v30 = vpack.c.bf16 %v1683_v58, %v1667_v21  ;;  %v1004_v28 = vpop.f32.mrb[40].mxu0  ;;  %v1117_v5 = vpop.f32.mrb[40].mxu1 }
 0x243   :  { %v1005_v9 = vadd.f32 %v1004_v28, %v6856_v42  ;;  %v1118_v33 = vadd.f32 %v1117_v5, %v6861_v43  ;;  %v1006_v50 = vpop.f32.mrb[41].mxu0  ;;  %v1119_v51 = vpop.f32.mrb[41].mxu1 }
 0x244   :  { %v1007_v52 = vadd.f32 %v1006_v50, %v6868_v3  ;;  %v1120_v53 = vadd.f32 %v1119_v51, %v6875_v14  ;;  %v1008_v54 = vpop.f32.mrb[42].mxu0  ;;  %v1121_v35 = vpop.f32.mrb[42].mxu1 }
 0x245   :  { %v1009_v36 = vadd.f32 %v1008_v54, %v6856_v42  ;;  %v1122_v16 = vadd.f32 %v1121_v35, %v6861_v43  ;;  %v1010_v39 = vpop.f32.mrb[43].mxu0  ;;  %v1123_v34 = vpop.f32.mrb[43].mxu1  ;;  %v1696_v56 = vmax.f32 %v1005_v9, 0.0  ;;  %v1698_v57 = vmax.f32 %v1118_v33, 0.0 }
 0x246   :  { %v1011_v40 = vadd.f32 %v1010_v39, %v6868_v3  ;;  %v1124_v41 = vadd.f32 %v1123_v34, %v6875_v14  ;;  %v1697_v37 = vmax.f32 %v1007_v52, 0.0  ;;  %v1699_v7 = vmax.f32 %v1120_v53, 0.0 }
 0x247   :  { %v1712_v44 = vmax.f32 %v1009_v36, 0.0  ;;  %v1714_v55 = vmax.f32 %v1122_v16, 0.0  ;;  %3421 = vmatmul.mubr.bf16.gmra.mrb[148].mxu0 %v6816_v26  ;;  %3518 = vmatmul.mubr.bf16.gmra.mrb[148].mxu1 %v6818_v27 }
 0x248   :  { %v1713_v61 = vmax.f32 %v1011_v40, 0.0  ;;  %v1715_v0 = vmax.f32 %v1124_v41, 0.0  ;;  %3428 = vmatprep.mubr.bf16.mxu0 %v6844_v31  ;;  %3525 = vmatprep.mubr.bf16.mxu1 %v6846_v32 }
 0x249   :  { %v6941_v62 = vpack.c.bf16 %v1712_v44, %v1696_v56  ;;  %v6943_v8 = vpack.c.bf16 %v1714_v55, %v1698_v57 }
 0x24a   :  { %v6945_v15 = vpack.c.bf16 %v1713_v61, %v1697_v37  ;;  %v6947_v11 = vpack.c.bf16 %v1715_v0, %v1699_v7  ;;  %v1014_v12 = vpop.f32.mrb[44].mxu0  ;;  %v1127_v26 = vpop.f32.mrb[44].mxu1 }
 0x24b   :  { %v1015_v27 = vadd.f32 %v1014_v12, %v6856_v42  ;;  %v1128_v21 = vadd.f32 %v1127_v26, %v6861_v43  ;;  %v1016_v22 = vpop.f32.mrb[45].mxu0  ;;  %v1129_v58 = vpop.f32.mrb[45].mxu1 }
 0x24c   :  { %v1017_v31 = vadd.f32 %v1016_v22, %v6868_v3  ;;  %v1130_v32 = vadd.f32 %v1129_v58, %v6875_v14  ;;  %v1018_v28 = vpop.f32.mrb[46].mxu0  ;;  %v1131_v5 = vpop.f32.mrb[46].mxu1 }
 0x24d   :  { %v1019_v9 = vadd.f32 %v1018_v28, %v6856_v42  ;;  %v1132_v33 = vadd.f32 %v1131_v5, %v6861_v43  ;;  %v1020_v50 = vpop.f32.mrb[47].mxu0  ;;  %v1133_v51 = vpop.f32.mrb[47].mxu1  ;;  %v1728_v54 = vmax.f32 %v1015_v27, 0.0  ;;  %v1730_v35 = vmax.f32 %v1128_v21, 0.0 }
 0x24e   :  { %v1021_v52 = vadd.f32 %v1020_v50, %v6868_v3  ;;  %v1134_v53 = vadd.f32 %v1133_v51, %v6875_v14  ;;  %v1729_v39 = vmax.f32 %v1017_v31, 0.0  ;;  %v1731_v34 = vmax.f32 %v1130_v32, 0.0 }
 0x24f   :  { %v1744_v36 = vmax.f32 %v1019_v9, 0.0  ;;  %v1746_v16 = vmax.f32 %v1132_v33, 0.0  ;;  %3429 = vmatmul.mubr.bf16.gmra.mrb[152].mxu0 %v6839_v24  ;;  %3526 = vmatmul.mubr.bf16.gmra.mrb[152].mxu1 %v6841_v25 }
 0x250   :  { %v1745_v40 = vmax.f32 %v1021_v52, 0.0  ;;  %v1747_v41 = vmax.f32 %v1134_v53, 0.0  ;;  %3436 = vmatprep.mubr.bf16.mxu0 %v6885_v20  ;;  %3533 = vmatprep.mubr.bf16.mxu1 %v6887_v13 }
 0x251   :  { %v6961_v56 = vpack.c.bf16 %v1744_v36, %v1728_v54  ;;  %v6963_v57 = vpack.c.bf16 %v1746_v16, %v1730_v35 }
 0x252   :  { %v6965_v44 = vpack.c.bf16 %v1745_v40, %v1729_v39  ;;  %v6967_v55 = vpack.c.bf16 %v1747_v41, %v1731_v34  ;;  %v1024_v37 = vpop.f32.mrb[48].mxu0  ;;  %v1137_v24 = vpop.f32.mrb[48].mxu1 }
 0x253   :  { %v1025_v25 = vadd.f32 %v1024_v37, %v6856_v42  ;;  %v1138_v7 = vadd.f32 %v1137_v24, %v6861_v43  ;;  %v1026_v61 = vpop.f32.mrb[49].mxu0  ;;  %v1139_v0 = vpop.f32.mrb[49].mxu1 }
 0x254   :  { %v1027_v20 = vadd.f32 %v1026_v61, %v6868_v3  ;;  %v1140_v13 = vadd.f32 %v1139_v0, %v6875_v14  ;;  %v1028_v12 = vpop.f32.mrb[50].mxu0  ;;  %v1141_v26 = vpop.f32.mrb[50].mxu1 }
 0x255   :  { %v1029_v27 = vadd.f32 %v1028_v12, %v6856_v42  ;;  %v1142_v21 = vadd.f32 %v1141_v26, %v6861_v43  ;;  %v1030_v22 = vpop.f32.mrb[51].mxu0  ;;  %v1143_v58 = vpop.f32.mrb[51].mxu1  ;;  %v1760_v28 = vmax.f32 %v1025_v25, 0.0  ;;  %v1762_v5 = vmax.f32 %v1138_v7, 0.0  ;;  %v5863_v25 = vld [vmem:[#allocation17 + $0x200] sm:$0xff]  }
 0x256   :  { %v1031_v31 = vadd.f32 %v1030_v22, %v6868_v3  ;;  %v1144_v32 = vadd.f32 %v1143_v58, %v6875_v14  ;;  %v1761_v50 = vmax.f32 %v1027_v20, 0.0  ;;  %v1763_v51 = vmax.f32 %v1140_v13, 0.0  ;;  %v5865_v13 = vld [vmem:[#allocation17 + $0x280] sm:$0xff]  }
 0x257   :  { %v1776_v9 = vmax.f32 %v1029_v27, 0.0  ;;  %v1778_v33 = vmax.f32 %v1142_v21, 0.0  ;;  %3437 = vmatmul.mubr.bf16.gmra.mrb[156].mxu0 %v6881_v2  ;;  %3534 = vmatmul.mubr.bf16.gmra.mrb[156].mxu1 %v6883_v10  ;;  %v5866_v27 = vld [vmem:[#allocation17 + $0x248] sm:$0xff]  }
 0x258   :  { %v1777_v52 = vmax.f32 %v1031_v31, 0.0  ;;  %v1779_v53 = vmax.f32 %v1144_v32, 0.0  ;;  %3574 = vmatprep.mubr.bf16.mxu0 %v6905_v38  ;;  %3671 = vmatprep.mubr.bf16.mxu1 %v6907_v46  ;;  %v5868_v21 = vld [vmem:[#allocation17 + $0x2c8] sm:$0xff]  }
 0x259   :  { %v6981_v54 = vpack.c.bf16 %v1776_v9, %v1760_v28  ;;  %v6983_v35 = vpack.c.bf16 %v1778_v33, %v1762_v5 }
 0x25a   :  { %v6985_v36 = vpack.c.bf16 %v1777_v52, %v1761_v50  ;;  %v6987_v16 = vpack.c.bf16 %v1779_v53, %v1763_v51  ;;  %v1034_v39 = vpop.f32.mrb[52].mxu0  ;;  %v1147_v2 = vpop.f32.mrb[52].mxu1  ;;  %v5867_v50 = vld [vmem:[#allocation17 + $0x208] sm:$0xff]  }
 0x25b   :  { %v1035_v10 = vadd.f32 %v1034_v39, %v6856_v42  ;;  %v1148_v34 = vadd.f32 %v1147_v2, %v6861_v43  ;;  %v1036_v40 = vpop.f32.mrb[53].mxu0  ;;  %v1149_v41 = vpop.f32.mrb[53].mxu1  ;;  %v5869_v53 = vld [vmem:[#allocation17 + $0x288] sm:$0xff]   ;;  %v5870_v39 = vld [vmem:[#allocation17 + $0x250] sm:$0xff]  }
 0x25c   :  { %v1037_v38 = vadd.f32 %v1036_v40, %v6868_v3  ;;  %v1150_v46 = vadd.f32 %v1149_v41, %v6875_v14  ;;  %v1038_v37 = vpop.f32.mrb[54].mxu0  ;;  %v1151_v24 = vpop.f32.mrb[54].mxu1 }
 0x25d   :  { %v1039_v7 = vadd.f32 %v1038_v37, %v6856_v42  ;;  %v1152_v61 = vadd.f32 %v1151_v24, %v6861_v43  ;;  %v1040_v0 = vpop.f32.mrb[55].mxu0  ;;  %v1153_v20 = vpop.f32.mrb[55].mxu1  ;;  %v1792_v22 = vmax.f32 %v1035_v10, 0.0  ;;  %v1794_v58 = vmax.f32 %v1148_v34, 0.0  ;;  %v5872_v34 = vld [vmem:[#allocation17 + $0x2d0] sm:$0xff]  }
 0x25e   :  { %v1041_v12 = vadd.f32 %v1040_v0, %v6868_v3  ;;  %v1154_v26 = vadd.f32 %v1153_v20, %v6875_v14  ;;  %v1793_v28 = vmax.f32 %v1037_v38, 0.0  ;;  %v1795_v5 = vmax.f32 %v1150_v46, 0.0  ;;  %v5871_v20 = vld [vmem:[#allocation17 + $0x210] sm:$0xff]  }
 0x25f   :  { %v1808_v31 = vmax.f32 %v1039_v7, 0.0  ;;  %v1810_v32 = vmax.f32 %v1152_v61, 0.0  ;;  %3575 = vmatmul.mubr.bf16.vlgmr.msra.gmra.mrb[160].mxu0 %v6901_v4  ;;  %3672 = vmatmul.mubr.bf16.vlgmr.msra.gmra.mrb[160].mxu1 %v6903_v49 }
 0x260   :  { %v1809_v9 = vmax.f32 %v1041_v12, 0.0  ;;  %v1811_v33 = vmax.f32 %v1154_v26, 0.0  ;;  %5522 = vmatpush3.bf16.msra.mxu0 %v5863_v25  ;;  %3582 = vmatprep.mubr.bf16.mxu0 %v6925_v17 }
 0x261   :  { %v7000_v51 = vpack.c.bf16 %v1808_v31, %v1792_v22  ;;  %v7002_v52 = vpack.c.bf16 %v1810_v32, %v1794_v58  ;;  %3679 = vmatprep.mubr.bf16.mxu1 %v6927_v30  ;;  %5586 = vmatpush3.bf16.msra.mxu1 %v5865_v13  ;;  %v5873_v13 = vld [vmem:[#allocation17 + $0x290] sm:$0xff]  }
 0x262   :  { %v7005_v4 = vpack.c.bf16 %v1809_v9, %v1793_v28  ;;  %v7007_v49 = vpack.c.bf16 %v1811_v33, %v1795_v5  ;;  %v1044_v2 = vpop.f32.mrb[56].mxu0  ;;  %v1157_v10 = vpop.f32.mrb[56].mxu1  ;;  %5523 = vmatprep.subr.bf16.mxu0 %v5866_v27  ;;  %5587 = vmatprep.subr.bf16.mxu1 %v5868_v21  ;;  %v5874_v27 = vld [vmem:[#allocation17 + $0x258] sm:$0xff]  }
 0x263   :  { %v1045_v17 = vadd.f32 %v1044_v2, %v6856_v42  ;;  %v1158_v40 = vadd.f32 %v1157_v10, %v6861_v43  ;;  %v1046_v41 = vpop.f32.mrb[57].mxu0  ;;  %v1159_v38 = vpop.f32.mrb[57].mxu1  ;;  %v5876_v21 = vld [vmem:[#allocation17 + $0x2d8] sm:$0xff]  }
 0x264   :  { %v1047_v30 = vadd.f32 %v1046_v41, %v6868_v3  ;;  %v1160_v46 = vadd.f32 %v1159_v38, %v6875_v14  ;;  %v1048_v37 = vpop.f32.mrb[58].mxu0  ;;  %v1161_v24 = vpop.f32.mrb[58].mxu1  ;;  %5524 = vmatpush3.bf16.msra.mxu0 %v5867_v50  ;;  %v5875_v2 = vld [vmem:[#allocation17 + $0x218] sm:$0xff]  }
 0x265   :  { %v1049_v25 = vadd.f32 %v1048_v37, %v6856_v42  ;;  %v1162_v7 = vadd.f32 %v1161_v24, %v6861_v43  ;;  %v1050_v61 = vpop.f32.mrb[59].mxu0  ;;  %v1163_v0 = vpop.f32.mrb[59].mxu1  ;;  %5588 = vmatpush3.bf16.msra.mxu1 %v5869_v53  ;;  %5525 = vmatprep.subr.bf16.mxu0 %v5870_v39  ;;  %v1824_v22 = vmax.f32 %v1045_v17, 0.0  ;;  %v1826_v58 = vmax.f32 %v1158_v40, 0.0  ;;  %v7025_v39 = vld [vmem:[#allocation15 + $0x8] sm:$0xff] }
 0x266   :  { %v1051_v12 = vadd.f32 %v1050_v61, %v6868_v3  ;;  %v1164_v26 = vadd.f32 %v1163_v0, %v6875_v14  ;;  %5589 = vmatprep.subr.bf16.mxu1 %v5872_v34  ;;  %v1825_v28 = vmax.f32 %v1047_v30, 0.0  ;;  %v1827_v5 = vmax.f32 %v1160_v46, 0.0 }
 0x267   :  { %v1840_v31 = vmax.f32 %v1049_v25, 0.0  ;;  %v1842_v32 = vmax.f32 %v1162_v7, 0.0  ;;  %3583 = vmatmul.mubr.bf16.gmra.mrb[164].mxu0 %v6921_v48  ;;  %3680 = vmatmul.mubr.bf16.gmra.mrb[164].mxu1 %v6923_v23  ;;  %v5877_v48 = vld [vmem:[#allocation17 + $0x298] sm:$0xff]   ;;  %v7038_v7 = vrot.slane %v7025_v39, %v421_v63  ;;  %v7043_v61 = vrot.slane %v7025_v39, %v429_v1  ;;  %v5879_v63 = vld [vmem:[#allocation17 + $0x220] sm:$0xff]  }
 0x268   :  { %v1841_v9 = vmax.f32 %v1051_v12, 0.0  ;;  %v1843_v33 = vmax.f32 %v1164_v26, 0.0  ;;  %3590 = vmatprep.mubr.bf16.mxu0 %v6945_v15  ;;  %3687 = vmatprep.mubr.bf16.mxu1 %v6947_v11  ;;  %v5878_v15 = vld [vmem:[#allocation17 + $0x260] sm:$0xff]   ;;  %v7050_v26 = vrot.slane %v7025_v39, %v425_v19 }
 0x269   :  { %v7021_v50 = vpack.c.bf16 %v1840_v31, %v1824_v22  ;;  %v7023_v53 = vpack.c.bf16 %v1842_v32, %v1826_v58  ;;  %5526 = vmatpush3.bf16.msra.mxu0 %v5871_v20  ;;  %5590 = vmatpush3.bf16.msra.mxu1 %v5873_v13  ;;  %v5880_v11 = vld [vmem:[#allocation17 + $0x2e0] sm:$0xff]   ;;  %v5884_v22 = vld [vmem:[#allocation17 + $0x2e8] sm:$0xff]  }
 0x26a   :  { %v7027_v10 = vpack.c.bf16 %v1841_v9, %v1825_v28  ;;  %v7029_v23 = vpack.c.bf16 %v1843_v33, %v1827_v5  ;;  %v1054_v34 = vpop.f32.mrb[60].mxu0  ;;  %v1167_v17 = vpop.f32.mrb[60].mxu1  ;;  %5527 = vmatprep.subr.bf16.mxu0 %v5874_v27  ;;  %5591 = vmatprep.subr.bf16.mxu1 %v5876_v21  ;;  %v5881_v27 = vld [vmem:[#allocation17 + $0x2a0] sm:$0xff]   ;;  %v5883_v33 = vld [vmem:[#allocation17 + $0x228] sm:$0xff]  }
 0x26b   :  { %v1055_v40 = vadd.f32 %v1054_v34, %v6856_v42  ;;  %v1168_v41 = vadd.f32 %v1167_v17, %v6861_v43  ;;  %v1056_v38 = vpop.f32.mrb[61].mxu0  ;;  %v1169_v30 = vpop.f32.mrb[61].mxu1  ;;  %v5886_v17 = vld [vmem:[#allocation17 + $0x270] sm:$0xff]  }
 0x26c   :  { %v1057_v46 = vadd.f32 %v1056_v38, %v6868_v3  ;;  %v1170_v37 = vadd.f32 %v1169_v30, %v6875_v14  ;;  %v1058_v24 = vpop.f32.mrb[62].mxu0  ;;  %v1171_v25 = vpop.f32.mrb[62].mxu1 }
 0x26d   :  { %v1059_v0 = vadd.f32 %v1058_v24, %v6856_v42  ;;  %v1172_v20 = vadd.f32 %v1171_v25, %v6861_v43  ;;  %v1060_v13 = vpop.f32.mrb[63].mxu0  ;;  %v1173_v12 = vpop.f32.mrb[63].mxu1  ;;  %5528 = vmatpush3.bf16.msra.mxu0 %v5875_v2  ;;  %5592 = vmatpush3.bf16.msra.mxu1 %v5877_v48  ;;  %v7057_v42 = vrot.slane %v7025_v39, %v433_v6  ;;  %v5882_v43 = vld [vmem:[#allocation17 + $0x268] sm:$0xff]   ;;  %v1856_v58 = vmax.f32 %v1055_v40, 0.0 }
 0x26e   :  { %v1061_v21 = vadd.f32 %v1060_v13, %v6868_v3  ;;  %v1174_v1 = vadd.f32 %v1173_v12, %v6875_v14  ;;  %5529 = vmatprep.subr.bf16.mxu0 %v5878_v15  ;;  %5593 = vmatprep.subr.bf16.mxu1 %v5880_v11  ;;  %v1858_v19 = vmax.f32 %v1168_v41, 0.0  ;;  %v1857_v3 = vmax.f32 %v1057_v46, 0.0  ;;  %v5885_v2 = vld [vmem:[#allocation17 + $0x2a8] sm:$0xff]   ;;  %v5889_v13 = vld [vmem:[#allocation17 + $0x2b0] sm:$0xff]  }
 0x26f   :  { %v1872_v31 = vmax.f32 %v1059_v0, 0.0  ;;  %v1874_v32 = vmax.f32 %v1172_v20, 0.0  ;;  %3591 = vmatmul.mubr.bf16.gmra.mrb[168].mxu0 %v6941_v62  ;;  %3688 = vmatmul.mubr.bf16.gmra.mrb[168].mxu1 %v6943_v8  ;;  %v1859_v28 = vmax.f32 %v1170_v37, 0.0  ;;  %v5887_v20 = vld [vmem:[#allocation17 + $0x230] sm:$0xff]  }
 0x270   :  { %v1873_v14 = vmax.f32 %v1061_v21, 0.0  ;;  %v1875_v5 = vmax.f32 %v1174_v1, 0.0  ;;  %3598 = vmatprep.mubr.bf16.mxu0 %v6965_v44  ;;  %3695 = vmatprep.mubr.bf16.mxu1 %v6967_v55  ;;  %v5888_v44 = vld [vmem:[#allocation17 + $0x2f0] sm:$0xff]   ;;  %v5892_v21 = vld [vmem:[#allocation17 + $0x2f8] sm:$0xff]  }
 0x271   :  { %v7063_v6 = vpack.c.bf16 %v1872_v31, %v1856_v58  ;;  %v7065_v9 = vpack.c.bf16 %v1874_v32, %v1858_v19  ;;  %5530 = vmatpush3.bf16.msra.mxu0 %v5879_v63  ;;  %5594 = vmatpush3.bf16.msra.mxu1 %v5881_v27  ;;  %v5890_v27 = vld [vmem:[#allocation17 + $0x278] sm:$0xff]  }
 0x272   :  { %v7067_v48 = vpack.c.bf16 %v1873_v14, %v1857_v3  ;;  %v7069_v62 = vpack.c.bf16 %v1875_v5, %v1859_v28  ;;  %v1210_v8 = vpop.f32.mrb[64].mxu0  ;;  %v1323_v34 = vpop.f32.mrb[64].mxu1  ;;  %5531 = vmatprep.subr.bf16.mxu0 %v5882_v43  ;;  %5595 = vmatprep.subr.bf16.mxu1 %v5884_v22  ;;  %v5891_v5 = vld [vmem:[#allocation17 + $0x238] sm:$0xff]  }
 0x273   :  { %v1211_v55 = vadd.f32 %v1210_v8, %v7038_v7  ;;  %v1324_v15 = vadd.f32 %v1323_v34, %v7043_v61  ;;  %v1212_v11 = vpop.f32.mrb[65].mxu0  ;;  %v1325_v40 = vpop.f32.mrb[65].mxu1  ;;  %v5894_v34 = vld [vmem:[#allocation17 + $0x340] sm:$0xff]  }
 0x274   :  { %v1213_v41 = vadd.f32 %v1212_v11, %v7050_v26  ;;  %v1326_v38 = vadd.f32 %v1325_v40, %v7057_v42  ;;  %v1214_v30 = vpop.f32.mrb[66].mxu0  ;;  %v1327_v46 = vpop.f32.mrb[66].mxu1 }
 0x275   :  { %v1215_v37 = vadd.f32 %v1214_v30, %v7038_v7  ;;  %v1328_v24 = vadd.f32 %v1327_v46, %v7043_v61  ;;  %v1216_v25 = vpop.f32.mrb[67].mxu0  ;;  %v1329_v0 = vpop.f32.mrb[67].mxu1  ;;  %5532 = vmatpush3.bf16.msra.mxu0 %v5883_v33  ;;  %5596 = vmatpush3.bf16.msra.mxu1 %v5885_v2  ;;  %v1636_v1 = vmax.f32 %v1211_v55, 0.0  ;;  %v1638_v43 = vmax.f32 %v1324_v15, 0.0  ;;  %v5893_v33 = vld [vmem:[#allocation17 + $0x2b8] sm:$0xff]  }
 0x276   :  { %v1217_v12 = vadd.f32 %v1216_v25, %v7050_v26  ;;  %v1330_v63 = vadd.f32 %v1329_v0, %v7057_v42  ;;  %5533 = vmatprep.subr.bf16.mxu0 %v5886_v17  ;;  %5597 = vmatprep.subr.bf16.mxu1 %v5888_v44  ;;  %v1637_v19 = vmax.f32 %v1213_v41, 0.0  ;;  %v1639_v31 = vmax.f32 %v1326_v38, 0.0 }
 0x277   :  { %v1652_v22 = vmax.f32 %v1215_v37, 0.0  ;;  %v1654_v58 = vmax.f32 %v1328_v24, 0.0  ;;  %3599 = vmatmul.mubr.bf16.gmra.mrb[172].mxu0 %v6961_v56  ;;  %3696 = vmatmul.mubr.bf16.gmra.mrb[172].mxu1 %v6963_v57 }
 0x278   :  { %v1653_v32 = vmax.f32 %v1217_v12, 0.0  ;;  %v1655_v3 = vmax.f32 %v1330_v63, 0.0  ;;  %3606 = vmatprep.mubr.bf16.mxu0 %v6985_v36  ;;  %3703 = vmatprep.mubr.bf16.mxu1 %v6987_v16  ;;  %v5896_v36 = vld [vmem:[#allocation17 + $0x3c0] sm:$0xff]  }
 0x279   :  { %v7083_v28 = vpack.c.bf16 %v1652_v22, %v1636_v1  ;;  %v7085_v14 = vpack.c.bf16 %v1654_v58, %v1638_v43  ;;  %5534 = vmatpush3.bf16.msra.mxu0 %v5887_v20  ;;  %5598 = vmatpush3.bf16.msra.mxu1 %v5889_v13 }
 0x27a   :  { %v7087_v2 = vpack.c.bf16 %v1653_v32, %v1637_v19  ;;  %v7089_v56 = vpack.c.bf16 %v1655_v3, %v1639_v31  ;;  %v1220_v57 = vpop.f32.mrb[68].mxu0  ;;  %v1333_v8 = vpop.f32.mrb[68].mxu1  ;;  %5535 = vmatprep.subr.bf16.mxu0 %v5890_v27  ;;  %5599 = vmatprep.subr.bf16.mxu1 %v5892_v21 }
 0x27b   :  { %v1221_v16 = vadd.f32 %v1220_v57, %v7038_v7  ;;  %v1334_v17 = vadd.f32 %v1333_v8, %v7043_v61  ;;  %v1222_v44 = vpop.f32.mrb[69].mxu0  ;;  %v1335_v55 = vpop.f32.mrb[69].mxu1 }
 0x27c   :  { %v1223_v15 = vadd.f32 %v1222_v44, %v7050_v26  ;;  %v1336_v11 = vadd.f32 %v1335_v55, %v7057_v42  ;;  %v1224_v40 = vpop.f32.mrb[70].mxu0  ;;  %v1337_v41 = vpop.f32.mrb[70].mxu1 }
 0x27d   :  { %v1225_v38 = vadd.f32 %v1224_v40, %v7038_v7  ;;  %v1338_v30 = vadd.f32 %v1337_v41, %v7043_v61  ;;  %v1226_v46 = vpop.f32.mrb[71].mxu0  ;;  %v1339_v37 = vpop.f32.mrb[71].mxu1  ;;  %5536 = vmatpush3.bf16.msra.mxu0 %v5891_v5  ;;  %5600 = vmatpush3.bf16.msra.mxu1 %v5893_v33  ;;  %v1668_v0 = vmax.f32 %v1221_v16, 0.0  ;;  %v1670_v20 = vmax.f32 %v1334_v17, 0.0 }
 0x27e   :  { %v1227_v24 = vadd.f32 %v1226_v46, %v7050_v26  ;;  %v1340_v25 = vadd.f32 %v1339_v37, %v7057_v42  ;;  %5649 = vmatprep.subr.bf16.mxu0 %v5894_v34  ;;  %5713 = vmatprep.subr.bf16.mxu1 %v5896_v36  ;;  %v1669_v63 = vmax.f32 %v1223_v15, 0.0  ;;  %v1671_v27 = vmax.f32 %v1336_v11, 0.0 }
 0x27f   :  { %v1684_v13 = vmax.f32 %v1225_v38, 0.0  ;;  %v1686_v12 = vmax.f32 %v1338_v30, 0.0  ;;  %3607 = vmatmul.mubr.bf16.gmra.mrb[176].mxu0 %v6981_v54  ;;  %3704 = vmatmul.mubr.bf16.gmra.mrb[176].mxu1 %v6983_v35 }
 0x280   :  { %v1685_v21 = vmax.f32 %v1227_v24, 0.0  ;;  %v1687_v1 = vmax.f32 %v1340_v25, 0.0  ;;  %3614 = vmatprep.mubr.bf16.mxu0 %v7005_v4  ;;  %3711 = vmatprep.mubr.bf16.mxu1 %v7007_v49 }
 0x281   :  { %v7103_v43 = vpack.c.bf16 %v1684_v13, %v1668_v0  ;;  %v7105_v22 = vpack.c.bf16 %v1686_v12, %v1670_v20 }
 0x282   :  { %v7107_v58 = vpack.c.bf16 %v1685_v21, %v1669_v63  ;;  %v7109_v19 = vpack.c.bf16 %v1687_v1, %v1671_v27  ;;  %v1230_v31 = vpop.f32.mrb[72].mxu0  ;;  %v1343_v54 = vpop.f32.mrb[72].mxu1 }
 0x283   :  { %v1231_v35 = vadd.f32 %v1230_v31, %v7038_v7  ;;  %v1344_v32 = vadd.f32 %v1343_v54, %v7043_v61  ;;  %v1232_v3 = vpop.f32.mrb[73].mxu0  ;;  %v1345_v5 = vpop.f32.mrb[73].mxu1 }
 0x284   :  { %v1233_v4 = vadd.f32 %v1232_v3, %v7050_v26  ;;  %v1346_v49 = vadd.f32 %v1345_v5, %v7057_v42  ;;  %v1234_v33 = vpop.f32.mrb[74].mxu0  ;;  %v1347_v57 = vpop.f32.mrb[74].mxu1 }
 0x285   :  { %v1235_v8 = vadd.f32 %v1234_v33, %v7038_v7  ;;  %v1348_v34 = vadd.f32 %v1347_v57, %v7043_v61  ;;  %v1236_v36 = vpop.f32.mrb[75].mxu0  ;;  %v1349_v16 = vpop.f32.mrb[75].mxu1  ;;  %v1700_v55 = vmax.f32 %v1231_v35, 0.0  ;;  %v1702_v15 = vmax.f32 %v1344_v32, 0.0 }
 0x286   :  { %v1237_v17 = vadd.f32 %v1236_v36, %v7050_v26  ;;  %v1350_v44 = vadd.f32 %v1349_v16, %v7057_v42  ;;  %v1701_v41 = vmax.f32 %v1233_v4, 0.0  ;;  %v1703_v38 = vmax.f32 %v1346_v49, 0.0 }
 0x287   :  { %v1716_v11 = vmax.f32 %v1235_v8, 0.0  ;;  %v1718_v40 = vmax.f32 %v1348_v34, 0.0  ;;  %3615 = vmatmul.mubr.bf16.gmra.mrb[180].mxu0 %v7000_v51  ;;  %3712 = vmatmul.mubr.bf16.gmra.mrb[180].mxu1 %v7002_v52 }
 0x288   :  { %v1717_v30 = vmax.f32 %v1237_v17, 0.0  ;;  %v1719_v46 = vmax.f32 %v1350_v44, 0.0  ;;  %3622 = vmatprep.mubr.bf16.mxu0 %v7027_v10  ;;  %3719 = vmatprep.mubr.bf16.mxu1 %v7029_v23 }
 0x289   :  { %v7123_v37 = vpack.c.bf16 %v1716_v11, %v1700_v55  ;;  %v7125_v24 = vpack.c.bf16 %v1718_v40, %v1702_v15 }
 0x28a   :  { %v7127_v25 = vpack.c.bf16 %v1717_v30, %v1701_v41  ;;  %v7129_v0 = vpack.c.bf16 %v1719_v46, %v1703_v38  ;;  %v1240_v20 = vpop.f32.mrb[76].mxu0  ;;  %v1353_v51 = vpop.f32.mrb[76].mxu1 }
 0x28b   :  { %v1241_v52 = vadd.f32 %v1240_v20, %v7038_v7  ;;  %v1354_v13 = vadd.f32 %v1353_v51, %v7043_v61  ;;  %v1242_v12 = vpop.f32.mrb[77].mxu0  ;;  %v1355_v63 = vpop.f32.mrb[77].mxu1 }
 0x28c   :  { %v1243_v10 = vadd.f32 %v1242_v12, %v7050_v26  ;;  %v1356_v23 = vadd.f32 %v1355_v63, %v7057_v42  ;;  %v1244_v27 = vpop.f32.mrb[78].mxu0  ;;  %v1357_v21 = vpop.f32.mrb[78].mxu1 }
 0x28d   :  { %v1245_v1 = vadd.f32 %v1244_v27, %v7038_v7  ;;  %v1358_v31 = vadd.f32 %v1357_v21, %v7043_v61  ;;  %v1246_v54 = vpop.f32.mrb[79].mxu0  ;;  %v1359_v35 = vpop.f32.mrb[79].mxu1  ;;  %v1732_v5 = vmax.f32 %v1241_v52, 0.0  ;;  %v1734_v4 = vmax.f32 %v1354_v13, 0.0 }
 0x28e   :  { %v1247_v32 = vadd.f32 %v1246_v54, %v7050_v26  ;;  %v1360_v3 = vadd.f32 %v1359_v35, %v7057_v42  ;;  %v1733_v57 = vmax.f32 %v1243_v10, 0.0  ;;  %v1735_v8 = vmax.f32 %v1356_v23, 0.0 }
 0x28f   :  { %v1748_v49 = vmax.f32 %v1245_v1, 0.0  ;;  %v1750_v33 = vmax.f32 %v1358_v31, 0.0  ;;  %3623 = vmatmul.mubr.bf16.gmra.mrb[184].mxu0 %v7021_v50  ;;  %3720 = vmatmul.mubr.bf16.gmra.mrb[184].mxu1 %v7023_v53 }
 0x290   :  { %v1749_v34 = vmax.f32 %v1247_v32, 0.0  ;;  %v1751_v36 = vmax.f32 %v1360_v3, 0.0  ;;  %3630 = vmatprep.mubr.bf16.mxu0 %v7067_v48  ;;  %3727 = vmatprep.mubr.bf16.mxu1 %v7069_v62 }
 0x291   :  { %v7143_v16 = vpack.c.bf16 %v1748_v49, %v1732_v5  ;;  %v7145_v17 = vpack.c.bf16 %v1750_v33, %v1734_v4 }
 0x292   :  { %v7147_v44 = vpack.c.bf16 %v1749_v34, %v1733_v57  ;;  %v7149_v55 = vpack.c.bf16 %v1751_v36, %v1735_v8  ;;  %v1250_v15 = vpop.f32.mrb[80].mxu0  ;;  %v1363_v50 = vpop.f32.mrb[80].mxu1  ;;  %v5895_v36 = vld [vmem:[#allocation17 + $0x300] sm:$0xff]  }
 0x293   :  { %v1251_v53 = vadd.f32 %v1250_v15, %v7038_v7  ;;  %v1364_v11 = vadd.f32 %v1363_v50, %v7043_v61  ;;  %v1252_v40 = vpop.f32.mrb[81].mxu0  ;;  %v1365_v41 = vpop.f32.mrb[81].mxu1 }
 0x294   :  { %v1253_v48 = vadd.f32 %v1252_v40, %v7050_v26  ;;  %v1366_v62 = vadd.f32 %v1365_v41, %v7057_v42  ;;  %v1254_v38 = vpop.f32.mrb[82].mxu0  ;;  %v1367_v30 = vpop.f32.mrb[82].mxu1  ;;  %v5897_v40 = vld [vmem:[#allocation17 + $0x380] sm:$0xff]  }
 0x295   :  { %v1255_v46 = vadd.f32 %v1254_v38, %v7038_v7  ;;  %v1368_v20 = vadd.f32 %v1367_v30, %v7043_v61  ;;  %v1256_v51 = vpop.f32.mrb[83].mxu0  ;;  %v1369_v52 = vpop.f32.mrb[83].mxu1  ;;  %v1764_v63 = vmax.f32 %v1251_v53, 0.0  ;;  %v1766_v10 = vmax.f32 %v1364_v11, 0.0  ;;  %v5900_v38 = vld [vmem:[#allocation17 + $0x3c8] sm:$0xff]  }
 0x296   :  { %v1257_v13 = vadd.f32 %v1256_v51, %v7050_v26  ;;  %v1370_v12 = vadd.f32 %v1369_v52, %v7057_v42  ;;  %v1765_v21 = vmax.f32 %v1253_v48, 0.0  ;;  %v1767_v1 = vmax.f32 %v1366_v62, 0.0  ;;  %v5898_v62 = vld [vmem:[#allocation17 + $0x348] sm:$0xff]  }
 0x297   :  { %v1780_v23 = vmax.f32 %v1255_v46, 0.0  ;;  %v1782_v27 = vmax.f32 %v1368_v20, 0.0  ;;  %3631 = vmatmul.mubr.bf16.gmra.mrb[188].mxu0 %v7063_v6  ;;  %3728 = vmatmul.mubr.bf16.gmra.mrb[188].mxu1 %v7065_v9 }
 0x298   :  { %v1781_v31 = vmax.f32 %v1257_v13, 0.0  ;;  %v1783_v54 = vmax.f32 %v1370_v12, 0.0  ;;  %3768 = vmatprep.mubr.bf16.mxu0 %v7087_v2  ;;  %3865 = vmatprep.mubr.bf16.mxu1 %v7089_v56 }
 0x299   :  { %v7163_v35 = vpack.c.bf16 %v1780_v23, %v1764_v63  ;;  %v7165_v32 = vpack.c.bf16 %v1782_v27, %v1766_v10  ;;  %v5899_v10 = vld [vmem:[#allocation17 + $0x308] sm:$0xff]  }
 0x29a   :  { %v7167_v3 = vpack.c.bf16 %v1781_v31, %v1765_v21  ;;  %v7169_v5 = vpack.c.bf16 %v1783_v54, %v1767_v1  ;;  %v1260_v4 = vpop.f32.mrb[84].mxu0  ;;  %v1373_v6 = vpop.f32.mrb[84].mxu1  ;;  %v5901_v21 = vld [vmem:[#allocation17 + $0x388] sm:$0xff]   ;;  %v5902_v1 = vld [vmem:[#allocation17 + $0x350] sm:$0xff]  }
 0x29b   :  { %v1261_v9 = vadd.f32 %v1260_v4, %v7038_v7  ;;  %v1374_v49 = vadd.f32 %v1373_v6, %v7043_v61  ;;  %v1262_v33 = vpop.f32.mrb[85].mxu0  ;;  %v1375_v57 = vpop.f32.mrb[85].mxu1  ;;  %v5904_v4 = vld [vmem:[#allocation17 + $0x3d0] sm:$0xff]  }
 0x29c   :  { %v1263_v2 = vadd.f32 %v1262_v33, %v7050_v26  ;;  %v1376_v56 = vadd.f32 %v1375_v57, %v7057_v42  ;;  %v1264_v8 = vpop.f32.mrb[86].mxu0  ;;  %v1377_v34 = vpop.f32.mrb[86].mxu1 }
 0x29d   :  { %v1265_v15 = vadd.f32 %v1264_v8, %v7038_v7  ;;  %v1378_v50 = vadd.f32 %v1377_v34, %v7043_v61  ;;  %v1266_v53 = vpop.f32.mrb[87].mxu0  ;;  %v1379_v11 = vpop.f32.mrb[87].mxu1  ;;  %v1796_v30 = vmax.f32 %v1261_v9, 0.0  ;;  %v1798_v46 = vmax.f32 %v1374_v49, 0.0 }
 0x29e   :  { %v1267_v41 = vadd.f32 %v1266_v53, %v7050_v26  ;;  %v1380_v48 = vadd.f32 %v1379_v11, %v7057_v42  ;;  %v1797_v52 = vmax.f32 %v1263_v2, 0.0  ;;  %v1799_v13 = vmax.f32 %v1376_v56, 0.0 }
 0x29f   :  { %v1812_v20 = vmax.f32 %v1265_v15, 0.0  ;;  %v1814_v51 = vmax.f32 %v1378_v50, 0.0  ;;  %3769 = vmatmul.mubr.bf16.vlgmr.msra.gmra.mrb[192].mxu0 %v7083_v28  ;;  %3866 = vmatmul.mubr.bf16.vlgmr.msra.gmra.mrb[192].mxu1 %v7085_v14  ;;  %v5903_v15 = vld [vmem:[#allocation17 + $0x310] sm:$0xff]  }
 0x2a0   :  { %v1813_v12 = vmax.f32 %v1267_v41, 0.0  ;;  %v1815_v63 = vmax.f32 %v1380_v48, 0.0  ;;  %5650 = vmatpush3.bf16.msra.mxu0 %v5895_v36  ;;  %3776 = vmatprep.mubr.bf16.mxu0 %v7107_v58  ;;  %v5905_v50 = vld [vmem:[#allocation17 + $0x390] sm:$0xff]   ;;  %v5908_v41 = vld [vmem:[#allocation17 + $0x3d8] sm:$0xff]  }
 0x2a1   :  { %v7182_v23 = vpack.c.bf16 %v1812_v20, %v1796_v30  ;;  %v7184_v27 = vpack.c.bf16 %v1814_v51, %v1798_v46  ;;  %3873 = vmatprep.mubr.bf16.mxu1 %v7109_v19  ;;  %5714 = vmatpush3.bf16.msra.mxu1 %v5897_v40  ;;  %v5906_v40 = vld [vmem:[#allocation17 + $0x358] sm:$0xff]  }
 0x2a2   :  { %v7187_v28 = vpack.c.bf16 %v1813_v12, %v1797_v52  ;;  %v7189_v14 = vpack.c.bf16 %v1815_v63, %v1799_v13  ;;  %v1270_v31 = vpop.f32.mrb[88].mxu0  ;;  %v1383_v54 = vpop.f32.mrb[88].mxu1  ;;  %5651 = vmatprep.subr.bf16.mxu0 %v5898_v62  ;;  %5715 = vmatprep.subr.bf16.mxu1 %v5900_v38  ;;  %v5907_v63 = vld [vmem:[#allocation17 + $0x318] sm:$0xff]  }
 0x2a3   :  { %v1271_v58 = vadd.f32 %v1270_v31, %v7038_v7  ;;  %v1384_v6 = vadd.f32 %v1383_v54, %v7043_v61  ;;  %v1272_v9 = vpop.f32.mrb[89].mxu0  ;;  %v1385_v49 = vpop.f32.mrb[89].mxu1  ;;  %v5910_v31 = vld [vmem:[#allocation17 + $0x360] sm:$0xff]  }
 0x2a4   :  { %v1273_v19 = vadd.f32 %v1272_v9, %v7050_v26  ;;  %v1386_v33 = vadd.f32 %v1385_v49, %v7057_v42  ;;  %v1274_v57 = vpop.f32.mrb[90].mxu0  ;;  %v1387_v2 = vpop.f32.mrb[90].mxu1  ;;  %5652 = vmatpush3.bf16.msra.mxu0 %v5899_v10  ;;  %v5909_v10 = vld [vmem:[#allocation17 + $0x398] sm:$0xff]  }
 0x2a5   :  { %v1275_v56 = vadd.f32 %v1274_v57, %v7038_v7  ;;  %v1388_v8 = vadd.f32 %v1387_v2, %v7043_v61  ;;  %v1276_v34 = vpop.f32.mrb[91].mxu0  ;;  %v1389_v36 = vpop.f32.mrb[91].mxu1  ;;  %5716 = vmatpush3.bf16.msra.mxu1 %v5901_v21  ;;  %5653 = vmatprep.subr.bf16.mxu0 %v5902_v1  ;;  %v1828_v48 = vmax.f32 %v1271_v58, 0.0  ;;  %v1830_v62 = vmax.f32 %v1384_v6, 0.0 }
 0x2a6   :  { %v1277_v53 = vadd.f32 %v1276_v34, %v7050_v26  ;;  %v1390_v11 = vadd.f32 %v1389_v36, %v7057_v42  ;;  %5717 = vmatprep.subr.bf16.mxu1 %v5904_v4  ;;  %v1829_v46 = vmax.f32 %v1273_v19, 0.0  ;;  %v1831_v20 = vmax.f32 %v1386_v33, 0.0 }
 0x2a7   :  { %v1844_v38 = vmax.f32 %v1275_v56, 0.0  ;;  %v1846_v30 = vmax.f32 %v1388_v8, 0.0  ;;  %3777 = vmatmul.mubr.bf16.gmra.mrb[196].mxu0 %v7103_v43  ;;  %3874 = vmatmul.mubr.bf16.gmra.mrb[196].mxu1 %v7105_v22  ;;  %v7218_v33 = vrot.slane %v7025_v39, %v437_v59  ;;  %v7223_v57 = vrot.slane %v7025_v39, %v445_v60  ;;  %v5911_v59 = vld [vmem:[#allocation17 + $0x320] sm:$0xff]  }
 0x2a8   :  { %v1845_v51 = vmax.f32 %v1277_v53, 0.0  ;;  %v1847_v52 = vmax.f32 %v1390_v11, 0.0  ;;  %3784 = vmatprep.mubr.bf16.mxu0 %v7127_v25  ;;  %3881 = vmatprep.mubr.bf16.mxu1 %v7129_v0  ;;  %v5912_v25 = vld [vmem:[#allocation17 + $0x3e0] sm:$0xff]   ;;  %v7230_v36 = vrot.slane %v7025_v39, %v441_v29  ;;  %v5916_v53 = vld [vmem:[#allocation17 + $0x3e8] sm:$0xff]  }
 0x2a9   :  { %v7203_v13 = vpack.c.bf16 %v1844_v38, %v1828_v48  ;;  %v7205_v12 = vpack.c.bf16 %v1846_v30, %v1830_v62  ;;  %5654 = vmatpush3.bf16.msra.mxu0 %v5903_v15  ;;  %5718 = vmatpush3.bf16.msra.mxu1 %v5905_v50  ;;  %v5913_v15 = vld [vmem:[#allocation17 + $0x3a0] sm:$0xff]   ;;  %v5917_v38 = vld [vmem:[#allocation17 + $0x3a8] sm:$0xff]  }
 0x2aa   :  { %v7207_v21 = vpack.c.bf16 %v1845_v51, %v1829_v46  ;;  %v7209_v43 = vpack.c.bf16 %v1847_v52, %v1831_v20  ;;  %v1280_v22 = vpop.f32.mrb[92].mxu0  ;;  %v1393_v1 = vpop.f32.mrb[92].mxu1  ;;  %5655 = vmatprep.subr.bf16.mxu0 %v5906_v40  ;;  %5719 = vmatprep.subr.bf16.mxu1 %v5908_v41  ;;  %v5918_v20 = vld [vmem:[#allocation17 + $0x370] sm:$0xff]  }
 0x2ab   :  { %v1281_v0 = vadd.f32 %v1280_v22, %v7038_v7  ;;  %v1394_v54 = vadd.f32 %v1393_v1, %v7043_v61  ;;  %v1282_v4 = vpop.f32.mrb[93].mxu0  ;;  %v1395_v58 = vpop.f32.mrb[93].mxu1 }
 0x2ac   :  { %v1283_v6 = vadd.f32 %v1282_v4, %v7050_v26  ;;  %v1396_v9 = vadd.f32 %v1395_v58, %v7057_v42  ;;  %v1284_v49 = vpop.f32.mrb[94].mxu0  ;;  %v1397_v19 = vpop.f32.mrb[94].mxu1  ;;  %v5919_v58 = vld [vmem:[#allocation17 + $0x330] sm:$0xff]  }
 0x2ad   :  { %v1285_v2 = vadd.f32 %v1284_v49, %v7038_v7  ;;  %v1398_v56 = vadd.f32 %v1397_v19, %v7043_v61  ;;  %v1286_v8 = vpop.f32.mrb[95].mxu0  ;;  %v1399_v34 = vpop.f32.mrb[95].mxu1  ;;  %5656 = vmatpush3.bf16.msra.mxu0 %v5907_v63  ;;  %5720 = vmatpush3.bf16.msra.mxu1 %v5909_v10  ;;  %v7237_v7 = vrot.slane %v7025_v39, %v449_v18  ;;  %v5914_v61 = vld [vmem:[#allocation17 + $0x368] sm:$0xff]   ;;  %v1860_v11 = vmax.f32 %v1281_v0, 0.0  ;;  %v5922_v19 = vld [vmem:[#allocation17 + $0x378] sm:$0xff]  }
 0x2ae   :  { %v1287_v50 = vadd.f32 %v1286_v8, %v7050_v26  ;;  %v1400_v60 = vadd.f32 %v1399_v34, %v7057_v42  ;;  %5657 = vmatprep.subr.bf16.mxu0 %v5910_v31  ;;  %5721 = vmatprep.subr.bf16.mxu1 %v5912_v25  ;;  %v1862_v29 = vmax.f32 %v1394_v54, 0.0  ;;  %v1861_v26 = vmax.f32 %v1283_v6, 0.0  ;;  %v5915_v39 = vld [vmem:[#allocation17 + $0x328] sm:$0xff]   ;;  %v5921_v6 = vld [vmem:[#allocation17 + $0x3b0] sm:$0xff]  }
 0x2af   :  { %v1876_v40 = vmax.f32 %v1285_v2, 0.0  ;;  %v1878_v41 = vmax.f32 %v1398_v56, 0.0  ;;  %3785 = vmatmul.mubr.bf16.gmra.mrb[200].mxu0 %v7123_v37  ;;  %3882 = vmatmul.mubr.bf16.gmra.mrb[200].mxu1 %v7125_v24  ;;  %v1863_v48 = vmax.f32 %v1396_v9, 0.0  ;;  %v5924_v2 = vld [vmem:[#allocation17 + $0x3f8] sm:$0xff]  }
 0x2b0   :  { %v1877_v42 = vmax.f32 %v1287_v50, 0.0  ;;  %v1879_v62 = vmax.f32 %v1400_v60, 0.0  ;;  %3792 = vmatprep.mubr.bf16.mxu0 %v7147_v44  ;;  %3889 = vmatprep.mubr.bf16.mxu1 %v7149_v55  ;;  %v5920_v44 = vld [vmem:[#allocation17 + $0x3f0] sm:$0xff]  }
 0x2b1   :  { %v7243_v47 = vpack.c.bf16 %v1876_v40, %v1860_v11  ;;  %v7245_v18 = vpack.c.bf16 %v1878_v41, %v1862_v29  ;;  %5658 = vmatpush3.bf16.msra.mxu0 %v5911_v59  ;;  %5722 = vmatpush3.bf16.msra.mxu1 %v5913_v15  ;;  %v5923_v29 = vld [vmem:[#allocation17 + $0x338] sm:$0xff]  }
 0x2b2   :  { %v7247_v30 = vpack.c.bf16 %v1877_v42, %v1861_v26  ;;  %v7249_v37 = vpack.c.bf16 %v1879_v62, %v1863_v48  ;;  %v1436_v24 = vpop.f32.mrb[96].mxu0  ;;  %v1549_v46 = vpop.f32.mrb[96].mxu1  ;;  %5659 = vmatprep.subr.bf16.mxu0 %v5914_v61  ;;  %5723 = vmatprep.subr.bf16.mxu1 %v5916_v53  ;;  %v5925_v40 = vld [vmem:[#allocation17 + $0x3b8] sm:$0xff]  }
 0x2b3   :  { %v1437_v55 = vadd.f32 %v1436_v24, %v7218_v33  ;;  %v1550_v51 = vadd.f32 %v1549_v46, %v7223_v57  ;;  %v1438_v52 = vpop.f32.mrb[97].mxu0  ;;  %v1551_v63 = vpop.f32.mrb[97].mxu1 }
 0x2b4   :  { %v1439_v10 = vadd.f32 %v1438_v52, %v7230_v36  ;;  %v1552_v22 = vadd.f32 %v1551_v63, %v7237_v7  ;;  %v1440_v1 = vpop.f32.mrb[98].mxu0  ;;  %v1553_v31 = vpop.f32.mrb[98].mxu1 }
 0x2b5   :  { %v1441_v25 = vadd.f32 %v1440_v1, %v7218_v33  ;;  %v1554_v0 = vadd.f32 %v1553_v31, %v7223_v57  ;;  %v1442_v54 = vpop.f32.mrb[99].mxu0  ;;  %v1555_v4 = vpop.f32.mrb[99].mxu1  ;;  %5660 = vmatpush3.bf16.msra.mxu0 %v5915_v39  ;;  %5724 = vmatpush3.bf16.msra.mxu1 %v5917_v38  ;;  %v1640_v56 = vmax.f32 %v1437_v55, 0.0  ;;  %v1642_v8 = vmax.f32 %v1550_v51, 0.0 }
 0x2b6   :  { %v1443_v9 = vadd.f32 %v1442_v54, %v7230_v36  ;;  %v1556_v49 = vadd.f32 %v1555_v4, %v7237_v7  ;;  %5661 = vmatprep.subr.bf16.mxu0 %v5918_v20  ;;  %5725 = vmatprep.subr.bf16.mxu1 %v5920_v44  ;;  %v1641_v15 = vmax.f32 %v1439_v10, 0.0  ;;  %v1643_v50 = vmax.f32 %v1552_v22, 0.0 }
 0x2b7   :  { %v1656_v34 = vmax.f32 %v1441_v25, 0.0  ;;  %v1658_v59 = vmax.f32 %v1554_v0, 0.0  ;;  %3793 = vmatmul.mubr.bf16.gmra.mrb[204].mxu0 %v7143_v16  ;;  %3890 = vmatmul.mubr.bf16.gmra.mrb[204].mxu1 %v7145_v17 }
 0x2b8   :  { %v1657_v60 = vmax.f32 %v1443_v9, 0.0  ;;  %v1659_v61 = vmax.f32 %v1556_v49, 0.0  ;;  %3800 = vmatprep.mubr.bf16.mxu0 %v7167_v3  ;;  %3897 = vmatprep.mubr.bf16.mxu1 %v7169_v5 }
 0x2b9   :  { %v7263_v53 = vpack.c.bf16 %v1656_v34, %v1640_v56  ;;  %v7265_v11 = vpack.c.bf16 %v1658_v59, %v1642_v8  ;;  %5662 = vmatpush3.bf16.msra.mxu0 %v5919_v58  ;;  %5726 = vmatpush3.bf16.msra.mxu1 %v5921_v6 }
 0x2ba   :  { %v7267_v41 = vpack.c.bf16 %v1657_v60, %v1641_v15  ;;  %v7269_v16 = vpack.c.bf16 %v1659_v61, %v1643_v50  ;;  %v1446_v17 = vpop.f32.mrb[100].mxu0  ;;  %v1559_v26 = vpop.f32.mrb[100].mxu1  ;;  %5663 = vmatprep.subr.bf16.mxu0 %v5922_v19  ;;  %5727 = vmatprep.subr.bf16.mxu1 %v5924_v2 }
 0x2bb   :  { %v1447_v3 = vadd.f32 %v1446_v17, %v7218_v33  ;;  %v1560_v5 = vadd.f32 %v1559_v26, %v7223_v57  ;;  %v1448_v48 = vpop.f32.mrb[101].mxu0  ;;  %v1561_v42 = vpop.f32.mrb[101].mxu1 }
 0x2bc   :  { %v1449_v62 = vadd.f32 %v1448_v48, %v7230_v36  ;;  %v1562_v39 = vadd.f32 %v1561_v42, %v7237_v7  ;;  %v1450_v38 = vpop.f32.mrb[102].mxu0  ;;  %v1563_v24 = vpop.f32.mrb[102].mxu1 }
 0x2bd   :  { %v1451_v46 = vadd.f32 %v1450_v38, %v7218_v33  ;;  %v1564_v20 = vadd.f32 %v1563_v24, %v7223_v57  ;;  %v1452_v44 = vpop.f32.mrb[103].mxu0  ;;  %v1565_v55 = vpop.f32.mrb[103].mxu1  ;;  %5664 = vmatpush3.bf16.msra.mxu0 %v5923_v29  ;;  %5728 = vmatpush3.bf16.msra.mxu1 %v5925_v40  ;;  %v1672_v63 = vmax.f32 %v1447_v3, 0.0  ;;  %v1674_v10 = vmax.f32 %v1560_v5, 0.0 }
 0x2be   :  { %v1453_v51 = vadd.f32 %v1452_v44, %v7230_v36  ;;  %v1566_v52 = vadd.f32 %v1565_v55, %v7237_v7  ;;  %v1673_v31 = vmax.f32 %v1449_v62, 0.0  ;;  %v1675_v25 = vmax.f32 %v1562_v39, 0.0 }
 0x2bf   :  { %v1688_v22 = vmax.f32 %v1451_v46, 0.0  ;;  %v1690_v1 = vmax.f32 %v1564_v20, 0.0  ;;  %3801 = vmatmul.mubr.bf16.gmra.mrb[208].mxu0 %v7163_v35  ;;  %3898 = vmatmul.mubr.bf16.gmra.mrb[208].mxu1 %v7165_v32 }
 0x2c0   :  { %v1689_v0 = vmax.f32 %v1453_v51, 0.0  ;;  %v1691_v54 = vmax.f32 %v1566_v52, 0.0  ;;  %3808 = vmatprep.mubr.bf16.mxu0 %v7187_v28  ;;  %3905 = vmatprep.mubr.bf16.mxu1 %v7189_v14 }
 0x2c1   :  { %v7283_v4 = vpack.c.bf16 %v1688_v22, %v1672_v63  ;;  %v7285_v58 = vpack.c.bf16 %v1690_v1, %v1674_v10 }
 0x2c2   :  { %v7287_v6 = vpack.c.bf16 %v1689_v0, %v1673_v31  ;;  %v7289_v9 = vpack.c.bf16 %v1691_v54, %v1675_v25  ;;  %v1456_v49 = vpop.f32.mrb[104].mxu0  ;;  %v1569_v35 = vpop.f32.mrb[104].mxu1 }
 0x2c3   :  { %v1457_v32 = vadd.f32 %v1456_v49, %v7218_v33  ;;  %v1570_v19 = vadd.f32 %v1569_v35, %v7223_v57  ;;  %v1458_v2 = vpop.f32.mrb[105].mxu0  ;;  %v1571_v56 = vpop.f32.mrb[105].mxu1 }
 0x2c4   :  { %v1459_v28 = vadd.f32 %v1458_v2, %v7230_v36  ;;  %v1572_v14 = vadd.f32 %v1571_v56, %v7237_v7  ;;  %v1460_v8 = vpop.f32.mrb[106].mxu0  ;;  %v1573_v34 = vpop.f32.mrb[106].mxu1 }
 0x2c5   :  { %v1461_v59 = vadd.f32 %v1460_v8, %v7218_v33  ;;  %v1574_v15 = vadd.f32 %v1573_v34, %v7223_v57  ;;  %v1462_v50 = vpop.f32.mrb[107].mxu0  ;;  %v1575_v60 = vpop.f32.mrb[107].mxu1  ;;  %v1704_v40 = vmax.f32 %v1457_v32, 0.0  ;;  %v1706_v17 = vmax.f32 %v1570_v19, 0.0 }
 0x2c6   :  { %v1463_v61 = vadd.f32 %v1462_v50, %v7230_v36  ;;  %v1576_v29 = vadd.f32 %v1575_v60, %v7237_v7  ;;  %v1705_v5 = vmax.f32 %v1459_v28, 0.0  ;;  %v1707_v48 = vmax.f32 %v1572_v14, 0.0 }
 0x2c7   :  { %v1720_v26 = vmax.f32 %v1461_v59, 0.0  ;;  %v1722_v3 = vmax.f32 %v1574_v15, 0.0  ;;  %3809 = vmatmul.mubr.bf16.gmra.mrb[212].mxu0 %v7182_v23  ;;  %3906 = vmatmul.mubr.bf16.gmra.mrb[212].mxu1 %v7184_v27 }
 0x2c8   :  { %v1721_v42 = vmax.f32 %v1463_v61, 0.0  ;;  %v1723_v62 = vmax.f32 %v1576_v29, 0.0  ;;  %3816 = vmatprep.mubr.bf16.mxu0 %v7207_v21  ;;  %3913 = vmatprep.mubr.bf16.mxu1 %v7209_v43 }
 0x2c9   :  { %v7303_v39 = vpack.c.bf16 %v1720_v26, %v1704_v40  ;;  %v7305_v38 = vpack.c.bf16 %v1722_v3, %v1706_v17 }
 0x2ca   :  { %v7307_v24 = vpack.c.bf16 %v1721_v42, %v1705_v5  ;;  %v7309_v46 = vpack.c.bf16 %v1723_v62, %v1707_v48  ;;  %v1466_v20 = vpop.f32.mrb[108].mxu0  ;;  %v1579_v23 = vpop.f32.mrb[108].mxu1 }
 0x2cb   :  { %v1467_v27 = vadd.f32 %v1466_v20, %v7218_v33  ;;  %v1580_v44 = vadd.f32 %v1579_v23, %v7223_v57  ;;  %v1468_v55 = vpop.f32.mrb[109].mxu0  ;;  %v1581_v51 = vpop.f32.mrb[109].mxu1 }
 0x2cc   :  { %v1469_v21 = vadd.f32 %v1468_v55, %v7230_v36  ;;  %v1582_v43 = vadd.f32 %v1581_v51, %v7237_v7  ;;  %v1470_v52 = vpop.f32.mrb[110].mxu0  ;;  %v1583_v63 = vpop.f32.mrb[110].mxu1 }
 0x2cd   :  { %v1471_v10 = vadd.f32 %v1470_v52, %v7218_v33  ;;  %v1584_v22 = vadd.f32 %v1583_v63, %v7223_v57  ;;  %v1472_v1 = vpop.f32.mrb[111].mxu0  ;;  %v1585_v31 = vpop.f32.mrb[111].mxu1  ;;  %v1736_v54 = vmax.f32 %v1467_v27, 0.0  ;;  %v1738_v49 = vmax.f32 %v1580_v44, 0.0 }
 0x2ce   :  { %v1473_v25 = vadd.f32 %v1472_v1, %v7230_v36  ;;  %v1586_v0 = vadd.f32 %v1585_v31, %v7237_v7  ;;  %v1737_v19 = vmax.f32 %v1469_v21, 0.0  ;;  %v1739_v2 = vmax.f32 %v1582_v43, 0.0 }
 0x2cf   :  { %v1752_v35 = vmax.f32 %v1471_v10, 0.0  ;;  %v1754_v32 = vmax.f32 %v1584_v22, 0.0  ;;  %3817 = vmatmul.mubr.bf16.gmra.mrb[216].mxu0 %v7203_v13  ;;  %3914 = vmatmul.mubr.bf16.gmra.mrb[216].mxu1 %v7205_v12 }
 0x2d0   :  { %v1753_v56 = vmax.f32 %v1473_v25, 0.0  ;;  %v1755_v28 = vmax.f32 %v1586_v0, 0.0  ;;  %3824 = vmatprep.mubr.bf16.mxu0 %v7247_v30  ;;  %3921 = vmatprep.mubr.bf16.mxu1 %v7249_v37 }
 0x2d1   :  { %v7323_v14 = vpack.c.bf16 %v1752_v35, %v1736_v54  ;;  %v7325_v8 = vpack.c.bf16 %v1754_v32, %v1738_v49 }
 0x2d2   :  { %v7327_v34 = vpack.c.bf16 %v1753_v56, %v1737_v19  ;;  %v7329_v59 = vpack.c.bf16 %v1755_v28, %v1739_v2  ;;  %v1476_v15 = vpop.f32.mrb[112].mxu0  ;;  %v1589_v13 = vpop.f32.mrb[112].mxu1 }
 0x2d3   :  { %v1477_v12 = vadd.f32 %v1476_v15, %v7218_v33  ;;  %v1590_v50 = vadd.f32 %v1589_v13, %v7223_v57  ;;  %v1478_v60 = vpop.f32.mrb[113].mxu0  ;;  %v1591_v61 = vpop.f32.mrb[113].mxu1 }
 0x2d4   :  { %v1479_v30 = vadd.f32 %v1478_v60, %v7230_v36  ;;  %v1592_v37 = vadd.f32 %v1591_v61, %v7237_v7  ;;  %v1480_v29 = vpop.f32.mrb[114].mxu0  ;;  %v1593_v40 = vpop.f32.mrb[114].mxu1 }
 0x2d5   :  { %v1481_v17 = vadd.f32 %v1480_v29, %v7218_v33  ;;  %v1594_v26 = vadd.f32 %v1593_v40, %v7223_v57  ;;  %v1482_v3 = vpop.f32.mrb[115].mxu0  ;;  %v1595_v5 = vpop.f32.mrb[115].mxu1  ;;  %v1768_v62 = vmax.f32 %v1477_v12, 0.0  ;;  %v1770_v20 = vmax.f32 %v1590_v50, 0.0 }
 0x2d6   :  { %v1483_v48 = vadd.f32 %v1482_v3, %v7230_v36  ;;  %v1596_v42 = vadd.f32 %v1595_v5, %v7237_v7  ;;  %v1769_v44 = vmax.f32 %v1479_v30, 0.0  ;;  %v1771_v55 = vmax.f32 %v1592_v37, 0.0 }
 0x2d7   :  { %v1784_v23 = vmax.f32 %v1481_v17, 0.0  ;;  %v1786_v27 = vmax.f32 %v1594_v26, 0.0  ;;  %3825 = vmatmul.mubr.bf16.gmra.mrb[220].mxu0 %v7243_v47  ;;  %3922 = vmatmul.mubr.bf16.gmra.mrb[220].mxu1 %v7245_v18 }
 0x2d8   :  { %v1785_v51 = vmax.f32 %v1483_v48, 0.0  ;;  %v1787_v21 = vmax.f32 %v1596_v42, 0.0  ;;  %3962 = vmatprep.mubr.bf16.mxu0 %v7267_v41  ;;  %4059 = vmatprep.mubr.bf16.mxu1 %v7269_v16 }
 0x2d9   :  { %v7343_v43 = vpack.c.bf16 %v1784_v23, %v1768_v62  ;;  %v7345_v52 = vpack.c.bf16 %v1786_v27, %v1770_v20 }
 0x2da   :  { %v7347_v63 = vpack.c.bf16 %v1785_v51, %v1769_v44  ;;  %v7349_v10 = vpack.c.bf16 %v1787_v21, %v1771_v55  ;;  %v1486_v22 = vpop.f32.mrb[116].mxu0  ;;  %v1599_v47 = vpop.f32.mrb[116].mxu1 }
 0x2db   :  { %v1487_v18 = vadd.f32 %v1486_v22, %v7218_v33  ;;  %v1600_v1 = vadd.f32 %v1599_v47, %v7223_v57  ;;  %v1488_v31 = vpop.f32.mrb[117].mxu0  ;;  %v1601_v25 = vpop.f32.mrb[117].mxu1 }
 0x2dc   :  { %v1489_v41 = vadd.f32 %v1488_v31, %v7230_v36  ;;  %v1602_v16 = vadd.f32 %v1601_v25, %v7237_v7  ;;  %v1490_v0 = vpop.f32.mrb[118].mxu0  ;;  %v1603_v54 = vpop.f32.mrb[118].mxu1 }
 0x2dd   :  { %v1491_v49 = vadd.f32 %v1490_v0, %v7218_v33  ;;  %v1604_v35 = vadd.f32 %v1603_v54, %v7223_v57  ;;  %v1492_v32 = vpop.f32.mrb[119].mxu0  ;;  %v1605_v19 = vpop.f32.mrb[119].mxu1  ;;  %v1800_v28 = vmax.f32 %v1487_v18, 0.0  ;;  %v1802_v15 = vmax.f32 %v1600_v1, 0.0 }
 0x2de   :  { %v1493_v2 = vadd.f32 %v1492_v32, %v7230_v36  ;;  %v1606_v56 = vadd.f32 %v1605_v19, %v7237_v7  ;;  %v1801_v50 = vmax.f32 %v1489_v41, 0.0  ;;  %v1803_v60 = vmax.f32 %v1602_v16, 0.0 }
 0x2df   :  { %v1816_v13 = vmax.f32 %v1491_v49, 0.0  ;;  %v1818_v12 = vmax.f32 %v1604_v35, 0.0  ;;  %3963 = vmatmul.mubr.bf16.vlgmr.msra.gmra.mrb[224].mxu0 %v7263_v53  ;;  %4060 = vmatmul.mubr.bf16.vlgmr.msra.gmra.mrb[224].mxu1 %v7265_v11 }
 0x2e0   :  { %v1817_v61 = vmax.f32 %v1493_v2, 0.0  ;;  %v1819_v30 = vmax.f32 %v1606_v56, 0.0  ;;  %3970 = vmatprep.mubr.bf16.mxu0 %v7287_v6  ;;  %4067 = vmatprep.mubr.bf16.mxu1 %v7289_v9 }
 0x2e1   :  { %v7363_v37 = vpack.c.bf16 %v1816_v13, %v1800_v28  ;;  %v7365_v29 = vpack.c.bf16 %v1818_v12, %v1802_v15 }
 0x2e2   :  { %v7367_v40 = vpack.c.bf16 %v1817_v61, %v1801_v50  ;;  %v7369_v17 = vpack.c.bf16 %v1819_v30, %v1803_v60  ;;  %v1496_v26 = vpop.f32.mrb[120].mxu0  ;;  %v1609_v53 = vpop.f32.mrb[120].mxu1 }
 0x2e3   :  { %v1497_v11 = vadd.f32 %v1496_v26, %v7218_v33  ;;  %v1610_v3 = vadd.f32 %v1609_v53, %v7223_v57  ;;  %v1498_v5 = vpop.f32.mrb[121].mxu0  ;;  %v1611_v48 = vpop.f32.mrb[121].mxu1 }
 0x2e4   :  { %v1499_v6 = vadd.f32 %v1498_v5, %v7230_v36  ;;  %v1612_v9 = vadd.f32 %v1611_v48, %v7237_v7  ;;  %v1500_v42 = vpop.f32.mrb[122].mxu0  ;;  %v1613_v62 = vpop.f32.mrb[122].mxu1 }
 0x2e5   :  { %v1501_v20 = vadd.f32 %v1500_v42, %v7218_v33  ;;  %v1614_v23 = vadd.f32 %v1613_v62, %v7223_v57  ;;  %v1502_v27 = vpop.f32.mrb[123].mxu0  ;;  %v1615_v44 = vpop.f32.mrb[123].mxu1  ;;  %v1832_v21 = vmax.f32 %v1497_v11, 0.0  ;;  %v1834_v22 = vmax.f32 %v1610_v3, 0.0  ;;  %v7411_v42 = vld [vmem:[#allocation18] ss:$0 sm:$0xff] }
 0x2e6   :  { %v1503_v55 = vadd.f32 %v1502_v27, %v7230_v36  ;;  %v1616_v51 = vadd.f32 %v1615_v44, %v7237_v7  ;;  %v1833_v1 = vmax.f32 %v1499_v6, 0.0  ;;  %v1835_v31 = vmax.f32 %v1612_v9, 0.0 }
 0x2e7   :  { %v1848_v47 = vmax.f32 %v1501_v20, 0.0  ;;  %v1850_v18 = vmax.f32 %v1614_v23, 0.0  ;;  %3971 = vmatmul.mubr.bf16.gmra.mrb[228].mxu0 %v7283_v4  ;;  %4068 = vmatmul.mubr.bf16.gmra.mrb[228].mxu1 %v7285_v58 }
 0x2e8   :  { %v1849_v25 = vmax.f32 %v1503_v55, 0.0  ;;  %v1851_v41 = vmax.f32 %v1616_v51, 0.0  ;;  %3978 = vmatprep.mubr.bf16.mxu0 %v7307_v24  ;;  %4075 = vmatprep.mubr.bf16.mxu1 %v7309_v46 }
 0x2e9   :  { %v7383_v16 = vpack.c.bf16 %v1848_v47, %v1832_v21  ;;  %v7385_v0 = vpack.c.bf16 %v1850_v18, %v1834_v22 }
 0x2ea   :  { %v7387_v54 = vpack.c.bf16 %v1849_v25, %v1833_v1  ;;  %v7389_v49 = vpack.c.bf16 %v1851_v41, %v1835_v31  ;;  %v1506_v35 = vpop.f32.mrb[124].mxu0  ;;  %v1619_v4 = vpop.f32.mrb[124].mxu1 }
 0x2eb   :  { %v1507_v58 = vadd.f32 %v1506_v35, %v7218_v33  ;;  %v1620_v32 = vadd.f32 %v1619_v4, %v7223_v57  ;;  %v1508_v19 = vpop.f32.mrb[125].mxu0  ;;  %v1621_v2 = vpop.f32.mrb[125].mxu1 }
 0x2ec   :  { %v1509_v24 = vadd.f32 %v1508_v19, %v7230_v36  ;;  %v1622_v46 = vadd.f32 %v1621_v2, %v7237_v7  ;;  %v1510_v56 = vpop.f32.mrb[126].mxu0  ;;  %v1623_v28 = vpop.f32.mrb[126].mxu1 }
 0x2ed   :  { %v1511_v15 = vadd.f32 %v1510_v56, %v7218_v33  ;;  %v1624_v13 = vadd.f32 %v1623_v28, %v7223_v57  ;;  %v1512_v12 = vpop.f32.mrb[127].mxu0  ;;  %v1625_v50 = vpop.f32.mrb[127].mxu1  ;;  %v1864_v30 = vmax.f32 %v1507_v58, 0.0  ;;  %v1866_v26 = vmax.f32 %v1620_v32, 0.0 }
 0x2ee   :  { %v1513_v60 = vadd.f32 %v1512_v12, %v7230_v36  ;;  %v1626_v61 = vadd.f32 %v1625_v50, %v7237_v7  ;;  %v1865_v3 = vmax.f32 %v1509_v24, 0.0  ;;  %v1867_v5 = vmax.f32 %v1622_v46, 0.0 }
 0x2ef   :  { %v1880_v53 = vmax.f32 %v1511_v15, 0.0  ;;  %v1882_v11 = vmax.f32 %v1624_v13, 0.0  ;;  %3979 = vmatmul.mubr.bf16.gmra.mrb[232].mxu0 %v7303_v39  ;;  %4076 = vmatmul.mubr.bf16.gmra.mrb[232].mxu1 %v7305_v38 }
 0x2f0   :  { %v1881_v48 = vmax.f32 %v1513_v60, 0.0  ;;  %v1883_v33 = vmax.f32 %v1626_v61, 0.0  ;;  %3986 = vmatprep.mubr.bf16.mxu0 %v7327_v34  ;;  %4083 = vmatprep.mubr.bf16.mxu1 %v7329_v59 }
 0x2f1   :  { %v7403_v57 = vpack.c.bf16 %v1880_v53, %v1864_v30  ;;  %v7405_v36 = vpack.c.bf16 %v1882_v11, %v1866_v26 }
 0x2f2   :  { %v7407_v7 = vpack.c.bf16 %v1881_v48, %v1865_v3  ;;  %v7409_v6 = vpack.c.bf16 %v1883_v33, %v1867_v5  ;;  %v5281_v9 = vpop.f32.mrb[128].mxu0  ;;  %v5345_v39 = vpop.f32.mrb[128].mxu1 }
 0x2f3   :  { %v5282_v38 = vpop.f32.mrb[129].mxu0  ;;  %v5346_v62 = vpop.f32.mrb[129].mxu1 }
 0x2f4   :  { %v5283_v20 = vadd.f32 %v5282_v38, %v5281_v9  ;;  %v5347_v23 = vadd.f32 %v5346_v62, %v5345_v39  ;;  %v5284_v27 = vpop.f32.mrb[130].mxu0  ;;  %v5348_v34 = vpop.f32.mrb[130].mxu1 }
 0x2f5   :  { %v5285_v44 = vpop.f32.mrb[131].mxu0  ;;  %v5349_v59 = vpop.f32.mrb[131].mxu1 }
 0x2f6   :  { %v3383_v55 = vadd.f32 %v5283_v20, %v7411_v42  ;;  %v5286_v51 = vadd.f32 %v5285_v44, %v5284_v27  ;;  %v5350_v21 = vadd.f32 %v5349_v59, %v5348_v34 }
 0x2f7   :  { %3987 = vmatmul.mubr.bf16.gmra.mrb[236].mxu0 %v7323_v14  ;;  %4084 = vmatmul.mubr.bf16.gmra.mrb[236].mxu1 %v7325_v8 }
 0x2f8   :  { %v7416_v22 = vadd.f32 %v5347_v23, %v3383_v55  ;;  %v3386_v47 = vadd.f32 %v5286_v51, %v7411_v42  ;;  %3994 = vmatprep.mubr.bf16.mxu0 %v7347_v63  ;;  %4091 = vmatprep.mubr.bf16.mxu1 %v7349_v10 }
 0x2fa   :  { %v7421_v18 = vadd.f32 %v5350_v21, %v3386_v47  ;;  %v5287_v1 = vpop.f32.mrb[132].mxu0  ;;  %v5351_v31 = vpop.f32.mrb[132].mxu1 }
 0x2fb   :  { %v5288_v25 = vpop.f32.mrb[133].mxu0  ;;  %v5352_v41 = vpop.f32.mrb[133].mxu1 }
 0x2fc   :  { %v5289_v35 = vadd.f32 %v5288_v25, %v5287_v1  ;;  %v5353_v4 = vadd.f32 %v5352_v41, %v5351_v31  ;;  %v5290_v58 = vpop.f32.mrb[134].mxu0  ;;  %v5354_v14 = vpop.f32.mrb[134].mxu1 }
 0x2fd   :  { %v5291_v32 = vpop.f32.mrb[135].mxu0  ;;  %v5355_v8 = vpop.f32.mrb[135].mxu1 }
 0x2fe   :  { %v3391_v19 = vadd.f32 %v5289_v35, %v7411_v42  ;;  %v5292_v2 = vadd.f32 %v5291_v32, %v5290_v58  ;;  %v5356_v24 = vadd.f32 %v5355_v8, %v5354_v14 }
 0x2ff   :  { %3995 = vmatmul.mubr.bf16.gmra.mrb[240].mxu0 %v7343_v43  ;;  %4092 = vmatmul.mubr.bf16.gmra.mrb[240].mxu1 %v7345_v52 }
 0x300   :  { %v7426_v63 = vadd.f32 %v5353_v4, %v3391_v19  ;;  %v3394_v10 = vadd.f32 %v5292_v2, %v7411_v42  ;;  %4002 = vmatprep.mubr.bf16.mxu0 %v7367_v40  ;;  %4099 = vmatprep.mubr.bf16.mxu1 %v7369_v17 }
 0x302   :  { %v7431_v46 = vadd.f32 %v5356_v24, %v3394_v10  ;;  %v5293_v56 = vpop.f32.mrb[136].mxu0  ;;  %v5357_v28 = vpop.f32.mrb[136].mxu1 }
 0x303   :  { %v5294_v15 = vpop.f32.mrb[137].mxu0  ;;  %v5358_v13 = vpop.f32.mrb[137].mxu1 }
 0x304   :  { %v5295_v12 = vadd.f32 %v5294_v15, %v5293_v56  ;;  %v5359_v50 = vadd.f32 %v5358_v13, %v5357_v28  ;;  %v5296_v60 = vpop.f32.mrb[138].mxu0  ;;  %v5360_v43 = vpop.f32.mrb[138].mxu1 }
 0x305   :  { %v5297_v61 = vpop.f32.mrb[139].mxu0  ;;  %v5361_v52 = vpop.f32.mrb[139].mxu1 }
 0x306   :  { %v3399_v30 = vadd.f32 %v5295_v12, %v7411_v42  ;;  %v5298_v26 = vadd.f32 %v5297_v61, %v5296_v60  ;;  %v5362_v53 = vadd.f32 %v5361_v52, %v5360_v43 }
 0x307   :  { %4003 = vmatmul.mubr.bf16.gmra.mrb[244].mxu0 %v7363_v37  ;;  %4100 = vmatmul.mubr.bf16.gmra.mrb[244].mxu1 %v7365_v29 }
 0x308   :  { %v7436_v40 = vadd.f32 %v5359_v50, %v3399_v30  ;;  %v3402_v17 = vadd.f32 %v5298_v26, %v7411_v42  ;;  %4010 = vmatprep.mubr.bf16.mxu0 %v7387_v54  ;;  %4107 = vmatprep.mubr.bf16.mxu1 %v7389_v49 }
 0x30a   :  { %v7441_v11 = vadd.f32 %v5362_v53, %v3402_v17  ;;  %v5299_v3 = vpop.f32.mrb[140].mxu0  ;;  %v5363_v5 = vpop.f32.mrb[140].mxu1 }
 0x30b   :  { %v5300_v48 = vpop.f32.mrb[141].mxu0  ;;  %v5364_v33 = vpop.f32.mrb[141].mxu1 }
 0x30c   :  { %v5301_v9 = vadd.f32 %v5300_v48, %v5299_v3  ;;  %v5365_v39 = vadd.f32 %v5364_v33, %v5363_v5  ;;  %v5302_v38 = vpop.f32.mrb[142].mxu0  ;;  %v5366_v37 = vpop.f32.mrb[142].mxu1 }
 0x30d   :  { %v5303_v62 = vpop.f32.mrb[143].mxu0  ;;  %v5367_v29 = vpop.f32.mrb[143].mxu1 }
 0x30e   :  { %v3407_v20 = vadd.f32 %v5301_v9, %v7411_v42  ;;  %v5304_v23 = vadd.f32 %v5303_v62, %v5302_v38  ;;  %v5368_v27 = vadd.f32 %v5367_v29, %v5366_v37 }
 0x30f   :  { %4011 = vmatmul.mubr.bf16.gmra.mrb[248].mxu0 %v7383_v16  ;;  %4108 = vmatmul.mubr.bf16.gmra.mrb[248].mxu1 %v7385_v0 }
 0x310   :  { %v7446_v54 = vadd.f32 %v5365_v39, %v3407_v20  ;;  %v3410_v49 = vadd.f32 %v5304_v23, %v7411_v42  ;;  %4018 = vmatprep.mubr.bf16.mxu0 %v7407_v7  ;;  %4115 = vmatprep.mubr.bf16.mxu1 %v7409_v6 }
 0x312   :  { %v7451_v34 = vadd.f32 %v5368_v27, %v3410_v49  ;;  %v5305_v44 = vpop.f32.mrb[144].mxu0  ;;  %v5369_v59 = vpop.f32.mrb[144].mxu1 }
 0x313   :  { %v5306_v55 = vpop.f32.mrb[145].mxu0  ;;  %v5370_v51 = vpop.f32.mrb[145].mxu1 }
 0x314   :  { %v5307_v21 = vadd.f32 %v5306_v55, %v5305_v44  ;;  %v5371_v47 = vadd.f32 %v5370_v51, %v5369_v59  ;;  %v5308_v1 = vpop.f32.mrb[146].mxu0  ;;  %v5372_v16 = vpop.f32.mrb[146].mxu1 }
 0x315   :  { %v5309_v31 = vpop.f32.mrb[147].mxu0  ;;  %v5373_v0 = vpop.f32.mrb[147].mxu1 }
 0x316   :  { %v3415_v25 = vadd.f32 %v5307_v21, %v7411_v42  ;;  %v5310_v41 = vadd.f32 %v5309_v31, %v5308_v1  ;;  %v5374_v35 = vadd.f32 %v5373_v0, %v5372_v16 }
 0x317   :  { %4019 = vmatmul.mubr.bf16.gmra.mrb[252].mxu0 %v7403_v57  ;;  %4116 = vmatmul.mubr.bf16.gmra.mrb[252].mxu1 %v7405_v36 }
 0x318   :  { %v7456_v7 = vadd.f32 %v5371_v47, %v3415_v25  ;;  %v3418_v6 = vadd.f32 %v5310_v41, %v7411_v42 }
 0x31a   :  { %v7459_v4 = vadd.f32 %v5374_v35, %v3418_v6  ;;  %v5311_v58 = vpop.f32.mrb[148].mxu0  ;;  %v5375_v14 = vpop.f32.mrb[148].mxu1 }
 0x31b   :  { %v5312_v32 = vpop.f32.mrb[149].mxu0  ;;  %v5376_v8 = vpop.f32.mrb[149].mxu1 }
 0x31c   :  { %v5313_v19 = vadd.f32 %v5312_v32, %v5311_v58  ;;  %v5377_v2 = vadd.f32 %v5376_v8, %v5375_v14  ;;  %v5314_v24 = vpop.f32.mrb[150].mxu0  ;;  %v5378_v10 = vpop.f32.mrb[150].mxu1 }
 0x31d   :  { %v5315_v56 = vpop.f32.mrb[151].mxu0  ;;  %v5379_v28 = vpop.f32.mrb[151].mxu1 }
 0x31e   :  { %v3423_v57 = vadd.f32 %v5313_v19, %v7411_v42  ;;  %v5316_v15 = vadd.f32 %v5315_v56, %v5314_v24  ;;  %v5380_v36 = vadd.f32 %v5379_v28, %v5378_v10 }
 0x320   :  { %v7462_v13 = vadd.f32 %v5377_v2, %v3423_v57  ;;  %v3426_v12 = vadd.f32 %v5316_v15, %v7411_v42 }
 0x322   :  { %v7465_v50 = vadd.f32 %v5380_v36, %v3426_v12  ;;  %v5317_v60 = vpop.f32.mrb[152].mxu0  ;;  %v5381_v43 = vpop.f32.mrb[152].mxu1 }
 0x323   :  { %v5318_v61 = vpop.f32.mrb[153].mxu0  ;;  %v5382_v52 = vpop.f32.mrb[153].mxu1 }
 0x324   :  { %v5319_v30 = vadd.f32 %v5318_v61, %v5317_v60  ;;  %v5383_v26 = vadd.f32 %v5382_v52, %v5381_v43  ;;  %v5320_v53 = vpop.f32.mrb[154].mxu0  ;;  %v5384_v17 = vpop.f32.mrb[154].mxu1 }
 0x325   :  { %v5321_v3 = vpop.f32.mrb[155].mxu0  ;;  %v5385_v5 = vpop.f32.mrb[155].mxu1 }
 0x326   :  { %v3431_v48 = vadd.f32 %v5319_v30, %v7411_v42  ;;  %v5322_v33 = vadd.f32 %v5321_v3, %v5320_v53  ;;  %v5386_v9 = vadd.f32 %v5385_v5, %v5384_v17 }
 0x328   :  { %v7468_v39 = vadd.f32 %v5383_v26, %v3431_v48  ;;  %v3434_v38 = vadd.f32 %v5322_v33, %v7411_v42 }
 0x32a   :  { %v7471_v37 = vadd.f32 %v5386_v9, %v3434_v38  ;;  %v5323_v62 = vpop.f32.mrb[156].mxu0  ;;  %v5387_v29 = vpop.f32.mrb[156].mxu1 }
 0x32b   :  { %v5324_v20 = vpop.f32.mrb[157].mxu0  ;;  %v5388_v23 = vpop.f32.mrb[157].mxu1 }
 0x32c   :  { %v5325_v27 = vadd.f32 %v5324_v20, %v5323_v62  ;;  %v5389_v49 = vadd.f32 %v5388_v23, %v5387_v29  ;;  %v5326_v44 = vpop.f32.mrb[158].mxu0  ;;  %v5390_v59 = vpop.f32.mrb[158].mxu1 }
 0x32d   :  { %v5327_v55 = vpop.f32.mrb[159].mxu0  ;;  %v5391_v51 = vpop.f32.mrb[159].mxu1 }
 0x32e   :  { %v3439_v21 = vadd.f32 %v5325_v27, %v7411_v42  ;;  %v5328_v47 = vadd.f32 %v5327_v55, %v5326_v44  ;;  %v5392_v1 = vadd.f32 %v5391_v51, %v5390_v59 }
 0x330   :  { %v7474_v16 = vadd.f32 %v5389_v49, %v3439_v21  ;;  %v3442_v31 = vadd.f32 %v5328_v47, %v7411_v42 }
 0x332   :  { %v7477_v0 = vadd.f32 %v5392_v1, %v3442_v31  ;;  %v5409_v25 = vpop.f32.mrb[160].mxu0  ;;  %v5473_v41 = vpop.f32.mrb[160].mxu1 }
 0x333   :  { %v5410_v35 = vpop.f32.mrb[161].mxu0  ;;  %v5474_v6 = vpop.f32.mrb[161].mxu1 }
 0x334   :  { %v5411_v58 = vadd.f32 %v5410_v35, %v5409_v25  ;;  %v5475_v14 = vadd.f32 %v5474_v6, %v5473_v41  ;;  %v5412_v32 = vpop.f32.mrb[162].mxu0  ;;  %v5476_v8 = vpop.f32.mrb[162].mxu1 }
 0x335   :  { %v5413_v19 = vpop.f32.mrb[163].mxu0  ;;  %v5477_v2 = vpop.f32.mrb[163].mxu1 }
 0x336   :  { %v3577_v24 = vadd.f32 %v5411_v58, %v7416_v22  ;;  %v5414_v10 = vadd.f32 %v5413_v19, %v5412_v32  ;;  %v5478_v56 = vadd.f32 %v5477_v2, %v5476_v8 }
 0x338   :  { %v7480_v28 = vadd.f32 %v5475_v14, %v3577_v24  ;;  %v3580_v42 = vadd.f32 %v5414_v10, %v7421_v18 }
 0x33a   :  { %v7483_v57 = vadd.f32 %v5478_v56, %v3580_v42  ;;  %v5415_v15 = vpop.f32.mrb[164].mxu0  ;;  %v5479_v36 = vpop.f32.mrb[164].mxu1 }
 0x33b   :  { %v5416_v12 = vpop.f32.mrb[165].mxu0  ;;  %v5480_v60 = vpop.f32.mrb[165].mxu1 }
 0x33c   :  { %v5417_v43 = vadd.f32 %v5416_v12, %v5415_v15  ;;  %v5481_v61 = vadd.f32 %v5480_v60, %v5479_v36  ;;  %v5418_v52 = vpop.f32.mrb[166].mxu0  ;;  %v5482_v30 = vpop.f32.mrb[166].mxu1 }
 0x33d   :  { %v5419_v26 = vpop.f32.mrb[167].mxu0  ;;  %v5483_v53 = vpop.f32.mrb[167].mxu1 }
 0x33e   :  { %v3585_v22 = vadd.f32 %v5417_v43, %v7426_v63  ;;  %v5420_v17 = vadd.f32 %v5419_v26, %v5418_v52  ;;  %v5484_v3 = vadd.f32 %v5483_v53, %v5482_v30 }
 0x340   :  { %v7486_v5 = vadd.f32 %v5481_v61, %v3585_v22  ;;  %v3588_v18 = vadd.f32 %v5420_v17, %v7431_v46 }
 0x342   :  { %v7489_v48 = vadd.f32 %v5484_v3, %v3588_v18  ;;  %v5421_v33 = vpop.f32.mrb[168].mxu0  ;;  %v5485_v9 = vpop.f32.mrb[168].mxu1 }
 0x343   :  { %v5422_v38 = vpop.f32.mrb[169].mxu0  ;;  %v5486_v62 = vpop.f32.mrb[169].mxu1 }
 0x344   :  { %v5423_v29 = vadd.f32 %v5422_v38, %v5421_v33  ;;  %v5487_v20 = vadd.f32 %v5486_v62, %v5485_v9  ;;  %v5424_v23 = vpop.f32.mrb[170].mxu0  ;;  %v5488_v27 = vpop.f32.mrb[170].mxu1 }
 0x345   :  { %v5425_v49 = vpop.f32.mrb[171].mxu0  ;;  %v5489_v44 = vpop.f32.mrb[171].mxu1 }
 0x346   :  { %v3593_v63 = vadd.f32 %v5423_v29, %v7436_v40  ;;  %v5426_v59 = vadd.f32 %v5425_v49, %v5424_v23  ;;  %v5490_v55 = vadd.f32 %v5489_v44, %v5488_v27 }
 0x348   :  { %v7492_v51 = vadd.f32 %v5487_v20, %v3593_v63  ;;  %v3596_v46 = vadd.f32 %v5426_v59, %v7441_v11 }
 0x34a   :  { %v7495_v21 = vadd.f32 %v5490_v55, %v3596_v46  ;;  %v5427_v47 = vpop.f32.mrb[172].mxu0  ;;  %v5491_v1 = vpop.f32.mrb[172].mxu1 }
 0x34b   :  { %v5428_v31 = vpop.f32.mrb[173].mxu0  ;;  %v5492_v25 = vpop.f32.mrb[173].mxu1 }
 0x34c   :  { %v5429_v41 = vadd.f32 %v5428_v31, %v5427_v47  ;;  %v5493_v35 = vadd.f32 %v5492_v25, %v5491_v1  ;;  %v5430_v6 = vpop.f32.mrb[174].mxu0  ;;  %v5494_v58 = vpop.f32.mrb[174].mxu1 }
 0x34d   :  { %v5431_v14 = vpop.f32.mrb[175].mxu0  ;;  %v5495_v32 = vpop.f32.mrb[175].mxu1 }
 0x34e   :  { %v3601_v40 = vadd.f32 %v5429_v41, %v7446_v54  ;;  %v5432_v8 = vadd.f32 %v5431_v14, %v5430_v6  ;;  %v5496_v19 = vadd.f32 %v5495_v32, %v5494_v58 }
 0x350   :  { %v7498_v2 = vadd.f32 %v5493_v35, %v3601_v40  ;;  %v3604_v11 = vadd.f32 %v5432_v8, %v7451_v34 }
 0x352   :  { %v7501_v24 = vadd.f32 %v5496_v19, %v3604_v11  ;;  %v5433_v10 = vpop.f32.mrb[176].mxu0  ;;  %v5497_v56 = vpop.f32.mrb[176].mxu1 }
 0x353   :  { %v5434_v42 = vpop.f32.mrb[177].mxu0  ;;  %v5498_v15 = vpop.f32.mrb[177].mxu1 }
 0x354   :  { %v5435_v36 = vadd.f32 %v5434_v42, %v5433_v10  ;;  %v5499_v12 = vadd.f32 %v5498_v15, %v5497_v56  ;;  %v5436_v60 = vpop.f32.mrb[178].mxu0  ;;  %v5500_v43 = vpop.f32.mrb[178].mxu1 }
 0x355   :  { %v5437_v61 = vpop.f32.mrb[179].mxu0  ;;  %v5501_v52 = vpop.f32.mrb[179].mxu1 }
 0x356   :  { %v3609_v54 = vadd.f32 %v5435_v36, %v7456_v7  ;;  %v5438_v30 = vadd.f32 %v5437_v61, %v5436_v60  ;;  %v5502_v26 = vadd.f32 %v5501_v52, %v5500_v43 }
 0x358   :  { %v7504_v53 = vadd.f32 %v5499_v12, %v3609_v54  ;;  %v3612_v34 = vadd.f32 %v5438_v30, %v7459_v4 }
 0x35a   :  { %v7507_v22 = vadd.f32 %v5502_v26, %v3612_v34  ;;  %v5439_v17 = vpop.f32.mrb[180].mxu0  ;;  %v5503_v3 = vpop.f32.mrb[180].mxu1 }
 0x35b   :  { %v5440_v18 = vpop.f32.mrb[181].mxu0  ;;  %v5504_v33 = vpop.f32.mrb[181].mxu1 }
 0x35c   :  { %v5441_v9 = vadd.f32 %v5440_v18, %v5439_v17  ;;  %v5505_v38 = vadd.f32 %v5504_v33, %v5503_v3  ;;  %v5442_v62 = vpop.f32.mrb[182].mxu0  ;;  %v5506_v29 = vpop.f32.mrb[182].mxu1 }
 0x35d   :  { %v5443_v20 = vpop.f32.mrb[183].mxu0  ;;  %v5507_v23 = vpop.f32.mrb[183].mxu1 }
 0x35e   :  { %v3617_v7 = vadd.f32 %v5441_v9, %v7462_v13  ;;  %v5444_v27 = vadd.f32 %v5443_v20, %v5442_v62  ;;  %v5508_v49 = vadd.f32 %v5507_v23, %v5506_v29 }
 0x360   :  { %v7510_v44 = vadd.f32 %v5505_v38, %v3617_v7  ;;  %v3620_v4 = vadd.f32 %v5444_v27, %v7465_v50 }
 0x362   :  { %v7513_v63 = vadd.f32 %v5508_v49, %v3620_v4  ;;  %v5445_v59 = vpop.f32.mrb[184].mxu0  ;;  %v5509_v55 = vpop.f32.mrb[184].mxu1 }
 0x363   :  { %v5446_v46 = vpop.f32.mrb[185].mxu0  ;;  %v5510_v47 = vpop.f32.mrb[185].mxu1 }
 0x364   :  { %v5447_v1 = vadd.f32 %v5446_v46, %v5445_v59  ;;  %v5511_v31 = vadd.f32 %v5510_v47, %v5509_v55  ;;  %v5448_v25 = vpop.f32.mrb[186].mxu0  ;;  %v5512_v41 = vpop.f32.mrb[186].mxu1 }
 0x365   :  { %v5449_v35 = vpop.f32.mrb[187].mxu0  ;;  %v5513_v6 = vpop.f32.mrb[187].mxu1 }
 0x366   :  { %v3625_v13 = vadd.f32 %v5447_v1, %v7468_v39  ;;  %v5450_v58 = vadd.f32 %v5449_v35, %v5448_v25  ;;  %v5514_v14 = vadd.f32 %v5513_v6, %v5512_v41 }
 0x368   :  { %v7516_v32 = vadd.f32 %v5511_v31, %v3625_v13  ;;  %v3628_v50 = vadd.f32 %v5450_v58, %v7471_v37 }
 0x36a   :  { %v7519_v40 = vadd.f32 %v5514_v14, %v3628_v50  ;;  %v5451_v8 = vpop.f32.mrb[188].mxu0  ;;  %v5515_v19 = vpop.f32.mrb[188].mxu1 }
 0x36b   :  { %v5452_v11 = vpop.f32.mrb[189].mxu0  ;;  %v5516_v10 = vpop.f32.mrb[189].mxu1 }
 0x36c   :  { %v5453_v56 = vadd.f32 %v5452_v11, %v5451_v8  ;;  %v5517_v42 = vadd.f32 %v5516_v10, %v5515_v19  ;;  %v5454_v15 = vpop.f32.mrb[190].mxu0  ;;  %v5518_v36 = vpop.f32.mrb[190].mxu1 }
 0x36d   :  { %v5455_v12 = vpop.f32.mrb[191].mxu0  ;;  %v5519_v60 = vpop.f32.mrb[191].mxu1 }
 0x36e   :  { %v3633_v39 = vadd.f32 %v5453_v56, %v7474_v16  ;;  %v5456_v43 = vadd.f32 %v5455_v12, %v5454_v15  ;;  %v5520_v61 = vadd.f32 %v5519_v60, %v5518_v36 }
 0x370   :  { %v7522_v52 = vadd.f32 %v5517_v42, %v3633_v39  ;;  %v3636_v37 = vadd.f32 %v5456_v43, %v7477_v0 }
 0x372   :  { %v7525_v54 = vadd.f32 %v5520_v61, %v3636_v37  ;;  %v5537_v30 = vpop.f32.mrb[192].mxu0  ;;  %v5601_v26 = vpop.f32.mrb[192].mxu1 }
 0x373   :  { %v5538_v34 = vpop.f32.mrb[193].mxu0  ;;  %v5602_v17 = vpop.f32.mrb[193].mxu1 }
 0x374   :  { %v5539_v3 = vadd.f32 %v5538_v34, %v5537_v30  ;;  %v5603_v18 = vadd.f32 %v5602_v17, %v5601_v26  ;;  %v5540_v33 = vpop.f32.mrb[194].mxu0  ;;  %v5604_v9 = vpop.f32.mrb[194].mxu1 }
 0x375   :  { %v5541_v38 = vpop.f32.mrb[195].mxu0  ;;  %v5605_v62 = vpop.f32.mrb[195].mxu1 }
 0x376   :  { %v3771_v16 = vadd.f32 %v5539_v3, %v7480_v28  ;;  %v5542_v29 = vadd.f32 %v5541_v38, %v5540_v33  ;;  %v5606_v20 = vadd.f32 %v5605_v62, %v5604_v9 }
 0x378   :  { %v7528_v23 = vadd.f32 %v5603_v18, %v3771_v16  ;;  %v3774_v0 = vadd.f32 %v5542_v29, %v7483_v57 }
 0x37a   :  { %v7531_v7 = vadd.f32 %v5606_v20, %v3774_v0  ;;  %v5543_v27 = vpop.f32.mrb[196].mxu0  ;;  %v5607_v49 = vpop.f32.mrb[196].mxu1 }
 0x37b   :  { %v5544_v4 = vpop.f32.mrb[197].mxu0  ;;  %v5608_v59 = vpop.f32.mrb[197].mxu1 }
 0x37c   :  { %v5545_v55 = vadd.f32 %v5544_v4, %v5543_v27  ;;  %v5609_v46 = vadd.f32 %v5608_v59, %v5607_v49  ;;  %v5546_v47 = vpop.f32.mrb[198].mxu0  ;;  %v5610_v1 = vpop.f32.mrb[198].mxu1 }
 0x37d   :  { %v5547_v31 = vpop.f32.mrb[199].mxu0  ;;  %v5611_v25 = vpop.f32.mrb[199].mxu1 }
 0x37e   :  { %v3779_v28 = vadd.f32 %v5545_v55, %v7486_v5  ;;  %v5548_v41 = vadd.f32 %v5547_v31, %v5546_v47  ;;  %v5612_v35 = vadd.f32 %v5611_v25, %v5610_v1 }
 0x380   :  { %v7534_v6 = vadd.f32 %v5609_v46, %v3779_v28  ;;  %v3782_v57 = vadd.f32 %v5548_v41, %v7489_v48 }
 0x382   :  { %v7537_v13 = vadd.f32 %v5612_v35, %v3782_v57  ;;  %v5549_v58 = vpop.f32.mrb[200].mxu0  ;;  %v5613_v14 = vpop.f32.mrb[200].mxu1 }
 0x383   :  { %v5550_v50 = vpop.f32.mrb[201].mxu0  ;;  %v5614_v8 = vpop.f32.mrb[201].mxu1 }
 0x384   :  { %v5551_v19 = vadd.f32 %v5550_v50, %v5549_v58  ;;  %v5615_v11 = vadd.f32 %v5614_v8, %v5613_v14  ;;  %v5552_v10 = vpop.f32.mrb[202].mxu0  ;;  %v5616_v56 = vpop.f32.mrb[202].mxu1 }
 0x385   :  { %v5553_v42 = vpop.f32.mrb[203].mxu0  ;;  %v5617_v15 = vpop.f32.mrb[203].mxu1 }
 0x386   :  { %v3787_v5 = vadd.f32 %v5551_v19, %v7492_v51  ;;  %v5554_v36 = vadd.f32 %v5553_v42, %v5552_v10  ;;  %v5618_v12 = vadd.f32 %v5617_v15, %v5616_v56 }
 0x388   :  { %v7540_v60 = vadd.f32 %v5615_v11, %v3787_v5  ;;  %v3790_v48 = vadd.f32 %v5554_v36, %v7495_v21 }
 0x38a   :  { %v7543_v39 = vadd.f32 %v5618_v12, %v3790_v48  ;;  %v5555_v43 = vpop.f32.mrb[204].mxu0  ;;  %v5619_v61 = vpop.f32.mrb[204].mxu1  ;;  %v6271_v48 = vmov -inf  }
 0x38b   :  { %v5556_v37 = vpop.f32.mrb[205].mxu0  ;;  %v5620_v30 = vpop.f32.mrb[205].mxu1  ;;  %2141 = vst.msk [vmem:[#allocation3] sm:$0xff] %vm2140_vm1, %v6271_v48  ;;  %2142 = vst.msk [vmem:[#allocation3 + $0x8] sm:$0xff] %vm2140_vm1, %v6271_v48 }
 0x38c   :  { %v5557_v26 = vadd.f32 %v5556_v37, %v5555_v43  ;;  %v5621_v34 = vadd.f32 %v5620_v30, %v5619_v61  ;;  %v5558_v17 = vpop.f32.mrb[206].mxu0  ;;  %v5622_v3 = vpop.f32.mrb[206].mxu1  ;;  %2143 = vst.msk [vmem:[#allocation3 + $0x10] sm:$0xff] %vm2140_vm1, %v6271_v48  ;;  %2144 = vst.msk [vmem:[#allocation3 + $0x18] sm:$0xff] %vm2140_vm1, %v6271_v48 }
 0x38d   :  { %v5559_v18 = vpop.f32.mrb[207].mxu0  ;;  %v5623_v33 = vpop.f32.mrb[207].mxu1  ;;  %2145 = vst.msk [vmem:[#allocation3 + $0x20] sm:$0xff] %vm2140_vm1, %v6271_v48  ;;  %2146 = vst.msk [vmem:[#allocation3 + $0x28] sm:$0xff] %vm2140_vm1, %v6271_v48 }
 0x38e   :  { %v3795_v51 = vadd.f32 %v5557_v26, %v7498_v2  ;;  %v5560_v9 = vadd.f32 %v5559_v18, %v5558_v17  ;;  %v5624_v38 = vadd.f32 %v5623_v33, %v5622_v3  ;;  %2147 = vst.msk [vmem:[#allocation3 + $0x30] sm:$0xff] %vm2140_vm1, %v6271_v48  ;;  %2148 = vst.msk [vmem:[#allocation3 + $0x38] sm:$0xff] %vm2140_vm1, %v6271_v48 }
 0x38f   :  { %2149 = vst.msk [vmem:[#allocation3 + $0x40] sm:$0xff] %vm2140_vm1, %v6271_v48  ;;  %2150 = vst.msk [vmem:[#allocation3 + $0x48] sm:$0xff] %vm2140_vm1, %v6271_v48 }
 0x390   :  { %v7546_v62 = vadd.f32 %v5621_v34, %v3795_v51  ;;  %v3798_v21 = vadd.f32 %v5560_v9, %v7501_v24  ;;  %2151 = vst.msk [vmem:[#allocation3 + $0x50] sm:$0xff] %vm2140_vm1, %v6271_v48  ;;  %2152 = vst.msk [vmem:[#allocation3 + $0x58] sm:$0xff] %vm2140_vm1, %v6271_v48 }
 0x391   :  { %2153 = vst.msk [vmem:[#allocation3 + $0x60] sm:$0xff] %vm2140_vm1, %v6271_v48  ;;  %2154 = vst.msk [vmem:[#allocation3 + $0x68] sm:$0xff] %vm2140_vm1, %v6271_v48 }
 0x392   :  { %v7549_v16 = vadd.f32 %v5624_v38, %v3798_v21  ;;  %v5561_v29 = vpop.f32.mrb[208].mxu0  ;;  %v5625_v20 = vpop.f32.mrb[208].mxu1  ;;  %2155 = vst.msk [vmem:[#allocation3 + $0x70] sm:$0xff] %vm2140_vm1, %v6271_v48  ;;  %2156 = vst.msk [vmem:[#allocation3 + $0x78] sm:$0xff] %vm2140_vm1, %v6271_v48 }
 0x393   :  { %v5562_v0 = vpop.f32.mrb[209].mxu0  ;;  %v5626_v27 = vpop.f32.mrb[209].mxu1 }
 0x394   :  { %v5563_v49 = vadd.f32 %v5562_v0, %v5561_v29  ;;  %v5627_v4 = vadd.f32 %v5626_v27, %v5625_v20  ;;  %v5564_v59 = vpop.f32.mrb[210].mxu0  ;;  %v5628_v55 = vpop.f32.mrb[210].mxu1 }
 0x395   :  { %v5565_v46 = vpop.f32.mrb[211].mxu0  ;;  %v5629_v47 = vpop.f32.mrb[211].mxu1 }
 0x396   :  { %v3803_v2 = vadd.f32 %v5563_v49, %v7504_v53  ;;  %v5566_v1 = vadd.f32 %v5565_v46, %v5564_v59  ;;  %v5630_v31 = vadd.f32 %v5629_v47, %v5628_v55 }
 0x398   :  { %v7552_v25 = vadd.f32 %v5627_v4, %v3803_v2  ;;  %v3806_v24 = vadd.f32 %v5566_v1, %v7507_v22 }
 0x39a   :  { %v7555_v28 = vadd.f32 %v5630_v31, %v3806_v24  ;;  %v5567_v41 = vpop.f32.mrb[212].mxu0  ;;  %v5631_v35 = vpop.f32.mrb[212].mxu1 }
 0x39b   :  { %v5568_v57 = vpop.f32.mrb[213].mxu0  ;;  %v5632_v58 = vpop.f32.mrb[213].mxu1 }
 0x39c   :  { %v5569_v14 = vadd.f32 %v5568_v57, %v5567_v41  ;;  %v5633_v50 = vadd.f32 %v5632_v58, %v5631_v35  ;;  %v5570_v8 = vpop.f32.mrb[214].mxu0  ;;  %v5634_v19 = vpop.f32.mrb[214].mxu1 }
 0x39d   :  { %v5571_v11 = vpop.f32.mrb[215].mxu0  ;;  %v5635_v10 = vpop.f32.mrb[215].mxu1 }
 0x39e   :  { %v3811_v53 = vadd.f32 %v5569_v14, %v7510_v44  ;;  %v5572_v56 = vadd.f32 %v5571_v11, %v5570_v8  ;;  %v5636_v42 = vadd.f32 %v5635_v10, %v5634_v19 }
 0x3a0   :  { %v7558_v15 = vadd.f32 %v5633_v50, %v3811_v53  ;;  %v3814_v22 = vadd.f32 %v5572_v56, %v7513_v63 }
 0x3a2   :  { %v7561_v5 = vadd.f32 %v5636_v42, %v3814_v22  ;;  %v5573_v36 = vpop.f32.mrb[216].mxu0  ;;  %v5637_v12 = vpop.f32.mrb[216].mxu1 }
 0x3a3   :  { %v5574_v44 = vpop.f32.mrb[217].mxu0  ;;  %v5638_v63 = vpop.f32.mrb[217].mxu1 }
 0x3a4   :  { %v5575_v43 = vadd.f32 %v5574_v44, %v5573_v36  ;;  %v5639_v61 = vadd.f32 %v5638_v63, %v5637_v12  ;;  %v5576_v37 = vpop.f32.mrb[218].mxu0  ;;  %v5640_v30 = vpop.f32.mrb[218].mxu1 }
 0x3a5   :  { %v5577_v26 = vpop.f32.mrb[219].mxu0  ;;  %v5641_v34 = vpop.f32.mrb[219].mxu1 }
 0x3a6   :  { %v3819_v17 = vadd.f32 %v5575_v43, %v7516_v32  ;;  %v5578_v3 = vadd.f32 %v5577_v26, %v5576_v37  ;;  %v5642_v18 = vadd.f32 %v5641_v34, %v5640_v30 }
 0x3a8   :  { %v7580_v33 = vadd.f32 %v5639_v61, %v3819_v17  ;;  %v3822_v51 = vadd.f32 %v5578_v3, %v7519_v40 }
 0x3aa   :  { %v7583_v9 = vadd.f32 %v5642_v18, %v3822_v51  ;;  %v5579_v38 = vpop.f32.mrb[220].mxu0  ;;  %v5643_v21 = vpop.f32.mrb[220].mxu1 }
 0x3ab   :  { %v5580_v29 = vpop.f32.mrb[221].mxu0  ;;  %v5644_v20 = vpop.f32.mrb[221].mxu1 }
 0x3ac   :  { %v5581_v0 = vadd.f32 %v5580_v29, %v5579_v38  ;;  %v5645_v27 = vadd.f32 %v5644_v20, %v5643_v21  ;;  %v5582_v49 = vpop.f32.mrb[222].mxu0  ;;  %v5646_v4 = vpop.f32.mrb[222].mxu1 }
 0x3ad   :  { %v5583_v59 = vpop.f32.mrb[223].mxu0  ;;  %v5647_v55 = vpop.f32.mrb[223].mxu1 }
 0x3ae   :  { %v3827_v32 = vadd.f32 %v5581_v0, %v7522_v52  ;;  %v5584_v46 = vadd.f32 %v5583_v59, %v5582_v49  ;;  %v5648_v47 = vadd.f32 %v5647_v55, %v5646_v4 }
 0x3b0   :  { %v7586_v2 = vadd.f32 %v5645_v27, %v3827_v32  ;;  %v3830_v40 = vadd.f32 %v5584_v46, %v7525_v54 }
 0x3b2   :  { %v7589_v1 = vadd.f32 %v5648_v47, %v3830_v40  ;;  %v5665_v31 = vpop.f32.mrb[224].mxu0  ;;  %v5729_v24 = vpop.f32.mrb[224].mxu1 }
 0x3b3   :  { %v5666_v41 = vpop.f32.mrb[225].mxu0  ;;  %v5730_v35 = vpop.f32.mrb[225].mxu1 }
 0x3b4   :  { %v5667_v57 = vadd.f32 %v5666_v41, %v5665_v31  ;;  %v5731_v58 = vadd.f32 %v5730_v35, %v5729_v24  ;;  %v5668_v14 = vpop.f32.mrb[226].mxu0  ;;  %v5732_v50 = vpop.f32.mrb[226].mxu1 }
 0x3b5   :  { %v5669_v8 = vpop.f32.mrb[227].mxu0  ;;  %v5733_v19 = vpop.f32.mrb[227].mxu1 }
 0x3b6   :  { %v3965_v52 = vadd.f32 %v5667_v57, %v7528_v23  ;;  %v5670_v11 = vadd.f32 %v5669_v8, %v5668_v14  ;;  %v5734_v10 = vadd.f32 %v5733_v19, %v5732_v50 }
 0x3b8   :  { %v7592_v53 = vadd.f32 %v5731_v58, %v3965_v52  ;;  %v3968_v54 = vadd.f32 %v5670_v11, %v7531_v7 }
 0x3ba   :  { %v7595_v56 = vadd.f32 %v5734_v10, %v3968_v54  ;;  %v5671_v42 = vpop.f32.mrb[228].mxu0  ;;  %v5735_v22 = vpop.f32.mrb[228].mxu1  ;;  %4220 = vmax.xlane.f32.xlu0 %v7592_v53 }
 0x3bb   :  { %v5672_v36 = vpop.f32.mrb[229].mxu0  ;;  %v5736_v12 = vpop.f32.mrb[229].mxu1 }
 0x3bc   :  { %v5221_v48 = vpack.c.bf16 %v7595_v56, %v7592_v53  ;;  %v5673_v44 = vadd.f32 %v5672_v36, %v5671_v42  ;;  %v5737_v63 = vadd.f32 %v5736_v12, %v5735_v22  ;;  %v5674_v23 = vpop.f32.mrb[230].mxu0  ;;  %v5738_v43 = vpop.f32.mrb[230].mxu1  ;;  %4222 = vmax.xlane.f32.xlu1 %v7595_v56  ;;  %v6272_v36 = vmov 0.0  }
 0x3bd   :  { %v5675_v61 = vpop.f32.mrb[231].mxu0  ;;  %v5739_v37 = vpop.f32.mrb[231].mxu1  ;;  %2174 = vst.msk [vmem:[#allocation5 + $0x8] sm:$0xff] %vm2140_vm1, %v6272_v36  ;;  %2157 = vst.msk [vmem:[#allocation4] sm:$0xff] %vm2140_vm1, %v6272_v36 }
 0x3be   :  { %5222 = vst [vmem:[#allocation20] sm:$0xff] %v5221_v48   ;;  %v3973_v7 = vadd.f32 %v5673_v44, %v7534_v6  ;;  %v5676_v30 = vadd.f32 %v5675_v61, %v5674_v23  ;;  %v5740_v26 = vadd.f32 %v5739_v37, %v5738_v43  ;;  %2158 = vst.msk [vmem:[#allocation4 + $0x8] sm:$0xff] %vm2140_vm1, %v6272_v36 }
 0x3bf   :  { %2159 = vst.msk [vmem:[#allocation4 + $0x10] sm:$0xff] %vm2140_vm1, %v6272_v36  ;;  %2160 = vst.msk [vmem:[#allocation4 + $0x18] sm:$0xff] %vm2140_vm1, %v6272_v36 }
 0x3c0   :  { %v7602_v34 = vadd.f32 %v5737_v63, %v3973_v7  ;;  %v3976_v17 = vadd.f32 %v5676_v30, %v7537_v13  ;;  %2161 = vst.msk [vmem:[#allocation4 + $0x20] sm:$0xff] %vm2140_vm1, %v6272_v36  ;;  %2162 = vst.msk [vmem:[#allocation4 + $0x28] sm:$0xff] %vm2140_vm1, %v6272_v36 }
 0x3c1   :  { %2163 = vst.msk [vmem:[#allocation4 + $0x30] sm:$0xff] %vm2140_vm1, %v6272_v36  ;;  %2164 = vst.msk [vmem:[#allocation4 + $0x38] sm:$0xff] %vm2140_vm1, %v6272_v36 }
 0x3c2   :  { %v7605_v3 = vadd.f32 %v5740_v26, %v3976_v17  ;;  %v5677_v18 = vpop.f32.mrb[232].mxu0  ;;  %v5741_v51 = vpop.f32.mrb[232].mxu1  ;;  %4224 = vmax.xlane.f32.xlu0 %v7602_v34  ;;  %2165 = vst.msk [vmem:[#allocation4 + $0x40] sm:$0xff] %vm2140_vm1, %v6272_v36  ;;  %2166 = vst.msk [vmem:[#allocation4 + $0x48] sm:$0xff] %vm2140_vm1, %v6272_v36 }
 0x3c3   :  { %v5678_v38 = vpop.f32.mrb[233].mxu0  ;;  %v5742_v21 = vpop.f32.mrb[233].mxu1  ;;  %2167 = vst.msk [vmem:[#allocation4 + $0x50] sm:$0xff] %vm2140_vm1, %v6272_v36  ;;  %2168 = vst.msk [vmem:[#allocation4 + $0x58] sm:$0xff] %vm2140_vm1, %v6272_v36 }
 0x3c4   :  { %v5226_v29 = vpack.c.bf16 %v7605_v3, %v7602_v34  ;;  %v5679_v20 = vadd.f32 %v5678_v38, %v5677_v18  ;;  %v5743_v0 = vadd.f32 %v5742_v21, %v5741_v51  ;;  %v5680_v6 = vpop.f32.mrb[234].mxu0  ;;  %v5744_v27 = vpop.f32.mrb[234].mxu1  ;;  %2169 = vst.msk [vmem:[#allocation4 + $0x60] sm:$0xff] %vm2140_vm1, %v6272_v36  ;;  %2170 = vst.msk [vmem:[#allocation4 + $0x68] sm:$0xff] %vm2140_vm1, %v6272_v36 }
 0x3c5   :  { %v5681_v49 = vpop.f32.mrb[235].mxu0  ;;  %v5745_v4 = vpop.f32.mrb[235].mxu1  ;;  %2171 = vst.msk [vmem:[#allocation4 + $0x70] sm:$0xff] %vm2140_vm1, %v6272_v36  ;;  %2172 = vst.msk [vmem:[#allocation4 + $0x78] sm:$0xff] %vm2140_vm1, %v6272_v36 }
 0x3c6   :  { %5258 = vst [vmem:[#allocation20 + $0x8] sm:$0xff] %v5226_v29   ;;  %v3981_v13 = vadd.f32 %v5679_v20, %v7540_v60  ;;  %v5682_v59 = vadd.f32 %v5681_v49, %v5680_v6  ;;  %v5746_v55 = vadd.f32 %v5745_v4, %v5744_v27  ;;  %4226 = vmax.xlane.f32.xlu0 %v7605_v3  ;;  %2173 = vst.msk [vmem:[#allocation5] sm:$0xff] %vm2140_vm1, %v6272_v36 }
 0x3c7   :  { %2175 = vst.msk [vmem:[#allocation5 + $0x10] sm:$0xff] %vm2140_vm1, %v6272_v36  ;;  %2176 = vst.msk [vmem:[#allocation5 + $0x18] sm:$0xff] %vm2140_vm1, %v6272_v36 }
 0x3c8   :  { %v7612_v32 = vadd.f32 %v5743_v0, %v3981_v13  ;;  %v3984_v46 = vadd.f32 %v5682_v59, %v7543_v39  ;;  %2177 = vst.msk [vmem:[#allocation5 + $0x20] sm:$0xff] %vm2140_vm1, %v6272_v36  ;;  %2178 = vst.msk [vmem:[#allocation5 + $0x28] sm:$0xff] %vm2140_vm1, %v6272_v36 }
 0x3c9   :  { %2179 = vst.msk [vmem:[#allocation5 + $0x30] sm:$0xff] %vm2140_vm1, %v6272_v36  ;;  %2180 = vst.msk [vmem:[#allocation5 + $0x38] sm:$0xff] %vm2140_vm1, %v6272_v36 }
 0x3ca   :  { %v7615_v47 = vadd.f32 %v5746_v55, %v3984_v46  ;;  %v5683_v40 = vpop.f32.mrb[236].mxu0  ;;  %v5747_v31 = vpop.f32.mrb[236].mxu1  ;;  %4228 = vmax.xlane.f32.xlu1 %v7612_v32  ;;  %2181 = vst.msk [vmem:[#allocation5 + $0x40] sm:$0xff] %vm2140_vm1, %v6272_v36  ;;  %2182 = vst.msk [vmem:[#allocation5 + $0x48] sm:$0xff] %vm2140_vm1, %v6272_v36 }
 0x3cb   :  { %v5684_v24 = vpop.f32.mrb[237].mxu0  ;;  %v5748_v41 = vpop.f32.mrb[237].mxu1  ;;  %2183 = vst.msk [vmem:[#allocation5 + $0x50] sm:$0xff] %vm2140_vm1, %v6272_v36  ;;  %2184 = vst.msk [vmem:[#allocation5 + $0x58] sm:$0xff] %vm2140_vm1, %v6272_v36 }
 0x3cc   :  { %v5231_v35 = vpack.c.bf16 %v7615_v47, %v7612_v32  ;;  %v5685_v60 = vadd.f32 %v5684_v24, %v5683_v40  ;;  %v5749_v57 = vadd.f32 %v5748_v41, %v5747_v31  ;;  %v5686_v58 = vpop.f32.mrb[238].mxu0  ;;  %v5750_v14 = vpop.f32.mrb[238].mxu1  ;;  %4230 = vmax.xlane.f32.xlu0 %v7615_v47  ;;  %2185 = vst.msk [vmem:[#allocation5 + $0x60] sm:$0xff] %vm2140_vm1, %v6272_v36  ;;  %2186 = vst.msk [vmem:[#allocation5 + $0x68] sm:$0xff] %vm2140_vm1, %v6272_v36 }
 0x3cd   :  { %v5687_v50 = vpop.f32.mrb[239].mxu0  ;;  %v5751_v8 = vpop.f32.mrb[239].mxu1  ;;  %2187 = vst.msk [vmem:[#allocation5 + $0x70] sm:$0xff] %vm2140_vm1, %v6272_v36  ;;  %2188 = vst.msk [vmem:[#allocation5 + $0x78] sm:$0xff] %vm2140_vm1, %v6272_v36 }
 0x3ce   :  { %5259 = vst [vmem:[#allocation20 + $0x10] sm:$0xff] %v5231_v35   ;;  %v3989_v39 = vadd.f32 %v5685_v60, %v7546_v62  ;;  %v5688_v19 = vadd.f32 %v5687_v50, %v5686_v58  ;;  %v5752_v52 = vadd.f32 %v5751_v8, %v5750_v14 }
 0x3d0   :  { %v7622_v11 = vadd.f32 %v5749_v57, %v3989_v39  ;;  %v3992_v10 = vadd.f32 %v5688_v19, %v7549_v16 }
 0x3d2   :  { %v7625_v54 = vadd.f32 %v5752_v52, %v3992_v10  ;;  %v5689_v42 = vpop.f32.mrb[240].mxu0  ;;  %v5753_v22 = vpop.f32.mrb[240].mxu1  ;;  %4232 = vmax.xlane.f32.xlu1 %v7622_v11 }
 0x3d3   :  { %v5690_v62 = vpop.f32.mrb[241].mxu0  ;;  %v5754_v16 = vpop.f32.mrb[241].mxu1 }
 0x3d4   :  { %v5236_v12 = vpack.c.bf16 %v7625_v54, %v7622_v11  ;;  %v5691_v48 = vadd.f32 %v5690_v62, %v5689_v42  ;;  %v5755_v44 = vadd.f32 %v5754_v16, %v5753_v22  ;;  %v5692_v63 = vpop.f32.mrb[242].mxu0  ;;  %v5756_v23 = vpop.f32.mrb[242].mxu1  ;;  %4234 = vmax.xlane.f32.xlu0 %v7625_v54 }
 0x3d5   :  { %v5693_v43 = vpop.f32.mrb[243].mxu0  ;;  %v5757_v61 = vpop.f32.mrb[243].mxu1 }
 0x3d6   :  { %5260 = vst [vmem:[#allocation20 + $0x18] sm:$0xff] %v5236_v12   ;;  %v3997_v37 = vadd.f32 %v5691_v48, %v7552_v25  ;;  %v5694_v7 = vadd.f32 %v5693_v43, %v5692_v63  ;;  %v5758_v30 = vadd.f32 %v5757_v61, %v5756_v23 }
 0x3d8   :  { %v7664_v26 = vadd.f32 %v5755_v44, %v3997_v37  ;;  %v4000_v17 = vadd.f32 %v5694_v7, %v7555_v28 }
 0x3da   :  { %v7667_v18 = vadd.f32 %v5758_v30, %v4000_v17  ;;  %v5695_v51 = vpop.f32.mrb[244].mxu0  ;;  %v5759_v38 = vpop.f32.mrb[244].mxu1  ;;  %4236 = vmax.xlane.f32.xlu1 %v7664_v26 }
 0x3db   :  { %v5696_v21 = vpop.f32.mrb[245].mxu0  ;;  %v5760_v29 = vpop.f32.mrb[245].mxu1 }
 0x3dc   :  { %v5241_v20 = vpack.c.bf16 %v7667_v18, %v7664_v26  ;;  %v5697_v0 = vadd.f32 %v5696_v21, %v5695_v51  ;;  %v5761_v6 = vadd.f32 %v5760_v29, %v5759_v38  ;;  %v5698_v25 = vpop.f32.mrb[246].mxu0  ;;  %v5762_v27 = vpop.f32.mrb[246].mxu1  ;;  %4238 = vmax.xlane.f32.xlu0 %v7667_v18  ;;  %v4562_v38 = vld [vmem:[#allocation11 + $0x18] sm:$0xff]  ;;  %v4561_v21 = vld [vmem:[#allocation11 + $0x10] sm:$0xff] }
 0x3dd   :  { %v5699_v49 = vpop.f32.mrb[247].mxu0  ;;  %v5763_v4 = vpop.f32.mrb[247].mxu1 }
 0x3de   :  { %5261 = vst [vmem:[#allocation20 + $0x20] sm:$0xff] %v5241_v20   ;;  %v4005_v28 = vadd.f32 %v5697_v0, %v7558_v15  ;;  %v5700_v13 = vadd.f32 %v5699_v49, %v5698_v25  ;;  %v5764_v59 = vadd.f32 %v5763_v4, %v5762_v27  ;;  %v7705_v29 = vpop.permute.xlu1 %4613  ;;  %v7707_v20 = vld [vmem:[#allocation3] sm:$0xff]  ;;  %v7709_v0 = vld [vmem:[#allocation3 + $0x8] sm:$0xff] }
 0x3df   :  { %v4572_v4 = vld [vmem:[#allocation11 + $0x68] sm:$0xff] }
 0x3e0   :  { %v7674_v55 = vadd.f32 %v5761_v6, %v4005_v28  ;;  %v4008_v46 = vadd.f32 %v5700_v13, %v7561_v5  ;;  %v7727_v28 = vld [vmem:[#allocation3 + $0x10] sm:$0xff] }
 0x3e2   :  { %v7677_v40 = vadd.f32 %v5764_v59, %v4008_v46  ;;  %v5701_v31 = vpop.f32.mrb[248].mxu0  ;;  %v5765_v24 = vpop.f32.mrb[248].mxu1  ;;  %4240 = vmax.xlane.f32.xlu1 %v7674_v55  ;;  %v7732_v46 = vld [vmem:[#allocation3 + $0x18] sm:$0xff] }
 0x3e3   :  { %v5702_v41 = vpop.f32.mrb[249].mxu0  ;;  %v5766_v35 = vpop.f32.mrb[249].mxu1 }
 0x3e4   :  { %v5246_v60 = vpack.c.bf16 %v7677_v40, %v7674_v55  ;;  %v5703_v57 = vadd.f32 %v5702_v41, %v5701_v31  ;;  %v5767_v58 = vadd.f32 %v5766_v35, %v5765_v24  ;;  %v5704_v15 = vpop.f32.mrb[250].mxu0  ;;  %v5768_v14 = vpop.f32.mrb[250].mxu1  ;;  %4242 = vmax.xlane.f32.xlu0 %v7677_v40  ;;  %v7742_v35 = vld [vmem:[#allocation3 + $0x20] sm:$0xff] }
 0x3e5   :  { %v5705_v50 = vpop.f32.mrb[251].mxu0  ;;  %v5769_v8 = vpop.f32.mrb[251].mxu1 }
 0x3e6   :  { %5262 = vst [vmem:[#allocation20 + $0x28] sm:$0xff] %v5246_v60   ;;  %v4013_v5 = vadd.f32 %v5703_v57, %v7580_v33  ;;  %v5706_v39 = vadd.f32 %v5705_v50, %v5704_v15  ;;  %v5770_v19 = vadd.f32 %v5769_v8, %v5768_v14  ;;  %v4570_v60 = vld [vmem:[#allocation11 + $0x58] sm:$0xff] }
 0x3e8   :  { %v7684_v52 = vadd.f32 %v5767_v58, %v4013_v5  ;;  %v4016_v10 = vadd.f32 %v5706_v39, %v7583_v9  ;;  %v7749_v58 = vld [vmem:[#allocation3 + $0x28] sm:$0xff]  ;;  %v7767_v39 = vld [vmem:[#allocation3 + $0x30] sm:$0xff] }
 0x3ea   :  { %v7687_v42 = vadd.f32 %v5770_v19, %v4016_v10  ;;  %v5707_v22 = vpop.f32.mrb[252].mxu0  ;;  %v5771_v36 = vpop.f32.mrb[252].mxu1  ;;  %4244 = vmax.xlane.f32.xlu1 %v7684_v52  ;;  %v7769_v10 = vld [vmem:[#allocation3 + $0x38] sm:$0xff] }
 0x3eb   :  { %v5708_v62 = vpop.f32.mrb[253].mxu0  ;;  %v5772_v16 = vpop.f32.mrb[253].mxu1 }
 0x3ec   :  { %v5251_v12 = vpack.c.bf16 %v7687_v42, %v7684_v52  ;;  %v5709_v48 = vadd.f32 %v5708_v62, %v5707_v22  ;;  %v5773_v44 = vadd.f32 %v5772_v16, %v5771_v36  ;;  %v5710_v33 = vpop.f32.mrb[254].mxu0  ;;  %v5774_v63 = vpop.f32.mrb[254].mxu1  ;;  %4246 = vmax.xlane.f32.xlu0 %v7687_v42  ;;  %v4568_v62 = vld [vmem:[#allocation11 + $0x48] sm:$0xff] }
 0x3ed   :  { %v5711_v23 = vpop.f32.mrb[255].mxu0  ;;  %v5775_v43 = vpop.f32.mrb[255].mxu1 }
 0x3ee   :  { %5263 = vst [vmem:[#allocation20 + $0x30] sm:$0xff] %v5251_v12   ;;  %v4021_v9 = vadd.f32 %v5709_v48, %v7586_v2  ;;  %v5712_v61 = vadd.f32 %v5711_v23, %v5710_v33  ;;  %v5776_v37 = vadd.f32 %v5775_v43, %v5774_v63  ;;  %v7703_v2 = vpop.permute.xlu0 %4610  ;;  %v7787_v48 = vld [vmem:[#allocation3 + $0x40] sm:$0xff]  ;;  %v7789_v33 = vld [vmem:[#allocation3 + $0x48] sm:$0xff]  ;;  %v4566_v43 = vld [vmem:[#allocation11 + $0x38] sm:$0xff] }
 0x3f0   :  { %v7694_v7 = vadd.f32 %v5773_v44, %v4021_v9  ;;  %v4024_v30 = vadd.f32 %v5712_v61, %v7589_v1 }
 0x3f2   :  { %v7697_v17 = vadd.f32 %v5776_v37, %v4024_v30  ;;  %4248 = vmax.xlane.f32.xlu1 %v7694_v7  ;;  %v7807_v37 = vld [vmem:[#allocation3 + $0x50] sm:$0xff] }
 0x3f4   :  { %v5256_v51 = vpack.c.bf16 %v7697_v17, %v7694_v7 }
 0x3f6   :  { %5264 = vst [vmem:[#allocation20 + $0x38] sm:$0xff] %v5256_v51   ;;  %v7809_v51 = vld [vmem:[#allocation3 + $0x58] sm:$0xff] }
 0x402   :  { %4619 = vperm.xlu0 %5796, %v4562_v38  }
 0x403   :  { %4616 = vperm.xlu1 %5797, %v4561_v21  }
 0x421   :  { %4250 = vmax.xlane.f32.xlu0 %v7697_v17 }
 0x447   :  { %v4221_v1 = vpop.xlane.xlu0 %4220 }
 0x448   :  { %v7712_v6 = vmax.f32 %v7707_v20, %v4221_v1  ;;  %v4564_v1 = vld [vmem:[#allocation11 + $0x28] sm:$0xff] }
 0x449   :  { %v4223_v25 = vpop.xlane.xlu1 %4222 }
 0x44a   :  { %4541 = vst.msk [vmem:[#allocation3] sm:$0xff] %vm2140_vm1, %v7712_v6  ;;  %v7719_v49 = vmax.f32 %v7709_v0, %v4223_v25  ;;  %4350 = vperm.xlu1 %5797, %v7712_v6  }
 0x44c   :  { %4542 = vst.msk [vmem:[#allocation3 + $0x8] sm:$0xff] %vm2140_vm1, %v7719_v49  ;;  %4355 = vperm.xlu0 %5796, %v7719_v49  }
 0x44f   :  { %v4225_v13 = vpop.xlane.xlu0 %4224 }
 0x450   :  { %v7730_v59 = vmax.f32 %v7727_v28, %v4225_v13  ;;  %v7857_v13 = vld [vmem:[#allocation3 + $0x78] sm:$0xff] }
 0x452   :  { %4543 = vst.msk [vmem:[#allocation3 + $0x10] sm:$0xff] %vm2140_vm1, %v7730_v59  ;;  %4360 = vperm.xlu1 %5797, %v7730_v59  }
 0x453   :  { %v4227_v24 = vpop.xlane.xlu0 %4226 }
 0x454   :  { %v7740_v41 = vmax.f32 %v7732_v46, %v4227_v24  ;;  %v7827_v24 = vld [vmem:[#allocation3 + $0x60] sm:$0xff] }
 0x455   :  { %8078 = vst [vmem:[#allocation30_spill] sm:$0xff] %v7827_v24 }
 0x456   :  { %4544 = vst.msk [vmem:[#allocation3 + $0x18] sm:$0xff] %vm2140_vm1, %v7740_v41  ;;  %4365 = vperm.xlu1 %5797, %v7740_v41  }
 0x457   :  { %v4229_v57 = vpop.xlane.xlu1 %4228 }
 0x458   :  { %v7752_v15 = vmax.f32 %v7742_v35, %v4229_v57 }
 0x459   :  { %v4231_v14 = vpop.xlane.xlu0 %4230 }
 0x45a   :  { %4545 = vst.msk [vmem:[#allocation3 + $0x20] sm:$0xff] %vm2140_vm1, %v7752_v15  ;;  %v7759_v8 = vmax.f32 %v7749_v58, %v4231_v14  ;;  %4370 = vperm.xlu0 %5796, %v7752_v15   ;;  %v7829_v14 = vld [vmem:[#allocation3 + $0x68] sm:$0xff] }
 0x45c   :  { %4546 = vst.msk [vmem:[#allocation3 + $0x28] sm:$0xff] %vm2140_vm1, %v7759_v8  ;;  %4375 = vperm.xlu1 %5797, %v7759_v8  }
 0x45f   :  { %v4233_v19 = vpop.xlane.xlu1 %4232 }
 0x460   :  { %v7772_v22 = vmax.f32 %v7767_v39, %v4233_v19 }
 0x461   :  { %v4235_v36 = vpop.xlane.xlu0 %4234 }
 0x462   :  { %4547 = vst.msk [vmem:[#allocation3 + $0x30] sm:$0xff] %vm2140_vm1, %v7772_v22  ;;  %v7779_v16 = vmax.f32 %v7769_v10, %v4235_v36  ;;  %4380 = vperm.xlu0 %5796, %v7772_v22  }
 0x464   :  { %4548 = vst.msk [vmem:[#allocation3 + $0x38] sm:$0xff] %vm2140_vm1, %v7779_v16  ;;  %4385 = vperm.xlu1 %5797, %v7779_v16  }
 0x467   :  { %v4237_v44 = vpop.xlane.xlu1 %4236 }
 0x468   :  { %v7792_v63 = vmax.f32 %v7787_v48, %v4237_v44 }
 0x469   :  { %v4239_v23 = vpop.xlane.xlu0 %4238 }
 0x46a   :  { %4549 = vst.msk [vmem:[#allocation3 + $0x40] sm:$0xff] %vm2140_vm1, %v7792_v63  ;;  %v7799_v9 = vmax.f32 %v7789_v33, %v4239_v23  ;;  %4390 = vperm.xlu0 %5796, %v7792_v63  }
 0x46c   :  { %4550 = vst.msk [vmem:[#allocation3 + $0x48] sm:$0xff] %vm2140_vm1, %v7799_v9  ;;  %4395 = vperm.xlu1 %5797, %v7799_v9  }
 0x46f   :  { %v4241_v30 = vpop.xlane.xlu1 %4240 }
 0x470   :  { %v7812_v38 = vmax.f32 %v7807_v37, %v4241_v30 }
 0x471   :  { %v4243_v21 = vpop.xlane.xlu0 %4242 }
 0x472   :  { %4551 = vst.msk [vmem:[#allocation3 + $0x50] sm:$0xff] %vm2140_vm1, %v7812_v38  ;;  %v7819_v25 = vmax.f32 %v7809_v51, %v4243_v21  ;;  %4400 = vperm.xlu0 %5796, %v7812_v38   ;;  %v7847_v21 = vld [vmem:[#allocation3 + $0x70] sm:$0xff] }
 0x473   :  { %8080 = vst [vmem:[#allocation32_spill] sm:$0xff] %v7847_v21 }
 0x474   :  { %4552 = vst.msk [vmem:[#allocation3 + $0x58] sm:$0xff] %vm2140_vm1, %v7819_v25  ;;  %4405 = vperm.xlu1 %5797, %v7819_v25  }
 0x477   :  { %v4245_v57 = vpop.xlane.xlu1 %4244 }
 0x478   :  { %v7832_v19 = vmax.f32 %v7827_v24, %v4245_v57 }
 0x479   :  { %v4247_v36 = vpop.xlane.xlu0 %4246 }
 0x47a   :  { %8079 = vst [vmem:[#allocation31_spill] sm:$0xff] %v7832_v19  ;;  %4553 = vst.msk [vmem:[#allocation3 + $0x60] sm:$0xff] %vm2140_vm1, %v7832_v19  ;;  %v7839_v23 = vmax.f32 %v7829_v14, %v4247_v36  ;;  %4410 = vperm.xlu0 %5796, %v7832_v19  }
 0x47c   :  { %4554 = vst.msk [vmem:[#allocation3 + $0x68] sm:$0xff] %vm2140_vm1, %v7839_v23  ;;  %4415 = vperm.xlu1 %5797, %v7839_v23  }
 0x47f   :  { %v4249_v57 = vpop.xlane.xlu1 %4248 }
 0x480   :  { %v7850_v44 = vmax.f32 %v7847_v21, %v4249_v57  ;;  %v4574_v57 = vld [vmem:[#allocation11 + $0x78] sm:$0xff] }
 0x481   :  { %v4620_v30 = vpop.permute.xlu0 %4619 }
 0x482   :  { %8081 = vst [vmem:[#allocation33_spill] sm:$0xff] %v7850_v44  ;;  %4555 = vst.msk [vmem:[#allocation3 + $0x70] sm:$0xff] %vm2140_vm1, %v7850_v44  ;;  %4420 = vperm.xlu0 %5796, %v7850_v44  }
 0x486   :  { %4625 = vperm.xlu0 %5796, %v4564_v1   ;;  %v4569_v1 = vld [vmem:[#allocation11 + $0x50] sm:$0xff] }
 0x48a   :  { %4631 = vperm.xlu0 %5796, %v4566_v43  }
 0x48e   :  { %4637 = vperm.xlu0 %5796, %v4568_v62   ;;  %v4565_v62 = vld [vmem:[#allocation11 + $0x30] sm:$0xff] }
 0x492   :  { %4643 = vperm.xlu0 %5796, %v4570_v60   ;;  %v4563_v60 = vld [vmem:[#allocation11 + $0x20] sm:$0xff] }
 0x496   :  { %4649 = vperm.xlu0 %5796, %v4572_v4   ;;  %v7868_v4 = vand.u32 127, %v183_v45  ;;  %v4571_v45 = vld [vmem:[#allocation11 + $0x60] sm:$0xff] }
 0x498   :  { %vm4658_vm2 = vcmp.eq.s32.totalorder %v7868_v4, %v7705_v29  ;;  %vm4660_vm3 = vcmp.eq.s32.totalorder %v7868_v4, %v4620_v30  ;;  %v4617_v29 = vpop.permute.xlu1 %4616  ;;  %vm4657_vm4 = vcmp.eq.s32.totalorder %v7868_v4, %v7703_v2 }
 0x499   :  { %v4674_v43 = vsel %vm4658_vm2, %v7595_v56, 0.0  ;;  %v4673_v30 = vsel %vm4657_vm4, %v7592_v53, 0.0  ;;  %vm4659_vm5 = vcmp.eq.s32.totalorder %v7868_v4, %v4617_v29 }
 0x49a   :  { %4655 = vperm.xlu0 %5796, %v4574_v57   ;;  %v4676_v57 = vsel %vm4660_vm3, %v7605_v3, 0.0 }
 0x4ae   :  { %v4251_v36 = vpop.xlane.xlu0 %4250 }
 0x4af   :  { %v7860_v61 = vmax.f32 %v7857_v13, %v4251_v36  ;;  %v4567_v36 = vld [vmem:[#allocation11 + $0x40] sm:$0xff] }
 0x4b1   :  { %4556 = vst.msk [vmem:[#allocation3 + $0x78] sm:$0xff] %vm2140_vm1, %v7860_v61  ;;  %4425 = vperm.xlu1 %5797, %v7860_v61  }
 0x4b5   :  { %4622 = vperm.xlu1 %5797, %v4563_v60   ;;  %v4573_v60 = vld [vmem:[#allocation11 + $0x70] sm:$0xff] }
 0x4b9   :  { %4691 = vadd.xlane.f32.xlu0 %v4674_v43  ;;  %4628 = vperm.xlu1 %5797, %v4565_v62   ;;  %v4675_v43 = vsel %vm4659_vm5, %v7602_v34, 0.0 }
 0x4bd   :  { %4695 = vadd.xlane.f32.xlu0 %v4676_v57  ;;  %4634 = vperm.xlu1 %5797, %v4567_v36  }
 0x4c1   :  { %4640 = vperm.xlu1 %5797, %v4569_v1  }
 0x4c5   :  { %4646 = vperm.xlu1 %5797, %v4571_v45  }
 0x4c9   :  { %4652 = vperm.xlu1 %5797, %v4573_v60   ;;  %v4351_v57 = vpop.permute.xlu1 %4350 }
 0x4ca   :  { %v4428_v5 = vsub.f32 %v7592_v53, %v4351_v57 }
 0x4cb   :  { %v7875_v12 = vpop.permute.xlu0 %4355 }
 0x4cc   :  { %v4444_v50 = vmul.f32 1.442695, %v4428_v5 }
 0x4ce   :  { %5926 = vpow2.f32 %v4444_v50 }
 0x4d1   :  { %v4361_v60 = vpop.permute.xlu1 %4360 }
 0x4d2   :  { %v4430_v29 = vsub.f32 %v7602_v34, %v4361_v60 }
 0x4d4   :  { %v4448_v27 = vmul.f32 1.442695, %v4430_v29 }
 0x4d6   :  { %5928 = vpow2.f32 %v4448_v27 }
 0x4d9   :  { %v4371_v62 = vpop.permute.xlu0 %4370 }
 0x4e1   :  { %v7882_v36 = vpop.permute.xlu0 %4380 }
 0x4e9   :  { %v7884_v1 = vpop.permute.xlu0 %4390 }
 0x4ed   :  { %4689 = vadd.xlane.f32.xlu1 %v4673_v30  ;;  %v4366_v30 = vpop.permute.xlu1 %4365 }
 0x4f1   :  { %4693 = vadd.xlane.f32.xlu1 %v4675_v43  ;;  %v7886_v45 = vpop.permute.xlu0 %4400  ;;  %v4432_v43 = vsub.f32 %v7612_v32, %v4371_v62  ;;  %v4376_v21 = vpop.permute.xlu1 %4375 }
 0x4f2   :  { %v4433_v5 = vsub.f32 %v7615_v47, %v4376_v21 }
 0x4f3   :  { %v4452_v53 = vmul.f32 1.442695, %v4432_v43 }
 0x4f4   :  { %v4454_v62 = vmul.f32 1.442695, %v4433_v5 }
 0x4f5   :  { %v4386_v34 = vpop.permute.xlu1 %4385  ;;  %5930 = vpow2.f32 %v4452_v53 }
 0x4f6   :  { %v4435_v60 = vsub.f32 %v7625_v54, %v4386_v34  ;;  %5932 = vpow2.f32 %v4454_v62 }
 0x4f9   :  { %v7889_v2 = vpop.permute.xlu0 %4410  ;;  %v4396_v29 = vpop.permute.xlu1 %4395 }
 0x4fa   :  { %v4437_v27 = vsub.f32 %v7667_v18, %v4396_v29 }
 0x4fc   :  { %v4462_v21 = vmul.f32 1.442695, %v4437_v27 }
 0x4fd   :  { %v4406_v43 = vpop.permute.xlu1 %4405 }
 0x501   :  { %v7892_v31 = vpop.permute.xlu0 %4420  ;;  %v4416_v24 = vpop.permute.xlu1 %4415 }
 0x505   :  { %v4626_v44 = vpop.permute.xlu0 %4625 }
 0x506   :  { %vm4662_vm6 = vcmp.eq.s32.totalorder %v7868_v4, %v4626_v44  ;;  %v5927_v44 = vpop.eup %5926 }
 0x507   :  { %v4678_v19 = vsel %vm4662_vm6, %v7615_v47, 0.0  ;;  %v5929_v47 = vpop.eup %5928 }
 0x508   :  { %4699 = vadd.xlane.f32.xlu0 %v4678_v19  ;;  %v4458_v19 = vmul.f32 1.442695, %v4435_v60 }
 0x509   :  { %v4632_v57 = vpop.permute.xlu0 %4631 }
 0x50a   :  { %vm4664_vm7 = vcmp.eq.s32.totalorder %v7868_v4, %v4632_v57  ;;  %5934 = vpow2.f32 %v4458_v19  ;;  %v4439_v57 = vsub.f32 %v7677_v40, %v4406_v43  ;;  %v4429_v19 = vsub.f32 %v7595_v56, %v7875_v12 }
 0x50b   :  { %v4680_v50 = vsel %vm4664_vm7, %v7625_v54, 0.0  ;;  %5936 = vpow2.f32 %v4462_v21  ;;  %v4441_v54 = vsub.f32 %v7687_v42, %v4416_v24  ;;  %v4431_v43 = vsub.f32 %v7605_v3, %v4366_v30 }
 0x50c   :  { %4703 = vadd.xlane.f32.xlu0 %v4680_v50  ;;  %v5931_v50 = vpop.eup %5930  ;;  %v4466_v53 = vmul.f32 1.442695, %v4439_v57  ;;  %v4446_v27 = vmul.f32 1.442695, %v4429_v19  ;;  %v4436_v12 = vsub.f32 %v7664_v26, %v7884_v1  ;;  %v4440_v1 = vsub.f32 %v7684_v52, %v7889_v2 }
 0x50d   :  { %v5933_v5 = vpop.eup %5932  ;;  %v4470_v34 = vmul.f32 1.442695, %v4441_v54  ;;  %v4638_v24 = vpop.permute.xlu0 %4637 }
 0x50e   :  { %5938 = vpow2.f32 %v4466_v53  ;;  %v4434_v53 = vsub.f32 %v7622_v11, %v7882_v36  ;;  %v4460_v36 = vmul.f32 1.442695, %v4436_v12  ;;  %vm4666_vm10 = vcmp.eq.s32.totalorder %v7868_v4, %v4638_v24 }
 0x50f   :  { %5940 = vpow2.f32 %v4470_v34 }
 0x510   :  { %4476 = vadd.xlane.f32.xlu0 %v5927_v44  ;;  %5942 = vpow2.f32 %v4446_v27  ;;  %v4456_v3 = vmul.f32 1.442695, %v4434_v53  ;;  %v4682_v27 = vsel %vm4666_vm10, %v7667_v18, 0.0  ;;  %v4596_v18 = vld [vmem:[#allocation5 + $0x18] sm:$0xff] }
 0x514   :  { %4480 = vadd.xlane.f32.xlu0 %v5929_v47  ;;  %v5935_v62 = vpop.eup %5934 }
 0x515   :  { %v5937_v60 = vpop.eup %5936 }
 0x518   :  { %4484 = vadd.xlane.f32.xlu0 %v5931_v50  ;;  %v5939_v29 = vpop.eup %5938  ;;  %v4450_v50 = vmul.f32 1.442695, %v4431_v43  ;;  %v4468_v43 = vmul.f32 1.442695, %v4440_v1  ;;  %v4595_v1 = vld [vmem:[#allocation5 + $0x10] sm:$0xff] }
 0x519   :  { %v5941_v44 = vpop.eup %5940 }
 0x51c   :  { %4486 = vadd.xlane.f32.xlu0 %v5933_v5  ;;  %v4644_v5 = vpop.permute.xlu0 %4643 }
 0x51d   :  { %vm4668_vm11 = vcmp.eq.s32.totalorder %v7868_v4, %v4644_v5 }
 0x51e   :  { %v4684_v24 = vsel %vm4668_vm11, %v7677_v40, 0.0 }
 0x520   :  { %4490 = vadd.xlane.f32.xlu0 %v5935_v62  ;;  %v4438_v62 = vsub.f32 %v7674_v55, %v7886_v45  ;;  %v4442_v45 = vsub.f32 %v7694_v7, %v7892_v31 }
 0x524   :  { %4494 = vadd.xlane.f32.xlu0 %v5937_v60  ;;  %v4650_v60 = vpop.permute.xlu0 %4649 }
 0x525   :  { %vm4670_vm12 = vcmp.eq.s32.totalorder %v7868_v4, %v4650_v60 }
 0x526   :  { %v4686_v5 = vsel %vm4670_vm12, %v7687_v42, 0.0 }
 0x528   :  { %4498 = vadd.xlane.f32.xlu0 %v5939_v29  ;;  %v5943_v29 = vpop.eup %5942 }
 0x52c   :  { %4502 = vadd.xlane.f32.xlu0 %v5941_v44  ;;  %v4464_v44 = vmul.f32 1.442695, %v4438_v62 }
 0x530   :  { %v4426_v47 = vpop.permute.xlu1 %4425 }
 0x531   :  { %v4443_v21 = vsub.f32 %v7697_v17, %v4426_v47  ;;  %v4594_v47 = vld [vmem:[#allocation5 + $0x8] sm:$0xff] }
 0x533   :  { %v4474_v57 = vmul.f32 1.442695, %v4443_v21 }
 0x534   :  { %v4623_v54 = vpop.permute.xlu1 %4622 }
 0x535   :  { %5944 = vpow2.f32 %v4474_v57  ;;  %vm4661_vm8 = vcmp.eq.s32.totalorder %v7868_v4, %v4623_v54 }
 0x536   :  { %v4677_v56 = vsel %vm4661_vm8, %v7612_v32, 0.0  ;;  %5946 = vpow2.f32 %v4450_v50  ;;  %v4472_v50 = vmul.f32 1.442695, %v4442_v45 }
 0x537   :  { %4697 = vadd.xlane.f32.xlu1 %v4677_v56  ;;  %5948 = vpow2.f32 %v4456_v3 }
 0x538   :  { %v4629_v30 = vpop.permute.xlu1 %4628  ;;  %5950 = vpow2.f32 %v4460_v36 }
 0x539   :  { %vm4663_vm9 = vcmp.eq.s32.totalorder %v7868_v4, %v4629_v30  ;;  %5952 = vpow2.f32 %v4464_v44 }
 0x53a   :  { %v4679_v34 = vsel %vm4663_vm9, %v7622_v11, 0.0  ;;  %v4656_v11 = vpop.permute.xlu0 %4655  ;;  %5954 = vpow2.f32 %v4468_v43 }
 0x53b   :  { %4701 = vadd.xlane.f32.xlu1 %v4679_v34  ;;  %5956 = vpow2.f32 %v4472_v50  ;;  %vm4672_vm13 = vcmp.eq.s32.totalorder %v7868_v4, %v4656_v11 }
 0x53c   :  { %v4635_v56 = vpop.permute.xlu1 %4634  ;;  %v4688_v3 = vsel %vm4672_vm13, %v7697_v17, 0.0 }
 0x53d   :  { %vm4665_vm14 = vcmp.eq.s32.totalorder %v7868_v4, %v4635_v56 }
 0x53e   :  { %v4681_v36 = vsel %vm4665_vm14, %v7664_v26, 0.0 }
 0x53f   :  { %v5945_v32 = vpop.eup %5944  ;;  %4478 = vadd.xlane.f32.xlu1 %v5943_v29 }
 0x540   :  { %4506 = vadd.xlane.f32.xlu0 %v5945_v32  ;;  %v5947_v19 = vpop.eup %5946  ;;  %v4641_v30 = vpop.permute.xlu1 %4640  ;;  %v4593_v32 = vld [vmem:[#allocation5] sm:$0xff] }
 0x541   :  { %v5949_v21 = vpop.eup %5948  ;;  %vm4667_vm15 = vcmp.eq.s32.totalorder %v7868_v4, %v4641_v30 }
 0x542   :  { %v5951_v53 = vpop.eup %5950  ;;  %v4683_v62 = vsel %vm4667_vm15, %v7674_v55, 0.0 }
 0x543   :  { %4482 = vadd.xlane.f32.xlu1 %v5947_v19  ;;  %v5953_v40 = vpop.eup %5952 }
 0x544   :  { %4707 = vadd.xlane.f32.xlu0 %v4682_v27  ;;  %v5955_v12 = vpop.eup %5954  ;;  %v4647_v42 = vpop.permute.xlu1 %4646 }
 0x545   :  { %v5957_v34 = vpop.eup %5956  ;;  %vm4669_vm0 = vcmp.eq.s32.totalorder %v7868_v4, %v4647_v42 }
 0x546   :  { %v4692_v57 = vpop.xlane.xlu0 %4691  ;;  %v4685_v60 = vsel %vm4669_vm0, %v7684_v52, 0.0 }
 0x547   :  { %v4722_v2 = vadd.f32 %v4692_v57, %v4594_v47  ;;  %4488 = vadd.xlane.f32.xlu1 %v5949_v21 }
 0x548   :  { %4711 = vadd.xlane.f32.xlu0 %v4684_v24  ;;  %v4653_v17 = vpop.permute.xlu1 %4652 }
 0x549   :  { %4738 = vst.msk [vmem:[#allocation5 + $0x8] sm:$0xff] %vm2140_vm1, %v4722_v2  ;;  %vm4671_vm2 = vcmp.eq.s32.totalorder %v7868_v4, %v4653_v17 }
 0x54a   :  { %v4696_v31 = vpop.xlane.xlu0 %4695  ;;  %v4687_v29 = vsel %vm4671_vm2, %v7694_v7, 0.0 }
 0x54b   :  { %v4724_v54 = vadd.f32 %v4696_v31, %v4596_v18  ;;  %4492 = vadd.xlane.f32.xlu1 %v5951_v53 }
 0x54c   :  { %4715 = vadd.xlane.f32.xlu0 %v4686_v5 }
 0x54d   :  { %4740 = vst.msk [vmem:[#allocation5 + $0x18] sm:$0xff] %vm2140_vm1, %v4724_v54 }
 0x54f   :  { %4496 = vadd.xlane.f32.xlu1 %v5953_v40 }
 0x550   :  { %4719 = vadd.xlane.f32.xlu0 %v4688_v3 }
 0x553   :  { %4500 = vadd.xlane.f32.xlu1 %v5955_v12 }
 0x557   :  { %4504 = vadd.xlane.f32.xlu1 %v5957_v34 }
 0x55b   :  { %4705 = vadd.xlane.f32.xlu1 %v4681_v36 }
 0x55f   :  { %4709 = vadd.xlane.f32.xlu1 %v4683_v62 }
 0x563   :  { %4713 = vadd.xlane.f32.xlu1 %v4685_v60 }
 0x567   :  { %4717 = vadd.xlane.f32.xlu1 %v4687_v29 }
 0x57a   :  { %v4690_v44 = vpop.xlane.xlu1 %4689 }
 0x57b   :  { %v4721_v26 = vadd.f32 %v4690_v44, %v4593_v32 }
 0x57d   :  { %4737 = vst.msk [vmem:[#allocation5] sm:$0xff] %vm2140_vm1, %v4721_v26 }
 0x57e   :  { %v4694_v19 = vpop.xlane.xlu1 %4693 }
 0x57f   :  { %v4723_v55 = vadd.f32 %v4694_v19, %v4595_v1 }
 0x581   :  { %4739 = vst.msk [vmem:[#allocation5 + $0x10] sm:$0xff] %vm2140_vm1, %v4723_v55 }
 0x582   :  { %6209 = shalt.err (!%p6206_p12)
}
 0x583   :  { %s6210_s29 = scalar_lea.hbm %s8072_s8, 1024 }
 0x584   :  { %p6211_p13 = scmp.ne.s32.totalorder %s8072_s8, %s6210_s29  ;;  %p6214_p0 = scmp.lt.u32.totalorder %s6210_s29, %s8072_s8 }
 0x586   :  { %p6216_p1 = pnand %p6214_p0, %p6211_p13 }
 0x588   :  { %6219 = shalt.err (!%p6216_p1)
}
 0x589   :  { %4927 = dma.vmem_to_hbm [thread:$0]  %s4922_s27, 1024, %s8072_s8, [#allocation8], %s6257_s19, %s6257_s19, %s6258_s20   ;;  %v8082_v52 = vsub.f32 %v7707_v20, %v7712_v6  ;;  %v8083_v4 = vsub.f32 %v7727_v28, %v7730_v59  ;;  %v8084_v27 = vsub.f32 %v7742_v35, %v7752_v15  ;;  %v4598_v45 = vld [vmem:[#allocation5 + $0x28] sm:$0xff]  ;;  %v8085_v57 = vsub.f32 %v7749_v58, %v7759_v8  ;;  %v4600_v20 = vld [vmem:[#allocation5 + $0x38] sm:$0xff]  ;;  %v4316_v28 = vld [vmem:[#allocation4] sm:$0xff] }
 0x58a   :  { %v8086_v35 = vsub.f32 %v7769_v10, %v7779_v16  ;;  %v4318_v31 = vld [vmem:[#allocation4 + $0x10] sm:$0xff]  ;;  %v8087_v8 = vsub.f32 %v7789_v33, %v7799_v9  ;;  %v4320_v3 = vld [vmem:[#allocation4 + $0x20] sm:$0xff]  ;;  %v8088_v16 = vsub.f32 %v7809_v51, %v7819_v25  ;;  %v4321_v36 = vld [vmem:[#allocation4 + $0x28] sm:$0xff]  ;;  %v8089_v9 = vsub.f32 %v7829_v14, %v7839_v23  ;;  %s6274_s8 = smov [#allocation21]  }
 0x58b   :  { %v4284_v7 = vmul.f32 1.442695, %v8082_v52  ;;  %v4288_v11 = vmul.f32 1.442695, %v8083_v4  ;;  %v4292_v43 = vmul.f32 1.442695, %v8084_v27 }
 0x58c   :  { %v4294_v2 = vmul.f32 1.442695, %v8085_v57  ;;  %v4298_v15 = vmul.f32 1.442695, %v8086_v35  ;;  %v4302_v54 = vmul.f32 1.442695, %v8087_v8 }
 0x58d   :  { %5958 = vpow2.f32 %v4284_v7  ;;  %v4306_v12 = vmul.f32 1.442695, %v8088_v16  ;;  %v4310_v62 = vmul.f32 1.442695, %v8089_v9  ;;  %v4323_v25 = vld [vmem:[#allocation4 + $0x38] sm:$0xff]  ;;  %v4325_v55 = vld [vmem:[#allocation4 + $0x48] sm:$0xff] }
 0x58e   :  { %5960 = vpow2.f32 %v4288_v11  ;;  %v4327_v4 = vld [vmem:[#allocation4 + $0x58] sm:$0xff]  ;;  %v4761_v9 = vld [vmem:[#allocation3 + $0x28] sm:$0xff]  ;;  %s4933_s19 = sshll.u32 %s6274_s8, 4  ;;  %s4934_s19 = int_to_ptr.vmem [resolvable:$true] %s4933_s19 }
 0x58f   :  { %5962 = vpow2.f32 %v4292_v43  ;;  %s6220_s20 = scalar_lea.vmem %s4934_s19, 2048  ;;  %p6225_p3 = scmp.lt.s32.totalorder %s4934_s19, %s4934_s19 }
 0x590   :  { %5964 = vpow2.f32 %v4294_v2  ;;  %p6221_p2 = scmp.ne.s32.totalorder %s4934_s19, %s6220_s20  ;;  %p6226_p4 = scmp.lt.s32.totalorder %s6220_s20, %s6220_s20 }
 0x591   :  { %5966 = vpow2.f32 %v4298_v15 }
 0x592   :  { %5968 = vpow2.f32 %v4302_v54  ;;  %p6227_p5 = por %p6226_p4, %p6225_p3 }
 0x593   :  { %5970 = vpow2.f32 %v4306_v12  ;;  %v8091_v12 = vsub.f32 %v7857_v13, %v7860_v61 }
 0x594   :  { %p6228_p6 = pnand %p6227_p5, %p6221_p2 }
 0x595   :  { %v4700_v47 = vpop.xlane.xlu0 %4699 }
 0x596   :  { %v4726_v21 = vadd.f32 %v4700_v47, %v4598_v45  ;;  %v4756_v47 = vld [vmem:[#allocation3] sm:$0xff] }
 0x597   :  { %v5959_v6 = vpop.eup %5958 }
 0x598   :  { %4742 = vst.msk [vmem:[#allocation5 + $0x28] sm:$0xff] %vm2140_vm1, %v4726_v21  ;;  %v4332_v50 = vmul.f32 %v5959_v6, %v4316_v28  ;;  %v5961_v18 = vpop.eup %5960  ;;  %v4329_v6 = vld [vmem:[#allocation4 + $0x68] sm:$0xff]  ;;  %v4836_v28 = vld [vmem:[#allocation5] sm:$0xff] }
 0x599   :  { %v4704_v24 = vpop.xlane.xlu0 %4703  ;;  %v4334_v5 = vmul.f32 %v5961_v18, %v4318_v31  ;;  %v5963_v40 = vpop.eup %5962 }
 0x59a   :  { %v4728_v59 = vadd.f32 %v4704_v24, %v4600_v20  ;;  %v4336_v30 = vmul.f32 %v5963_v40, %v4320_v3  ;;  %v5965_v34 = vpop.eup %5964  ;;  %v8090_v40 = vsub.f32 %v7709_v0, %v7719_v49  ;;  %v4838_v3 = vld [vmem:[#allocation5 + $0x10] sm:$0xff]  ;;  %v8092_v0 = vsub.f32 %v7732_v46, %v7740_v41 }
 0x59b   :  { %v4337_v60 = vmul.f32 %v5965_v34, %v4321_v36  ;;  %v5967_v29 = vpop.eup %5966 }
 0x59c   :  { %4744 = vst.msk [vmem:[#allocation5 + $0x38] sm:$0xff] %vm2140_vm1, %v4728_v59  ;;  %v4339_v26 = vmul.f32 %v5967_v29, %v4323_v25  ;;  %v5969_v1 = vpop.eup %5968  ;;  %v4868_v59 = vld [vmem:[#allocation12] sm:$0xff]  ;;  %v4290_v49 = vmul.f32 1.442695, %v8092_v0  ;;  %v4873_v29 = vld [vmem:[#allocation12 + $0x28] sm:$0xff] }
 0x59d   :  { %v4477_v53 = vpop.xlane.xlu0 %4476  ;;  %v4341_v23 = vmul.f32 %v5969_v1, %v4325_v55  ;;  %v5971_v52 = vpop.eup %5970  ;;  %v8100_v0 = vld [vmem:[#allocation33_spill] sm:$0xff] }
 0x59e   :  { %v4508_v58 = vadd.f32 %v4477_v53, %v4332_v50  ;;  %v4343_v21 = vmul.f32 %v5971_v52, %v4327_v4  ;;  %v4758_v53 = vld [vmem:[#allocation3 + $0x10] sm:$0xff] }
 0x5a0   :  { %4525 = vst.msk [vmem:[#allocation4] sm:$0xff] %vm2140_vm1, %v4508_v58 }
 0x5a1   :  { %v4481_v56 = vpop.xlane.xlu0 %4480 }
 0x5a2   :  { %v4510_v10 = vadd.f32 %v4481_v56, %v4334_v5  ;;  %v4286_v56 = vmul.f32 1.442695, %v8090_v40 }
 0x5a3   :  { %v4843_v52 = vld [vmem:[#allocation5 + $0x38] sm:$0xff] }
 0x5a4   :  { %4527 = vst.msk [vmem:[#allocation4 + $0x10] sm:$0xff] %vm2140_vm1, %v4510_v10  ;;  %v4870_v10 = vld [vmem:[#allocation12 + $0x10] sm:$0xff] }
 0x5a5   :  { %v4485_v42 = vpop.xlane.xlu0 %4484 }
 0x5a6   :  { %v4512_v33 = vadd.f32 %v4485_v42, %v4336_v30  ;;  %v4314_v30 = vmul.f32 1.442695, %v8091_v12  ;;  %v4322_v12 = vld [vmem:[#allocation4 + $0x30] sm:$0xff] }
 0x5a7   :  { %v4772_v17 = vld [vmem:[#allocation4] sm:$0xff] }
 0x5a8   :  { %5972 = vlog2.f32 %v4772_v17  ;;  %4529 = vst.msk [vmem:[#allocation4 + $0x20] sm:$0xff] %vm2140_vm1, %v4512_v33 }
 0x5a9   :  { %v4487_v51 = vpop.xlane.xlu0 %4486  ;;  %5974 = vpow2.f32 %v4310_v62  ;;  %v8093_v62 = vsub.f32 %v7767_v39, %v7772_v22  ;;  %v4599_v22 = vld [vmem:[#allocation5 + $0x30] sm:$0xff] }
 0x5aa   :  { %v4513_v32 = vadd.f32 %v4487_v51, %v4337_v60  ;;  %v4841_v60 = vld [vmem:[#allocation5 + $0x28] sm:$0xff]  ;;  %v4597_v51 = vld [vmem:[#allocation5 + $0x20] sm:$0xff] }
 0x5ab   :  { %v4774_v44 = vld [vmem:[#allocation4 + $0x10] sm:$0xff]  ;;  %v4296_v17 = vmul.f32 1.442695, %v8093_v62  ;;  %v4604_v62 = vld [vmem:[#allocation5 + $0x58] sm:$0xff] }
 0x5ac   :  { %5976 = vlog2.f32 %v4774_v44  ;;  %4530 = vst.msk [vmem:[#allocation4 + $0x28] sm:$0xff] %vm2140_vm1, %v4513_v32  ;;  %v4763_v44 = vld [vmem:[#allocation3 + $0x38] sm:$0xff] }
 0x5ad   :  { %v4491_v19 = vpop.xlane.xlu0 %4490 }
 0x5ae   :  { %v4515_v14 = vadd.f32 %v4491_v19, %v4339_v26  ;;  %v4875_v26 = vld [vmem:[#allocation12 + $0x38] sm:$0xff] }
 0x5af   :  { %v4776_v54 = vld [vmem:[#allocation4 + $0x20] sm:$0xff] }
 0x5b0   :  { %4532 = vst.msk [vmem:[#allocation4 + $0x38] sm:$0xff] %vm2140_vm1, %v4515_v14  ;;  %v8094_v14 = vsub.f32 %v7787_v48, %v7792_v63  ;;  %v8095_v48 = vsub.f32 %v7807_v37, %v7812_v38 }
 0x5b1   :  { %v4495_v7 = vpop.xlane.xlu0 %4494 }
 0x5b2   :  { %v5973_v11 = vpop.eup %5972  ;;  %v4517_v27 = vadd.f32 %v4495_v7, %v4341_v23  ;;  %v4300_v23 = vmul.f32 1.442695, %v8094_v14  ;;  %v4304_v63 = vmul.f32 1.442695, %v8095_v48 }
 0x5b3   :  { %v4789_v43 = vmul.f32 0.6931472, %v5973_v11  ;;  %v4777_v45 = vld [vmem:[#allocation4 + $0x28] sm:$0xff]  ;;  %v5975_v57 = vpop.eup %5974 }
 0x5b4   :  { %5978 = vlog2.f32 %v4777_v45  ;;  %4534 = vst.msk [vmem:[#allocation4 + $0x48] sm:$0xff] %vm2140_vm1, %v4517_v27  ;;  %v4345_v31 = vmul.f32 %v5975_v57, %v4329_v6  ;;  %v4317_v27 = vld [vmem:[#allocation4 + $0x8] sm:$0xff]  ;;  %v4331_v57 = vld [vmem:[#allocation4 + $0x78] sm:$0xff] }
 0x5b5   :  { %v4820_v2 = vadd.f32 %v4789_v43, %v4756_v47  ;;  %v4499_v20 = vpop.xlane.xlu0 %4498 }
 0x5b6   :  { %v5977_v24 = vpop.eup %5976  ;;  %v4519_v35 = vadd.f32 %v4499_v20, %v4343_v21 }
 0x5b7   :  { %v4852_v15 = vsub.f32 %v4820_v2, %v4836_v28  ;;  %v4793_v50 = vmul.f32 0.6931472, %v5977_v24  ;;  %v4779_v18 = vld [vmem:[#allocation4 + $0x38] sm:$0xff]  ;;  %v4760_v24 = vld [vmem:[#allocation3 + $0x20] sm:$0xff] }
 0x5b8   :  { %5980 = vlog2.f32 %v4779_v18  ;;  %4536 = vst.msk [vmem:[#allocation4 + $0x58] sm:$0xff] %vm2140_vm1, %v4519_v35  ;;  %v4319_v35 = vld [vmem:[#allocation4 + $0x18] sm:$0xff] }
 0x5b9   :  { %v4884_v58 = vmul.f32 %v4868_v59, %v4852_v15  ;;  %v4822_v8 = vadd.f32 %v4793_v50, %v4758_v53  ;;  %v4503_v5 = vpop.xlane.xlu0 %4502  ;;  %5982 = vlog2.f32 %v4776_v54  ;;  %v8096_v53 = vld [vmem:[#allocation30_spill] sm:$0xff] }
 0x5ba   :  { %v4521_v16 = vadd.f32 %v4503_v5, %v4345_v31  ;;  %5984 = vpow2.f32 %v4286_v56  ;;  %v8097_v31 = vld [vmem:[#allocation31_spill] sm:$0xff] }
 0x5bb   :  { %4900 = vst.msk [vmem:[#allocation21] sm:$0xff] %vm2140_vm1, %v4884_v58  ;;  %v4854_v34 = vsub.f32 %v4822_v8, %v4838_v3  ;;  %5986 = vpow2.f32 %v4314_v30  ;;  %v4781_v39 = vld [vmem:[#allocation4 + $0x48] sm:$0xff]  ;;  %v8098_v37 = vsub.f32 %v8096_v53, %v8097_v31  ;;  %v4872_v8 = vld [vmem:[#allocation12 + $0x20] sm:$0xff]  ;;  %v4879_v53 = vld [vmem:[#allocation12 + $0x58] sm:$0xff] }
 0x5bc   :  { %4538 = vst.msk [vmem:[#allocation4 + $0x68] sm:$0xff] %vm2140_vm1, %v4521_v16  ;;  %5988 = vpow2.f32 %v4290_v49  ;;  %v4602_v3 = vld [vmem:[#allocation5 + $0x48] sm:$0xff] }
 0x5bd   :  { %v4886_v42 = vmul.f32 %v4870_v10, %v4854_v34  ;;  %5990 = vpow2.f32 %v4296_v17  ;;  %v4308_v38 = vmul.f32 1.442695, %v8098_v37 }
 0x5be   :  { %v5979_v36 = vpop.eup %5978  ;;  %5992 = vlog2.f32 %v4781_v39 }
 0x5bf   :  { %4902 = vst.msk [vmem:[#allocation21 + $0x10] sm:$0xff] %vm2140_vm1, %v4886_v42  ;;  %v4799_v33 = vmul.f32 0.6931472, %v5979_v36  ;;  %5994 = vpow2.f32 %v4300_v23  ;;  %v4783_v2 = vld [vmem:[#allocation4 + $0x58] sm:$0xff]  ;;  %v8099_v36 = vld [vmem:[#allocation32_spill] sm:$0xff]  ;;  %v4326_v23 = vld [vmem:[#allocation4 + $0x50] sm:$0xff] }
 0x5c0   :  { %5996 = vlog2.f32 %v4783_v2  ;;  %v8101_v49 = vsub.f32 %v8099_v36, %v8100_v0 }
 0x5c1   :  { %v4825_v61 = vadd.f32 %v4799_v33, %v4761_v9  ;;  %5998 = vpow2.f32 %v4304_v63 }
 0x5c2   :  { %v5981_v13 = vpop.eup %5980  ;;  %v4312_v33 = vmul.f32 1.442695, %v8101_v49 }
 0x5c3   :  { %v4857_v25 = vsub.f32 %v4825_v61, %v4841_v60  ;;  %v4803_v32 = vmul.f32 0.6931472, %v5981_v13  ;;  %v5983_v55 = vpop.eup %5982  ;;  %v4785_v58 = vld [vmem:[#allocation4 + $0x68] sm:$0xff] }
 0x5c4   :  { %v4698_v46 = vpop.xlane.xlu1 %4697  ;;  %v5985_v4 = vpop.eup %5984  ;;  %v4797_v47 = vmul.f32 0.6931472, %v5983_v55  ;;  %6000 = vlog2.f32 %v4785_v58 }
 0x5c5   :  { %v4889_v41 = vmul.f32 %v4873_v29, %v4857_v25  ;;  %v4827_v1 = vadd.f32 %v4803_v32, %v4763_v44  ;;  %v4725_v19 = vadd.f32 %v4698_v46, %v4597_v51  ;;  %v5987_v43 = vpop.eup %5986  ;;  %v4333_v20 = vmul.f32 %v5985_v4, %v4317_v27  ;;  %v4324_v29 = vld [vmem:[#allocation4 + $0x40] sm:$0xff] }
 0x5c6   :  { %v5989_v6 = vpop.eup %5988  ;;  %v4347_v59 = vmul.f32 %v5987_v43, %v4331_v57  ;;  %v4824_v15 = vadd.f32 %v4797_v47, %v4760_v24  ;;  %6002 = vpow2.f32 %v4308_v38  ;;  %v4608_v57 = vld [vmem:[#allocation5 + $0x78] sm:$0xff] }
 0x5c7   :  { %4905 = vst.msk [vmem:[#allocation21 + $0x28] sm:$0xff] %vm2140_vm1, %v4889_v41  ;;  %v4859_v7 = vsub.f32 %v4827_v1, %v4843_v52  ;;  %4741 = vst.msk [vmem:[#allocation5 + $0x20] sm:$0xff] %vm2140_vm1, %v4725_v19  ;;  %v4335_v56 = vmul.f32 %v5989_v6, %v4319_v35  ;;  %v5991_v10 = vpop.eup %5990  ;;  %6004 = vpow2.f32 %v4312_v33  ;;  %v4606_v19 = vld [vmem:[#allocation5 + $0x68] sm:$0xff]  ;;  %v4767_v6 = vld [vmem:[#allocation3 + $0x58] sm:$0xff] }
 0x5c8   :  { %v4702_v11 = vpop.xlane.xlu1 %4701  ;;  %v5993_v61 = vpop.eup %5992  ;;  %v4338_v13 = vmul.f32 %v5991_v10, %v4322_v12  ;;  %v4765_v52 = vld [vmem:[#allocation3 + $0x48] sm:$0xff]  ;;  %v4771_v33 = vld [vmem:[#allocation3 + $0x78] sm:$0xff] }
 0x5c9   :  { %v4891_v45 = vmul.f32 %v4875_v26, %v4859_v7  ;;  %v4727_v21 = vadd.f32 %v4702_v11, %v4599_v22  ;;  %v5995_v17 = vpop.eup %5994  ;;  %v4807_v44 = vmul.f32 0.6931472, %v5993_v61 }
 0x5ca   :  { %v5997_v41 = vpop.eup %5996  ;;  %v4340_v1 = vmul.f32 %v5995_v17, %v4324_v29  ;;  %v4837_v17 = vld [vmem:[#allocation5 + $0x8] sm:$0xff] }
 0x5cb   :  { %4907 = vst.msk [vmem:[#allocation21 + $0x38] sm:$0xff] %vm2140_vm1, %v4891_v45  ;;  %4743 = vst.msk [vmem:[#allocation5 + $0x30] sm:$0xff] %vm2140_vm1, %v4727_v21  ;;  %v5999_v55 = vpop.eup %5998  ;;  %v4829_v4 = vadd.f32 %v4807_v44, %v4765_v52  ;;  %v4811_v11 = vmul.f32 0.6931472, %v5997_v41  ;;  %v4877_v45 = vld [vmem:[#allocation12 + $0x48] sm:$0xff]  ;;  %v4601_v41 = vld [vmem:[#allocation5 + $0x40] sm:$0xff] }
 0x5cc   :  { %v4479_v28 = vpop.xlane.xlu1 %4478  ;;  %v4342_v21 = vmul.f32 %v5999_v55, %v4326_v23 }
 0x5cd   :  { %v4509_v50 = vadd.f32 %v4479_v28, %v4333_v20  ;;  %v4507_v18 = vpop.xlane.xlu0 %4506  ;;  %v4328_v20 = vld [vmem:[#allocation4 + $0x60] sm:$0xff] }
 0x5ce   :  { %v4840_v54 = vld [vmem:[#allocation5 + $0x20] sm:$0xff]  ;;  %v4523_v5 = vadd.f32 %v4507_v18, %v4347_v59  ;;  %v6001_v43 = vpop.eup %6000 }
 0x5cf   :  { %v4856_v40 = vsub.f32 %v4824_v15, %v4840_v54  ;;  %4526 = vst.msk [vmem:[#allocation4 + $0x8] sm:$0xff] %vm2140_vm1, %v4509_v50  ;;  %v4831_v15 = vadd.f32 %v4811_v11, %v4767_v6  ;;  %v4815_v50 = vmul.f32 0.6931472, %v6001_v43  ;;  %v4330_v54 = vld [vmem:[#allocation4 + $0x70] sm:$0xff] }
 0x5d0   :  { %4540 = vst.msk [vmem:[#allocation4 + $0x78] sm:$0xff] %vm2140_vm1, %v4523_v5  ;;  %v4483_v16 = vpop.xlane.xlu1 %4482  ;;  %v6003_v48 = vpop.eup %6002  ;;  %v4874_v6 = vld [vmem:[#allocation12 + $0x30] sm:$0xff] }
 0x5d1   :  { %v4888_v30 = vmul.f32 %v4872_v8, %v4856_v40  ;;  %v4511_v34 = vadd.f32 %v4483_v16, %v4335_v56  ;;  %v4708_v42 = vpop.xlane.xlu0 %4707  ;;  %v4344_v37 = vmul.f32 %v6003_v48, %v4328_v20  ;;  %v6005_v38 = vpop.eup %6004  ;;  %v4769_v40 = vld [vmem:[#allocation3 + $0x68] sm:$0xff] }
 0x5d2   :  { %v4730_v9 = vadd.f32 %v4708_v42, %v4602_v3  ;;  %v4881_v42 = vld [vmem:[#allocation12 + $0x68] sm:$0xff]  ;;  %v4346_v49 = vmul.f32 %v6005_v38, %v4330_v54  ;;  %v4842_v20 = vld [vmem:[#allocation5 + $0x30] sm:$0xff] }
 0x5d3   :  { %4904 = vst.msk [vmem:[#allocation21 + $0x20] sm:$0xff] %vm2140_vm1, %v4888_v30  ;;  %4528 = vst.msk [vmem:[#allocation4 + $0x18] sm:$0xff] %vm2140_vm1, %v4511_v34  ;;  %v4833_v30 = vadd.f32 %v4815_v50, %v4769_v40  ;;  %v4757_v34 = vld [vmem:[#allocation3 + $0x8] sm:$0xff]  ;;  %v4764_v50 = vld [vmem:[#allocation3 + $0x40] sm:$0xff] }
 0x5d4   :  { %4746 = vst.msk [vmem:[#allocation5 + $0x48] sm:$0xff] %vm2140_vm1, %v4730_v9  ;;  %v4489_v60 = vpop.xlane.xlu1 %4488  ;;  %v4766_v40 = vld [vmem:[#allocation3 + $0x50] sm:$0xff] }
 0x5d5   :  { %v4514_v51 = vadd.f32 %v4489_v60, %v4338_v13  ;;  %v4712_v25 = vpop.xlane.xlu0 %4711  ;;  %v4869_v60 = vld [vmem:[#allocation12 + $0x8] sm:$0xff] }
 0x5d6   :  { %v4773_v32 = vld [vmem:[#allocation4 + $0x8] sm:$0xff]  ;;  %v4732_v46 = vadd.f32 %v4712_v25, %v4604_v62 }
 0x5d7   :  { %6006 = vlog2.f32 %v4773_v32  ;;  %v4787_v26 = vld [vmem:[#allocation4 + $0x78] sm:$0xff]  ;;  %4531 = vst.msk [vmem:[#allocation4 + $0x30] sm:$0xff] %vm2140_vm1, %v4514_v51 }
 0x5d8   :  { %6008 = vlog2.f32 %v4787_v26  ;;  %4748 = vst.msk [vmem:[#allocation5 + $0x58] sm:$0xff] %vm2140_vm1, %v4732_v46  ;;  %v4493_v14 = vpop.xlane.xlu1 %4492  ;;  %v4759_v26 = vld [vmem:[#allocation3 + $0x18] sm:$0xff] }
 0x5d9   :  { %v4516_v39 = vadd.f32 %v4493_v14, %v4340_v1  ;;  %v4716_v22 = vpop.xlane.xlu0 %4715  ;;  %v4883_v1 = vld [vmem:[#allocation12 + $0x78] sm:$0xff] }
 0x5da   :  { %v4775_v7 = vld [vmem:[#allocation4 + $0x18] sm:$0xff]  ;;  %v4734_v27 = vadd.f32 %v4716_v22, %v4606_v19 }
 0x5db   :  { %6010 = vlog2.f32 %v4775_v7  ;;  %v4845_v47 = vld [vmem:[#allocation5 + $0x48] sm:$0xff]  ;;  %4533 = vst.msk [vmem:[#allocation4 + $0x40] sm:$0xff] %vm2140_vm1, %v4516_v39  ;;  %v4839_v22 = vld [vmem:[#allocation5 + $0x18] sm:$0xff] }
 0x5dc   :  { %v4861_v63 = vsub.f32 %v4829_v4, %v4845_v47  ;;  %4750 = vst.msk [vmem:[#allocation5 + $0x68] sm:$0xff] %vm2140_vm1, %v4734_v27  ;;  %v4497_v2 = vpop.xlane.xlu1 %4496  ;;  %v4871_v7 = vld [vmem:[#allocation12 + $0x18] sm:$0xff]  ;;  %v4603_v47 = vld [vmem:[#allocation5 + $0x50] sm:$0xff] }
 0x5dd   :  { %v4518_v24 = vadd.f32 %v4497_v2, %v4342_v21  ;;  %v4720_v28 = vpop.xlane.xlu0 %4719  ;;  %v4762_v21 = vld [vmem:[#allocation3 + $0x30] sm:$0xff] }
 0x5de   :  { %v4893_v59 = vmul.f32 %v4877_v45, %v4861_v63  ;;  %v4778_v35 = vld [vmem:[#allocation4 + $0x30] sm:$0xff]  ;;  %v4736_v18 = vadd.f32 %v4720_v28, %v4608_v57 }
 0x5df   :  { %6012 = vlog2.f32 %v4778_v35  ;;  %v4847_v31 = vld [vmem:[#allocation5 + $0x58] sm:$0xff]  ;;  %4535 = vst.msk [vmem:[#allocation4 + $0x50] sm:$0xff] %vm2140_vm1, %v4518_v24 }
 0x5e0   :  { %4909 = vst.msk [vmem:[#allocation21 + $0x48] sm:$0xff] %vm2140_vm1, %v4893_v59  ;;  %v4863_v58 = vsub.f32 %v4831_v15, %v4847_v31  ;;  %4752 = vst.msk [vmem:[#allocation5 + $0x78] sm:$0xff] %vm2140_vm1, %v4736_v18  ;;  %v4501_v8 = vpop.xlane.xlu1 %4500  ;;  %v4605_v15 = vld [vmem:[#allocation5 + $0x60] sm:$0xff] }
 0x5e1   :  { %v6007_v5 = vpop.eup %6006  ;;  %v4520_v56 = vadd.f32 %v4501_v8, %v4344_v37 }
 0x5e2   :  { %v6009_v3 = vpop.eup %6008  ;;  %v4791_v10 = vmul.f32 0.6931472, %v6007_v5  ;;  %v4895_v16 = vmul.f32 %v4879_v53, %v4863_v58  ;;  %v4780_v12 = vld [vmem:[#allocation4 + $0x40] sm:$0xff]  ;;  %v4607_v5 = vld [vmem:[#allocation5 + $0x70] sm:$0xff] }
 0x5e3   :  { %6014 = vlog2.f32 %v4780_v12  ;;  %v4849_v36 = vld [vmem:[#allocation5 + $0x68] sm:$0xff]  ;;  %v4819_v0 = vmul.f32 0.6931472, %v6009_v3  ;;  %4537 = vst.msk [vmem:[#allocation4 + $0x60] sm:$0xff] %vm2140_vm1, %v4520_v56  ;;  %v4876_v58 = vld [vmem:[#allocation12 + $0x40] sm:$0xff] }
 0x5e4   :  { %v4821_v9 = vadd.f32 %v4791_v10, %v4757_v34  ;;  %4911 = vst.msk [vmem:[#allocation21 + $0x58] sm:$0xff] %vm2140_vm1, %v4895_v16  ;;  %v4865_v61 = vsub.f32 %v4833_v30, %v4849_v36  ;;  %v4505_v13 = vpop.xlane.xlu1 %4504  ;;  %v4878_v34 = vld [vmem:[#allocation12 + $0x50] sm:$0xff] }
 0x5e5   :  { %v6011_v62 = vpop.eup %6010  ;;  %v4835_v29 = vadd.f32 %v4819_v0, %v4771_v33  ;;  %v4522_v51 = vadd.f32 %v4505_v13, %v4346_v49  ;;  %v4768_v0 = vld [vmem:[#allocation3 + $0x60] sm:$0xff] }
 0x5e6   :  { %v4853_v25 = vsub.f32 %v4821_v9, %v4837_v17  ;;  %v4795_v32 = vmul.f32 0.6931472, %v6011_v62  ;;  %v4897_v44 = vmul.f32 %v4881_v42, %v4865_v61  ;;  %v4782_v46 = vld [vmem:[#allocation4 + $0x50] sm:$0xff]  ;;  %v4880_v13 = vld [vmem:[#allocation12 + $0x60] sm:$0xff] }
 0x5e7   :  { %6016 = vlog2.f32 %v4782_v46  ;;  %v4851_v19 = vld [vmem:[#allocation5 + $0x78] sm:$0xff]  ;;  %4539 = vst.msk [vmem:[#allocation4 + $0x70] sm:$0xff] %vm2140_vm1, %v4522_v51 }
 0x5e8   :  { %v4885_v55 = vmul.f32 %v4869_v60, %v4853_v25  ;;  %v4823_v14 = vadd.f32 %v4795_v32, %v4759_v26  ;;  %4913 = vst.msk [vmem:[#allocation21 + $0x68] sm:$0xff] %vm2140_vm1, %v4897_v44  ;;  %v4867_v23 = vsub.f32 %v4835_v29, %v4851_v19  ;;  %v4706_v52 = vpop.xlane.xlu1 %4705  ;;  %v4770_v60 = vld [vmem:[#allocation3 + $0x70] sm:$0xff] }
 0x5e9   :  { %v6013_v39 = vpop.eup %6012  ;;  %v4729_v4 = vadd.f32 %v4706_v52, %v4601_v41  ;;  %v4882_v32 = vld [vmem:[#allocation12 + $0x70] sm:$0xff] }
 0x5ea   :  { %4901 = vst.msk [vmem:[#allocation21 + $0x8] sm:$0xff] %vm2140_vm1, %v4885_v55  ;;  %v4855_v11 = vsub.f32 %v4823_v14, %v4839_v22  ;;  %v4801_v27 = vmul.f32 0.6931472, %v6013_v39  ;;  %v4899_v43 = vmul.f32 %v4883_v1, %v4867_v23  ;;  %v4784_v45 = vld [vmem:[#allocation4 + $0x60] sm:$0xff] }
 0x5eb   :  { %6018 = vlog2.f32 %v4784_v45  ;;  %4745 = vst.msk [vmem:[#allocation5 + $0x40] sm:$0xff] %vm2140_vm1, %v4729_v4 }
 0x5ec   :  { %v4887_v57 = vmul.f32 %v4871_v7, %v4855_v11  ;;  %v4826_v48 = vadd.f32 %v4801_v27, %v4762_v21  ;;  %4915 = vst.msk [vmem:[#allocation21 + $0x78] sm:$0xff] %vm2140_vm1, %v4899_v43  ;;  %v4710_v63 = vpop.xlane.xlu1 %4709 }
 0x5ed   :  { %v6015_v2 = vpop.eup %6014  ;;  %v4731_v24 = vadd.f32 %v4710_v63, %v4603_v47 }
 0x5ee   :  { %4903 = vst.msk [vmem:[#allocation21 + $0x18] sm:$0xff] %vm2140_vm1, %v4887_v57  ;;  %v4858_v28 = vsub.f32 %v4826_v48, %v4842_v20  ;;  %v4786_v59 = vld [vmem:[#allocation4 + $0x70] sm:$0xff]  ;;  %v4805_v35 = vmul.f32 0.6931472, %v6015_v2 }
 0x5ef   :  { %6020 = vlog2.f32 %v4786_v59  ;;  %4747 = vst.msk [vmem:[#allocation5 + $0x50] sm:$0xff] %vm2140_vm1, %v4731_v24 }
 0x5f0   :  { %v4890_v18 = vmul.f32 %v4874_v6, %v4858_v28  ;;  %v4828_v53 = vadd.f32 %v4805_v35, %v4764_v50  ;;  %v4714_v31 = vpop.xlane.xlu1 %4713 }
 0x5f1   :  { %v6017_v37 = vpop.eup %6016  ;;  %v4733_v38 = vadd.f32 %v4714_v31, %v4605_v15 }
 0x5f2   :  { %4906 = vst.msk [vmem:[#allocation21 + $0x30] sm:$0xff] %vm2140_vm1, %v4890_v18  ;;  %v4844_v8 = vld [vmem:[#allocation5 + $0x40] sm:$0xff]  ;;  %v4809_v54 = vmul.f32 0.6931472, %v6017_v37 }
 0x5f3   :  { %v4860_v56 = vsub.f32 %v4828_v53, %v4844_v8  ;;  %4749 = vst.msk [vmem:[#allocation5 + $0x60] sm:$0xff] %vm2140_vm1, %v4733_v38 }
 0x5f4   :  { %v4830_v3 = vadd.f32 %v4809_v54, %v4766_v40  ;;  %v4718_v10 = vpop.xlane.xlu1 %4717 }
 0x5f5   :  { %v6019_v16 = vpop.eup %6018  ;;  %v4892_v12 = vmul.f32 %v4876_v58, %v4860_v56  ;;  %v4735_v30 = vadd.f32 %v4718_v10, %v4607_v5 }
 0x5f6   :  { %v4846_v42 = vld [vmem:[#allocation5 + $0x50] sm:$0xff]  ;;  %v4813_v36 = vmul.f32 0.6931472, %v6019_v16 }
 0x5f7   :  { %4908 = vst.msk [vmem:[#allocation21 + $0x40] sm:$0xff] %vm2140_vm1, %v4892_v12  ;;  %v4862_v49 = vsub.f32 %v4830_v3, %v4846_v42  ;;  %4751 = vst.msk [vmem:[#allocation5 + $0x70] sm:$0xff] %vm2140_vm1, %v4735_v30 }
 0x5f8   :  { %v4832_v33 = vadd.f32 %v4813_v36, %v4768_v0 }
 0x5f9   :  { %v6021_v9 = vpop.eup %6020  ;;  %v4894_v61 = vmul.f32 %v4878_v34, %v4862_v49 }
 0x5fa   :  { %v4848_v62 = vld [vmem:[#allocation5 + $0x60] sm:$0xff]  ;;  %v4817_v17 = vmul.f32 0.6931472, %v6021_v9 }
 0x5fb   :  { %4910 = vst.msk [vmem:[#allocation21 + $0x50] sm:$0xff] %vm2140_vm1, %v4894_v61  ;;  %v4864_v29 = vsub.f32 %v4832_v33, %v4848_v62 }
 0x5fc   :  { %v4834_v51 = vadd.f32 %v4817_v17, %v4770_v60 }
 0x5fd   :  { %v4896_v25 = vmul.f32 %v4880_v13, %v4864_v29 }
 0x5fe   :  { %v4850_v44 = vld [vmem:[#allocation5 + $0x70] sm:$0xff] }
 0x5ff   :  { %4912 = vst.msk [vmem:[#allocation21 + $0x60] sm:$0xff] %vm2140_vm1, %v4896_v25  ;;  %v4866_v46 = vsub.f32 %v4834_v51, %v4850_v44 }
 0x601   :  { %v4898_v41 = vmul.f32 %v4882_v32, %v4866_v46 }
 0x603   :  { %4914 = vst.msk [vmem:[#allocation21 + $0x70] sm:$0xff] %vm2140_vm1, %v4898_v41 }
 0x604   :  { %6231 = shalt.err (!%p6228_p6)
}
 0x605   :  { %s6232_s17 = scalar_lea.hbm %s8073_s9, 2048 }
 0x606   :  { %p6233_p7 = scmp.ne.s32.totalorder %s8073_s9, %s6232_s17  ;;  %p6236_p8 = scmp.lt.u32.totalorder %s6232_s17, %s8073_s9 }
 0x608   :  { %p6238_p9 = pnand %p6236_p8, %p6233_p7 }
 0x60a   :  { %6241 = shalt.err (!%p6238_p9)
}
 0x60b   :  { %4939 = dma.vmem_to_hbm [thread:$0]  %s4934_s19, 2048, %s8073_s9, [#allocation22], %s6261_s10, %s6261_s10, %s6262_s14  }
 0x60c   :  { %6252 = dma.done.wait [#allocation8], 1024  }
 0x60d   :  { %6253 = vsyncadd [#allocation8], 4294966272 }
 0x60e   :  { %6254 = dma.done.wait [#allocation22], 2048  }
 0x60f   :  { %6255 = vsyncadd [#allocation22], 4294965248 }
 0x610   :  { %4946 = vsyncpa [#allocation7], 1 }
 0x611   :  { %4947 = vsyncpa [#allocation10], 1 }
 0x612   :  { %4948 = vsyncpa [#allocation13], 1 }
 0x613   :  { %4949 = vsyncpa [#allocation16], 1 }
 0x614   :  { %4950 = vsyncpa [#allocation19], 1 }
 0x615   :  { %4951 = vsyncpa [#allocation8], 1 }
 0x616   :  { %4952 = vsyncpa [#allocation22], 1 }

</bundles_post_ra>
